<compile_context>
chip_gen: v7x
topology: tpu7x:2x2x1
jax: 0.10.0
libtpu: 0.0.40
codegen_flags: <defaults>
</compile_context>

<pallas_src>
import numpy as np
import jax
import jax.numpy as jnp
from jax import lax
from jax.experimental import pallas as pl
from jax.experimental.pallas import tpu as pltpu


_SQRT1_2 = np.float32(0.7071067811865476)


def _gelu(x):
    # exact (erf-based) GELU, matching nn.GELU() default
    return 0.5 * x * (1.0 + lax.erf(x * _SQRT1_2))


# ============================================================================
# Fused decoder-block kernel (one grid step per batch element)
# ============================================================================

def _refl_conv3x3(x_bf16, shift_ref, w9_ref, b_ref):
    """Reflection-padded 3x3 conv + bias + GELU on a lane-dense (Cin, P) slab.

    Nine accumulating taps; the reflected spatial shift is x @ S_k with a 0/1
    selection matrix (exact in bf16), then a (Cout, Cin) weight matmul.
    """
    cout = w9_ref.shape[1]
    P = x_bf16.shape[1]
    acc = jnp.zeros((cout, P), jnp.float32)
    for k in range(9):                                           # static unroll
        xk = jnp.dot(x_bf16, shift_ref[k],
                     preferred_element_type=jnp.float32)         # (Cin, P), exact shift
        acc = acc + jnp.dot(w9_ref[k], xk.astype(jnp.bfloat16),
                            preferred_element_type=jnp.float32)  # (Cout, P)
    return _gelu(acc + b_ref[...])


def sc_decoder_kernel(x_ref, skip_ref, ut_ref, shift_ref,
                      wcu_ref, bcu_ref,
                      rwu_ref, rws_ref, rb_ref,
                      w1t_ref, b1_ref, w2_ref, b2_ref,
                      kavg_ref, kmax_ref, sgb_ref, fw_ref,
                      wf1_ref, bf1_ref, wf2_ref, bf2_ref,
                      out_ref):
    f32, bf16 = jnp.float32, jnp.bfloat16

    # ---- 1) bilinear 2x upsample as one matmul (Cin, P1) @ (P1, P2) ----
    xu = jnp.dot(x_ref[...], ut_ref[...], preferred_element_type=f32)         # (Cin, P2)

    # ---- 2) conv_up: reflection-padded 3x3 conv + GELU (in-kernel taps) ----
    xu = _refl_conv3x3(xu.astype(bf16), shift_ref, wcu_ref, bcu_ref)          # (Cin, P2)

    # ---- 3+4) concat-free refine 1x1 + GELU ----
    x = _gelu(jnp.dot(rwu_ref[...], xu.astype(bf16), preferred_element_type=f32)
              + jnp.dot(rws_ref[...], skip_ref[...], preferred_element_type=f32)
              + rb_ref[...])                                                  # (Ct, P2)

    # ---- 5) SCAttention ----
    # channel gate on the VPU (avoid N=1 / M=1 MXU round trips on the gate path)
    pooled = jnp.mean(x, axis=1, keepdims=True)                               # (Ct, 1)
    hid = _gelu(jnp.sum(w1t_ref[...] * pooled, axis=0, keepdims=True)
                + b1_ref[...])                                                # (1, Ch)
    c_att = jax.nn.sigmoid(jnp.sum(w2_ref[...] * hid, axis=1, keepdims=True)
                           + b2_ref[...])                                     # (Ct, 1)

    # spatial gate: 7x7 conv of [mean_c, max_c] as two lane-dense (1,P)@(P,P) matmuls
    avg_row = jnp.mean(x, axis=0, keepdims=True)                              # (1, P2)
    max_row = jnp.max(x, axis=0, keepdims=True)                               # (1, P2)
    s_row = (jnp.dot(avg_row.astype(bf16), kavg_ref[...], preferred_element_type=f32)
             + jnp.dot(max_row.astype(bf16), kmax_ref[...], preferred_element_type=f32)
             + sgb_ref[0, 0])
    s_att = jax.nn.sigmoid(s_row)                                             # (1, P2)

    # fused gate application + fuse 1x1 conv:  x*c_att + x*s_att == x*(c_att + s_att)
    gated = x * (c_att + s_att)                                               # (Ct, P2)
    att = jnp.dot(fw_ref[...], gated.astype(bf16), preferred_element_type=f32)

    # ---- 6) conv_final: two reflection-padded 3x3 convs + GELU ----
    y = _refl_conv3x3(att.astype(bf16), shift_ref, wf1_ref, bf1_ref)
    y = _refl_conv3x3(y.astype(bf16), shift_ref, wf2_ref, bf2_ref)
    out_ref[...] = y.astype(out_ref.dtype)


# ============================================================================
# pallas_call wrapper
# ============================================================================

def _full_spec(arr):
    zeros = (0,) * arr.ndim
    return pl.BlockSpec(arr.shape, lambda b, _z=zeros: _z)


def sc_decoder_block_forward(x, skip, p):
    B, Cin, H, W = x.shape
    H2, W2 = 2 * H, 2 * W
    P1, P2 = H * W, H2 * W2
    Cskip = skip.shape[1]
    out_ch = p["wf29"].shape[1]

    # NCHW -> lane-dense (C, P) is a pure reshape (no transpose through HBM);
    # bf16 inputs: they are MXU operands only.
    x_cp = x.reshape(B, Cin, P1).astype(jnp.bfloat16)
    skip_cp = skip.reshape(B, Cskip, P2).astype(jnp.bfloat16)

    out = pl.pallas_call(
        sc_decoder_kernel,
        out_shape=jax.ShapeDtypeStruct((B, out_ch, P2), jnp.float32),
        grid=(B,),
        in_specs=[
            pl.BlockSpec((None, Cin, P1), lambda b: (b, 0, 0)),    # x (one batch/step)
            pl.BlockSpec((None, Cskip, P2), lambda b: (b, 0, 0)),  # skip
            _full_spec(p["ut"]),                                   # bilinear upsample matrix
            _full_spec(p["shift"]),                                # 9 refl-shift matrices
            _full_spec(p["wcu9"]), _full_spec(p["bcu"]),           # conv_up taps + bias
            _full_spec(p["rwu"]), _full_spec(p["rws"]), _full_spec(p["rb"]),  # refine 1x1
            _full_spec(p["w1t"]), _full_spec(p["b1"]),             # channel gate conv1
            _full_spec(p["w2"]), _full_spec(p["b2"]),              # channel gate conv2
            _full_spec(p["kavg"]), _full_spec(p["kmax"]),          # spatial gate matrices
            pl.BlockSpec(memory_space=pltpu.MemorySpace.SMEM),     # spatial gate bias scalar
            _full_spec(p["fw"]),                                   # fuse 1x1
            _full_spec(p["wf19"]), _full_spec(p["bf1"]),           # conv_final #1
            _full_spec(p["wf29"]), _full_spec(p["bf2"]),           # conv_final #2
        ],
        out_specs=pl.BlockSpec((None, out_ch, P2), lambda b: (b, 0, 0)),
        compiler_params=pltpu.CompilerParams(
            dimension_semantics=("parallel",)),   # batch elems independent -> v7x megacore
    )(x_cp, skip_cp, p["ut"], p["shift"], p["wcu9"], p["bcu"],
      p["rwu"], p["rws"], p["rb"], p["w1t"], p["b1"], p["w2"], p["b2"],
      p["kavg"], p["kmax"], p["sgb"], p["fw"],
      p["wf19"], p["bf1"], p["wf29"], p["bf2"])

    return out.reshape(B, out_ch, H2, W2)


# ============================================================================
# Host-side weight / layout preprocessing (pure glue, runs once)
# ============================================================================

def bilinear_upsample_matrix(n_in):
    """(2n, n) bilinear 2x interpolation matrix (PyTorch align_corners=False)."""
    n_out = 2 * n_in
    M = np.zeros((n_out, n_in), np.float32)
    for j in range(n_out):
        src = max((j + 0.5) / 2.0 - 0.5, 0.0)
        i0 = min(int(np.floor(src)), n_in - 1)
        i1 = min(i0 + 1, n_in - 1)
        w = src - i0
        M[j, i0] += 1.0 - w
        M[j, i1] += w
    return M


def build_shift_matrices(H, W):
    """(9, P, P) selection matrices:  (x @ S[k])[:, p(h,w)] = x[:, p(refl(h+dh), refl(w+dw))]."""
    def refl(i, n):
        if i < 0:
            return -i
        if i >= n:
            return 2 * n - 2 - i
        return i
    P = H * W
    S = np.zeros((9, P, P), np.float32)
    k = 0
    for dh in (-1, 0, 1):
        for dw in (-1, 0, 1):
            for h in range(H):
                hh = refl(h + dh, H)
                for w in range(W):
                    ww = refl(w + dw, W)
                    S[k, hh * W + ww, h * W + w] = 1.0
            k += 1
    return S


def build_spatial_matrices(sg_w, H, W):
    """Two (P, P) matrices so that  s = avg_row @ K_avg + max_row @ K_max  == 7x7 conv, zero pad 3."""
    sg = np.asarray(sg_w, dtype=np.float32)                # (1, 2, 7, 7)
    P = H * W
    K = np.zeros((2, P, P), np.float32)
    for c in range(2):
        for h in range(H):
            for w in range(W):
                p = h * W + w
                for kh in range(7):
                    for kw in range(7):
                        hh, ww = h + kh - 3, w + kw - 3
                        if 0 <= hh < H and 0 <= ww < W:
                            K[c, hh * W + ww, p] += sg[0, c, kh, kw]
    return K[0], K[1]


def pack_params(rp, H, W):
    """Repack PyTorch-layout weights into kernel-side arrays (bf16 MXU operands)."""
    H2, W2 = 2 * H, 2 * W
    ut = np.kron(bilinear_upsample_matrix(H), bilinear_upsample_matrix(W)).T  # (P1, P2)
    shift = build_shift_matrices(H2, W2)                                      # (9, P2, P2)
    kavg, kmax = build_spatial_matrices(rp["sg_w"], H2, W2)                   # (P2, P2) x2
    # Dense shift / spatial-gate matrices are O(P^2): fine here (~1.7 MiB bf16 total
    # at P2=256), but a scaling wall on v7x (64 MiB VMEM) for large images.
    # TODO(synk): pltpu.roll-based shifts + banded spatial gate for P2 >> 1024.
    assert (shift.size + kavg.size + kmax.size) * 2 < 8 * 1024 * 1024, \
        "dense shift/spatial matrices too large for VMEM"

    Cin = rp["w_cu"].shape[0]
    w_r = np.asarray(rp["w_r"], np.float32)

    def taps(w):  # (Cout, Cin, 3, 3) -> (9, Cout, Cin), tap k = (kh)*3 + (kw)
        w = np.asarray(w, np.float32)
        return np.transpose(w, (2, 3, 0, 1)).reshape(9, w.shape[0], w.shape[1])

    bf = jnp.bfloat16
    f32 = jnp.float32
    return {
        "ut": jnp.asarray(ut, bf),                 # bilinear weights exact in bf16
        "shift": jnp.asarray(shift, bf),           # 0/1 selection, exact in bf16
        "wcu9": jnp.asarray(taps(rp["w_cu"]), bf),
        "bcu": jnp.asarray(rp["b_cu"], f32).reshape(-1, 1),
        "rwu": jnp.asarray(w_r[:, :Cin], bf),      # refine 1x1, x_up half
        "rws": jnp.asarray(w_r[:, Cin:], bf),      # refine 1x1, skip half (no HBM concat)
        "rb": jnp.asarray(rp["b_r"], f32).reshape(-1, 1),
        "w1t": jnp.asarray(np.asarray(rp["c1_w"], np.float32).T, f32),   # (Ct, Ch) for VPU gate
        "b1": jnp.asarray(rp["c1_b"], f32).reshape(1, -1),
        "w2": jnp.asarray(rp["c2_w"], f32),                              # (Ct, Ch)
        "b2": jnp.asarray(rp["c2_b"], f32).reshape(-1, 1),
        "kavg": jnp.asarray(kavg, bf),
        "kmax": jnp.asarray(kmax, bf),
        "sgb": jnp.asarray(rp["sg_b"], f32).reshape(1, 1),
        "fw": jnp.asarray(rp["fuse_w"], bf),
        "wf19": jnp.asarray(taps(rp["w_f1"]), bf),
        "bf1": jnp.asarray(rp["b_f1"], f32).reshape(-1, 1),
        "wf29": jnp.asarray(taps(rp["w_f2"]), bf),
        "bf2": jnp.asarray(rp["b_f2"], f32).reshape(-1, 1),
    }


# ============================================================================
# Pure-JAX reference (mirrors the PyTorch forward in NCHW)
# ============================================================================

def _conv_nchw(x, w, pad):
    return lax.conv_general_dilated(x, w, (1, 1), [(pad, pad), (pad, pad)],
                                    dimension_numbers=("NCHW", "OIHW", "NCHW"))


def _reflect_conv3x3_ref(x, w, b):
    xp = jnp.pad(x, ((0, 0), (0, 0), (1, 1), (1, 1)), mode="reflect")
    return _conv_nchw(xp, w, 0) + b[None, :, None, None]


def upsample_bilinear_ref(x):
    B, C, H, W = x.shape
    def idx(n):
        j = jnp.arange(2 * n, dtype=jnp.float32)
        src = jnp.maximum((j + 0.5) / 2.0 - 0.5, 0.0)
        i0 = jnp.minimum(jnp.floor(src).astype(jnp.int32), n - 1)
        i1 = jnp.minimum(i0 + 1, n - 1)
        w = src - i0.astype(jnp.float32)
        return i0, i1, w
    h0, h1, wh = idx(H)
    w0, w1, ww = idx(W)
    xh = (x[:, :, h0, :] * (1.0 - wh)[None, None, :, None]
          + x[:, :, h1, :] * wh[None, None, :, None])
    return (xh[:, :, :, w0] * (1.0 - ww)[None, None, None, :]
            + xh[:, :, :, w1] * ww[None, None, None, :])


def ref_attention(x, rp):
    pooled = jnp.mean(x, axis=(2, 3))
    h = _gelu(pooled @ rp["c1_w"].T + rp["c1_b"])
    c_att = jax.nn.sigmoid(h @ rp["c2_w"].T + rp["c2_b"])
    x_ca = x * c_att[:, :, None, None]
    avg = jnp.mean(x, axis=1, keepdims=True)
    mx = jnp.max(x, axis=1, keepdims=True)
    s = _conv_nchw(jnp.concatenate([avg, mx], axis=1), rp["sg_w"], 3)
    s = s + rp["sg_b"].reshape(1, 1, 1, 1)
    x_sa = x * jax.nn.sigmoid(s)
    return _conv_nchw(x_ca + x_sa, rp["fuse_w"][:, :, None, None], 0)


def ref_forward(x, skip, rp):
    x_up = upsample_bilinear_ref(x)
    x_up = _gelu(_reflect_conv3x3_ref(x_up, rp["w_cu"], rp["b_cu"]))
    cat = jnp.concatenate([x_up, skip], axis=1)
    refined = _gelu(_conv_nchw(cat, rp["w_r"][:, :, None, None], 0)
                    + rp["b_r"][None, :, None, None])
    att = ref_attention(refined, rp)
    out = _gelu(_reflect_conv3x3_ref(att, rp["w_f1"], rp["b_f1"]))
    out = _gelu(_reflect_conv3x3_ref(out, rp["w_f2"], rp["b_f2"]))
    return out


if __name__ == "__main__":
    B = 2
    in_ch, skip_ch, out_ch = 32, 32, 32
    H = W = 8                          # low-res input; decoder upsamples to 16x16
    reduction = 8
    Ct = in_ch + skip_ch               # 64
    Ch = Ct // reduction               # 8
    H2, W2 = 2 * H, 2 * W
    P2 = H2 * W2                       # 256 (lane-dense: two full lanes)

    key = jax.random.PRNGKey(0)
    ks = jax.random.split(key, 17)
    s = 0.1
    nrm = jax.random.normal
    rp = {
        "w_cu": s * nrm(ks[0], (in_ch, in_ch, 3, 3), jnp.float32),
        "b_cu": s * nrm(ks[1], (in_ch,), jnp.float32),
        "w_r":  s * nrm(ks[2], (Ct, Ct), jnp.float32),
        "b_r":  s * nrm(ks[3], (Ct,), jnp.float32),
        "c1_w": s * nrm(ks[4], (Ch, Ct), jnp.float32),
        "c1_b": s * nrm(ks[5], (Ch,), jnp.float32),
        "c2_w": s * nrm(ks[6], (Ct, Ch), jnp.float32),
        "c2_b": s * nrm(ks[7], (Ct,), jnp.float32),
        "sg_w": s * nrm(ks[8], (1, 2, 7, 7), jnp.float32),
        "sg_b": s * nrm(ks[9], (1,), jnp.float32),
        "fuse_w": s * nrm(ks[10], (Ct, Ct), jnp.float32),
        "w_f1": s * nrm(ks[11], (out_ch, Ct, 3, 3), jnp.float32),
        "b_f1": s * nrm(ks[12], (out_ch,), jnp.float32),
        "w_f2": s * nrm(ks[13], (out_ch, out_ch, 3, 3), jnp.float32),
        "b_f2": s * nrm(ks[14], (out_ch,), jnp.float32),
    }
    x = nrm(ks[15], (B, in_ch, H, W), jnp.float32)
    skip = nrm(ks[16], (B, skip_ch, H2, W2), jnp.float32)

    p = pack_params(rp, H, W)

    fwd = jax.jit(sc_decoder_block_forward)
    out = jax.block_until_ready(fwd(x, skip, p))
    assert out.shape == (B, out_ch, H2, W2), out.shape

    # end-to-end check against the pure-JAX reference (bf16 MXU operands with
    # f32 accumulation through ~6 matmul stages -> a few % relative error max)
    ref_out = ref_forward(x, skip, rp)
    err = float(jnp.max(jnp.abs(out - ref_out)))
    tol = 5e-2 * max(1.0, float(jnp.max(jnp.abs(ref_out))))
    assert err < tol, f"decoder block mismatch: max abs err {err} (tol {tol})"

    print("KERNEL_OK")
</pallas_src>

<mosaic_0001>
module attributes {stable_mosaic.version = 11 : i64} {
  func.func @sc_decoder_kernel(%arg0: i32, %arg1: memref<1x32x64xbf16, #tpu.memory_space<vmem>>, %arg2: memref<1x32x256xbf16, #tpu.memory_space<vmem>>, %arg3: memref<64x256xbf16, #tpu.memory_space<vmem>>, %arg4: memref<9x256x256xbf16, #tpu.memory_space<vmem>>, %arg5: memref<9x32x32xbf16, #tpu.memory_space<vmem>>, %arg6: memref<32x1xf32, #tpu.memory_space<vmem>>, %arg7: memref<64x32xbf16, #tpu.memory_space<vmem>>, %arg8: memref<64x32xbf16, #tpu.memory_space<vmem>>, %arg9: memref<64x1xf32, #tpu.memory_space<vmem>>, %arg10: memref<64x8xf32, #tpu.memory_space<vmem>>, %arg11: memref<1x8xf32, #tpu.memory_space<vmem>>, %arg12: memref<64x8xf32, #tpu.memory_space<vmem>>, %arg13: memref<64x1xf32, #tpu.memory_space<vmem>>, %arg14: memref<256x256xbf16, #tpu.memory_space<vmem>>, %arg15: memref<256x256xbf16, #tpu.memory_space<vmem>>, %arg16: memref<1x1xf32, #tpu.memory_space<smem>>, %arg17: memref<64x64xbf16, #tpu.memory_space<vmem>>, %arg18: memref<9x32x64xbf16, #tpu.memory_space<vmem>>, %arg19: memref<32x1xf32, #tpu.memory_space<vmem>>, %arg20: memref<9x32x32xbf16, #tpu.memory_space<vmem>>, %arg21: memref<32x1xf32, #tpu.memory_space<vmem>>, %arg22: memref<1x32x256xf32, #tpu.memory_space<vmem>>) attributes {dimension_semantics = [#tpu.dimension_semantics<parallel>], iteration_bounds = array<i64: 2>, scalar_prefetch = 0 : i64, scratch_operands = 0 : i64, tpu.core_type = #tpu.core_type<tc>, window_params = [{transform_indices = @transform_0, window_bounds = array<i64: 1, 32, 64>}, {transform_indices = @transform_1, window_bounds = array<i64: 1, 32, 256>}, {pipeline_mode = #tpu.pipeline_mode<synchronous>, transform_indices = @transform_2, window_bounds = array<i64: 64, 256>}, {pipeline_mode = #tpu.pipeline_mode<synchronous>, transform_indices = @transform_3, window_bounds = array<i64: 9, 256, 256>}, {pipeline_mode = #tpu.pipeline_mode<synchronous>, transform_indices = @transform_4, window_bounds = array<i64: 9, 32, 32>}, {pipeline_mode = #tpu.pipeline_mode<synchronous>, transform_indices = @transform_5, window_bounds = array<i64: 32, 1>}, {pipeline_mode = #tpu.pipeline_mode<synchronous>, transform_indices = @transform_6, window_bounds = array<i64: 64, 32>}, {pipeline_mode = #tpu.pipeline_mode<synchronous>, transform_indices = @transform_7, window_bounds = array<i64: 64, 32>}, {pipeline_mode = #tpu.pipeline_mode<synchronous>, transform_indices = @transform_8, window_bounds = array<i64: 64, 1>}, {pipeline_mode = #tpu.pipeline_mode<synchronous>, transform_indices = @transform_9, window_bounds = array<i64: 64, 8>}, {pipeline_mode = #tpu.pipeline_mode<synchronous>, transform_indices = @transform_10, window_bounds = array<i64: 1, 8>}, {pipeline_mode = #tpu.pipeline_mode<synchronous>, transform_indices = @transform_11, window_bounds = array<i64: 64, 8>}, {pipeline_mode = #tpu.pipeline_mode<synchronous>, transform_indices = @transform_12, window_bounds = array<i64: 64, 1>}, {pipeline_mode = #tpu.pipeline_mode<synchronous>, transform_indices = @transform_13, window_bounds = array<i64: 256, 256>}, {pipeline_mode = #tpu.pipeline_mode<synchronous>, transform_indices = @transform_14, window_bounds = array<i64: 256, 256>}, {transform_indices = @transform_15, window_bounds = array<i64: 1, 1>}, {pipeline_mode = #tpu.pipeline_mode<synchronous>, transform_indices = @transform_16, window_bounds = array<i64: 64, 64>}, {pipeline_mode = #tpu.pipeline_mode<synchronous>, transform_indices = @transform_17, window_bounds = array<i64: 9, 32, 64>}, {pipeline_mode = #tpu.pipeline_mode<synchronous>, transform_indices = @transform_18, window_bounds = array<i64: 32, 1>}, {pipeline_mode = #tpu.pipeline_mode<synchronous>, transform_indices = @transform_19, window_bounds = array<i64: 9, 32, 32>}, {pipeline_mode = #tpu.pipeline_mode<synchronous>, transform_indices = @transform_20, window_bounds = array<i64: 32, 1>}, {transform_indices = @transform_21, window_bounds = array<i64: 1, 32, 256>}]} {
    %c0 = arith.constant 0 : index
    %c0_0 = arith.constant 0 : index
    %c0_1 = arith.constant 0 : index
    %0 = vector.load %arg1[%c0, %c0_0, %c0_1] : memref<1x32x64xbf16, #tpu.memory_space<vmem>>, vector<1x32x64xbf16>
    %1 = vector.shape_cast %0 : vector<1x32x64xbf16> to vector<32x64xbf16>
    %c0_2 = arith.constant 0 : index
    %c0_3 = arith.constant 0 : index
    %2 = vector.load %arg3[%c0_2, %c0_3] : memref<64x256xbf16, #tpu.memory_space<vmem>>, vector<64x256xbf16>
    %cst = arith.constant dense<0.000000e+00> : vector<32x256xf32>
    %3 = tpu.matmul %1, %2, %cst {dimension_numbers = #tpu.dot_dimension_numbers<[1], [0], [0], [1], [0, 0, 1, 1], [], []>} : vector<32x64xbf16>, vector<64x256xbf16>, vector<32x256xf32> -> vector<32x256xf32>
    %4 = arith.truncf %3 : vector<32x256xf32> to vector<32x256xbf16>
    %cst_4 = arith.constant 0.000000e+00 : f32
    %5 = vector.broadcast %cst_4 : f32 to vector<32x256xf32>
    %c0_5 = arith.constant 0 : index
    %c0_6 = arith.constant 0 : index
    %c0_7 = arith.constant 0 : index
    %6 = vector.load %arg4[%c0_5, %c0_6, %c0_7] : memref<9x256x256xbf16, #tpu.memory_space<vmem>>, vector<1x256x256xbf16>
    %7 = vector.shape_cast %6 : vector<1x256x256xbf16> to vector<256x256xbf16>
    %cst_8 = arith.constant dense<0.000000e+00> : vector<32x256xf32>
    %8 = tpu.matmul %4, %7, %cst_8 {dimension_numbers = #tpu.dot_dimension_numbers<[1], [0], [0], [1], [0, 0, 1, 1], [], []>} : vector<32x256xbf16>, vector<256x256xbf16>, vector<32x256xf32> -> vector<32x256xf32>
    %c0_9 = arith.constant 0 : index
    %c0_10 = arith.constant 0 : index
    %c0_11 = arith.constant 0 : index
    %9 = vector.load %arg5[%c0_9, %c0_10, %c0_11] : memref<9x32x32xbf16, #tpu.memory_space<vmem>>, vector<1x32x32xbf16>
    %10 = vector.shape_cast %9 : vector<1x32x32xbf16> to vector<32x32xbf16>
    %11 = arith.truncf %8 : vector<32x256xf32> to vector<32x256xbf16>
    %cst_12 = arith.constant dense<0.000000e+00> : vector<32x256xf32>
    %12 = tpu.matmul %10, %11, %cst_12 {dimension_numbers = #tpu.dot_dimension_numbers<[1], [0], [0], [1], [0, 0, 1, 1], [], []>} : vector<32x32xbf16>, vector<32x256xbf16>, vector<32x256xf32> -> vector<32x256xf32>
    %13 = arith.addf %5, %12 : vector<32x256xf32>
    %c1 = arith.constant 1 : index
    %c0_13 = arith.constant 0 : index
    %c0_14 = arith.constant 0 : index
    %14 = vector.load %arg4[%c1, %c0_13, %c0_14] : memref<9x256x256xbf16, #tpu.memory_space<vmem>>, vector<1x256x256xbf16>
    %15 = vector.shape_cast %14 : vector<1x256x256xbf16> to vector<256x256xbf16>
    %cst_15 = arith.constant dense<0.000000e+00> : vector<32x256xf32>
    %16 = tpu.matmul %4, %15, %cst_15 {dimension_numbers = #tpu.dot_dimension_numbers<[1], [0], [0], [1], [0, 0, 1, 1], [], []>} : vector<32x256xbf16>, vector<256x256xbf16>, vector<32x256xf32> -> vector<32x256xf32>
    %c1_16 = arith.constant 1 : index
    %c0_17 = arith.constant 0 : index
    %c0_18 = arith.constant 0 : index
    %17 = vector.load %arg5[%c1_16, %c0_17, %c0_18] : memref<9x32x32xbf16, #tpu.memory_space<vmem>>, vector<1x32x32xbf16>
    %18 = vector.shape_cast %17 : vector<1x32x32xbf16> to vector<32x32xbf16>
    %19 = arith.truncf %16 : vector<32x256xf32> to vector<32x256xbf16>
    %cst_19 = arith.constant dense<0.000000e+00> : vector<32x256xf32>
    %20 = tpu.matmul %18, %19, %cst_19 {dimension_numbers = #tpu.dot_dimension_numbers<[1], [0], [0], [1], [0, 0, 1, 1], [], []>} : vector<32x32xbf16>, vector<32x256xbf16>, vector<32x256xf32> -> vector<32x256xf32>
    %21 = arith.addf %13, %20 : vector<32x256xf32>
    %c2 = arith.constant 2 : index
    %c0_20 = arith.constant 0 : index
    %c0_21 = arith.constant 0 : index
    %22 = vector.load %arg4[%c2, %c0_20, %c0_21] : memref<9x256x256xbf16, #tpu.memory_space<vmem>>, vector<1x256x256xbf16>
    %23 = vector.shape_cast %22 : vector<1x256x256xbf16> to vector<256x256xbf16>
    %cst_22 = arith.constant dense<0.000000e+00> : vector<32x256xf32>
    %24 = tpu.matmul %4, %23, %cst_22 {dimension_numbers = #tpu.dot_dimension_numbers<[1], [0], [0], [1], [0, 0, 1, 1], [], []>} : vector<32x256xbf16>, vector<256x256xbf16>, vector<32x256xf32> -> vector<32x256xf32>
    %c2_23 = arith.constant 2 : index
    %c0_24 = arith.constant 0 : index
    %c0_25 = arith.constant 0 : index
    %25 = vector.load %arg5[%c2_23, %c0_24, %c0_25] : memref<9x32x32xbf16, #tpu.memory_space<vmem>>, vector<1x32x32xbf16>
    %26 = vector.shape_cast %25 : vector<1x32x32xbf16> to vector<32x32xbf16>
    %27 = arith.truncf %24 : vector<32x256xf32> to vector<32x256xbf16>
    %cst_26 = arith.constant dense<0.000000e+00> : vector<32x256xf32>
    %28 = tpu.matmul %26, %27, %cst_26 {dimension_numbers = #tpu.dot_dimension_numbers<[1], [0], [0], [1], [0, 0, 1, 1], [], []>} : vector<32x32xbf16>, vector<32x256xbf16>, vector<32x256xf32> -> vector<32x256xf32>
    %29 = arith.addf %21, %28 : vector<32x256xf32>
    %c3 = arith.constant 3 : index
    %c0_27 = arith.constant 0 : index
    %c0_28 = arith.constant 0 : index
    %30 = vector.load %arg4[%c3, %c0_27, %c0_28] : memref<9x256x256xbf16, #tpu.memory_space<vmem>>, vector<1x256x256xbf16>
    %31 = vector.shape_cast %30 : vector<1x256x256xbf16> to vector<256x256xbf16>
    %cst_29 = arith.constant dense<0.000000e+00> : vector<32x256xf32>
    %32 = tpu.matmul %4, %31, %cst_29 {dimension_numbers = #tpu.dot_dimension_numbers<[1], [0], [0], [1], [0, 0, 1, 1], [], []>} : vector<32x256xbf16>, vector<256x256xbf16>, vector<32x256xf32> -> vector<32x256xf32>
    %c3_30 = arith.constant 3 : index
    %c0_31 = arith.constant 0 : index
    %c0_32 = arith.constant 0 : index
    %33 = vector.load %arg5[%c3_30, %c0_31, %c0_32] : memref<9x32x32xbf16, #tpu.memory_space<vmem>>, vector<1x32x32xbf16>
    %34 = vector.shape_cast %33 : vector<1x32x32xbf16> to vector<32x32xbf16>
    %35 = arith.truncf %32 : vector<32x256xf32> to vector<32x256xbf16>
    %cst_33 = arith.constant dense<0.000000e+00> : vector<32x256xf32>
    %36 = tpu.matmul %34, %35, %cst_33 {dimension_numbers = #tpu.dot_dimension_numbers<[1], [0], [0], [1], [0, 0, 1, 1], [], []>} : vector<32x32xbf16>, vector<32x256xbf16>, vector<32x256xf32> -> vector<32x256xf32>
    %37 = arith.addf %29, %36 : vector<32x256xf32>
    %c4 = arith.constant 4 : index
    %c0_34 = arith.constant 0 : index
    %c0_35 = arith.constant 0 : index
    %38 = vector.load %arg4[%c4, %c0_34, %c0_35] : memref<9x256x256xbf16, #tpu.memory_space<vmem>>, vector<1x256x256xbf16>
    %39 = vector.shape_cast %38 : vector<1x256x256xbf16> to vector<256x256xbf16>
    %cst_36 = arith.constant dense<0.000000e+00> : vector<32x256xf32>
    %40 = tpu.matmul %4, %39, %cst_36 {dimension_numbers = #tpu.dot_dimension_numbers<[1], [0], [0], [1], [0, 0, 1, 1], [], []>} : vector<32x256xbf16>, vector<256x256xbf16>, vector<32x256xf32> -> vector<32x256xf32>
    %c4_37 = arith.constant 4 : index
    %c0_38 = arith.constant 0 : index
    %c0_39 = arith.constant 0 : index
    %41 = vector.load %arg5[%c4_37, %c0_38, %c0_39] : memref<9x32x32xbf16, #tpu.memory_space<vmem>>, vector<1x32x32xbf16>
    %42 = vector.shape_cast %41 : vector<1x32x32xbf16> to vector<32x32xbf16>
    %43 = arith.truncf %40 : vector<32x256xf32> to vector<32x256xbf16>
    %cst_40 = arith.constant dense<0.000000e+00> : vector<32x256xf32>
    %44 = tpu.matmul %42, %43, %cst_40 {dimension_numbers = #tpu.dot_dimension_numbers<[1], [0], [0], [1], [0, 0, 1, 1], [], []>} : vector<32x32xbf16>, vector<32x256xbf16>, vector<32x256xf32> -> vector<32x256xf32>
    %45 = arith.addf %37, %44 : vector<32x256xf32>
    %c5 = arith.constant 5 : index
    %c0_41 = arith.constant 0 : index
    %c0_42 = arith.constant 0 : index
    %46 = vector.load %arg4[%c5, %c0_41, %c0_42] : memref<9x256x256xbf16, #tpu.memory_space<vmem>>, vector<1x256x256xbf16>
    %47 = vector.shape_cast %46 : vector<1x256x256xbf16> to vector<256x256xbf16>
    %cst_43 = arith.constant dense<0.000000e+00> : vector<32x256xf32>
    %48 = tpu.matmul %4, %47, %cst_43 {dimension_numbers = #tpu.dot_dimension_numbers<[1], [0], [0], [1], [0, 0, 1, 1], [], []>} : vector<32x256xbf16>, vector<256x256xbf16>, vector<32x256xf32> -> vector<32x256xf32>
    %c5_44 = arith.constant 5 : index
    %c0_45 = arith.constant 0 : index
    %c0_46 = arith.constant 0 : index
    %49 = vector.load %arg5[%c5_44, %c0_45, %c0_46] : memref<9x32x32xbf16, #tpu.memory_space<vmem>>, vector<1x32x32xbf16>
    %50 = vector.shape_cast %49 : vector<1x32x32xbf16> to vector<32x32xbf16>
    %51 = arith.truncf %48 : vector<32x256xf32> to vector<32x256xbf16>
    %cst_47 = arith.constant dense<0.000000e+00> : vector<32x256xf32>
    %52 = tpu.matmul %50, %51, %cst_47 {dimension_numbers = #tpu.dot_dimension_numbers<[1], [0], [0], [1], [0, 0, 1, 1], [], []>} : vector<32x32xbf16>, vector<32x256xbf16>, vector<32x256xf32> -> vector<32x256xf32>
    %53 = arith.addf %45, %52 : vector<32x256xf32>
    %c6 = arith.constant 6 : index
    %c0_48 = arith.constant 0 : index
    %c0_49 = arith.constant 0 : index
    %54 = vector.load %arg4[%c6, %c0_48, %c0_49] : memref<9x256x256xbf16, #tpu.memory_space<vmem>>, vector<1x256x256xbf16>
    %55 = vector.shape_cast %54 : vector<1x256x256xbf16> to vector<256x256xbf16>
    %cst_50 = arith.constant dense<0.000000e+00> : vector<32x256xf32>
    %56 = tpu.matmul %4, %55, %cst_50 {dimension_numbers = #tpu.dot_dimension_numbers<[1], [0], [0], [1], [0, 0, 1, 1], [], []>} : vector<32x256xbf16>, vector<256x256xbf16>, vector<32x256xf32> -> vector<32x256xf32>
    %c6_51 = arith.constant 6 : index
    %c0_52 = arith.constant 0 : index
    %c0_53 = arith.constant 0 : index
    %57 = vector.load %arg5[%c6_51, %c0_52, %c0_53] : memref<9x32x32xbf16, #tpu.memory_space<vmem>>, vector<1x32x32xbf16>
    %58 = vector.shape_cast %57 : vector<1x32x32xbf16> to vector<32x32xbf16>
    %59 = arith.truncf %56 : vector<32x256xf32> to vector<32x256xbf16>
    %cst_54 = arith.constant dense<0.000000e+00> : vector<32x256xf32>
    %60 = tpu.matmul %58, %59, %cst_54 {dimension_numbers = #tpu.dot_dimension_numbers<[1], [0], [0], [1], [0, 0, 1, 1], [], []>} : vector<32x32xbf16>, vector<32x256xbf16>, vector<32x256xf32> -> vector<32x256xf32>
    %61 = arith.addf %53, %60 : vector<32x256xf32>
    %c7 = arith.constant 7 : index
    %c0_55 = arith.constant 0 : index
    %c0_56 = arith.constant 0 : index
    %62 = vector.load %arg4[%c7, %c0_55, %c0_56] : memref<9x256x256xbf16, #tpu.memory_space<vmem>>, vector<1x256x256xbf16>
    %63 = vector.shape_cast %62 : vector<1x256x256xbf16> to vector<256x256xbf16>
    %cst_57 = arith.constant dense<0.000000e+00> : vector<32x256xf32>
    %64 = tpu.matmul %4, %63, %cst_57 {dimension_numbers = #tpu.dot_dimension_numbers<[1], [0], [0], [1], [0, 0, 1, 1], [], []>} : vector<32x256xbf16>, vector<256x256xbf16>, vector<32x256xf32> -> vector<32x256xf32>
    %c7_58 = arith.constant 7 : index
    %c0_59 = arith.constant 0 : index
    %c0_60 = arith.constant 0 : index
    %65 = vector.load %arg5[%c7_58, %c0_59, %c0_60] : memref<9x32x32xbf16, #tpu.memory_space<vmem>>, vector<1x32x32xbf16>
    %66 = vector.shape_cast %65 : vector<1x32x32xbf16> to vector<32x32xbf16>
    %67 = arith.truncf %64 : vector<32x256xf32> to vector<32x256xbf16>
    %cst_61 = arith.constant dense<0.000000e+00> : vector<32x256xf32>
    %68 = tpu.matmul %66, %67, %cst_61 {dimension_numbers = #tpu.dot_dimension_numbers<[1], [0], [0], [1], [0, 0, 1, 1], [], []>} : vector<32x32xbf16>, vector<32x256xbf16>, vector<32x256xf32> -> vector<32x256xf32>
    %69 = arith.addf %61, %68 : vector<32x256xf32>
    %c8 = arith.constant 8 : index
    %c0_62 = arith.constant 0 : index
    %c0_63 = arith.constant 0 : index
    %70 = vector.load %arg4[%c8, %c0_62, %c0_63] : memref<9x256x256xbf16, #tpu.memory_space<vmem>>, vector<1x256x256xbf16>
    %71 = vector.shape_cast %70 : vector<1x256x256xbf16> to vector<256x256xbf16>
    %cst_64 = arith.constant dense<0.000000e+00> : vector<32x256xf32>
    %72 = tpu.matmul %4, %71, %cst_64 {dimension_numbers = #tpu.dot_dimension_numbers<[1], [0], [0], [1], [0, 0, 1, 1], [], []>} : vector<32x256xbf16>, vector<256x256xbf16>, vector<32x256xf32> -> vector<32x256xf32>
    %c8_65 = arith.constant 8 : index
    %c0_66 = arith.constant 0 : index
    %c0_67 = arith.constant 0 : index
    %73 = vector.load %arg5[%c8_65, %c0_66, %c0_67] : memref<9x32x32xbf16, #tpu.memory_space<vmem>>, vector<1x32x32xbf16>
    %74 = vector.shape_cast %73 : vector<1x32x32xbf16> to vector<32x32xbf16>
    %75 = arith.truncf %72 : vector<32x256xf32> to vector<32x256xbf16>
    %cst_68 = arith.constant dense<0.000000e+00> : vector<32x256xf32>
    %76 = tpu.matmul %74, %75, %cst_68 {dimension_numbers = #tpu.dot_dimension_numbers<[1], [0], [0], [1], [0, 0, 1, 1], [], []>} : vector<32x32xbf16>, vector<32x256xbf16>, vector<32x256xf32> -> vector<32x256xf32>
    %77 = arith.addf %69, %76 : vector<32x256xf32>
    %c0_69 = arith.constant 0 : index
    %c0_70 = arith.constant 0 : index
    %78 = vector.load %arg6[%c0_69, %c0_70] : memref<32x1xf32, #tpu.memory_space<vmem>>, vector<32x1xf32>
    %79 = vector.broadcast %78 : vector<32x1xf32> to vector<32x256xf32>
    %80 = arith.addf %77, %79 : vector<32x256xf32>
    %cst_71 = arith.constant 5.000000e-01 : f32
    %81 = vector.broadcast %cst_71 : f32 to vector<32x256xf32>
    %82 = arith.mulf %81, %80 : vector<32x256xf32>
    %cst_72 = arith.constant 0.707106769 : f32
    %83 = vector.broadcast %cst_72 : f32 to vector<32x256xf32>
    %84 = arith.mulf %80, %83 : vector<32x256xf32>
    %85 = math.erf %84 : vector<32x256xf32>
    %cst_73 = arith.constant 1.000000e+00 : f32
    %86 = vector.broadcast %cst_73 : f32 to vector<32x256xf32>
    %87 = arith.addf %86, %85 : vector<32x256xf32>
    %88 = arith.mulf %82, %87 : vector<32x256xf32>
    %c0_74 = arith.constant 0 : index
    %c0_75 = arith.constant 0 : index
    %89 = vector.load %arg7[%c0_74, %c0_75] : memref<64x32xbf16, #tpu.memory_space<vmem>>, vector<64x32xbf16>
    %90 = arith.truncf %88 : vector<32x256xf32> to vector<32x256xbf16>
    %cst_76 = arith.constant dense<0.000000e+00> : vector<64x256xf32>
    %91 = tpu.matmul %89, %90, %cst_76 {dimension_numbers = #tpu.dot_dimension_numbers<[1], [0], [0], [1], [0, 0, 1, 1], [], []>} : vector<64x32xbf16>, vector<32x256xbf16>, vector<64x256xf32> -> vector<64x256xf32>
    %c0_77 = arith.constant 0 : index
    %c0_78 = arith.constant 0 : index
    %92 = vector.load %arg8[%c0_77, %c0_78] : memref<64x32xbf16, #tpu.memory_space<vmem>>, vector<64x32xbf16>
    %c0_79 = arith.constant 0 : index
    %c0_80 = arith.constant 0 : index
    %c0_81 = arith.constant 0 : index
    %93 = vector.load %arg2[%c0_79, %c0_80, %c0_81] : memref<1x32x256xbf16, #tpu.memory_space<vmem>>, vector<1x32x256xbf16>
    %94 = vector.shape_cast %93 : vector<1x32x256xbf16> to vector<32x256xbf16>
    %cst_82 = arith.constant dense<0.000000e+00> : vector<64x256xf32>
    %95 = tpu.matmul %92, %94, %cst_82 {dimension_numbers = #tpu.dot_dimension_numbers<[1], [0], [0], [1], [0, 0, 1, 1], [], []>} : vector<64x32xbf16>, vector<32x256xbf16>, vector<64x256xf32> -> vector<64x256xf32>
    %96 = arith.addf %91, %95 : vector<64x256xf32>
    %c0_83 = arith.constant 0 : index
    %c0_84 = arith.constant 0 : index
    %97 = vector.load %arg9[%c0_83, %c0_84] : memref<64x1xf32, #tpu.memory_space<vmem>>, vector<64x1xf32>
    %98 = vector.broadcast %97 : vector<64x1xf32> to vector<64x256xf32>
    %99 = arith.addf %96, %98 : vector<64x256xf32>
    %cst_85 = arith.constant 5.000000e-01 : f32
    %100 = vector.broadcast %cst_85 : f32 to vector<64x256xf32>
    %101 = arith.mulf %100, %99 : vector<64x256xf32>
    %cst_86 = arith.constant 0.707106769 : f32
    %102 = vector.broadcast %cst_86 : f32 to vector<64x256xf32>
    %103 = arith.mulf %99, %102 : vector<64x256xf32>
    %104 = math.erf %103 : vector<64x256xf32>
    %cst_87 = arith.constant 1.000000e+00 : f32
    %105 = vector.broadcast %cst_87 : f32 to vector<64x256xf32>
    %106 = arith.addf %105, %104 : vector<64x256xf32>
    %107 = arith.mulf %101, %106 : vector<64x256xf32>
    %cst_88 = arith.constant dense<0.000000e+00> : vector<64xf32>
    %108 = vector.multi_reduction <add>, %107, %cst_88 [1] : vector<64x256xf32> to vector<64xf32>
    %109 = vector.shape_cast %108 : vector<64xf32> to vector<64x1xf32>
    %cst_89 = arith.constant 2.560000e+02 : f32
    %110 = vector.broadcast %cst_89 : f32 to vector<64x1xf32>
    %111 = arith.divf %109, %110 : vector<64x1xf32>
    %c0_90 = arith.constant 0 : index
    %c0_91 = arith.constant 0 : index
    %112 = vector.load %arg10[%c0_90, %c0_91] : memref<64x8xf32, #tpu.memory_space<vmem>>, vector<64x8xf32>
    %113 = vector.broadcast %111 : vector<64x1xf32> to vector<64x8xf32>
    %114 = arith.mulf %112, %113 : vector<64x8xf32>
    %cst_92 = arith.constant dense<0.000000e+00> : vector<8xf32>
    %115 = vector.multi_reduction <add>, %114, %cst_92 [0] : vector<64x8xf32> to vector<8xf32>
    %116 = vector.shape_cast %115 : vector<8xf32> to vector<1x8xf32>
    %c0_93 = arith.constant 0 : index
    %c0_94 = arith.constant 0 : index
    %117 = vector.load %arg11[%c0_93, %c0_94] : memref<1x8xf32, #tpu.memory_space<vmem>>, vector<1x8xf32>
    %118 = arith.addf %116, %117 : vector<1x8xf32>
    %cst_95 = arith.constant 5.000000e-01 : f32
    %119 = vector.broadcast %cst_95 : f32 to vector<1x8xf32>
    %120 = arith.mulf %119, %118 : vector<1x8xf32>
    %cst_96 = arith.constant 0.707106769 : f32
    %121 = vector.broadcast %cst_96 : f32 to vector<1x8xf32>
    %122 = arith.mulf %118, %121 : vector<1x8xf32>
    %123 = math.erf %122 : vector<1x8xf32>
    %cst_97 = arith.constant 1.000000e+00 : f32
    %124 = vector.broadcast %cst_97 : f32 to vector<1x8xf32>
    %125 = arith.addf %124, %123 : vector<1x8xf32>
    %126 = arith.mulf %120, %125 : vector<1x8xf32>
    %c0_98 = arith.constant 0 : index
    %c0_99 = arith.constant 0 : index
    %127 = vector.load %arg12[%c0_98, %c0_99] : memref<64x8xf32, #tpu.memory_space<vmem>>, vector<64x8xf32>
    %128 = vector.broadcast %126 : vector<1x8xf32> to vector<64x8xf32>
    %129 = arith.mulf %127, %128 : vector<64x8xf32>
    %cst_100 = arith.constant dense<0.000000e+00> : vector<64xf32>
    %130 = vector.multi_reduction <add>, %129, %cst_100 [1] : vector<64x8xf32> to vector<64xf32>
    %131 = vector.shape_cast %130 : vector<64xf32> to vector<64x1xf32>
    %c0_101 = arith.constant 0 : index
    %c0_102 = arith.constant 0 : index
    %132 = vector.load %arg13[%c0_101, %c0_102] : memref<64x1xf32, #tpu.memory_space<vmem>>, vector<64x1xf32>
    %133 = arith.addf %131, %132 : vector<64x1xf32>
    %134 = arith.negf %133 : vector<64x1xf32>
    %135 = math.exp %134 : vector<64x1xf32>
    %cst_103 = arith.constant 1.000000e+00 : f32
    %136 = vector.broadcast %cst_103 : f32 to vector<64x1xf32>
    %137 = arith.addf %136, %135 : vector<64x1xf32>
    %138 = arith.divf %136, %137 : vector<64x1xf32>
    %cst_104 = arith.constant dense<0.000000e+00> : vector<256xf32>
    %139 = vector.multi_reduction <add>, %107, %cst_104 [0] : vector<64x256xf32> to vector<256xf32>
    %140 = vector.shape_cast %139 : vector<256xf32> to vector<1x256xf32>
    %cst_105 = arith.constant 6.400000e+01 : f32
    %141 = vector.broadcast %cst_105 : f32 to vector<1x256xf32>
    %142 = arith.divf %140, %141 : vector<1x256xf32>
    %cst_106 = arith.constant dense<0xFF800000> : vector<256xf32>
    %143 = vector.multi_reduction <maximumf>, %107, %cst_106 [0] : vector<64x256xf32> to vector<256xf32>
    %144 = vector.shape_cast %143 : vector<256xf32> to vector<1x256xf32>
    %145 = arith.truncf %142 : vector<1x256xf32> to vector<1x256xbf16>
    %c0_107 = arith.constant 0 : index
    %c0_108 = arith.constant 0 : index
    %146 = vector.load %arg14[%c0_107, %c0_108] : memref<256x256xbf16, #tpu.memory_space<vmem>>, vector<256x256xbf16>
    %cst_109 = arith.constant dense<0.000000e+00> : vector<1x256xf32>
    %147 = tpu.matmul %145, %146, %cst_109 {dimension_numbers = #tpu.dot_dimension_numbers<[1], [0], [0], [1], [0, 0, 1, 1], [], []>} : vector<1x256xbf16>, vector<256x256xbf16>, vector<1x256xf32> -> vector<1x256xf32>
    %148 = arith.truncf %144 : vector<1x256xf32> to vector<1x256xbf16>
    %c0_110 = arith.constant 0 : index
    %c0_111 = arith.constant 0 : index
    %149 = vector.load %arg15[%c0_110, %c0_111] : memref<256x256xbf16, #tpu.memory_space<vmem>>, vector<256x256xbf16>
    %cst_112 = arith.constant dense<0.000000e+00> : vector<1x256xf32>
    %150 = tpu.matmul %148, %149, %cst_112 {dimension_numbers = #tpu.dot_dimension_numbers<[1], [0], [0], [1], [0, 0, 1, 1], [], []>} : vector<1x256xbf16>, vector<256x256xbf16>, vector<1x256xf32> -> vector<1x256xf32>
    %151 = arith.addf %147, %150 : vector<1x256xf32>
    %c0_113 = arith.constant 0 : index
    %c0_114 = arith.constant 0 : index
    %152 = memref.load %arg16[%c0_113, %c0_114] : memref<1x1xf32, #tpu.memory_space<smem>>
    %153 = vector.broadcast %152 : f32 to vector<1x256xf32>
    %154 = arith.addf %151, %153 : vector<1x256xf32>
    %155 = arith.negf %154 : vector<1x256xf32>
    %156 = math.exp %155 : vector<1x256xf32>
    %cst_115 = arith.constant 1.000000e+00 : f32
    %157 = vector.broadcast %cst_115 : f32 to vector<1x256xf32>
    %158 = arith.addf %157, %156 : vector<1x256xf32>
    %159 = arith.divf %157, %158 : vector<1x256xf32>
    %160 = vector.broadcast %138 : vector<64x1xf32> to vector<64x256xf32>
    %161 = vector.broadcast %159 : vector<1x256xf32> to vector<64x256xf32>
    %162 = arith.addf %160, %161 : vector<64x256xf32>
    %163 = arith.mulf %107, %162 : vector<64x256xf32>
    %c0_116 = arith.constant 0 : index
    %c0_117 = arith.constant 0 : index
    %164 = vector.load %arg17[%c0_116, %c0_117] : memref<64x64xbf16, #tpu.memory_space<vmem>>, vector<64x64xbf16>
    %165 = arith.truncf %163 : vector<64x256xf32> to vector<64x256xbf16>
    %cst_118 = arith.constant dense<0.000000e+00> : vector<64x256xf32>
    %166 = tpu.matmul %164, %165, %cst_118 {dimension_numbers = #tpu.dot_dimension_numbers<[1], [0], [0], [1], [0, 0, 1, 1], [], []>} : vector<64x64xbf16>, vector<64x256xbf16>, vector<64x256xf32> -> vector<64x256xf32>
    %167 = arith.truncf %166 : vector<64x256xf32> to vector<64x256xbf16>
    %cst_119 = arith.constant 0.000000e+00 : f32
    %168 = vector.broadcast %cst_119 : f32 to vector<32x256xf32>
    %c0_120 = arith.constant 0 : index
    %c0_121 = arith.constant 0 : index
    %c0_122 = arith.constant 0 : index
    %169 = vector.load %arg4[%c0_120, %c0_121, %c0_122] : memref<9x256x256xbf16, #tpu.memory_space<vmem>>, vector<1x256x256xbf16>
    %170 = vector.shape_cast %169 : vector<1x256x256xbf16> to vector<256x256xbf16>
    %cst_123 = arith.constant dense<0.000000e+00> : vector<64x256xf32>
    %171 = tpu.matmul %167, %170, %cst_123 {dimension_numbers = #tpu.dot_dimension_numbers<[1], [0], [0], [1], [0, 0, 1, 1], [], []>} : vector<64x256xbf16>, vector<256x256xbf16>, vector<64x256xf32> -> vector<64x256xf32>
    %c0_124 = arith.constant 0 : index
    %c0_125 = arith.constant 0 : index
    %c0_126 = arith.constant 0 : index
    %172 = vector.load %arg18[%c0_124, %c0_125, %c0_126] : memref<9x32x64xbf16, #tpu.memory_space<vmem>>, vector<1x32x64xbf16>
    %173 = vector.shape_cast %172 : vector<1x32x64xbf16> to vector<32x64xbf16>
    %174 = arith.truncf %171 : vector<64x256xf32> to vector<64x256xbf16>
    %cst_127 = arith.constant dense<0.000000e+00> : vector<32x256xf32>
    %175 = tpu.matmul %173, %174, %cst_127 {dimension_numbers = #tpu.dot_dimension_numbers<[1], [0], [0], [1], [0, 0, 1, 1], [], []>} : vector<32x64xbf16>, vector<64x256xbf16>, vector<32x256xf32> -> vector<32x256xf32>
    %176 = arith.addf %168, %175 : vector<32x256xf32>
    %c1_128 = arith.constant 1 : index
    %c0_129 = arith.constant 0 : index
    %c0_130 = arith.constant 0 : index
    %177 = vector.load %arg4[%c1_128, %c0_129, %c0_130] : memref<9x256x256xbf16, #tpu.memory_space<vmem>>, vector<1x256x256xbf16>
    %178 = vector.shape_cast %177 : vector<1x256x256xbf16> to vector<256x256xbf16>
    %cst_131 = arith.constant dense<0.000000e+00> : vector<64x256xf32>
    %179 = tpu.matmul %167, %178, %cst_131 {dimension_numbers = #tpu.dot_dimension_numbers<[1], [0], [0], [1], [0, 0, 1, 1], [], []>} : vector<64x256xbf16>, vector<256x256xbf16>, vector<64x256xf32> -> vector<64x256xf32>
    %c1_132 = arith.constant 1 : index
    %c0_133 = arith.constant 0 : index
    %c0_134 = arith.constant 0 : index
    %180 = vector.load %arg18[%c1_132, %c0_133, %c0_134] : memref<9x32x64xbf16, #tpu.memory_space<vmem>>, vector<1x32x64xbf16>
    %181 = vector.shape_cast %180 : vector<1x32x64xbf16> to vector<32x64xbf16>
    %182 = arith.truncf %179 : vector<64x256xf32> to vector<64x256xbf16>
    %cst_135 = arith.constant dense<0.000000e+00> : vector<32x256xf32>
    %183 = tpu.matmul %181, %182, %cst_135 {dimension_numbers = #tpu.dot_dimension_numbers<[1], [0], [0], [1], [0, 0, 1, 1], [], []>} : vector<32x64xbf16>, vector<64x256xbf16>, vector<32x256xf32> -> vector<32x256xf32>
    %184 = arith.addf %176, %183 : vector<32x256xf32>
    %c2_136 = arith.constant 2 : index
    %c0_137 = arith.constant 0 : index
    %c0_138 = arith.constant 0 : index
    %185 = vector.load %arg4[%c2_136, %c0_137, %c0_138] : memref<9x256x256xbf16, #tpu.memory_space<vmem>>, vector<1x256x256xbf16>
    %186 = vector.shape_cast %185 : vector<1x256x256xbf16> to vector<256x256xbf16>
    %cst_139 = arith.constant dense<0.000000e+00> : vector<64x256xf32>
    %187 = tpu.matmul %167, %186, %cst_139 {dimension_numbers = #tpu.dot_dimension_numbers<[1], [0], [0], [1], [0, 0, 1, 1], [], []>} : vector<64x256xbf16>, vector<256x256xbf16>, vector<64x256xf32> -> vector<64x256xf32>
    %c2_140 = arith.constant 2 : index
    %c0_141 = arith.constant 0 : index
    %c0_142 = arith.constant 0 : index
    %188 = vector.load %arg18[%c2_140, %c0_141, %c0_142] : memref<9x32x64xbf16, #tpu.memory_space<vmem>>, vector<1x32x64xbf16>
    %189 = vector.shape_cast %188 : vector<1x32x64xbf16> to vector<32x64xbf16>
    %190 = arith.truncf %187 : vector<64x256xf32> to vector<64x256xbf16>
    %cst_143 = arith.constant dense<0.000000e+00> : vector<32x256xf32>
    %191 = tpu.matmul %189, %190, %cst_143 {dimension_numbers = #tpu.dot_dimension_numbers<[1], [0], [0], [1], [0, 0, 1, 1], [], []>} : vector<32x64xbf16>, vector<64x256xbf16>, vector<32x256xf32> -> vector<32x256xf32>
    %192 = arith.addf %184, %191 : vector<32x256xf32>
    %c3_144 = arith.constant 3 : index
    %c0_145 = arith.constant 0 : index
    %c0_146 = arith.constant 0 : index
    %193 = vector.load %arg4[%c3_144, %c0_145, %c0_146] : memref<9x256x256xbf16, #tpu.memory_space<vmem>>, vector<1x256x256xbf16>
    %194 = vector.shape_cast %193 : vector<1x256x256xbf16> to vector<256x256xbf16>
    %cst_147 = arith.constant dense<0.000000e+00> : vector<64x256xf32>
    %195 = tpu.matmul %167, %194, %cst_147 {dimension_numbers = #tpu.dot_dimension_numbers<[1], [0], [0], [1], [0, 0, 1, 1], [], []>} : vector<64x256xbf16>, vector<256x256xbf16>, vector<64x256xf32> -> vector<64x256xf32>
    %c3_148 = arith.constant 3 : index
    %c0_149 = arith.constant 0 : index
    %c0_150 = arith.constant 0 : index
    %196 = vector.load %arg18[%c3_148, %c0_149, %c0_150] : memref<9x32x64xbf16, #tpu.memory_space<vmem>>, vector<1x32x64xbf16>
    %197 = vector.shape_cast %196 : vector<1x32x64xbf16> to vector<32x64xbf16>
    %198 = arith.truncf %195 : vector<64x256xf32> to vector<64x256xbf16>
    %cst_151 = arith.constant dense<0.000000e+00> : vector<32x256xf32>
    %199 = tpu.matmul %197, %198, %cst_151 {dimension_numbers = #tpu.dot_dimension_numbers<[1], [0], [0], [1], [0, 0, 1, 1], [], []>} : vector<32x64xbf16>, vector<64x256xbf16>, vector<32x256xf32> -> vector<32x256xf32>
    %200 = arith.addf %192, %199 : vector<32x256xf32>
    %c4_152 = arith.constant 4 : index
    %c0_153 = arith.constant 0 : index
    %c0_154 = arith.constant 0 : index
    %201 = vector.load %arg4[%c4_152, %c0_153, %c0_154] : memref<9x256x256xbf16, #tpu.memory_space<vmem>>, vector<1x256x256xbf16>
    %202 = vector.shape_cast %201 : vector<1x256x256xbf16> to vector<256x256xbf16>
    %cst_155 = arith.constant dense<0.000000e+00> : vector<64x256xf32>
    %203 = tpu.matmul %167, %202, %cst_155 {dimension_numbers = #tpu.dot_dimension_numbers<[1], [0], [0], [1], [0, 0, 1, 1], [], []>} : vector<64x256xbf16>, vector<256x256xbf16>, vector<64x256xf32> -> vector<64x256xf32>
    %c4_156 = arith.constant 4 : index
    %c0_157 = arith.constant 0 : index
    %c0_158 = arith.constant 0 : index
    %204 = vector.load %arg18[%c4_156, %c0_157, %c0_158] : memref<9x32x64xbf16, #tpu.memory_space<vmem>>, vector<1x32x64xbf16>
    %205 = vector.shape_cast %204 : vector<1x32x64xbf16> to vector<32x64xbf16>
    %206 = arith.truncf %203 : vector<64x256xf32> to vector<64x256xbf16>
    %cst_159 = arith.constant dense<0.000000e+00> : vector<32x256xf32>
    %207 = tpu.matmul %205, %206, %cst_159 {dimension_numbers = #tpu.dot_dimension_numbers<[1], [0], [0], [1], [0, 0, 1, 1], [], []>} : vector<32x64xbf16>, vector<64x256xbf16>, vector<32x256xf32> -> vector<32x256xf32>
    %208 = arith.addf %200, %207 : vector<32x256xf32>
    %c5_160 = arith.constant 5 : index
    %c0_161 = arith.constant 0 : index
    %c0_162 = arith.constant 0 : index
    %209 = vector.load %arg4[%c5_160, %c0_161, %c0_162] : memref<9x256x256xbf16, #tpu.memory_space<vmem>>, vector<1x256x256xbf16>
    %210 = vector.shape_cast %209 : vector<1x256x256xbf16> to vector<256x256xbf16>
    %cst_163 = arith.constant dense<0.000000e+00> : vector<64x256xf32>
    %211 = tpu.matmul %167, %210, %cst_163 {dimension_numbers = #tpu.dot_dimension_numbers<[1], [0], [0], [1], [0, 0, 1, 1], [], []>} : vector<64x256xbf16>, vector<256x256xbf16>, vector<64x256xf32> -> vector<64x256xf32>
    %c5_164 = arith.constant 5 : index
    %c0_165 = arith.constant 0 : index
    %c0_166 = arith.constant 0 : index
    %212 = vector.load %arg18[%c5_164, %c0_165, %c0_166] : memref<9x32x64xbf16, #tpu.memory_space<vmem>>, vector<1x32x64xbf16>
    %213 = vector.shape_cast %212 : vector<1x32x64xbf16> to vector<32x64xbf16>
    %214 = arith.truncf %211 : vector<64x256xf32> to vector<64x256xbf16>
    %cst_167 = arith.constant dense<0.000000e+00> : vector<32x256xf32>
    %215 = tpu.matmul %213, %214, %cst_167 {dimension_numbers = #tpu.dot_dimension_numbers<[1], [0], [0], [1], [0, 0, 1, 1], [], []>} : vector<32x64xbf16>, vector<64x256xbf16>, vector<32x256xf32> -> vector<32x256xf32>
    %216 = arith.addf %208, %215 : vector<32x256xf32>
    %c6_168 = arith.constant 6 : index
    %c0_169 = arith.constant 0 : index
    %c0_170 = arith.constant 0 : index
    %217 = vector.load %arg4[%c6_168, %c0_169, %c0_170] : memref<9x256x256xbf16, #tpu.memory_space<vmem>>, vector<1x256x256xbf16>
    %218 = vector.shape_cast %217 : vector<1x256x256xbf16> to vector<256x256xbf16>
    %cst_171 = arith.constant dense<0.000000e+00> : vector<64x256xf32>
    %219 = tpu.matmul %167, %218, %cst_171 {dimension_numbers = #tpu.dot_dimension_numbers<[1], [0], [0], [1], [0, 0, 1, 1], [], []>} : vector<64x256xbf16>, vector<256x256xbf16>, vector<64x256xf32> -> vector<64x256xf32>
    %c6_172 = arith.constant 6 : index
    %c0_173 = arith.constant 0 : index
    %c0_174 = arith.constant 0 : index
    %220 = vector.load %arg18[%c6_172, %c0_173, %c0_174] : memref<9x32x64xbf16, #tpu.memory_space<vmem>>, vector<1x32x64xbf16>
    %221 = vector.shape_cast %220 : vector<1x32x64xbf16> to vector<32x64xbf16>
    %222 = arith.truncf %219 : vector<64x256xf32> to vector<64x256xbf16>
    %cst_175 = arith.constant dense<0.000000e+00> : vector<32x256xf32>
    %223 = tpu.matmul %221, %222, %cst_175 {dimension_numbers = #tpu.dot_dimension_numbers<[1], [0], [0], [1], [0, 0, 1, 1], [], []>} : vector<32x64xbf16>, vector<64x256xbf16>, vector<32x256xf32> -> vector<32x256xf32>
    %224 = arith.addf %216, %223 : vector<32x256xf32>
    %c7_176 = arith.constant 7 : index
    %c0_177 = arith.constant 0 : index
    %c0_178 = arith.constant 0 : index
    %225 = vector.load %arg4[%c7_176, %c0_177, %c0_178] : memref<9x256x256xbf16, #tpu.memory_space<vmem>>, vector<1x256x256xbf16>
    %226 = vector.shape_cast %225 : vector<1x256x256xbf16> to vector<256x256xbf16>
    %cst_179 = arith.constant dense<0.000000e+00> : vector<64x256xf32>
    %227 = tpu.matmul %167, %226, %cst_179 {dimension_numbers = #tpu.dot_dimension_numbers<[1], [0], [0], [1], [0, 0, 1, 1], [], []>} : vector<64x256xbf16>, vector<256x256xbf16>, vector<64x256xf32> -> vector<64x256xf32>
    %c7_180 = arith.constant 7 : index
    %c0_181 = arith.constant 0 : index
    %c0_182 = arith.constant 0 : index
    %228 = vector.load %arg18[%c7_180, %c0_181, %c0_182] : memref<9x32x64xbf16, #tpu.memory_space<vmem>>, vector<1x32x64xbf16>
    %229 = vector.shape_cast %228 : vector<1x32x64xbf16> to vector<32x64xbf16>
    %230 = arith.truncf %227 : vector<64x256xf32> to vector<64x256xbf16>
    %cst_183 = arith.constant dense<0.000000e+00> : vector<32x256xf32>
    %231 = tpu.matmul %229, %230, %cst_183 {dimension_numbers = #tpu.dot_dimension_numbers<[1], [0], [0], [1], [0, 0, 1, 1], [], []>} : vector<32x64xbf16>, vector<64x256xbf16>, vector<32x256xf32> -> vector<32x256xf32>
    %232 = arith.addf %224, %231 : vector<32x256xf32>
    %c8_184 = arith.constant 8 : index
    %c0_185 = arith.constant 0 : index
    %c0_186 = arith.constant 0 : index
    %233 = vector.load %arg4[%c8_184, %c0_185, %c0_186] : memref<9x256x256xbf16, #tpu.memory_space<vmem>>, vector<1x256x256xbf16>
    %234 = vector.shape_cast %233 : vector<1x256x256xbf16> to vector<256x256xbf16>
    %cst_187 = arith.constant dense<0.000000e+00> : vector<64x256xf32>
    %235 = tpu.matmul %167, %234, %cst_187 {dimension_numbers = #tpu.dot_dimension_numbers<[1], [0], [0], [1], [0, 0, 1, 1], [], []>} : vector<64x256xbf16>, vector<256x256xbf16>, vector<64x256xf32> -> vector<64x256xf32>
    %c8_188 = arith.constant 8 : index
    %c0_189 = arith.constant 0 : index
    %c0_190 = arith.constant 0 : index
    %236 = vector.load %arg18[%c8_188, %c0_189, %c0_190] : memref<9x32x64xbf16, #tpu.memory_space<vmem>>, vector<1x32x64xbf16>
    %237 = vector.shape_cast %236 : vector<1x32x64xbf16> to vector<32x64xbf16>
    %238 = arith.truncf %235 : vector<64x256xf32> to vector<64x256xbf16>
    %cst_191 = arith.constant dense<0.000000e+00> : vector<32x256xf32>
    %239 = tpu.matmul %237, %238, %cst_191 {dimension_numbers = #tpu.dot_dimension_numbers<[1], [0], [0], [1], [0, 0, 1, 1], [], []>} : vector<32x64xbf16>, vector<64x256xbf16>, vector<32x256xf32> -> vector<32x256xf32>
    %240 = arith.addf %232, %239 : vector<32x256xf32>
    %c0_192 = arith.constant 0 : index
    %c0_193 = arith.constant 0 : index
    %241 = vector.load %arg19[%c0_192, %c0_193] : memref<32x1xf32, #tpu.memory_space<vmem>>, vector<32x1xf32>
    %242 = vector.broadcast %241 : vector<32x1xf32> to vector<32x256xf32>
    %243 = arith.addf %240, %242 : vector<32x256xf32>
    %cst_194 = arith.constant 5.000000e-01 : f32
    %244 = vector.broadcast %cst_194 : f32 to vector<32x256xf32>
    %245 = arith.mulf %244, %243 : vector<32x256xf32>
    %cst_195 = arith.constant 0.707106769 : f32
    %246 = vector.broadcast %cst_195 : f32 to vector<32x256xf32>
    %247 = arith.mulf %243, %246 : vector<32x256xf32>
    %248 = math.erf %247 : vector<32x256xf32>
    %cst_196 = arith.constant 1.000000e+00 : f32
    %249 = vector.broadcast %cst_196 : f32 to vector<32x256xf32>
    %250 = arith.addf %249, %248 : vector<32x256xf32>
    %251 = arith.mulf %245, %250 : vector<32x256xf32>
    %252 = arith.truncf %251 : vector<32x256xf32> to vector<32x256xbf16>
    %cst_197 = arith.constant 0.000000e+00 : f32
    %253 = vector.broadcast %cst_197 : f32 to vector<32x256xf32>
    %c0_198 = arith.constant 0 : index
    %c0_199 = arith.constant 0 : index
    %c0_200 = arith.constant 0 : index
    %254 = vector.load %arg4[%c0_198, %c0_199, %c0_200] : memref<9x256x256xbf16, #tpu.memory_space<vmem>>, vector<1x256x256xbf16>
    %255 = vector.shape_cast %254 : vector<1x256x256xbf16> to vector<256x256xbf16>
    %cst_201 = arith.constant dense<0.000000e+00> : vector<32x256xf32>
    %256 = tpu.matmul %252, %255, %cst_201 {dimension_numbers = #tpu.dot_dimension_numbers<[1], [0], [0], [1], [0, 0, 1, 1], [], []>} : vector<32x256xbf16>, vector<256x256xbf16>, vector<32x256xf32> -> vector<32x256xf32>
    %c0_202 = arith.constant 0 : index
    %c0_203 = arith.constant 0 : index
    %c0_204 = arith.constant 0 : index
    %257 = vector.load %arg20[%c0_202, %c0_203, %c0_204] : memref<9x32x32xbf16, #tpu.memory_space<vmem>>, vector<1x32x32xbf16>
    %258 = vector.shape_cast %257 : vector<1x32x32xbf16> to vector<32x32xbf16>
    %259 = arith.truncf %256 : vector<32x256xf32> to vector<32x256xbf16>
    %cst_205 = arith.constant dense<0.000000e+00> : vector<32x256xf32>
    %260 = tpu.matmul %258, %259, %cst_205 {dimension_numbers = #tpu.dot_dimension_numbers<[1], [0], [0], [1], [0, 0, 1, 1], [], []>} : vector<32x32xbf16>, vector<32x256xbf16>, vector<32x256xf32> -> vector<32x256xf32>
    %261 = arith.addf %253, %260 : vector<32x256xf32>
    %c1_206 = arith.constant 1 : index
    %c0_207 = arith.constant 0 : index
    %c0_208 = arith.constant 0 : index
    %262 = vector.load %arg4[%c1_206, %c0_207, %c0_208] : memref<9x256x256xbf16, #tpu.memory_space<vmem>>, vector<1x256x256xbf16>
    %263 = vector.shape_cast %262 : vector<1x256x256xbf16> to vector<256x256xbf16>
    %cst_209 = arith.constant dense<0.000000e+00> : vector<32x256xf32>
    %264 = tpu.matmul %252, %263, %cst_209 {dimension_numbers = #tpu.dot_dimension_numbers<[1], [0], [0], [1], [0, 0, 1, 1], [], []>} : vector<32x256xbf16>, vector<256x256xbf16>, vector<32x256xf32> -> vector<32x256xf32>
    %c1_210 = arith.constant 1 : index
    %c0_211 = arith.constant 0 : index
    %c0_212 = arith.constant 0 : index
    %265 = vector.load %arg20[%c1_210, %c0_211, %c0_212] : memref<9x32x32xbf16, #tpu.memory_space<vmem>>, vector<1x32x32xbf16>
    %266 = vector.shape_cast %265 : vector<1x32x32xbf16> to vector<32x32xbf16>
    %267 = arith.truncf %264 : vector<32x256xf32> to vector<32x256xbf16>
    %cst_213 = arith.constant dense<0.000000e+00> : vector<32x256xf32>
    %268 = tpu.matmul %266, %267, %cst_213 {dimension_numbers = #tpu.dot_dimension_numbers<[1], [0], [0], [1], [0, 0, 1, 1], [], []>} : vector<32x32xbf16>, vector<32x256xbf16>, vector<32x256xf32> -> vector<32x256xf32>
    %269 = arith.addf %261, %268 : vector<32x256xf32>
    %c2_214 = arith.constant 2 : index
    %c0_215 = arith.constant 0 : index
    %c0_216 = arith.constant 0 : index
    %270 = vector.load %arg4[%c2_214, %c0_215, %c0_216] : memref<9x256x256xbf16, #tpu.memory_space<vmem>>, vector<1x256x256xbf16>
    %271 = vector.shape_cast %270 : vector<1x256x256xbf16> to vector<256x256xbf16>
    %cst_217 = arith.constant dense<0.000000e+00> : vector<32x256xf32>
    %272 = tpu.matmul %252, %271, %cst_217 {dimension_numbers = #tpu.dot_dimension_numbers<[1], [0], [0], [1], [0, 0, 1, 1], [], []>} : vector<32x256xbf16>, vector<256x256xbf16>, vector<32x256xf32> -> vector<32x256xf32>
    %c2_218 = arith.constant 2 : index
    %c0_219 = arith.constant 0 : index
    %c0_220 = arith.constant 0 : index
    %273 = vector.load %arg20[%c2_218, %c0_219, %c0_220] : memref<9x32x32xbf16, #tpu.memory_space<vmem>>, vector<1x32x32xbf16>
    %274 = vector.shape_cast %273 : vector<1x32x32xbf16> to vector<32x32xbf16>
    %275 = arith.truncf %272 : vector<32x256xf32> to vector<32x256xbf16>
    %cst_221 = arith.constant dense<0.000000e+00> : vector<32x256xf32>
    %276 = tpu.matmul %274, %275, %cst_221 {dimension_numbers = #tpu.dot_dimension_numbers<[1], [0], [0], [1], [0, 0, 1, 1], [], []>} : vector<32x32xbf16>, vector<32x256xbf16>, vector<32x256xf32> -> vector<32x256xf32>
    %277 = arith.addf %269, %276 : vector<32x256xf32>
    %c3_222 = arith.constant 3 : index
    %c0_223 = arith.constant 0 : index
    %c0_224 = arith.constant 0 : index
    %278 = vector.load %arg4[%c3_222, %c0_223, %c0_224] : memref<9x256x256xbf16, #tpu.memory_space<vmem>>, vector<1x256x256xbf16>
    %279 = vector.shape_cast %278 : vector<1x256x256xbf16> to vector<256x256xbf16>
    %cst_225 = arith.constant dense<0.000000e+00> : vector<32x256xf32>
    %280 = tpu.matmul %252, %279, %cst_225 {dimension_numbers = #tpu.dot_dimension_numbers<[1], [0], [0], [1], [0, 0, 1, 1], [], []>} : vector<32x256xbf16>, vector<256x256xbf16>, vector<32x256xf32> -> vector<32x256xf32>
    %c3_226 = arith.constant 3 : index
    %c0_227 = arith.constant 0 : index
    %c0_228 = arith.constant 0 : index
    %281 = vector.load %arg20[%c3_226, %c0_227, %c0_228] : memref<9x32x32xbf16, #tpu.memory_space<vmem>>, vector<1x32x32xbf16>
    %282 = vector.shape_cast %281 : vector<1x32x32xbf16> to vector<32x32xbf16>
    %283 = arith.truncf %280 : vector<32x256xf32> to vector<32x256xbf16>
    %cst_229 = arith.constant dense<0.000000e+00> : vector<32x256xf32>
    %284 = tpu.matmul %282, %283, %cst_229 {dimension_numbers = #tpu.dot_dimension_numbers<[1], [0], [0], [1], [0, 0, 1, 1], [], []>} : vector<32x32xbf16>, vector<32x256xbf16>, vector<32x256xf32> -> vector<32x256xf32>
    %285 = arith.addf %277, %284 : vector<32x256xf32>
    %c4_230 = arith.constant 4 : index
    %c0_231 = arith.constant 0 : index
    %c0_232 = arith.constant 0 : index
    %286 = vector.load %arg4[%c4_230, %c0_231, %c0_232] : memref<9x256x256xbf16, #tpu.memory_space<vmem>>, vector<1x256x256xbf16>
    %287 = vector.shape_cast %286 : vector<1x256x256xbf16> to vector<256x256xbf16>
    %cst_233 = arith.constant dense<0.000000e+00> : vector<32x256xf32>
    %288 = tpu.matmul %252, %287, %cst_233 {dimension_numbers = #tpu.dot_dimension_numbers<[1], [0], [0], [1], [0, 0, 1, 1], [], []>} : vector<32x256xbf16>, vector<256x256xbf16>, vector<32x256xf32> -> vector<32x256xf32>
    %c4_234 = arith.constant 4 : index
    %c0_235 = arith.constant 0 : index
    %c0_236 = arith.constant 0 : index
    %289 = vector.load %arg20[%c4_234, %c0_235, %c0_236] : memref<9x32x32xbf16, #tpu.memory_space<vmem>>, vector<1x32x32xbf16>
    %290 = vector.shape_cast %289 : vector<1x32x32xbf16> to vector<32x32xbf16>
    %291 = arith.truncf %288 : vector<32x256xf32> to vector<32x256xbf16>
    %cst_237 = arith.constant dense<0.000000e+00> : vector<32x256xf32>
    %292 = tpu.matmul %290, %291, %cst_237 {dimension_numbers = #tpu.dot_dimension_numbers<[1], [0], [0], [1], [0, 0, 1, 1], [], []>} : vector<32x32xbf16>, vector<32x256xbf16>, vector<32x256xf32> -> vector<32x256xf32>
    %293 = arith.addf %285, %292 : vector<32x256xf32>
    %c5_238 = arith.constant 5 : index
    %c0_239 = arith.constant 0 : index
    %c0_240 = arith.constant 0 : index
    %294 = vector.load %arg4[%c5_238, %c0_239, %c0_240] : memref<9x256x256xbf16, #tpu.memory_space<vmem>>, vector<1x256x256xbf16>
    %295 = vector.shape_cast %294 : vector<1x256x256xbf16> to vector<256x256xbf16>
    %cst_241 = arith.constant dense<0.000000e+00> : vector<32x256xf32>
    %296 = tpu.matmul %252, %295, %cst_241 {dimension_numbers = #tpu.dot_dimension_numbers<[1], [0], [0], [1], [0, 0, 1, 1], [], []>} : vector<32x256xbf16>, vector<256x256xbf16>, vector<32x256xf32> -> vector<32x256xf32>
    %c5_242 = arith.constant 5 : index
    %c0_243 = arith.constant 0 : index
    %c0_244 = arith.constant 0 : index
    %297 = vector.load %arg20[%c5_242, %c0_243, %c0_244] : memref<9x32x32xbf16, #tpu.memory_space<vmem>>, vector<1x32x32xbf16>
    %298 = vector.shape_cast %297 : vector<1x32x32xbf16> to vector<32x32xbf16>
    %299 = arith.truncf %296 : vector<32x256xf32> to vector<32x256xbf16>
    %cst_245 = arith.constant dense<0.000000e+00> : vector<32x256xf32>
    %300 = tpu.matmul %298, %299, %cst_245 {dimension_numbers = #tpu.dot_dimension_numbers<[1], [0], [0], [1], [0, 0, 1, 1], [], []>} : vector<32x32xbf16>, vector<32x256xbf16>, vector<32x256xf32> -> vector<32x256xf32>
    %301 = arith.addf %293, %300 : vector<32x256xf32>
    %c6_246 = arith.constant 6 : index
    %c0_247 = arith.constant 0 : index
    %c0_248 = arith.constant 0 : index
    %302 = vector.load %arg4[%c6_246, %c0_247, %c0_248] : memref<9x256x256xbf16, #tpu.memory_space<vmem>>, vector<1x256x256xbf16>
    %303 = vector.shape_cast %302 : vector<1x256x256xbf16> to vector<256x256xbf16>
    %cst_249 = arith.constant dense<0.000000e+00> : vector<32x256xf32>
    %304 = tpu.matmul %252, %303, %cst_249 {dimension_numbers = #tpu.dot_dimension_numbers<[1], [0], [0], [1], [0, 0, 1, 1], [], []>} : vector<32x256xbf16>, vector<256x256xbf16>, vector<32x256xf32> -> vector<32x256xf32>
    %c6_250 = arith.constant 6 : index
    %c0_251 = arith.constant 0 : index
    %c0_252 = arith.constant 0 : index
    %305 = vector.load %arg20[%c6_250, %c0_251, %c0_252] : memref<9x32x32xbf16, #tpu.memory_space<vmem>>, vector<1x32x32xbf16>
    %306 = vector.shape_cast %305 : vector<1x32x32xbf16> to vector<32x32xbf16>
    %307 = arith.truncf %304 : vector<32x256xf32> to vector<32x256xbf16>
    %cst_253 = arith.constant dense<0.000000e+00> : vector<32x256xf32>
    %308 = tpu.matmul %306, %307, %cst_253 {dimension_numbers = #tpu.dot_dimension_numbers<[1], [0], [0], [1], [0, 0, 1, 1], [], []>} : vector<32x32xbf16>, vector<32x256xbf16>, vector<32x256xf32> -> vector<32x256xf32>
    %309 = arith.addf %301, %308 : vector<32x256xf32>
    %c7_254 = arith.constant 7 : index
    %c0_255 = arith.constant 0 : index
    %c0_256 = arith.constant 0 : index
    %310 = vector.load %arg4[%c7_254, %c0_255, %c0_256] : memref<9x256x256xbf16, #tpu.memory_space<vmem>>, vector<1x256x256xbf16>
    %311 = vector.shape_cast %310 : vector<1x256x256xbf16> to vector<256x256xbf16>
    %cst_257 = arith.constant dense<0.000000e+00> : vector<32x256xf32>
    %312 = tpu.matmul %252, %311, %cst_257 {dimension_numbers = #tpu.dot_dimension_numbers<[1], [0], [0], [1], [0, 0, 1, 1], [], []>} : vector<32x256xbf16>, vector<256x256xbf16>, vector<32x256xf32> -> vector<32x256xf32>
    %c7_258 = arith.constant 7 : index
    %c0_259 = arith.constant 0 : index
    %c0_260 = arith.constant 0 : index
    %313 = vector.load %arg20[%c7_258, %c0_259, %c0_260] : memref<9x32x32xbf16, #tpu.memory_space<vmem>>, vector<1x32x32xbf16>
    %314 = vector.shape_cast %313 : vector<1x32x32xbf16> to vector<32x32xbf16>
    %315 = arith.truncf %312 : vector<32x256xf32> to vector<32x256xbf16>
    %cst_261 = arith.constant dense<0.000000e+00> : vector<32x256xf32>
    %316 = tpu.matmul %314, %315, %cst_261 {dimension_numbers = #tpu.dot_dimension_numbers<[1], [0], [0], [1], [0, 0, 1, 1], [], []>} : vector<32x32xbf16>, vector<32x256xbf16>, vector<32x256xf32> -> vector<32x256xf32>
    %317 = arith.addf %309, %316 : vector<32x256xf32>
    %c8_262 = arith.constant 8 : index
    %c0_263 = arith.constant 0 : index
    %c0_264 = arith.constant 0 : index
    %318 = vector.load %arg4[%c8_262, %c0_263, %c0_264] : memref<9x256x256xbf16, #tpu.memory_space<vmem>>, vector<1x256x256xbf16>
    %319 = vector.shape_cast %318 : vector<1x256x256xbf16> to vector<256x256xbf16>
    %cst_265 = arith.constant dense<0.000000e+00> : vector<32x256xf32>
    %320 = tpu.matmul %252, %319, %cst_265 {dimension_numbers = #tpu.dot_dimension_numbers<[1], [0], [0], [1], [0, 0, 1, 1], [], []>} : vector<32x256xbf16>, vector<256x256xbf16>, vector<32x256xf32> -> vector<32x256xf32>
    %c8_266 = arith.constant 8 : index
    %c0_267 = arith.constant 0 : index
    %c0_268 = arith.constant 0 : index
    %321 = vector.load %arg20[%c8_266, %c0_267, %c0_268] : memref<9x32x32xbf16, #tpu.memory_space<vmem>>, vector<1x32x32xbf16>
    %322 = vector.shape_cast %321 : vector<1x32x32xbf16> to vector<32x32xbf16>
    %323 = arith.truncf %320 : vector<32x256xf32> to vector<32x256xbf16>
    %cst_269 = arith.constant dense<0.000000e+00> : vector<32x256xf32>
    %324 = tpu.matmul %322, %323, %cst_269 {dimension_numbers = #tpu.dot_dimension_numbers<[1], [0], [0], [1], [0, 0, 1, 1], [], []>} : vector<32x32xbf16>, vector<32x256xbf16>, vector<32x256xf32> -> vector<32x256xf32>
    %325 = arith.addf %317, %324 : vector<32x256xf32>
    %c0_270 = arith.constant 0 : index
    %c0_271 = arith.constant 0 : index
    %326 = vector.load %arg21[%c0_270, %c0_271] : memref<32x1xf32, #tpu.memory_space<vmem>>, vector<32x1xf32>
    %327 = vector.broadcast %326 : vector<32x1xf32> to vector<32x256xf32>
    %328 = arith.addf %325, %327 : vector<32x256xf32>
    %cst_272 = arith.constant 5.000000e-01 : f32
    %329 = vector.broadcast %cst_272 : f32 to vector<32x256xf32>
    %330 = arith.mulf %329, %328 : vector<32x256xf32>
    %cst_273 = arith.constant 0.707106769 : f32
    %331 = vector.broadcast %cst_273 : f32 to vector<32x256xf32>
    %332 = arith.mulf %328, %331 : vector<32x256xf32>
    %333 = math.erf %332 : vector<32x256xf32>
    %cst_274 = arith.constant 1.000000e+00 : f32
    %334 = vector.broadcast %cst_274 : f32 to vector<32x256xf32>
    %335 = arith.addf %334, %333 : vector<32x256xf32>
    %336 = arith.mulf %330, %335 : vector<32x256xf32>
    %c0_275 = arith.constant 0 : index
    %c0_276 = arith.constant 0 : index
    %c0_277 = arith.constant 0 : index
    %337 = vector.load %arg22[%c0_275, %c0_276, %c0_277] : memref<1x32x256xf32, #tpu.memory_space<vmem>>, vector<1x32x256xf32>
    %338 = vector.shape_cast %337 : vector<1x32x256xf32> to vector<32x256xf32>
    %339 = vector.shape_cast %336 : vector<32x256xf32> to vector<1x32x256xf32>
    tpu.vector_store %arg22[%c0_275, %c0_276, %c0_277], %339 {strides = array<i32>} : memref<1x32x256xf32, #tpu.memory_space<vmem>>, vector<1x32x256xf32>,
    return
  }
  func.func @transform_0(%arg0: i32) -> (i32, i32, i32) {
    %c0_i32 = arith.constant 0 : i32
    %c0_i32_0 = arith.constant 0 : i32
    %c0_i32_1 = arith.constant 0 : i32
    return %arg0, %c0_i32, %c0_i32_0 : i32, i32, i32
  }
  func.func @transform_1(%arg0: i32) -> (i32, i32, i32) {
    %c0_i32 = arith.constant 0 : i32
    %c0_i32_0 = arith.constant 0 : i32
    %c0_i32_1 = arith.constant 0 : i32
    return %arg0, %c0_i32, %c0_i32_0 : i32, i32, i32
  }
  func.func @transform_2(%arg0: i32) -> (i32, i32) {
    %c0_i32 = arith.constant 0 : i32
    %c0_i32_0 = arith.constant 0 : i32
    %c0_i32_1 = arith.constant 0 : i32
    return %c0_i32, %c0_i32_0 : i32, i32
  }
  func.func @transform_3(%arg0: i32) -> (i32, i32, i32) {
    %c0_i32 = arith.constant 0 : i32
    %c0_i32_0 = arith.constant 0 : i32
    %c0_i32_1 = arith.constant 0 : i32
    %c0_i32_2 = arith.constant 0 : i32
    return %c0_i32, %c0_i32_0, %c0_i32_1 : i32, i32, i32
  }
  func.func @transform_4(%arg0: i32) -> (i32, i32, i32) {
    %c0_i32 = arith.constant 0 : i32
    %c0_i32_0 = arith.constant 0 : i32
    %c0_i32_1 = arith.constant 0 : i32
    %c0_i32_2 = arith.constant 0 : i32
    return %c0_i32, %c0_i32_0, %c0_i32_1 : i32, i32, i32
  }
  func.func @transform_5(%arg0: i32) -> (i32, i32) {
    %c0_i32 = arith.constant 0 : i32
    %c0_i32_0 = arith.constant 0 : i32
    %c0_i32_1 = arith.constant 0 : i32
    return %c0_i32, %c0_i32_0 : i32, i32
  }
  func.func @transform_6(%arg0: i32) -> (i32, i32) {
    %c0_i32 = arith.constant 0 : i32
    %c0_i32_0 = arith.constant 0 : i32
    %c0_i32_1 = arith.constant 0 : i32
    return %c0_i32, %c0_i32_0 : i32, i32
  }
  func.func @transform_7(%arg0: i32) -> (i32, i32) {
    %c0_i32 = arith.constant 0 : i32
    %c0_i32_0 = arith.constant 0 : i32
    %c0_i32_1 = arith.constant 0 : i32
    return %c0_i32, %c0_i32_0 : i32, i32
  }
  func.func @transform_8(%arg0: i32) -> (i32, i32) {
    %c0_i32 = arith.constant 0 : i32
    %c0_i32_0 = arith.constant 0 : i32
    %c0_i32_1 = arith.constant 0 : i32
    return %c0_i32, %c0_i32_0 : i32, i32
  }
  func.func @transform_9(%arg0: i32) -> (i32, i32) {
    %c0_i32 = arith.constant 0 : i32
    %c0_i32_0 = arith.constant 0 : i32
    %c0_i32_1 = arith.constant 0 : i32
    return %c0_i32, %c0_i32_0 : i32, i32
  }
  func.func @transform_10(%arg0: i32) -> (i32, i32) {
    %c0_i32 = arith.constant 0 : i32
    %c0_i32_0 = arith.constant 0 : i32
    %c0_i32_1 = arith.constant 0 : i32
    return %c0_i32, %c0_i32_0 : i32, i32
  }
  func.func @transform_11(%arg0: i32) -> (i32, i32) {
    %c0_i32 = arith.constant 0 : i32
    %c0_i32_0 = arith.constant 0 : i32
    %c0_i32_1 = arith.constant 0 : i32
    return %c0_i32, %c0_i32_0 : i32, i32
  }
  func.func @transform_12(%arg0: i32) -> (i32, i32) {
    %c0_i32 = arith.constant 0 : i32
    %c0_i32_0 = arith.constant 0 : i32
    %c0_i32_1 = arith.constant 0 : i32
    return %c0_i32, %c0_i32_0 : i32, i32
  }
  func.func @transform_13(%arg0: i32) -> (i32, i32) {
    %c0_i32 = arith.constant 0 : i32
    %c0_i32_0 = arith.constant 0 : i32
    %c0_i32_1 = arith.constant 0 : i32
    return %c0_i32, %c0_i32_0 : i32, i32
  }
  func.func @transform_14(%arg0: i32) -> (i32, i32) {
    %c0_i32 = arith.constant 0 : i32
    %c0_i32_0 = arith.constant 0 : i32
    %c0_i32_1 = arith.constant 0 : i32
    return %c0_i32, %c0_i32_0 : i32, i32
  }
  func.func @transform_15(%arg0: i32) -> (i32, i32) {
    %c0_i32 = arith.constant 0 : i32
    %c0_i32_0 = arith.constant 0 : i32
    %c0_i32_1 = arith.constant 0 : i32
    return %c0_i32, %c0_i32_0 : i32, i32
  }
  func.func @transform_16(%arg0: i32) -> (i32, i32) {
    %c0_i32 = arith.constant 0 : i32
    %c0_i32_0 = arith.constant 0 : i32
    %c0_i32_1 = arith.constant 0 : i32
    return %c0_i32, %c0_i32_0 : i32, i32
  }
  func.func @transform_17(%arg0: i32) -> (i32, i32, i32) {
    %c0_i32 = arith.constant 0 : i32
    %c0_i32_0 = arith.constant 0 : i32
    %c0_i32_1 = arith.constant 0 : i32
    %c0_i32_2 = arith.constant 0 : i32
    return %c0_i32, %c0_i32_0, %c0_i32_1 : i32, i32, i32
  }
  func.func @transform_18(%arg0: i32) -> (i32, i32) {
    %c0_i32 = arith.constant 0 : i32
    %c0_i32_0 = arith.constant 0 : i32
    %c0_i32_1 = arith.constant 0 : i32
    return %c0_i32, %c0_i32_0 : i32, i32
  }
  func.func @transform_19(%arg0: i32) -> (i32, i32, i32) {
    %c0_i32 = arith.constant 0 : i32
    %c0_i32_0 = arith.constant 0 : i32
    %c0_i32_1 = arith.constant 0 : i32
    %c0_i32_2 = arith.constant 0 : i32
    return %c0_i32, %c0_i32_0, %c0_i32_1 : i32, i32, i32
  }
  func.func @transform_20(%arg0: i32) -> (i32, i32) {
    %c0_i32 = arith.constant 0 : i32
    %c0_i32_0 = arith.constant 0 : i32
    %c0_i32_1 = arith.constant 0 : i32
    return %c0_i32, %c0_i32_0 : i32, i32
  }
  func.func @transform_21(%arg0: i32) -> (i32, i32, i32) {
    %c0_i32 = arith.constant 0 : i32
    %c0_i32_0 = arith.constant 0 : i32
    %c0_i32_1 = arith.constant 0 : i32
    return %arg0, %c0_i32, %c0_i32_0 : i32, i32, i32
  }
}

</mosaic_0001>

<bundles_post_ra>
// kernel: sc_decoder_block_forward.1
= control target key start
LH: loop header
LB: loop body
LE: loop exit
PB: predicated region body
PF: predicated region fallthrough
CT: control target
= control target key end

     0   :  { %s12289_s0 = inlined_call_operand.vmem [shape: bf16[2,32,64], index: 0, kind: input, shape index: {}]   ;;  %s12290_s1 = inlined_call_operand.vmem [shape: bf16[2,32,256], index: 1, kind: input, shape index: {}]   ;;  %s12291_s2 = inlined_call_operand.hbm [shape: bf16[64,256], index: 2, kind: input, shape index: {}]   ;;  %s12292_s3 = inlined_call_operand.hbm [shape: bf16[9,256,256], index: 3, kind: input, shape index: {}]   ;;  %s12293_s4 = inlined_call_operand.hbm [shape: bf16[9,32,32], index: 4, kind: input, shape index: {}]   ;;  %s12294_s5 = inlined_call_operand.vmem [shape: f32[32,1], index: 5, kind: input, shape index: {}]   ;;  %s12295_s6 = inlined_call_operand.vmem [shape: bf16[64,32], index: 6, kind: input, shape index: {}]   ;;  %s12296_s7 = inlined_call_operand.vmem [shape: bf16[64,32], index: 7, kind: input, shape index: {}]   ;;  %s12297_s8 = inlined_call_operand.vmem [shape: f32[64,1], index: 8, kind: input, shape index: {}]   ;;  %s12298_s9 = inlined_call_operand.vmem [shape: f32[64,8], index: 9, kind: input, shape index: {}]   ;;  %s12299_s10 = inlined_call_operand.hbm [shape: f32[1,8], index: 10, kind: input, shape index: {}]   ;;  %s12300_s11 = inlined_call_operand.vmem [shape: f32[64,8], index: 11, kind: input, shape index: {}]   ;;  %s12301_s12 = inlined_call_operand.vmem [shape: f32[64,1], index: 12, kind: input, shape index: {}]   ;;  %s12302_s13 = inlined_call_operand.hbm [shape: bf16[256,256], index: 13, kind: input, shape index: {}]   ;;  %s12303_s14 = inlined_call_operand.hbm [shape: bf16[256,256], index: 14, kind: input, shape index: {}]   ;;  %s12304_s15 = inlined_call_operand.<no memory space> [shape: f32[1,1], index: 15, kind: input, shape index: {}]   ;;  %s12305_s16 = inlined_call_operand.hbm [shape: bf16[64,64], index: 16, kind: input, shape index: {}]   ;;  %s12306_s17 = inlined_call_operand.hbm [shape: bf16[9,32,64], index: 17, kind: input, shape index: {}]   ;;  %s12307_s18 = inlined_call_operand.vmem [shape: f32[32,1], index: 18, kind: input, shape index: {}]   ;;  %s12308_s19 = inlined_call_operand.hbm [shape: bf16[9,32,32], index: 19, kind: input, shape index: {}]   ;;  %s12309_s20 = inlined_call_operand.vmem [shape: f32[32,1], index: 20, kind: input, shape index: {}]   ;;  %s12310_s21 = inlined_call_operand.vmem [shape: f32[2,32,256], index: 21, kind: output, shape index: {}]  }
   0x1   :  { %12358 = sst [smem:[#allocation49_spill]] %s12289_s0 }
   0x2   :  { %12359 = sst [smem:[#allocation50_spill]] %s12290_s1 }
   0x3   :  { %12360 = sst [smem:[#allocation51_spill]] %s12291_s2 }
   0x4   :  { %12361 = sst [smem:[#allocation52_spill]] %s12292_s3 }
   0x5   :  { %12362 = sst [smem:[#allocation53_spill]] %s12293_s4 }
   0x6   :  { %12363 = sst [smem:[#allocation54_spill]] %s12294_s5 }
   0x7   :  { %12364 = sst [smem:[#allocation55_spill]] %s12299_s10 }
   0x8   :  { %12365 = sst [smem:[#allocation56_spill]] %s12303_s14 }
   0x9   :  { %12366 = sst [smem:[#allocation57_spill]] %s12307_s18 }
   0xa   :  { %12367 = sst [smem:[#allocation58_spill]] %s12309_s20 }
   0xb   :  { %12368 = sst [smem:[#allocation59_spill]] %s12310_s21 }
   0xc   :  { %26 = sst [smem:[#allocation2]] %s12304_s15 }
   0xd   :  { %27 = vsyncpa [#allocation4], 0 }
   0xe   :  { %28 = vsyncpa [#allocation6], 0 }
   0xf   :  { %29 = vsyncpa [#allocation9], 0 }
  0x10   :  { %30 = vsyncpa [#allocation12], 0 }
  0x11   :  { %31 = vsyncpa [#allocation15], 0  ;;  %s10883_s26 = smov 0  }
  0x12 LB: > { %12369 = sst [smem:[#allocation22_spill]] %s10754_s26  ;;  %s10889_s27 = sadd.s32 4294967295, %s10754_s26   ;;  %s10754_s26 = sphi %s10883_s26, %s37_s26  }
  0x13   : > { %p8308_p0 = scmp.ge.s32.totalorder %s10754_s26, 1  ;;  %p519_p1 = scmp.lt.s32.totalorder %s10754_s26, 3 }
  0x14   : > { %p12318_p2 = scmp.eq.s32.totalorder %s10889_s27, 0  ;;  %s10756_s3 = smov [#allocation5]  }
  0x15   : > { %p10894_p3 = pnand %p8308_p0, %p519_p1  ;;  %s544_s28 = sshll.u32 %s10756_s3, 4  ;;  %s10898_s28 = int_to_ptr.vmem [resolvable:$true] %s544_s28 }
  0x16   : > { %s10757_s29 = smov [#allocation8]   ;;  %s10758_s30 = smov [#allocation11]  }
  0x17   : > { %s12370_s15 = scalar_select %p10894_p3, 1, 0 }
  0x18   : > { %p9094_p4 = pneg %p10894_p3  ;;  %s586_s0 = sshll.u32 %s10757_s29, 4  ;;  %s10902_s0 = int_to_ptr.vmem [resolvable:$true] %s586_s0 }
  0x19   : > { %s615_s5 = sshll.u32 %s10758_s30, 4  ;;  %s12372_s1 = sld [smem:[#allocation52_spill]]  ;;  %s10910_s5 = int_to_ptr.vmem [resolvable:$true] %s615_s5 }
  0x1a   : > { %p10906_p5 = pnand %p12318_p2, %p9094_p4 }
  0x1c   : > { %p10920_p7 = pneg %p10906_p5 }
  0x1f   : > { %s10476_s24 = scalar_lea.hbm %s12372_s1, 36864 }
  0x20   : > { %p10477_p6 = scmp.ne.s32.totalorder %s12372_s1, %s10476_s24  ;;  %p10483_p10 = scmp.lt.u32.totalorder %s10476_s24, %s12372_s1 }
  0x22   : > { %p10479_p8 = pnand %p10920_p7, %p10477_p6 }
  0x24   : > { %p10480_p9 = pneg %p10479_p8 }
  0x26   : > { %p10485_p11 = pnand %p10483_p10, %p10480_p9 }
  0x28   : > { %10488 = shalt.err (!%p10485_p11)
}
  0x29   : > { %s10489_s22 = scalar_lea.vmem %s10898_s28, 36864  ;;  %p10497_p1 = scmp.lt.s32.totalorder %s10898_s28, %s10898_s28 }
  0x2a   : > { %p10490_p12 = scmp.ne.s32.totalorder %s10898_s28, %s10489_s22  ;;  %p10498_p4 = scmp.lt.s32.totalorder %s10489_s22, %s10489_s22 }
  0x2c   : > { %p10492_p13 = pnand %p10490_p12, %p10920_p7  ;;  %p10499_p6 = por %p10498_p4, %p10497_p1 }
  0x2e   : > { %p10493_p0 = pneg %p10492_p13 }
  0x30   : > { %p10500_p8 = pnand %p10499_p6, %p10493_p0 }
  0x32   : > { %10503 = shalt.err (!%p10500_p8)
}
  0x33   : > { %s12320_s23 = smov 128   ;;  %s12322_s24 = smov 8  }
  0x34   : > { %9100 = dma.hbm_to_vmem [thread:$0]  (!%p10906_p5), %s12372_s1, 36864, %s10898_s28, [#allocation6], %s12320_s23, %s12320_s23, %s12322_s24  }
  0x35   : > { %s12374_s10 = sld [smem:[#allocation55_spill]] }
  0x3b   : > { %s10504_s22 = scalar_lea.hbm %s12374_s10, 16 }
  0x3c   : > { %p10505_p9 = scmp.ne.s32.totalorder %s12374_s10, %s10504_s22  ;;  %p10511_p12 = scmp.lt.u32.totalorder %s10504_s22, %s12374_s10 }
  0x3e   : > { %p10507_p10 = pnand %p10505_p9, %p10920_p7 }
  0x40   : > { %p10508_p11 = pneg %p10507_p10 }
  0x42   : > { %p10513_p13 = pnand %p10511_p12, %p10508_p11 }
  0x44   : > { %10516 = shalt.err (!%p10513_p13)
}
  0x45   : > { %s10517_s28 = scalar_lea.vmem %s10902_s0, 16  ;;  %s10524_s21 = scalar_lea.vmem %s10902_s0, 32 }
  0x46   : > { %p10518_p0 = scmp.ne.s32.totalorder %s10902_s0, %s10517_s28  ;;  %p10525_p6 = scmp.lt.s32.totalorder %s10902_s0, %s10902_s0 }
  0x47   : > { %p10526_p8 = scmp.lt.s32.totalorder %s10524_s21, %s10517_s28 }
  0x48   : > { %p10520_p1 = pnand %p10518_p0, %p10920_p7 }
  0x49   : > { %p10527_p9 = por %p10526_p8, %p10525_p6 }
  0x4a   : > { %p10521_p4 = pneg %p10520_p1 }
  0x4c   : > { %p10528_p10 = pnand %p10527_p9, %p10521_p4 }
  0x4e   : > { %10531 = shalt.err (!%p10528_p10)
}
  0x4f   : > { %9106 = dma.hbm_to_vmem [thread:$0]  (!%p10906_p5), %s12374_s10, 16, %s10902_s0, [#allocation9]  }
  0x50   : > { %s12375_s14 = sld [smem:[#allocation56_spill]] }
  0x56   : > { %s10532_s25 = scalar_lea.hbm %s12375_s14, 4096 }
  0x57   : > { %p10533_p11 = scmp.ne.s32.totalorder %s12375_s14, %s10532_s25  ;;  %p10539_p0 = scmp.lt.u32.totalorder %s10532_s25, %s12375_s14 }
  0x59   : > { %p10535_p12 = pnand %p10533_p11, %p10920_p7 }
  0x5b   : > { %p10536_p13 = pneg %p10535_p12 }
  0x5d   : > { %p10541_p1 = pnand %p10539_p0, %p10536_p13 }
  0x5f   : > { %10544 = shalt.err (!%p10541_p1)
}
  0x60   : > { %s10545_s0 = scalar_lea.vmem %s10910_s5, 4096  ;;  %p10553_p9 = scmp.lt.s32.totalorder %s10910_s5, %s10910_s5 }
  0x61   : > { %p10546_p4 = scmp.ne.s32.totalorder %s10910_s5, %s10545_s0  ;;  %p10554_p10 = scmp.lt.s32.totalorder %s10545_s0, %s10545_s0 }
  0x63   : > { %p10548_p6 = pnand %p10546_p4, %p10920_p7  ;;  %p10555_p11 = por %p10554_p10, %p10553_p9 }
  0x65   : > { %p10549_p8 = pneg %p10548_p6 }
  0x67   : > { %p10556_p12 = pnand %p10555_p11, %p10549_p8 }
  0x69   : > { %10559 = shalt.err (!%p10556_p12)
}
  0x6a   : > { %9112 = dma.hbm_to_vmem [thread:$0]  (!%p10906_p5), %s12375_s14, 4096, %s10910_s5, [#allocation12], %s12320_s23, %s12320_s23, %s12322_s24  }
  0x6b   : > { %s10761_s20 = smov [#allocation14]   ;;  %s10762_s2 = smov [#allocation3]  }
  0x6c   : > { %s644_s26 = sshll.u32 %s10761_s20, 4  ;;  %s531_s25 = sshll.u32 %s10762_s2, 4  ;;  %s645_s26 = int_to_ptr.vmem [resolvable:$true] %s644_s26  ;;  %s10994_s25 = int_to_ptr.vmem [resolvable:$true] %s531_s25 }
  0x6d   : > { %s10560_s22 = scalar_lea.hbm %s12306_s17, 2304 }
  0x6e   : > { %p10561_p13 = scmp.ne.s32.totalorder %s12306_s17, %s10560_s22  ;;  %p10567_p4 = scmp.lt.u32.totalorder %s10560_s22, %s12306_s17 }
  0x70   : > { %p10563_p0 = pnand %p10561_p13, %p10920_p7 }
  0x72   : > { %p10564_p1 = pneg %p10563_p0 }
  0x74   : > { %p10569_p6 = pnand %p10567_p4, %p10564_p1 }
  0x76   : > { %10572 = shalt.err (!%p10569_p6)
}
  0x77   : > { %s10573_s18 = scalar_lea.vmem %s645_s26, 2304  ;;  %p10581_p11 = scmp.lt.s32.totalorder %s645_s26, %s645_s26 }
  0x78   : > { %p10574_p8 = scmp.ne.s32.totalorder %s645_s26, %s10573_s18  ;;  %p10582_p12 = scmp.lt.s32.totalorder %s10573_s18, %s10573_s18 }
  0x7a   : > { %p10576_p9 = pnand %p10574_p8, %p10920_p7  ;;  %p10583_p2 = por %p10582_p12, %p10581_p11 }
  0x7c   : > { %p10577_p10 = pneg %p10576_p9 }
  0x7e   : > { %p10584_p3 = pnand %p10583_p2, %p10577_p10 }
  0x80   : > { %10587 = shalt.err (!%p10584_p3)
}
  0x81   : > { %s12324_s20 = smov 64   ;;  %s12326_s2 = smov 4  }
  0x82   : > { %9118 = dma.hbm_to_vmem [thread:$0]  (!%p10906_p5), %s12306_s17, 2304, %s645_s26, [#allocation15], %s12324_s20, %s12324_s20, %s12326_s2  }
  0x83   : > { %s12376_s0 = sld [smem:[#allocation51_spill]] }
  0x89   : > { %s10588_s21 = scalar_lea.hbm %s12376_s0, 1024 }
  0x8a   : > { %p10589_p2 = scmp.ne.s32.totalorder %s12376_s0, %s10588_s21  ;;  %p10595_p0 = scmp.lt.u32.totalorder %s10588_s21, %s12376_s0 }
  0x8c   : > { %p10591_p3 = pnand %p10589_p2, %p10920_p7 }
  0x8e   : > { %p10592_p13 = pneg %p10591_p3 }
  0x90   : > { %p10597_p1 = pnand %p10595_p0, %p10592_p13 }
  0x92   : > { %10600 = shalt.err (!%p10597_p1)
}
  0x93   : > { %s10601_s26 = scalar_lea.vmem %s10994_s25, 1024  ;;  %p10609_p9 = scmp.lt.s32.totalorder %s10994_s25, %s10994_s25 }
  0x94   : > { %p10602_p4 = scmp.ne.s32.totalorder %s10994_s25, %s10601_s26  ;;  %p10610_p10 = scmp.lt.s32.totalorder %s10601_s26, %s10601_s26 }
  0x96   : > { %p10604_p6 = pnand %p10602_p4, %p10920_p7  ;;  %p10611_p11 = por %p10610_p10, %p10609_p9 }
  0x98   : > { %p10605_p8 = pneg %p10604_p6 }
  0x9a   : > { %p10612_p12 = pnand %p10611_p11, %p10605_p8 }
  0x9c   : > { %10615 = shalt.err (!%p10612_p12)
}
  0x9d   : > { %s12377_s23 = smov 8   ;;  %s12378_s24 = smov 128  }
  0x9e   : > { %9097 = dma.hbm_to_vmem [thread:$0]  (!%p10906_p5), %s12376_s0, 1024, %s10994_s25, [#allocation4], %s12378_s24, %s12378_s24, %s12377_s23  }
  0x9f   : > { %s10765_s22 = smov [#allocation7]   ;;  %s10766_s21 = smov [#allocation10]  }
  0xa0   : > { %s557_s28 = sshll.u32 %s10765_s22, 4  ;;  %s602_s5 = sshll.u32 %s10766_s21, 4  ;;  %s558_s28 = int_to_ptr.vmem [resolvable:$true] %s557_s28  ;;  %s11043_s5 = int_to_ptr.vmem [resolvable:$true] %s602_s5 }
  0xa1   : > { %s12379_s20 = sld [smem:[#allocation53_spill]] }
  0xa7   : > { %s10616_s2 = scalar_lea.hbm %s12379_s20, 2304 }
  0xa8   : > { %p10617_p2 = scmp.ne.s32.totalorder %s12379_s20, %s10616_s2  ;;  %p10623_p0 = scmp.lt.u32.totalorder %s10616_s2, %s12379_s20 }
  0xaa   : > { %p10619_p3 = pnand %p10617_p2, %p10920_p7 }
  0xac   : > { %p10620_p13 = pneg %p10619_p3 }
  0xae   : > { %p10625_p1 = pnand %p10623_p0, %p10620_p13 }
  0xb0   : > { %10628 = shalt.err (!%p10625_p1)
}
  0xb1   : > { %s10629_s30 = scalar_lea.vmem %s558_s28, 2304  ;;  %p10637_p9 = scmp.lt.s32.totalorder %s558_s28, %s558_s28 }
  0xb2   : > { %p10630_p4 = scmp.ne.s32.totalorder %s558_s28, %s10629_s30  ;;  %p10638_p10 = scmp.lt.s32.totalorder %s10629_s30, %s10629_s30 }
  0xb4   : > { %p10632_p6 = pnand %p10630_p4, %p10920_p7  ;;  %p10639_p11 = por %p10638_p10, %p10637_p9 }
  0xb6   : > { %p10633_p8 = pneg %p10632_p6 }
  0xb8   : > { %p10640_p12 = pnand %p10639_p11, %p10633_p8 }
  0xba   : > { %10643 = shalt.err (!%p10640_p12)
}
  0xbb   : > { %s12380_s10 = smov 4   ;;  %s12381_s1 = smov 64  }
  0xbc   : > { %9103 = dma.hbm_to_vmem [thread:$0]  (!%p10906_p5), %s12379_s20, 2304, %s558_s28, [#allocation6], %s12381_s1, %s12381_s1, %s12380_s10  }
  0xbd   : > { %s10644_s26 = scalar_lea.hbm %s12302_s13, 4096 }
  0xbe   : > { %p10645_p2 = scmp.ne.s32.totalorder %s12302_s13, %s10644_s26  ;;  %p10651_p0 = scmp.lt.u32.totalorder %s10644_s26, %s12302_s13 }
  0xc0   : > { %p10647_p3 = pnand %p10645_p2, %p10920_p7 }
  0xc2   : > { %p10648_p13 = pneg %p10647_p3 }
  0xc4   : > { %p10653_p1 = pnand %p10651_p0, %p10648_p13 }
  0xc6   : > { %10656 = shalt.err (!%p10653_p1)
}
  0xc7   : > { %s10657_s28 = scalar_lea.vmem %s11043_s5, 4096  ;;  %p10665_p9 = scmp.lt.s32.totalorder %s11043_s5, %s11043_s5 }
  0xc8   : > { %p10658_p4 = scmp.ne.s32.totalorder %s11043_s5, %s10657_s28  ;;  %p10666_p10 = scmp.lt.s32.totalorder %s10657_s28, %s10657_s28 }
  0xca   : > { %p10660_p6 = pnand %p10658_p4, %p10920_p7  ;;  %p10667_p11 = por %p10666_p10, %p10665_p9 }
  0xcc   : > { %p10661_p8 = pneg %p10660_p6 }
  0xce   : > { %p10668_p12 = pnand %p10667_p11, %p10661_p8 }
  0xd0   : > { %10671 = shalt.err (!%p10668_p12)
}
  0xd1   : > { %9109 = dma.hbm_to_vmem [thread:$0]  (!%p10906_p5), %s12302_s13, 4096, %s11043_s5, [#allocation9], %s12378_s24, %s12378_s24, %s12377_s23  }
  0xd2   : > { %s10767_s2 = smov [#allocation13]   ;;  %s10768_s18 = smov [#allocation16]  }
  0xd3   : > { %s631_s21 = sshll.u32 %s10767_s2, 4  ;;  %s660_s26 = sshll.u32 %s10768_s18, 4  ;;  %s632_s21 = int_to_ptr.vmem [resolvable:$true] %s631_s21  ;;  %s11092_s26 = int_to_ptr.vmem [resolvable:$true] %s660_s26 }
  0xd4   : > { %s10672_s30 = scalar_lea.hbm %s12305_s16, 512 }
  0xd5   : > { %p10673_p2 = scmp.ne.s32.totalorder %s12305_s16, %s10672_s30  ;;  %p10679_p0 = scmp.lt.u32.totalorder %s10672_s30, %s12305_s16 }
  0xd7   : > { %p10675_p3 = pnand %p10673_p2, %p10920_p7 }
  0xd9   : > { %p10676_p13 = pneg %p10675_p3 }
  0xdb   : > { %p10681_p1 = pnand %p10679_p0, %p10676_p13 }
  0xdd   : > { %10684 = shalt.err (!%p10681_p1)
}
  0xde   : > { %s10685_s24 = scalar_lea.vmem %s632_s21, 512  ;;  %p10693_p9 = scmp.lt.s32.totalorder %s632_s21, %s632_s21 }
  0xdf   : > { %p10686_p4 = scmp.ne.s32.totalorder %s632_s21, %s10685_s24  ;;  %p10694_p10 = scmp.lt.s32.totalorder %s10685_s24, %s10685_s24 }
  0xe1   : > { %p10688_p6 = pnand %p10686_p4, %p10920_p7  ;;  %p10695_p11 = por %p10694_p10, %p10693_p9 }
  0xe3   : > { %p10689_p8 = pneg %p10688_p6 }
  0xe5   : > { %p10696_p12 = pnand %p10695_p11, %p10689_p8 }
  0xe7   : > { %10699 = shalt.err (!%p10696_p12)
}
  0xe8   : > { %9115 = dma.hbm_to_vmem [thread:$0]  (!%p10906_p5), %s12305_s16, 512, %s632_s21, [#allocation12], %s12381_s1, %s12381_s1, %s12380_s10  }
  0xe9   : > { %s10700_s18 = scalar_lea.hbm %s12308_s19, 2304 }
  0xea   : > { %p10701_p2 = scmp.ne.s32.totalorder %s12308_s19, %s10700_s18  ;;  %p10707_p0 = scmp.lt.u32.totalorder %s10700_s18, %s12308_s19 }
  0xec   : > { %p10703_p3 = pnand %p10701_p2, %p10920_p7 }
  0xee   : > { %p10704_p13 = pneg %p10703_p3 }
  0xf0   : > { %p10709_p1 = pnand %p10707_p0, %p10704_p13 }
  0xf2   : > { %10712 = shalt.err (!%p10709_p1)
}
  0xf3   : > { %s10713_s21 = scalar_lea.vmem %s11092_s26, 2304  ;;  %p10721_p9 = scmp.lt.s32.totalorder %s11092_s26, %s11092_s26 }
  0xf4   : > { %p10714_p4 = scmp.ne.s32.totalorder %s11092_s26, %s10713_s21  ;;  %p10722_p10 = scmp.lt.s32.totalorder %s10713_s21, %s10713_s21 }
  0xf6   : > { %p10716_p6 = pnand %p10714_p4, %p10920_p7  ;;  %p10723_p11 = por %p10722_p10, %p10721_p9 }
  0xf8   : > { %p10717_p8 = pneg %p10716_p6 }
  0xfa   : > { %p10724_p12 = pnand %p10723_p11, %p10717_p8 }
  0xfc   : > { %10727 = shalt.err (!%p10724_p12)
}
  0xfd   : > { %9121 = dma.hbm_to_vmem [thread:$0]  (!%p10906_p5), %s12308_s19, 2304, %s11092_s26, [#allocation15], %s12381_s1, %s12381_s1, %s12380_s10  }
  0xfe   : > { %p12382_p2 = scmp.ne.s32.totalorder %s12370_s15, 0 }
 0x100   : > { %695 = sbr.rel (%p12382_p2) target bundleno = 5664 (0x1620), region = 104 }
 0x107   : > { %p12383_p7 = scmp.eq.s32.totalorder %s10889_s27, 0 }
 0x109   : > { %10733 = dma.done.wait (%p12383_p7), [#allocation4], 1024   ;;  %p12384_p3 = pmov %p12383_p7 }
 0x10b   : > { %10735 = vsyncadd (%p12384_p3), [#allocation4], 4294966272  ;;  %p12385_p13 = pmov %p12384_p3 }
 0x10c   : > { %p12386_p0 = pmov %p12384_p3 }
 0x10d   : > { %10737 = dma.done.wait (%p12385_p13), [#allocation6], 39168  }
 0x10e   : > { %10739 = vsyncadd (%p12386_p0), [#allocation6], 4294928128  ;;  %p12387_p1 = pmov %p12386_p0 }
 0x10f   : > { %p12388_p5 = pmov %p12386_p0 }
 0x110   : > { %10741 = dma.done.wait (%p12387_p1), [#allocation9], 4112  }
 0x111   : > { %10743 = vsyncadd (%p12388_p5), [#allocation9], 4294963184  ;;  %p12389_p4 = pmov %p12386_p0 }
 0x112   : > { %p12390_p6 = pmov %p12386_p0 }
 0x113   : > { %10745 = dma.done.wait (%p12389_p4), [#allocation12], 4608  }
 0x114   : > { %10747 = vsyncadd (%p12390_p6), [#allocation12], 4294962688  ;;  %p12391_p8 = pmov %p12386_p0 }
 0x115   : > { %p12392_p9 = pmov %p12386_p0 }
 0x116   : > { %10749 = dma.done.wait (%p12391_p8), [#allocation15], 4608  }
 0x117   : > { %10751 = vsyncadd (%p12392_p9), [#allocation15], 4294962688  ;;  %p792_p10 = scmp.lt.s32.totalorder %s10889_s27, 1  ;;  %v12330_v0 = vmov 0   ;;  %v9164_v1 = vld [vmem:[#allocation3 + $0x4] ss:$8 sps:$4 sm:$0xff]  }
 0x118   : > { %909 = vmatprep.mubr.bf16.mxu1 %v12330_v0  ;;  %9162 = vset.pattern.permute.xlu0 %v12330_v0  ;;  %v9166_v2 = vld [vmem:[#allocation3] ss:$8 sps:$4 sm:$0xff]   ;;  %v9167_v3 = vld [vmem:[#allocation3 + $0x14] ss:$8 sps:$4 sm:$0xff]   ;;  %v9169_v4 = vld [vmem:[#allocation3 + $0x10] ss:$8 sps:$4 sm:$0xff]  }
 0x119   : > { %9163 = vset.pattern.permute.xlu1 %v12330_v0  ;;  %s12486_s27 = smov (!%p792_p10, %s10889_s27), 1  ;;  %877 = vmatprep.subr.bf16.mxu1 %v9164_v1  ;;  %v9170_v5 = vld [vmem:[#allocation3 + $0x24] ss:$8 sps:$4 sm:$0xff]   ;;  %s12393_s10 = sld [smem:[#allocation49_spill]]  ;;  %v9172_v6 = vld [vmem:[#allocation3 + $0x20] ss:$8 sps:$4 sm:$0xff]  }
 0x11a   : > { %s8847_s15 = sshll.u32 %s12486_s27, 4  ;;  %878 = vmatpush1.bf16.msra.mxu1 %v9166_v2  ;;  %v9173_v7 = vld [vmem:[#allocation3 + $0x34] ss:$8 sps:$4 sm:$0xff]   ;;  %v9178_v8 = vld [vmem:[#allocation5 + $0x104] ss:$8 sps:$4 sm:$0xff]   ;;  %vm870_vm0 = vcmask 523264  }
 0x11b   : > { %879 = vmatprep.subr.bf16.mxu1 %v9167_v3  ;;  %v9183_v9 = vld [vmem:[#allocation5 + $0x100] ss:$8 sps:$4 sm:$0xff]   ;;  %1380 = vmatprep.subr.bf16.mxu0 %v9178_v8  ;;  %v9184_v10 = vld [vmem:[#allocation5 + $0x114] ss:$8 sps:$4 sm:$0xff]   ;;  %v9175_v11 = vld [vmem:[#allocation3 + $0x30] ss:$8 sps:$4 sm:$0xff]  }
 0x11c   : > { %1381 = vmatpush1.bf16.msra.mxu0 %v9183_v9  ;;  %v9182_v12 = vld [vmem:[#allocation5 + $0x4] ss:$8 sps:$4 sm:$0xff]   ;;  %v9189_v13 = vld [vmem:[#allocation5 + $0x110] ss:$8 sps:$4 sm:$0xff]   ;;  %v9180_v16 = vld [vmem:[#allocation5] ss:$8 sps:$4 sm:$0xff]  }
 0x11d   : > { %1382 = vmatprep.subr.bf16.mxu0 %v9184_v10  ;;  %v9190_v14 = vld [vmem:[#allocation5 + $0x124] ss:$8 sps:$4 sm:$0xff]   ;;  %v9188_v17 = vld [vmem:[#allocation5 + $0x14] ss:$8 sps:$4 sm:$0xff]   ;;  %v9195_v18 = vld [vmem:[#allocation5 + $0x120] ss:$8 sps:$4 sm:$0xff]  }
 0x11e   : > { %880 = vmatpush1.bf16.msra.mxu1 %v9169_v4  ;;  %v9196_v19 = vld [vmem:[#allocation5 + $0x134] ss:$8 sps:$4 sm:$0xff]   ;;  %v9186_v20 = vld [vmem:[#allocation5 + $0x10] ss:$8 sps:$4 sm:$0xff]   ;;  %v9194_v21 = vld [vmem:[#allocation5 + $0x24] ss:$8 sps:$4 sm:$0xff]  }
 0x11f   : > { %s11174_s1 = scalar_lea.vmem %s12393_s10, %s8847_s15  ;;  %881 = vmatprep.subr.bf16.mxu1 %v9170_v5  ;;  %v9201_v22 = vld [vmem:[#allocation5 + $0x130] ss:$8 sps:$4 sm:$0xff]   ;;  %v9202_v23 = vld [vmem:[#allocation5 + $0x144] ss:$8 sps:$4 sm:$0xff]   ;;  %v9192_v25 = vld [vmem:[#allocation5 + $0x20] ss:$8 sps:$4 sm:$0xff]  }
 0x120   : > { %v9176_v15 = vld [vmem:[%s11174_s1] sm:$0xff]   ;;  %1383 = vmatpush1.bf16.msra.mxu0 %v9189_v13  ;;  %v9177_v24 = vld [vmem:[%s11174_s1 + $0x8] sm:$0xff]   ;;  %v9200_v26 = vld [vmem:[#allocation5 + $0x34] ss:$8 sps:$4 sm:$0xff]   ;;  %vm1452_vm1 = vcmask 261120   ;;  %s12394_s14 = sld [smem:[#allocation54_spill]] }
 0x121   : > { %1384 = vmatprep.subr.bf16.mxu0 %v9190_v14  ;;  %v9207_v27 = vld [vmem:[#allocation5 + $0x140] ss:$8 sps:$4 sm:$0xff]   ;;  %v9208_v28 = vld [vmem:[#allocation5 + $0x154] ss:$8 sps:$4 sm:$0xff]   ;;  %v9198_v29 = vld [vmem:[#allocation5 + $0x30] ss:$8 sps:$4 sm:$0xff]  }
 0x122   : > { %882 = vmatpush1.bf16.msra.mxu1 %v9172_v6  ;;  %v9206_v30 = vld [vmem:[#allocation5 + $0x44] ss:$8 sps:$4 sm:$0xff]   ;;  %v9213_v31 = vld [vmem:[#allocation5 + $0x150] ss:$8 sps:$4 sm:$0xff]   ;;  %v9204_v33 = vld [vmem:[#allocation5 + $0x40] ss:$8 sps:$4 sm:$0xff]  }
 0x123   : > { %883 = vmatprep.subr.bf16.mxu1 %v9173_v7  ;;  %v9214_v32 = vld [vmem:[#allocation5 + $0x164] ss:$8 sps:$4 sm:$0xff]   ;;  %v9212_v34 = vld [vmem:[#allocation5 + $0x54] ss:$8 sps:$4 sm:$0xff]   ;;  %v9219_v35 = vld [vmem:[#allocation5 + $0x160] ss:$8 sps:$4 sm:$0xff]  }
 0x124   : > { %1385 = vmatpush1.bf16.msra.mxu0 %v9195_v18  ;;  %v9220_v36 = vld [vmem:[#allocation5 + $0x174] ss:$8 sps:$4 sm:$0xff]   ;;  %v9210_v37 = vld [vmem:[#allocation5 + $0x50] ss:$8 sps:$4 sm:$0xff]   ;;  %v9218_v38 = vld [vmem:[#allocation5 + $0x64] ss:$8 sps:$4 sm:$0xff]  }
 0x125   : > { %1386 = vmatprep.subr.bf16.mxu0 %v9196_v19  ;;  %v9225_v39 = vld [vmem:[#allocation5 + $0x170] ss:$8 sps:$4 sm:$0xff]   ;;  %v9226_v40 = vld [vmem:[#allocation5 + $0x184] ss:$8 sps:$4 sm:$0xff]   ;;  %v9216_v41 = vld [vmem:[#allocation5 + $0x60] ss:$8 sps:$4 sm:$0xff]  }
 0x126   : > { %884 = vmatpush1.bf16.msra.mxu1 %v9175_v11  ;;  %v9224_v42 = vld [vmem:[#allocation5 + $0x74] ss:$8 sps:$4 sm:$0xff]   ;;  %v9231_v43 = vld [vmem:[#allocation5 + $0x180] ss:$8 sps:$4 sm:$0xff]   ;;  %v9222_v45 = vld [vmem:[#allocation5 + $0x70] ss:$8 sps:$4 sm:$0xff]  }
 0x127   : > { %1126 = vmatprep.subr.bf16.mxu1 %v9182_v12  ;;  %v9232_v44 = vld [vmem:[#allocation5 + $0x194] ss:$8 sps:$4 sm:$0xff]   ;;  %v9230_v46 = vld [vmem:[#allocation5 + $0x84] ss:$8 sps:$4 sm:$0xff]   ;;  %v9237_v47 = vld [vmem:[#allocation5 + $0x190] ss:$8 sps:$4 sm:$0xff]  }
 0x128   : > { %1387 = vmatpush1.bf16.msra.mxu0 %v9201_v22  ;;  %v9228_v48 = vld [vmem:[#allocation5 + $0x80] ss:$8 sps:$4 sm:$0xff]   ;;  %v9238_v49 = vld [vmem:[#allocation5 + $0x1a4] ss:$8 sps:$4 sm:$0xff]   ;;  %v9236_v50 = vld [vmem:[#allocation5 + $0x94] ss:$8 sps:$4 sm:$0xff]  }
 0x129   : > { %8345 = vmatmul.mubr.msk.bf16.vlgmr.msra.gmra.mrb[0].mxu1 %vm870_vm0, %v9176_v15  ;;  %1388 = vmatprep.subr.bf16.mxu0 %v9202_v23  ;;  %v9243_v51 = vld [vmem:[#allocation5 + $0x1a0] ss:$8 sps:$4 sm:$0xff]   ;;  %v9244_v52 = vld [vmem:[#allocation5 + $0x1b4] ss:$8 sps:$4 sm:$0xff]   ;;  %v9234_v53 = vld [vmem:[#allocation5 + $0x90] ss:$8 sps:$4 sm:$0xff]  }
 0x12a   : > { %919 = vmatprep.mubr.bf16.mxu1 %v12330_v0  ;;  %1127 = vmatpush1.bf16.msra.mxu1 %v9180_v16  ;;  %v9242_v54 = vld [vmem:[#allocation5 + $0xa4] ss:$8 sps:$4 sm:$0xff]   ;;  %v9249_v55 = vld [vmem:[#allocation5 + $0x1b0] ss:$8 sps:$4 sm:$0xff]   ;;  %v9240_v57 = vld [vmem:[#allocation5 + $0xa0] ss:$8 sps:$4 sm:$0xff]  }
 0x12b   : > { %1128 = vmatprep.subr.bf16.mxu1 %v9188_v17  ;;  %v9250_v56 = vld [vmem:[#allocation5 + $0x1c4] ss:$8 sps:$4 sm:$0xff]   ;;  %v9248_v58 = vld [vmem:[#allocation5 + $0xb4] ss:$8 sps:$4 sm:$0xff]   ;;  %v9255_v59 = vld [vmem:[#allocation5 + $0x1c0] ss:$8 sps:$4 sm:$0xff]  }
 0x12c   : > { %1389 = vmatpush1.bf16.msra.mxu0 %v9207_v27  ;;  %v9256_v60 = vld [vmem:[#allocation5 + $0x1d4] ss:$8 sps:$4 sm:$0xff]   ;;  %v9246_v61 = vld [vmem:[#allocation5 + $0xb0] ss:$8 sps:$4 sm:$0xff]   ;;  %v9254_v62 = vld [vmem:[#allocation5 + $0xc4] ss:$8 sps:$4 sm:$0xff]  }
 0x12d   : > { %1390 = vmatprep.subr.bf16.mxu0 %v9208_v28  ;;  %v9261_v63 = vld [vmem:[#allocation5 + $0x1d0] ss:$8 sps:$4 sm:$0xff]   ;;  %v9262_v1 = vld [vmem:[#allocation5 + $0x1e4] ss:$8 sps:$4 sm:$0xff]   ;;  %v9252_v2 = vld [vmem:[#allocation5 + $0xc0] ss:$8 sps:$4 sm:$0xff]  }
 0x12e   : > { %1129 = vmatpush1.bf16.msra.mxu1 %v9186_v20  ;;  %v9260_v3 = vld [vmem:[#allocation5 + $0xd4] ss:$8 sps:$4 sm:$0xff]   ;;  %v9267_v4 = vld [vmem:[#allocation5 + $0x1e0] ss:$8 sps:$4 sm:$0xff]   ;;  %v9258_v5 = vld [vmem:[#allocation5 + $0xd0] ss:$8 sps:$4 sm:$0xff]  }
 0x12f   : > { %1130 = vmatprep.subr.bf16.mxu1 %v9194_v21  ;;  %v9266_v6 = vld [vmem:[#allocation5 + $0xe4] ss:$8 sps:$4 sm:$0xff]   ;;  %v9264_v7 = vld [vmem:[#allocation5 + $0xe0] ss:$8 sps:$4 sm:$0xff]   ;;  %v9268_v8 = vld [vmem:[#allocation5 + $0x1f4] ss:$8 sps:$4 sm:$0xff]  }
 0x130   : > { %1391 = vmatpush1.bf16.msra.mxu0 %v9213_v31  ;;  %v9272_v9 = vld [vmem:[#allocation5 + $0xf4] ss:$8 sps:$4 sm:$0xff]   ;;  %v9273_v10 = vld [vmem:[#allocation5 + $0x1f0] ss:$8 sps:$4 sm:$0xff]   ;;  %v9276_v12 = vld [vmem:[#allocation5 + $0x204] ss:$8 sps:$4 sm:$0xff]  }
 0x131   : > { %8346 = vmatmul.mubr.msk.bf16.gmra.mrb[4].mxu1 %vm870_vm0, %v9177_v24  ;;  %1392 = vmatprep.subr.bf16.mxu0 %v9214_v32  ;;  %v9270_v11 = vld [vmem:[#allocation5 + $0xf0] ss:$8 sps:$4 sm:$0xff]   ;;  %v9274_v19 = vld [vmem:[#allocation5 + $0x200] ss:$8 sps:$4 sm:$0xff]   ;;  %v9279_v20 = vld [vmem:[#allocation5 + $0x214] ss:$8 sps:$4 sm:$0xff]  }
 0x132   : > { %1131 = vmatpush1.bf16.msra.mxu1 %v9192_v25  ;;  %v9277_v22 = vld [vmem:[#allocation5 + $0x210] ss:$8 sps:$4 sm:$0xff]   ;;  %v9282_v24 = vld [vmem:[#allocation5 + $0x224] ss:$8 sps:$4 sm:$0xff]   ;;  %s8848_s29 = sshll.u32 %s12486_s27, 5  ;;  %s12395_s28 = sld [smem:[#allocation50_spill]] }
 0x133   : > { %1132 = vmatprep.subr.bf16.mxu1 %v9200_v26  ;;  %v9283_v31 = vld [vmem:[#allocation5 + $0x230] ss:$8 sps:$4 sm:$0xff]   ;;  %v9288_v32 = vld [vmem:[#allocation5 + $0x244] ss:$8 sps:$4 sm:$0xff]   ;;  %vm4424_vm2 = vcmask 64512   ;;  %s12396_s18 = sld [smem:[#allocation57_spill]] }
 0x134   : > { %1393 = vmatpush1.bf16.msra.mxu0 %v9219_v35  ;;  %v9289_v35 = vld [vmem:[#allocation5 + $0x250] ss:$8 sps:$4 sm:$0xff]   ;;  %s12397_s4 = sld [smem:[#allocation58_spill]]  ;;  %s5086_s22 = sld [smem:[#allocation2]] }
 0x135   : > { %1394 = vmatprep.subr.bf16.mxu0 %v9220_v36  ;;  %v9294_v36 = vld [vmem:[#allocation5 + $0x264] ss:$8 sps:$4 sm:$0xff]   ;;  %s8849_s2 = sshll.u32 %s12486_s27, 6  ;;  %s12483_s30 = sld [smem:[#allocation59_spill]] }
 0x136   : > { %1133 = vmatpush1.bf16.msra.mxu1 %v9198_v29  ;;  %v9280_v29 = vld [vmem:[#allocation5 + $0x220] ss:$8 sps:$4 sm:$0xff]  }
 0x137   : > { %1134 = vmatprep.subr.bf16.mxu1 %v9206_v30  ;;  %v9285_v30 = vld [vmem:[#allocation5 + $0x234] ss:$8 sps:$4 sm:$0xff]  }
 0x138   : > { %1395 = vmatpush1.bf16.msra.mxu0 %v9225_v39  ;;  %v9295_v39 = vld [vmem:[#allocation5 + $0x270] ss:$8 sps:$4 sm:$0xff]   ;;  %s801_s21 = scalar_lea.vmem %s12395_s28, %s8848_s29 }
 0x139   : > { %1396 = vmatprep.subr.bf16.mxu0 %v9226_v40  ;;  %v9300_v40 = vld [vmem:[#allocation5 + $0x284] ss:$8 sps:$4 sm:$0xff]  }
 0x13a   : > { %1135 = vmatpush1.bf16.msra.mxu1 %v9204_v33  ;;  %v9286_v33 = vld [vmem:[#allocation5 + $0x240] ss:$8 sps:$4 sm:$0xff]  }
 0x13b   : > { %1136 = vmatprep.subr.bf16.mxu1 %v9212_v34  ;;  %v9291_v34 = vld [vmem:[#allocation5 + $0x254] ss:$8 sps:$4 sm:$0xff]   ;;  %s12276_s28 = scalar_lea.vmem %s12483_s30, %s8849_s2 }
 0x13c   : > { %1397 = vmatpush1.bf16.msra.mxu0 %v9231_v43  ;;  %v9301_v43 = vld [vmem:[#allocation5 + $0x290] ss:$8 sps:$4 sm:$0xff]  }
 0x13d   : > { %1398 = vmatprep.subr.bf16.mxu0 %v9232_v44  ;;  %v9306_v44 = vld [vmem:[#allocation5 + $0x2a4] ss:$8 sps:$4 sm:$0xff]  }
 0x13e   : > { %1137 = vmatpush1.bf16.msra.mxu1 %v9210_v37  ;;  %v9292_v37 = vld [vmem:[#allocation5 + $0x260] ss:$8 sps:$4 sm:$0xff]  }
 0x13f   : > { %1138 = vmatprep.subr.bf16.mxu1 %v9218_v38  ;;  %v9297_v38 = vld [vmem:[#allocation5 + $0x274] ss:$8 sps:$4 sm:$0xff]  }
 0x140   : > { %1399 = vmatpush1.bf16.msra.mxu0 %v9237_v47  ;;  %v9307_v47 = vld [vmem:[#allocation5 + $0x2b0] ss:$8 sps:$4 sm:$0xff]  }
 0x141   : > { %1400 = vmatprep.subr.bf16.mxu0 %v9238_v49  ;;  %v9310_v49 = vld [vmem:[#allocation5 + $0x2c0] ss:$8 sps:$4 sm:$0xff]  }
 0x142   : > { %1139 = vmatpush1.bf16.msra.mxu1 %v9216_v41  ;;  %v9298_v41 = vld [vmem:[#allocation5 + $0x280] ss:$8 sps:$4 sm:$0xff]  }
 0x143   : > { %1140 = vmatprep.subr.bf16.mxu1 %v9224_v42  ;;  %v9303_v42 = vld [vmem:[#allocation5 + $0x294] ss:$8 sps:$4 sm:$0xff]  }
 0x144   : > { %1401 = vmatpush1.bf16.msra.mxu0 %v9243_v51  ;;  %v9313_v51 = vld [vmem:[#allocation5 + $0x2d0] ss:$8 sps:$4 sm:$0xff]  }
 0x145   : > { %1402 = vmatprep.subr.bf16.mxu0 %v9244_v52  ;;  %v9318_v52 = vld [vmem:[#allocation5 + $0x2e4] ss:$8 sps:$4 sm:$0xff]  }
 0x146   : > { %1141 = vmatpush1.bf16.msra.mxu1 %v9222_v45  ;;  %v9304_v45 = vld [vmem:[#allocation5 + $0x2a0] ss:$8 sps:$4 sm:$0xff]  }
 0x147   : > { %1142 = vmatprep.subr.bf16.mxu1 %v9230_v46  ;;  %v9309_v46 = vld [vmem:[#allocation5 + $0x2b4] ss:$8 sps:$4 sm:$0xff]  }
 0x148   : > { %1403 = vmatpush1.bf16.msra.mxu0 %v9249_v55  ;;  %v9319_v55 = vld [vmem:[#allocation5 + $0x2f0] ss:$8 sps:$4 sm:$0xff]  }
 0x149   : > { %1404 = vmatprep.subr.bf16.mxu0 %v9250_v56  ;;  %v9324_v56 = vld [vmem:[#allocation5 + $0x404] ss:$8 sps:$4 sm:$0xff]  }
 0x14a   : > { %1143 = vmatpush1.bf16.msra.mxu1 %v9228_v48  ;;  %v9312_v48 = vld [vmem:[#allocation5 + $0x2c4] ss:$8 sps:$4 sm:$0xff]  }
 0x14b   : > { %1144 = vmatprep.subr.bf16.mxu1 %v9236_v50  ;;  %v9315_v50 = vld [vmem:[#allocation5 + $0x2d4] ss:$8 sps:$4 sm:$0xff]  }
 0x14c   : > { %1405 = vmatpush1.bf16.msra.mxu0 %v9255_v59  ;;  %v9325_v59 = vld [vmem:[#allocation5 + $0x410] ss:$8 sps:$4 sm:$0xff]  }
 0x14d   : > { %1406 = vmatprep.subr.bf16.mxu0 %v9256_v60  ;;  %v9330_v60 = vld [vmem:[#allocation5 + $0x424] ss:$8 sps:$4 sm:$0xff]  }
 0x14e   : > { %1145 = vmatpush1.bf16.msra.mxu1 %v9234_v53  ;;  %v9316_v53 = vld [vmem:[#allocation5 + $0x2e0] ss:$8 sps:$4 sm:$0xff]  }
 0x14f   : > { %1146 = vmatprep.subr.bf16.mxu1 %v9242_v54  ;;  %v9321_v54 = vld [vmem:[#allocation5 + $0x2f4] ss:$8 sps:$4 sm:$0xff]  }
 0x150   : > { %1407 = vmatpush1.bf16.msra.mxu0 %v9261_v63  ;;  %v9331_v63 = vld [vmem:[#allocation5 + $0x430] ss:$8 sps:$4 sm:$0xff]  }
 0x151   : > { %1408 = vmatprep.subr.bf16.mxu0 %v9262_v1  ;;  %v9336_v1 = vld [vmem:[#allocation5 + $0x444] ss:$8 sps:$4 sm:$0xff]  }
 0x152   : > { %1147 = vmatpush1.bf16.msra.mxu1 %v9240_v57  ;;  %v9322_v57 = vld [vmem:[#allocation5 + $0x400] ss:$8 sps:$4 sm:$0xff]  }
 0x153   : > { %1148 = vmatprep.subr.bf16.mxu1 %v9248_v58  ;;  %v9327_v58 = vld [vmem:[#allocation5 + $0x414] ss:$8 sps:$4 sm:$0xff]  }
 0x154   : > { %1409 = vmatpush1.bf16.msra.mxu0 %v9267_v4  ;;  %v9337_v4 = vld [vmem:[#allocation5 + $0x450] ss:$8 sps:$4 sm:$0xff]  }
 0x155   : > { %1410 = vmatprep.subr.bf16.mxu0 %v9268_v8  ;;  %v9343_v8 = vld [vmem:[#allocation5 + $0x470] ss:$8 sps:$4 sm:$0xff]  }
 0x156   : > { %1149 = vmatpush1.bf16.msra.mxu1 %v9246_v61  ;;  %v9328_v61 = vld [vmem:[#allocation5 + $0x420] ss:$8 sps:$4 sm:$0xff]  }
 0x157   : > { %1150 = vmatprep.subr.bf16.mxu1 %v9254_v62  ;;  %v9333_v62 = vld [vmem:[#allocation5 + $0x434] ss:$8 sps:$4 sm:$0xff]  }
 0x158   : > { %1411 = vmatpush1.bf16.msra.mxu0 %v9273_v10  ;;  %v9346_v10 = vld [vmem:[#allocation5 + $0x480] ss:$8 sps:$4 sm:$0xff]  }
 0x159   : > { %1774 = vmatprep.subr.bf16.mxu0 %v9276_v12  ;;  %v9349_v12 = vld [vmem:[#allocation5 + $0x490] ss:$8 sps:$4 sm:$0xff]  }
 0x15a   : > { %1151 = vmatpush1.bf16.msra.mxu1 %v9252_v2  ;;  %v9334_v2 = vld [vmem:[#allocation5 + $0x440] ss:$8 sps:$4 sm:$0xff]  }
 0x15b   : > { %1152 = vmatprep.subr.bf16.mxu1 %v9260_v3  ;;  %v9339_v3 = vld [vmem:[#allocation5 + $0x454] ss:$8 sps:$4 sm:$0xff]  }
 0x15e   : > { %1153 = vmatpush1.bf16.msra.mxu1 %v9258_v5  ;;  %v9342_v5 = vld [vmem:[#allocation5 + $0x464] ss:$8 sps:$4 sm:$0xff]  }
 0x15f   : > { %1154 = vmatprep.subr.bf16.mxu1 %v9266_v6  ;;  %v9340_v6 = vld [vmem:[#allocation5 + $0x460] ss:$8 sps:$4 sm:$0xff]  }
 0x162   : > { %1155 = vmatpush1.bf16.msra.mxu1 %v9264_v7  ;;  %v9345_v7 = vld [vmem:[#allocation5 + $0x474] ss:$8 sps:$4 sm:$0xff]  }
 0x163   : > { %1156 = vmatprep.subr.bf16.mxu1 %v9272_v9  ;;  %v9348_v9 = vld [vmem:[#allocation5 + $0x484] ss:$8 sps:$4 sm:$0xff]  }
 0x166   : > { %1157 = vmatpush1.bf16.msra.mxu1 %v9270_v11  ;;  %v9351_v11 = vld [vmem:[#allocation5 + $0x494] ss:$8 sps:$4 sm:$0xff]  }
 0x1fc   : > { %v911_v13 = vpop.f32.mrb[0].mxu1 }
 0x1fd   : > { %v913_v14 = vpop.f32.mrb[1].mxu1 }
 0x1fe   : > { %v915_v15 = vpop.f32.mrb[2].mxu1 }
 0x1ff   : > { %v11181_v16 = vpack.c.bf16 %v915_v15, %v911_v13  ;;  %v917_v17 = vpop.f32.mrb[3].mxu1  ;;  %v9354_v13 = vld [vmem:[#allocation5 + $0x4a4] ss:$8 sps:$4 sm:$0xff]   ;;  %v9357_v15 = vld [vmem:[#allocation5 + $0x4b4] ss:$8 sps:$4 sm:$0xff]  }
 0x200   : > { %v11183_v18 = vpack.c.bf16 %v917_v17, %v913_v14  ;;  %v9352_v14 = vld [vmem:[#allocation5 + $0x4a0] ss:$8 sps:$4 sm:$0xff]   ;;  %v9355_v17 = vld [vmem:[#allocation5 + $0x4b0] ss:$8 sps:$4 sm:$0xff]  }
 0x202   : > { %1158 = vmatprep.mubr.bf16.mxu1 %v11183_v18  ;;  %1412 = vmatprep.mubr.bf16.mxu0 %v11183_v18 }
 0x203   : > { %1159 = vmatmul.mubr.bf16.vlgmr.msra.gmra.mrb[8].mxu1 %v11181_v16  ;;  %1413 = vmatmul.mubr.bf16.vlgmr.msra.gmra.mrb[0].mxu0 %v11181_v16 }
 0x204   : > { %1775 = vmatpush1.bf16.msra.mxu0 %v9274_v19  ;;  %v921_v21 = vpop.f32.mrb[4].mxu1  ;;  %v9360_v19 = vld [vmem:[#allocation5 + $0x4c4] ss:$8 sps:$4 sm:$0xff]  }
 0x205   : > { %v923_v23 = vpop.f32.mrb[5].mxu1  ;;  %1776 = vmatprep.subr.bf16.mxu0 %v9279_v20  ;;  %v9358_v20 = vld [vmem:[#allocation5 + $0x4c0] ss:$8 sps:$4 sm:$0xff]  }
 0x206   : > { %v925_v25 = vpop.f32.mrb[6].mxu1 }
 0x207   : > { %v11189_v26 = vpack.c.bf16 %v925_v25, %v921_v21  ;;  %v927_v27 = vpop.f32.mrb[7].mxu1  ;;  %v9363_v21 = vld [vmem:[#allocation5 + $0x4d4] ss:$8 sps:$4 sm:$0xff]  }
 0x208   : > { %v11191_v28 = vpack.c.bf16 %v927_v27, %v923_v23  ;;  %1777 = vmatpush1.bf16.msra.mxu0 %v9277_v22  ;;  %v9361_v22 = vld [vmem:[#allocation5 + $0x4d0] ss:$8 sps:$4 sm:$0xff]   ;;  %v9366_v23 = vld [vmem:[#allocation5 + $0x4e4] ss:$8 sps:$4 sm:$0xff]   ;;  %v9369_v25 = vld [vmem:[#allocation5 + $0x4f4] ss:$8 sps:$4 sm:$0xff]  }
 0x209   : > { %1778 = vmatprep.subr.bf16.mxu0 %v9282_v24  ;;  %v9364_v24 = vld [vmem:[#allocation5 + $0x4e0] ss:$8 sps:$4 sm:$0xff]   ;;  %v9367_v27 = vld [vmem:[#allocation5 + $0x4f0] ss:$8 sps:$4 sm:$0xff]  }
 0x20a   : > { %1422 = vmatprep.mubr.bf16.mxu0 %v11191_v28  ;;  %1168 = vmatprep.mubr.bf16.mxu1 %v11191_v28 }
 0x20b   : > { %1423 = vmatmul.mubr.bf16.gmra.mrb[4].mxu0 %v11189_v26  ;;  %1169 = vmatmul.mubr.bf16.gmra.mrb[12].mxu1 %v11189_v26 }
 0x20c   : > { %1779 = vmatpush1.bf16.msra.mxu0 %v9280_v29  ;;  %1806 = vmatprep.mubr.bf16.mxu0 %v11183_v18  ;;  %v9372_v29 = vld [vmem:[#allocation5 + $0x504] ss:$8 sps:$4 sm:$0xff]  }
 0x20d   : > { %1780 = vmatprep.subr.bf16.mxu0 %v9285_v30  ;;  %1491 = vmatprep.mubr.bf16.mxu1 %v12330_v0  ;;  %v9370_v30 = vld [vmem:[#allocation5 + $0x500] ss:$8 sps:$4 sm:$0xff]  }
 0x210   : > { %1781 = vmatpush1.bf16.msra.mxu0 %v9283_v31  ;;  %v9375_v31 = vld [vmem:[#allocation5 + $0x514] ss:$8 sps:$4 sm:$0xff]  }
 0x211   : > { %1782 = vmatprep.subr.bf16.mxu0 %v9288_v32  ;;  %v9373_v32 = vld [vmem:[#allocation5 + $0x510] ss:$8 sps:$4 sm:$0xff]  }
 0x214   : > { %1783 = vmatpush1.bf16.msra.mxu0 %v9286_v33  ;;  %v9378_v33 = vld [vmem:[#allocation5 + $0x524] ss:$8 sps:$4 sm:$0xff]  }
 0x215   : > { %1784 = vmatprep.subr.bf16.mxu0 %v9291_v34  ;;  %v9376_v34 = vld [vmem:[#allocation5 + $0x520] ss:$8 sps:$4 sm:$0xff]  }
 0x218   : > { %1785 = vmatpush1.bf16.msra.mxu0 %v9289_v35  ;;  %v9381_v35 = vld [vmem:[#allocation5 + $0x534] ss:$8 sps:$4 sm:$0xff]  }
 0x219   : > { %1786 = vmatprep.subr.bf16.mxu0 %v9294_v36  ;;  %v9379_v36 = vld [vmem:[#allocation5 + $0x530] ss:$8 sps:$4 sm:$0xff]  }
 0x21c   : > { %1787 = vmatpush1.bf16.msra.mxu0 %v9292_v37  ;;  %v9384_v37 = vld [vmem:[#allocation5 + $0x544] ss:$8 sps:$4 sm:$0xff]  }
 0x21d   : > { %1788 = vmatprep.subr.bf16.mxu0 %v9297_v38  ;;  %v9382_v38 = vld [vmem:[#allocation5 + $0x540] ss:$8 sps:$4 sm:$0xff]  }
 0x220   : > { %1789 = vmatpush1.bf16.msra.mxu0 %v9295_v39  ;;  %v9387_v39 = vld [vmem:[#allocation5 + $0x554] ss:$8 sps:$4 sm:$0xff]  }
 0x221   : > { %1790 = vmatprep.subr.bf16.mxu0 %v9300_v40  ;;  %v9385_v40 = vld [vmem:[#allocation5 + $0x550] ss:$8 sps:$4 sm:$0xff]  }
 0x224   : > { %1791 = vmatpush1.bf16.msra.mxu0 %v9298_v41  ;;  %v9390_v41 = vld [vmem:[#allocation5 + $0x564] ss:$8 sps:$4 sm:$0xff]  }
 0x225   : > { %1792 = vmatprep.subr.bf16.mxu0 %v9303_v42  ;;  %v9388_v42 = vld [vmem:[#allocation5 + $0x560] ss:$8 sps:$4 sm:$0xff]  }
 0x228   : > { %1793 = vmatpush1.bf16.msra.mxu0 %v9301_v43  ;;  %v9393_v43 = vld [vmem:[#allocation5 + $0x574] ss:$8 sps:$4 sm:$0xff]  }
 0x229   : > { %1794 = vmatprep.subr.bf16.mxu0 %v9306_v44  ;;  %v9391_v44 = vld [vmem:[#allocation5 + $0x570] ss:$8 sps:$4 sm:$0xff]  }
 0x22c   : > { %1795 = vmatpush1.bf16.msra.mxu0 %v9304_v45  ;;  %v9396_v45 = vld [vmem:[#allocation5 + $0x584] ss:$8 sps:$4 sm:$0xff]  }
 0x22d   : > { %1796 = vmatprep.subr.bf16.mxu0 %v9309_v46  ;;  %v9394_v46 = vld [vmem:[#allocation5 + $0x580] ss:$8 sps:$4 sm:$0xff]  }
 0x230   : > { %1797 = vmatpush1.bf16.msra.mxu0 %v9307_v47  ;;  %v9399_v47 = vld [vmem:[#allocation5 + $0x594] ss:$8 sps:$4 sm:$0xff]  }
 0x231   : > { %1798 = vmatprep.subr.bf16.mxu0 %v9312_v48  ;;  %v9397_v48 = vld [vmem:[#allocation5 + $0x590] ss:$8 sps:$4 sm:$0xff]  }
 0x234   : > { %1799 = vmatpush1.bf16.msra.mxu0 %v9310_v49  ;;  %v9402_v49 = vld [vmem:[#allocation5 + $0x5a4] ss:$8 sps:$4 sm:$0xff]  }
 0x235   : > { %1800 = vmatprep.subr.bf16.mxu0 %v9315_v50  ;;  %v9400_v50 = vld [vmem:[#allocation5 + $0x5a0] ss:$8 sps:$4 sm:$0xff]  }
 0x238   : > { %1801 = vmatpush1.bf16.msra.mxu0 %v9313_v51  ;;  %v9405_v51 = vld [vmem:[#allocation5 + $0x5b4] ss:$8 sps:$4 sm:$0xff]  }
 0x239   : > { %1802 = vmatprep.subr.bf16.mxu0 %v9318_v52  ;;  %v9403_v52 = vld [vmem:[#allocation5 + $0x5b0] ss:$8 sps:$4 sm:$0xff]  }
 0x23c   : > { %1803 = vmatpush1.bf16.msra.mxu0 %v9316_v53  ;;  %v9408_v53 = vld [vmem:[#allocation5 + $0x5c4] ss:$8 sps:$4 sm:$0xff]  }
 0x23d   : > { %1804 = vmatprep.subr.bf16.mxu0 %v9321_v54  ;;  %v9406_v54 = vld [vmem:[#allocation5 + $0x5c0] ss:$8 sps:$4 sm:$0xff]  }
 0x240   : > { %1805 = vmatpush1.bf16.msra.mxu0 %v9319_v55  ;;  %v9411_v55 = vld [vmem:[#allocation5 + $0x5d4] ss:$8 sps:$4 sm:$0xff]  }
 0x241   : > { %2438 = vmatprep.subr.bf16.mxu0 %v9324_v56  ;;  %v9409_v56 = vld [vmem:[#allocation5 + $0x5d0] ss:$8 sps:$4 sm:$0xff]  }
 0x243   : > { %1807 = vmatmul.mubr.bf16.vlgmr.msra.gmra.mrb[8].mxu0 %v11181_v16 }
 0x244   : > { %1816 = vmatprep.mubr.bf16.mxu0 %v11191_v28  ;;  %2439 = vmatpush1.bf16.msra.mxu0 %v9322_v57  ;;  %v9414_v57 = vld [vmem:[#allocation5 + $0x5e4] ss:$8 sps:$4 sm:$0xff]  }
 0x245   : > { %2440 = vmatprep.subr.bf16.mxu0 %v9327_v58  ;;  %v9412_v58 = vld [vmem:[#allocation5 + $0x5e0] ss:$8 sps:$4 sm:$0xff]  }
 0x248   : > { %2441 = vmatpush1.bf16.msra.mxu0 %v9325_v59  ;;  %v9417_v59 = vld [vmem:[#allocation5 + $0x5f4] ss:$8 sps:$4 sm:$0xff]  }
 0x249   : > { %2442 = vmatprep.subr.bf16.mxu0 %v9330_v60  ;;  %v9415_v60 = vld [vmem:[#allocation5 + $0x5f0] ss:$8 sps:$4 sm:$0xff]  }
 0x24b   : > { %1817 = vmatmul.mubr.bf16.gmra.mrb[12].mxu0 %v11189_v26 }
 0x24c   : > { %2443 = vmatpush1.bf16.msra.mxu0 %v9328_v61  ;;  %2470 = vmatprep.mubr.bf16.mxu0 %v11183_v18  ;;  %v9420_v61 = vld [vmem:[#allocation5 + $0x704] ss:$8 sps:$4 sm:$0xff]  }
 0x24d   : > { %2444 = vmatprep.subr.bf16.mxu0 %v9333_v62  ;;  %v9418_v62 = vld [vmem:[#allocation5 + $0x700] ss:$8 sps:$4 sm:$0xff]  }
 0x250   : > { %2445 = vmatpush1.bf16.msra.mxu0 %v9331_v63  ;;  %v9423_v63 = vld [vmem:[#allocation5 + $0x714] ss:$8 sps:$4 sm:$0xff]  }
 0x251   : > { %2446 = vmatprep.subr.bf16.mxu0 %v9336_v1  ;;  %v9421_v1 = vld [vmem:[#allocation5 + $0x710] ss:$8 sps:$4 sm:$0xff]  }
 0x254   : > { %2447 = vmatpush1.bf16.msra.mxu0 %v9334_v2  ;;  %v9426_v2 = vld [vmem:[#allocation5 + $0x724] ss:$8 sps:$4 sm:$0xff]  }
 0x255   : > { %2448 = vmatprep.subr.bf16.mxu0 %v9339_v3  ;;  %v9424_v3 = vld [vmem:[#allocation5 + $0x720] ss:$8 sps:$4 sm:$0xff]  }
 0x258   : > { %2449 = vmatpush1.bf16.msra.mxu0 %v9337_v4  ;;  %v9429_v4 = vld [vmem:[#allocation5 + $0x734] ss:$8 sps:$4 sm:$0xff]  }
 0x259   : > { %2450 = vmatprep.subr.bf16.mxu0 %v9342_v5  ;;  %v9427_v5 = vld [vmem:[#allocation5 + $0x730] ss:$8 sps:$4 sm:$0xff]  }
 0x25c   : > { %2451 = vmatpush1.bf16.msra.mxu0 %v9340_v6  ;;  %v9432_v6 = vld [vmem:[#allocation5 + $0x744] ss:$8 sps:$4 sm:$0xff]  }
 0x25d   : > { %2452 = vmatprep.subr.bf16.mxu0 %v9345_v7  ;;  %v9430_v7 = vld [vmem:[#allocation5 + $0x740] ss:$8 sps:$4 sm:$0xff]  }
 0x260   : > { %2453 = vmatpush1.bf16.msra.mxu0 %v9343_v8  ;;  %v9435_v8 = vld [vmem:[#allocation5 + $0x754] ss:$8 sps:$4 sm:$0xff]  }
 0x261   : > { %2454 = vmatprep.subr.bf16.mxu0 %v9348_v9  ;;  %v9433_v9 = vld [vmem:[#allocation5 + $0x750] ss:$8 sps:$4 sm:$0xff]  }
 0x264   : > { %2455 = vmatpush1.bf16.msra.mxu0 %v9346_v10  ;;  %v9438_v10 = vld [vmem:[#allocation5 + $0x764] ss:$8 sps:$4 sm:$0xff]  }
 0x265   : > { %2456 = vmatprep.subr.bf16.mxu0 %v9351_v11 }
 0x268   : > { %2457 = vmatpush1.bf16.msra.mxu0 %v9349_v12 }
 0x269   : > { %2458 = vmatprep.subr.bf16.mxu0 %v9354_v13 }
 0x26c   : > { %2459 = vmatpush1.bf16.msra.mxu0 %v9352_v14 }
 0x26d   : > { %2460 = vmatprep.subr.bf16.mxu0 %v9357_v15 }
 0x270   : > { %2461 = vmatpush1.bf16.msra.mxu0 %v9355_v17 }
 0x271   : > { %2462 = vmatprep.subr.bf16.mxu0 %v9360_v19  ;;  %v9436_v19 = vld [vmem:[#allocation5 + $0x760] ss:$8 sps:$4 sm:$0xff]  }
 0x274   : > { %2463 = vmatpush1.bf16.msra.mxu0 %v9358_v20 }
 0x275   : > { %2464 = vmatprep.subr.bf16.mxu0 %v9363_v21 }
 0x278   : > { %2465 = vmatpush1.bf16.msra.mxu0 %v9361_v22 }
 0x279   : > { %2466 = vmatprep.subr.bf16.mxu0 %v9366_v23 }
 0x27c   : > { %2467 = vmatpush1.bf16.msra.mxu0 %v9364_v24  ;;  %v9441_v24 = vld [vmem:[#allocation5 + $0x774] ss:$8 sps:$4 sm:$0xff]  }
 0x27d   : > { %2468 = vmatprep.subr.bf16.mxu0 %v9369_v25 }
 0x280   : > { %2469 = vmatpush1.bf16.msra.mxu0 %v9367_v27 }
 0x281   : > { %2770 = vmatprep.subr.bf16.mxu0 %v9372_v29  ;;  %v9439_v29 = vld [vmem:[#allocation5 + $0x770] ss:$8 sps:$4 sm:$0xff]  }
 0x283   : > { %2471 = vmatmul.mubr.bf16.vlgmr.msra.gmra.mrb[16].mxu0 %v11181_v16 }
 0x284   : > { %2480 = vmatprep.mubr.bf16.mxu0 %v11191_v28  ;;  %2771 = vmatpush1.bf16.msra.mxu0 %v9370_v30  ;;  %v9444_v30 = vld [vmem:[#allocation5 + $0x784] ss:$8 sps:$4 sm:$0xff]  }
 0x285   : > { %2772 = vmatprep.subr.bf16.mxu0 %v9375_v31 }
 0x288   : > { %2773 = vmatpush1.bf16.msra.mxu0 %v9373_v32 }
 0x289   : > { %2774 = vmatprep.subr.bf16.mxu0 %v9378_v33 }
 0x28b   : > { %2481 = vmatmul.mubr.bf16.gmra.mrb[20].mxu0 %v11189_v26 }
 0x28c   : > { %2775 = vmatpush1.bf16.msra.mxu0 %v9376_v34  ;;  %2802 = vmatprep.mubr.bf16.mxu0 %v11183_v18 }
 0x28d   : > { %2776 = vmatprep.subr.bf16.mxu0 %v9381_v35 }
 0x290   : > { %2777 = vmatpush1.bf16.msra.mxu0 %v9379_v36  ;;  %v9442_v36 = vld [vmem:[#allocation5 + $0x780] ss:$8 sps:$4 sm:$0xff]  }
 0x291   : > { %2778 = vmatprep.subr.bf16.mxu0 %v9384_v37 }
 0x294   : > { %2779 = vmatpush1.bf16.msra.mxu0 %v9382_v38 }
 0x295   : > { %2780 = vmatprep.subr.bf16.mxu0 %v9387_v39 }
 0x298   : > { %2781 = vmatpush1.bf16.msra.mxu0 %v9385_v40  ;;  %v9447_v40 = vld [vmem:[#allocation5 + $0x794] ss:$8 sps:$4 sm:$0xff]  }
 0x299   : > { %2782 = vmatprep.subr.bf16.mxu0 %v9390_v41 }
 0x29c   : > { %2783 = vmatpush1.bf16.msra.mxu0 %v9388_v42 }
 0x29d   : > { %2784 = vmatprep.subr.bf16.mxu0 %v9393_v43 }
 0x2a0   : > { %2785 = vmatpush1.bf16.msra.mxu0 %v9391_v44 }
 0x2a1   : > { %2786 = vmatprep.subr.bf16.mxu0 %v9396_v45  ;;  %v9445_v45 = vld [vmem:[#allocation5 + $0x790] ss:$8 sps:$4 sm:$0xff]  }
 0x2a4   : > { %2787 = vmatpush1.bf16.msra.mxu0 %v9394_v46  ;;  %v9448_v46 = vld [vmem:[#allocation7 + $0x10] sm:$0xff]  }
 0x2a5   : > { %2788 = vmatprep.subr.bf16.mxu0 %v9399_v47  ;;  %v9451_v47 = vld [vmem:[#allocation5 + $0x7a4] ss:$8 sps:$4 sm:$0xff]  }
 0x2a8   : > { %2789 = vmatpush1.bf16.msra.mxu0 %v9397_v48  ;;  %v9449_v48 = vld [vmem:[#allocation5 + $0x7a0] ss:$8 sps:$4 sm:$0xff]  }
 0x2a9   : > { %2790 = vmatprep.subr.bf16.mxu0 %v9402_v49  ;;  %v9454_v49 = vld [vmem:[#allocation5 + $0x7b4] ss:$8 sps:$4 sm:$0xff]  }
 0x2ac   : > { %2791 = vmatpush1.bf16.msra.mxu0 %v9400_v50  ;;  %v9452_v50 = vld [vmem:[#allocation5 + $0x7b0] ss:$8 sps:$4 sm:$0xff]  }
 0x2ad   : > { %2792 = vmatprep.subr.bf16.mxu0 %v9405_v51  ;;  %v9467_v51 = vld [vmem:[#allocation7 + $0x18] sm:$0xff]  }
 0x2b0   : > { %2793 = vmatpush1.bf16.msra.mxu0 %v9403_v52  ;;  %v9457_v52 = vld [vmem:[#allocation5 + $0x7c4] ss:$8 sps:$4 sm:$0xff]  }
 0x2b1   : > { %2794 = vmatprep.subr.bf16.mxu0 %v9408_v53  ;;  %v9455_v53 = vld [vmem:[#allocation5 + $0x7c0] ss:$8 sps:$4 sm:$0xff]  }
 0x2b4   : > { %2795 = vmatpush1.bf16.msra.mxu0 %v9406_v54  ;;  %v9460_v54 = vld [vmem:[#allocation5 + $0x7d4] ss:$8 sps:$4 sm:$0xff]  }
 0x2b5   : > { %2796 = vmatprep.subr.bf16.mxu0 %v9411_v55  ;;  %v9458_v55 = vld [vmem:[#allocation5 + $0x7d0] ss:$8 sps:$4 sm:$0xff]  }
 0x2b8   : > { %2797 = vmatpush1.bf16.msra.mxu0 %v9409_v56  ;;  %v9468_v56 = vld [vmem:[#allocation7] sm:$0xff]  }
 0x2b9   : > { %2798 = vmatprep.subr.bf16.mxu0 %v9414_v57  ;;  %v9463_v57 = vld [vmem:[#allocation5 + $0x7e4] ss:$8 sps:$4 sm:$0xff]  }
 0x2bc   : > { %2799 = vmatpush1.bf16.msra.mxu0 %v9412_v58  ;;  %v9461_v58 = vld [vmem:[#allocation5 + $0x7e0] ss:$8 sps:$4 sm:$0xff]  }
 0x2bd   : > { %2800 = vmatprep.subr.bf16.mxu0 %v9417_v59  ;;  %v9466_v59 = vld [vmem:[#allocation5 + $0x7f4] ss:$8 sps:$4 sm:$0xff]  }
 0x2c0   : > { %2801 = vmatpush1.bf16.msra.mxu0 %v9415_v60  ;;  %v9464_v60 = vld [vmem:[#allocation5 + $0x7f0] ss:$8 sps:$4 sm:$0xff]  }
 0x2c1   : > { %3434 = vmatprep.subr.bf16.mxu0 %v9420_v61  ;;  %v9469_v61 = vld [vmem:[#allocation7 + $0x8] sm:$0xff]  }
 0x2c3   : > { %2803 = vmatmul.mubr.bf16.vlgmr.msra.gmra.mrb[24].mxu0 %v11181_v16 }
 0x2c4   : > { %2812 = vmatprep.mubr.bf16.mxu0 %v11191_v28  ;;  %3435 = vmatpush1.bf16.msra.mxu0 %v9418_v62 }
 0x2c5   : > { %3436 = vmatprep.subr.bf16.mxu0 %v9423_v63 }
 0x2c8   : > { %3437 = vmatpush1.bf16.msra.mxu0 %v9421_v1 }
 0x2c9   : > { %3438 = vmatprep.subr.bf16.mxu0 %v9426_v2 }
 0x2cb   : > { %2813 = vmatmul.mubr.bf16.gmra.mrb[28].mxu0 %v11189_v26 }
 0x2cc   : > { %3439 = vmatpush1.bf16.msra.mxu0 %v9424_v3  ;;  %3466 = vmatprep.mubr.bf16.mxu0 %v11183_v18 }
 0x2cd   : > { %3440 = vmatprep.subr.bf16.mxu0 %v9429_v4 }
 0x2d0   : > { %3441 = vmatpush1.bf16.msra.mxu0 %v9427_v5 }
 0x2d1   : > { %3442 = vmatprep.subr.bf16.mxu0 %v9432_v6 }
 0x2d4   : > { %3443 = vmatpush1.bf16.msra.mxu0 %v9430_v7 }
 0x2d5   : > { %3444 = vmatprep.subr.bf16.mxu0 %v9435_v8 }
 0x2d6   : > { %v1160_v11 = vpop.f32.mrb[8].mxu1  ;;  %v1414_v12 = vpop.f32.mrb[0].mxu0 }
 0x2d7   : > { %v1162_v13 = vpop.f32.mrb[9].mxu1  ;;  %v1416_v14 = vpop.f32.mrb[1].mxu0 }
 0x2d8   : > { %3445 = vmatpush1.bf16.msra.mxu0 %v9433_v9  ;;  %v1164_v15 = vpop.f32.mrb[10].mxu1  ;;  %v1418_v17 = vpop.f32.mrb[2].mxu0 }
 0x2d9   : > { %v1183_v20 = vpack.c.bf16 %v1164_v15, %v1160_v11  ;;  %v1438_v21 = vpack.c.bf16 %v1418_v17, %v1414_v12  ;;  %v1166_v22 = vpop.f32.mrb[11].mxu1  ;;  %v1420_v23 = vpop.f32.mrb[3].mxu0  ;;  %3446 = vmatprep.subr.bf16.mxu0 %v9438_v10  ;;  %v9473_v11 = vld [vmem:[#allocation5 + $0x304] ss:$8 sps:$4 sm:$0xff]   ;;  %v9474_v15 = vld [vmem:[#allocation5 + $0x310] ss:$8 sps:$4 sm:$0xff]  }
 0x2da   : > { %v1184_v25 = vpack.c.bf16 %v1166_v22, %v1162_v13  ;;  %v1439_v27 = vpack.c.bf16 %v1420_v23, %v1416_v14  ;;  %v9470_v12 = vld [vmem:[#allocation7 + $0x20] sm:$0xff]   ;;  %v9476_v14 = vld [vmem:[#allocation5 + $0x314] ss:$8 sps:$4 sm:$0xff]   ;;  %v9481_v22 = vld [vmem:[#allocation5 + $0x330] ss:$8 sps:$4 sm:$0xff]  }
 0x2db   : > { %v9471_v13 = vld [vmem:[#allocation5 + $0x300] ss:$8 sps:$4 sm:$0xff]   ;;  %v9480_v17 = vld [vmem:[#allocation5 + $0x324] ss:$8 sps:$4 sm:$0xff]  }
 0x2dc   : > { %3447 = vmatpush1.bf16.msra.mxu0 %v9436_v19  ;;  %1459 = vmatprep.subr.bf16.mxu1 %v1439_v27  ;;  %v9477_v19 = vld [vmem:[#allocation7 + $0x28] sm:$0xff]   ;;  %v9487_v27 = vld [vmem:[#allocation5 + $0x350] ss:$8 sps:$4 sm:$0xff]  }
 0x2dd   : > { %1460 = vmatpush1.bf16.msra.mxu1 %v1438_v21  ;;  %3448 = vmatprep.subr.bf16.mxu0 %v9441_v24  ;;  %v9483_v21 = vld [vmem:[#allocation5 + $0x334] ss:$8 sps:$4 sm:$0xff]   ;;  %v9486_v23 = vld [vmem:[#allocation5 + $0x344] ss:$8 sps:$4 sm:$0xff]   ;;  %v9484_v24 = vld [vmem:[#allocation5 + $0x340] ss:$8 sps:$4 sm:$0xff]  }
 0x2de   : > { %v1424_v31 = vpop.f32.mrb[4].mxu0  ;;  %v1170_v32 = vpop.f32.mrb[12].mxu1 }
 0x2df   : > { %v1426_v33 = vpop.f32.mrb[5].mxu0  ;;  %v1172_v34 = vpop.f32.mrb[13].mxu1 }
 0x2e0   : > { %3449 = vmatpush1.bf16.msra.mxu0 %v9439_v29  ;;  %v1428_v35 = vpop.f32.mrb[6].mxu0  ;;  %v1174_v37 = vpop.f32.mrb[14].mxu1  ;;  %v9492_v29 = vld [vmem:[#allocation5 + $0x364] ss:$8 sps:$4 sm:$0xff]  }
 0x2e1   : > { %v1440_v38 = vpack.c.bf16 %v1428_v35, %v1424_v31  ;;  %v1430_v39 = vpop.f32.mrb[7].mxu0  ;;  %3450 = vmatprep.subr.bf16.mxu0 %v9444_v30  ;;  %v1185_v41 = vpack.c.bf16 %v1174_v37, %v1170_v32  ;;  %v1176_v42 = vpop.f32.mrb[15].mxu1  ;;  %v9490_v30 = vld [vmem:[#allocation5 + $0x360] ss:$8 sps:$4 sm:$0xff]   ;;  %v9495_v31 = vld [vmem:[#allocation5 + $0x374] ss:$8 sps:$4 sm:$0xff]  }
 0x2e2   : > { %v1441_v43 = vpack.c.bf16 %v1430_v39, %v1426_v33  ;;  %v1186_v44 = vpack.c.bf16 %v1176_v42, %v1172_v34  ;;  %v9493_v32 = vld [vmem:[#allocation5 + $0x370] ss:$8 sps:$4 sm:$0xff]   ;;  %v9498_v33 = vld [vmem:[#allocation5 + $0x384] ss:$8 sps:$4 sm:$0xff]   ;;  %v9496_v34 = vld [vmem:[#allocation5 + $0x380] ss:$8 sps:$4 sm:$0xff]  }
 0x2e3   : > { %v9501_v35 = vld [vmem:[#allocation5 + $0x394] ss:$8 sps:$4 sm:$0xff]   ;;  %v9504_v37 = vld [vmem:[#allocation5 + $0x3a4] ss:$8 sps:$4 sm:$0xff]   ;;  %v9508_v42 = vld [vmem:[#allocation5 + $0x3c0] ss:$8 sps:$4 sm:$0xff]  }
 0x2e4   : > { %3451 = vmatpush1.bf16.msra.mxu0 %v9442_v36  ;;  %1461 = vmatprep.subr.bf16.mxu1 %v1441_v43  ;;  %v9499_v36 = vld [vmem:[#allocation5 + $0x390] ss:$8 sps:$4 sm:$0xff]   ;;  %v9507_v39 = vld [vmem:[#allocation5 + $0x3b4] ss:$8 sps:$4 sm:$0xff]  }
 0x2e5   : > { %1462 = vmatpush1.bf16.msra.mxu1 %v1440_v38  ;;  %3452 = vmatprep.subr.bf16.mxu0 %v9447_v40  ;;  %v9502_v38 = vld [vmem:[#allocation5 + $0x3a0] ss:$8 sps:$4 sm:$0xff]   ;;  %v9505_v40 = vld [vmem:[#allocation5 + $0x3b0] ss:$8 sps:$4 sm:$0xff]  }
 0x2e6   : > { %1528 = vmatprep.subr.bf16.mxu1 %v1184_v25  ;;  %v9489_v25 = vld [vmem:[#allocation5 + $0x354] ss:$8 sps:$4 sm:$0xff]  }
 0x2e8   : > { %3453 = vmatpush1.bf16.msra.mxu0 %v9445_v45  ;;  %8413 = vmatmul.mubr.msk.bf16.vlgmr.msra.gmra.mrb[16].mxu1 %vm1452_vm1, %v9448_v46 }
 0x2e9   : > { %1529 = vmatpush1.bf16.msra.mxu1 %v1183_v20  ;;  %3454 = vmatprep.subr.bf16.mxu0 %v9451_v47  ;;  %v9478_v20 = vld [vmem:[#allocation5 + $0x320] ss:$8 sps:$4 sm:$0xff]  }
 0x2ea   : > { %1530 = vmatprep.subr.bf16.mxu1 %v1186_v44  ;;  %1501 = vmatprep.mubr.bf16.mxu1 %v12330_v0  ;;  %v9513_v44 = vld [vmem:[#allocation5 + $0x3d4] ss:$8 sps:$4 sm:$0xff]  }
 0x2ec   : > { %3455 = vmatpush1.bf16.msra.mxu0 %v9449_v48 }
 0x2ed   : > { %3456 = vmatprep.subr.bf16.mxu0 %v9454_v49  ;;  %1531 = vmatpush1.bf16.msra.mxu1 %v1185_v41  ;;  %v9510_v41 = vld [vmem:[#allocation5 + $0x3c4] ss:$8 sps:$4 sm:$0xff]   ;;  %v9511_v49 = vld [vmem:[#allocation5 + $0x3d0] ss:$8 sps:$4 sm:$0xff]  }
 0x2f0   : > { %3457 = vmatpush1.bf16.msra.mxu0 %v9452_v50  ;;  %8414 = vmatmul.mubr.msk.bf16.gmra.mrb[20].mxu1 %vm1452_vm1, %v9467_v51  ;;  %v9516_v51 = vld [vmem:[#allocation5 + $0x3e4] ss:$8 sps:$4 sm:$0xff]  }
 0x2f1   : > { %3458 = vmatprep.subr.bf16.mxu0 %v9457_v52  ;;  %1560 = vmatprep.mubr.bf16.mxu1 %v12330_v0  ;;  %v9514_v52 = vld [vmem:[#allocation5 + $0x3e0] ss:$8 sps:$4 sm:$0xff]  }
 0x2f4   : > { %3459 = vmatpush1.bf16.msra.mxu0 %v9455_v53 }
 0x2f5   : > { %3460 = vmatprep.subr.bf16.mxu0 %v9460_v54  ;;  %v9519_v54 = vld [vmem:[#allocation5 + $0x3f4] ss:$8 sps:$4 sm:$0xff]  }
 0x2f8   : > { %3461 = vmatpush1.bf16.msra.mxu0 %v9458_v55  ;;  %8417 = vmatmul.mubr.msk.bf16.vlgmr.msra.gmra.mrb[16].mxu1 %vm1452_vm1, %v9468_v56 }
 0x2f9   : > { %3462 = vmatprep.subr.bf16.mxu0 %v9463_v57  ;;  %1570 = vmatprep.mubr.bf16.mxu1 %v12330_v0 }
 0x2fc   : > { %3463 = vmatpush1.bf16.msra.mxu0 %v9461_v58 }
 0x2fd   : > { %3464 = vmatprep.subr.bf16.mxu0 %v9466_v59  ;;  %v9517_v59 = vld [vmem:[#allocation5 + $0x3f0] ss:$8 sps:$4 sm:$0xff]  }
 0x300   : > { %3465 = vmatpush1.bf16.msra.mxu0 %v9464_v60  ;;  %8418 = vmatmul.mubr.msk.bf16.gmra.mrb[20].mxu1 %vm1452_vm1, %v9469_v61 }
 0x301   : > { %1884 = vmatprep.mubr.bf16.mxu1 %v12330_v0 }
 0x303   : > { %3467 = vmatmul.mubr.bf16.vlgmr.msra.gmra.mrb[32].mxu0 %v11181_v16 }
 0x304   : > { %3476 = vmatprep.mubr.bf16.mxu0 %v11191_v28 }
 0x30b   : > { %3477 = vmatmul.mubr.bf16.gmra.mrb[36].mxu0 %v11189_v26 }
 0x30c   : > { %4190 = vmatprep.mubr.bf16.mxu0 %v12330_v0 }
 0x316   : > { %v1808_v62 = vpop.f32.mrb[8].mxu0 }
 0x317   : > { %v1810_v63 = vpop.f32.mrb[9].mxu0 }
 0x318   : > { %v1812_v1 = vpop.f32.mrb[10].mxu0 }
 0x319   : > { %v1832_v2 = vpack.c.bf16 %v1812_v1, %v1808_v62  ;;  %v1814_v3 = vpop.f32.mrb[11].mxu0 }
 0x31a   : > { %v1833_v4 = vpack.c.bf16 %v1814_v3, %v1810_v63 }
 0x31c   : > { %1852 = vmatprep.subr.bf16.mxu1 %v1833_v4 }
 0x31d   : > { %1853 = vmatpush1.bf16.msra.mxu1 %v1832_v2 }
 0x31e   : > { %v1818_v5 = vpop.f32.mrb[12].mxu0 }
 0x31f   : > { %v1820_v6 = vpop.f32.mrb[13].mxu0 }
 0x320   : > { %v1822_v7 = vpop.f32.mrb[14].mxu0 }
 0x321   : > { %v1834_v8 = vpack.c.bf16 %v1822_v7, %v1818_v5  ;;  %v1824_v9 = vpop.f32.mrb[15].mxu0 }
 0x322   : > { %v1835_v10 = vpack.c.bf16 %v1824_v9, %v1820_v6 }
 0x324   : > { %1854 = vmatprep.subr.bf16.mxu1 %v1835_v10 }
 0x325   : > { %1855 = vmatpush1.bf16.msra.mxu1 %v1834_v8 }
 0x326   : > { %2106 = vmatprep.subr.bf16.mxu1 %v9473_v11 }
 0x328   : > { %8453 = vmatmul.mubr.msk.bf16.vlgmr.msra.gmra.mrb[16].mxu1 %vm1452_vm1, %v9470_v12 }
 0x329   : > { %2107 = vmatpush1.bf16.msra.mxu1 %v9471_v13  ;;  %1894 = vmatprep.mubr.bf16.mxu1 %v12330_v0 }
 0x32a   : > { %2108 = vmatprep.subr.bf16.mxu1 %v9476_v14 }
 0x32d   : > { %2109 = vmatpush1.bf16.msra.mxu1 %v9474_v15 }
 0x32e   : > { %2110 = vmatprep.subr.bf16.mxu1 %v9480_v17 }
 0x330   : > { %8454 = vmatmul.mubr.msk.bf16.gmra.mrb[20].mxu1 %vm1452_vm1, %v9477_v19 }
 0x331   : > { %2111 = vmatpush1.bf16.msra.mxu1 %v9478_v20  ;;  %2138 = vmatprep.mubr.bf16.mxu1 %v11183_v18 }
 0x332   : > { %2112 = vmatprep.subr.bf16.mxu1 %v9483_v21 }
 0x335   : > { %2113 = vmatpush1.bf16.msra.mxu1 %v9481_v22 }
 0x336   : > { %2114 = vmatprep.subr.bf16.mxu1 %v9486_v23 }
 0x339   : > { %2115 = vmatpush1.bf16.msra.mxu1 %v9484_v24 }
 0x33a   : > { %2116 = vmatprep.subr.bf16.mxu1 %v9489_v25 }
 0x33d   : > { %2117 = vmatpush1.bf16.msra.mxu1 %v9487_v27 }
 0x33e   : > { %2118 = vmatprep.subr.bf16.mxu1 %v9492_v29 }
 0x341   : > { %2119 = vmatpush1.bf16.msra.mxu1 %v9490_v30 }
 0x342   : > { %2120 = vmatprep.subr.bf16.mxu1 %v9495_v31 }
 0x345   : > { %2121 = vmatpush1.bf16.msra.mxu1 %v9493_v32 }
 0x346   : > { %2122 = vmatprep.subr.bf16.mxu1 %v9498_v33 }
 0x349   : > { %2123 = vmatpush1.bf16.msra.mxu1 %v9496_v34 }
 0x34a   : > { %2124 = vmatprep.subr.bf16.mxu1 %v9501_v35 }
 0x34d   : > { %2125 = vmatpush1.bf16.msra.mxu1 %v9499_v36 }
 0x34e   : > { %2126 = vmatprep.subr.bf16.mxu1 %v9504_v37 }
 0x351   : > { %2127 = vmatpush1.bf16.msra.mxu1 %v9502_v38  ;;  %v9520_v38 = vld [vmem:[#allocation7 + $0x30] sm:$0xff]  }
 0x352   : > { %2128 = vmatprep.subr.bf16.mxu1 %v9507_v39  ;;  %v9521_v39 = vld [vmem:[#allocation7 + $0x38] sm:$0xff]  }
 0x355   : > { %2129 = vmatpush1.bf16.msra.mxu1 %v9505_v40  ;;  %v9522_v40 = vld [vmem:[#allocation7 + $0x40] sm:$0xff]  }
 0x356   : > { %v11227_v43 = vpop.f32.mrb[16].mxu0  ;;  %2130 = vmatprep.subr.bf16.mxu1 %v9510_v41  ;;  %v9526_v41 = vld [vmem:[#allocation5 + $0x604] ss:$8 sps:$4 sm:$0xff]  }
 0x357   : > { %v11229_v45 = vpop.f32.mrb[17].mxu0 }
 0x358   : > { %v11231_v46 = vpop.f32.mrb[18].mxu0 }
 0x359   : > { %v2496_v47 = vpack.c.bf16 %v11231_v46, %v11227_v43  ;;  %2131 = vmatpush1.bf16.msra.mxu1 %v9508_v42  ;;  %v11235_v48 = vpop.f32.mrb[19].mxu0  ;;  %v9523_v42 = vld [vmem:[#allocation7 + $0x48] sm:$0xff]   ;;  %v9527_v43 = vld [vmem:[#allocation7 + $0x50] sm:$0xff]  }
 0x35a   : > { %v2497_v50 = vpack.c.bf16 %v11235_v48, %v11229_v45  ;;  %2132 = vmatprep.subr.bf16.mxu1 %v9513_v44  ;;  %v9524_v44 = vld [vmem:[#allocation5 + $0x600] ss:$8 sps:$4 sm:$0xff]   ;;  %v9530_v45 = vld [vmem:[#allocation5 + $0x614] ss:$8 sps:$4 sm:$0xff]   ;;  %v9528_v46 = vld [vmem:[#allocation5 + $0x610] ss:$8 sps:$4 sm:$0xff]  }
 0x35b   : > { %v9534_v48 = vld [vmem:[#allocation7 + $0x58] sm:$0xff]  }
 0x35d   : > { %2133 = vmatpush1.bf16.msra.mxu1 %v9511_v49  ;;  %v9531_v49 = vld [vmem:[#allocation5 + $0x620] ss:$8 sps:$4 sm:$0xff]  }
 0x35e   : > { %v11239_v53 = vpop.f32.mrb[20].mxu0  ;;  %2134 = vmatprep.subr.bf16.mxu1 %v9516_v51  ;;  %v9535_v51 = vld [vmem:[#allocation5 + $0x630] ss:$8 sps:$4 sm:$0xff]  }
 0x35f   : > { %v2484_v55 = vpop.f32.mrb[21].mxu0 }
 0x360   : > { %v2486_v56 = vpop.f32.mrb[22].mxu0 }
 0x361   : > { %v2498_v57 = vpack.c.bf16 %v2486_v56, %v11239_v53  ;;  %2135 = vmatpush1.bf16.msra.mxu1 %v9514_v52  ;;  %v2488_v58 = vpop.f32.mrb[23].mxu0  ;;  %v9540_v52 = vld [vmem:[#allocation5 + $0x644] ss:$8 sps:$4 sm:$0xff]   ;;  %v9538_v53 = vld [vmem:[#allocation5 + $0x640] ss:$8 sps:$4 sm:$0xff]  }
 0x362   : > { %v2499_v60 = vpack.c.bf16 %v2488_v58, %v2484_v55  ;;  %2136 = vmatprep.subr.bf16.mxu1 %v9519_v54  ;;  %v9543_v54 = vld [vmem:[#allocation5 + $0x654] ss:$8 sps:$4 sm:$0xff]   ;;  %v9541_v55 = vld [vmem:[#allocation5 + $0x650] ss:$8 sps:$4 sm:$0xff]   ;;  %v9546_v56 = vld [vmem:[#allocation5 + $0x664] ss:$8 sps:$4 sm:$0xff]  }
 0x363   : > { %v9549_v58 = vld [vmem:[#allocation5 + $0x674] ss:$8 sps:$4 sm:$0xff]  }
 0x365   : > { %2137 = vmatpush1.bf16.msra.mxu1 %v9517_v59  ;;  %v9547_v59 = vld [vmem:[#allocation5 + $0x670] ss:$8 sps:$4 sm:$0xff]  }
 0x368   : > { %2139 = vmatmul.mubr.bf16.vlgmr.msra.gmra.mrb[24].mxu1 %v11181_v16 }
 0x369   : > { %2148 = vmatprep.mubr.bf16.mxu1 %v11191_v28 }
 0x370   : > { %2149 = vmatmul.mubr.bf16.gmra.mrb[28].mxu1 %v11189_v26 }
 0x371   : > { %2216 = vmatprep.mubr.bf16.mxu1 %v12330_v0 }
 0x396   : > { %v2804_v61 = vpop.f32.mrb[24].mxu0 }
 0x397   : > { %v2806_v62 = vpop.f32.mrb[25].mxu0 }
 0x398   : > { %v2808_v63 = vpop.f32.mrb[26].mxu0 }
 0x399   : > { %v2828_v1 = vpack.c.bf16 %v2808_v63, %v2804_v61  ;;  %v2810_v2 = vpop.f32.mrb[27].mxu0  ;;  %v9550_v61 = vld [vmem:[#allocation5 + $0x680] ss:$8 sps:$4 sm:$0xff]   ;;  %v9553_v63 = vld [vmem:[#allocation5 + $0x690] ss:$8 sps:$4 sm:$0xff]  }
 0x39a   : > { %v2829_v3 = vpack.c.bf16 %v2810_v2, %v2806_v62  ;;  %v9555_v62 = vld [vmem:[#allocation5 + $0x694] ss:$8 sps:$4 sm:$0xff]   ;;  %v9556_v2 = vld [vmem:[#allocation5 + $0x6a0] ss:$8 sps:$4 sm:$0xff]  }
 0x39e   : > { %v2814_v4 = vpop.f32.mrb[28].mxu0 }
 0x39f   : > { %v2816_v5 = vpop.f32.mrb[29].mxu0 }
 0x3a0   : > { %v2818_v6 = vpop.f32.mrb[30].mxu0 }
 0x3a1   : > { %v2830_v7 = vpack.c.bf16 %v2818_v6, %v2814_v4  ;;  %v2820_v8 = vpop.f32.mrb[31].mxu0  ;;  %v9559_v4 = vld [vmem:[#allocation5 + $0x6b0] ss:$8 sps:$4 sm:$0xff]   ;;  %v9562_v6 = vld [vmem:[#allocation5 + $0x6c0] ss:$8 sps:$4 sm:$0xff]  }
 0x3a2   : > { %v2831_v9 = vpack.c.bf16 %v2820_v8, %v2816_v5  ;;  %v9564_v5 = vld [vmem:[#allocation5 + $0x6c4] ss:$8 sps:$4 sm:$0xff]   ;;  %v9565_v8 = vld [vmem:[#allocation5 + $0x6d0] ss:$8 sps:$4 sm:$0xff]  }
 0x3d6   : > { %v11246_v10 = vpop.f32.mrb[32].mxu0 }
 0x3d7   : > { %v11248_v11 = vpop.f32.mrb[33].mxu0 }
 0x3d8   : > { %v11250_v12 = vpop.f32.mrb[34].mxu0 }
 0x3d9   : > { %v3492_v13 = vpack.c.bf16 %v11250_v12, %v11246_v10  ;;  %v11254_v14 = vpop.f32.mrb[35].mxu0  ;;  %v9576_v10 = vld [vmem:[#allocation5 + $0x800] ss:$8 sps:$4 sm:$0xff]   ;;  %v9582_v12 = vld [vmem:[#allocation5 + $0x814] ss:$8 sps:$4 sm:$0xff]  }
 0x3da   : > { %v3493_v15 = vpack.c.bf16 %v11254_v14, %v11248_v11  ;;  %v9579_v11 = vld [vmem:[#allocation7 + $0x70] sm:$0xff]   ;;  %v9585_v14 = vld [vmem:[#allocation5 + $0x824] ss:$8 sps:$4 sm:$0xff]  }
 0x3de   : > { %v11258_v17 = vpop.f32.mrb[36].mxu0 }
 0x3df   : > { %v11260_v19 = vpop.f32.mrb[37].mxu0 }
 0x3e0   : > { %v11262_v20 = vpop.f32.mrb[38].mxu0 }
 0x3e1   : > { %v3494_v21 = vpack.c.bf16 %v11262_v20, %v11258_v17  ;;  %v11266_v22 = vpop.f32.mrb[39].mxu0  ;;  %v9583_v17 = vld [vmem:[#allocation5 + $0x820] ss:$8 sps:$4 sm:$0xff]   ;;  %v9587_v20 = vld [vmem:[#allocation5 + $0x830] ss:$8 sps:$4 sm:$0xff]  }
 0x3e2   : > { %v3495_v23 = vpack.c.bf16 %v11266_v22, %v11260_v19  ;;  %v9589_v19 = vld [vmem:[#allocation5 + $0x834] ss:$8 sps:$4 sm:$0xff]   ;;  %v9590_v22 = vld [vmem:[#allocation5 + $0x840] ss:$8 sps:$4 sm:$0xff]  }
 0x43b   : > { %v2140_v24 = vpop.f32.mrb[24].mxu1 }
 0x43c   : > { %v2142_v25 = vpop.f32.mrb[25].mxu1 }
 0x43d   : > { %v2144_v27 = vpop.f32.mrb[26].mxu1 }
 0x43e   : > { %v2164_v29 = vpack.c.bf16 %v2144_v27, %v2140_v24  ;;  %v2146_v30 = vpop.f32.mrb[27].mxu1  ;;  %v9568_v24 = vld [vmem:[#allocation5 + $0x6e0] ss:$8 sps:$4 sm:$0xff]   ;;  %v9571_v27 = vld [vmem:[#allocation5 + $0x6f0] ss:$8 sps:$4 sm:$0xff]  }
 0x43f   : > { %v2165_v31 = vpack.c.bf16 %v2146_v30, %v2142_v25  ;;  %v9573_v25 = vld [vmem:[#allocation5 + $0x6f4] ss:$8 sps:$4 sm:$0xff]  }
 0x441   : > { %2184 = vmatprep.subr.bf16.mxu1 %v2165_v31 }
 0x442   : > { %2185 = vmatpush1.bf16.msra.mxu1 %v2164_v29 }
 0x443   : > { %v2150_v32 = vpop.f32.mrb[28].mxu1 }
 0x444   : > { %v2152_v33 = vpop.f32.mrb[29].mxu1 }
 0x445   : > { %v2154_v34 = vpop.f32.mrb[30].mxu1 }
 0x446   : > { %v2166_v35 = vpack.c.bf16 %v2154_v34, %v2150_v32  ;;  %v2156_v36 = vpop.f32.mrb[31].mxu1 }
 0x447   : > { %v2167_v37 = vpack.c.bf16 %v2156_v36, %v2152_v33 }
 0x449   : > { %2186 = vmatprep.subr.bf16.mxu1 %v2167_v37 }
 0x44a   : > { %2187 = vmatpush1.bf16.msra.mxu1 %v2166_v35 }
 0x44b   : > { %2516 = vmatprep.subr.bf16.mxu1 %v2497_v50  ;;  %v9537_v50 = vld [vmem:[#allocation5 + $0x634] ss:$8 sps:$4 sm:$0xff]  }
 0x44d   : > { %8489 = vmatmul.mubr.msk.bf16.vlgmr.msra.gmra.mrb[16].mxu1 %vm1452_vm1, %v9520_v38 }
 0x44e   : > { %2517 = vmatpush1.bf16.msra.mxu1 %v2496_v47  ;;  %2226 = vmatprep.mubr.bf16.mxu1 %v12330_v0  ;;  %v9533_v47 = vld [vmem:[#allocation5 + $0x624] ss:$8 sps:$4 sm:$0xff]  }
 0x44f   : > { %2518 = vmatprep.subr.bf16.mxu1 %v2499_v60  ;;  %v9552_v60 = vld [vmem:[#allocation5 + $0x684] ss:$8 sps:$4 sm:$0xff]  }
 0x452   : > { %2519 = vmatpush1.bf16.msra.mxu1 %v2498_v57  ;;  %v9544_v57 = vld [vmem:[#allocation5 + $0x660] ss:$8 sps:$4 sm:$0xff]  }
 0x453   : > { %2848 = vmatprep.subr.bf16.mxu1 %v2829_v3  ;;  %v9561_v3 = vld [vmem:[#allocation5 + $0x6b4] ss:$8 sps:$4 sm:$0xff]  }
 0x455   : > { %8490 = vmatmul.mubr.msk.bf16.gmra.mrb[20].mxu1 %vm1452_vm1, %v9521_v39 }
 0x456   : > { %2548 = vmatprep.mubr.bf16.mxu1 %v12330_v0 }
 0x45d   : > { %8525 = vmatmul.mubr.msk.bf16.vlgmr.msra.gmra.mrb[16].mxu1 %vm1452_vm1, %v9522_v40 }
 0x45e   : > { %2849 = vmatpush1.bf16.msra.mxu1 %v2828_v1  ;;  %2558 = vmatprep.mubr.bf16.mxu1 %v12330_v0  ;;  %v9558_v1 = vld [vmem:[#allocation5 + $0x6a4] ss:$8 sps:$4 sm:$0xff]  }
 0x45f   : > { %2850 = vmatprep.subr.bf16.mxu1 %v2831_v9  ;;  %v9570_v9 = vld [vmem:[#allocation5 + $0x6e4] ss:$8 sps:$4 sm:$0xff]  }
 0x462   : > { %2851 = vmatpush1.bf16.msra.mxu1 %v2830_v7  ;;  %v9567_v7 = vld [vmem:[#allocation5 + $0x6d4] ss:$8 sps:$4 sm:$0xff]  }
 0x463   : > { %3102 = vmatprep.subr.bf16.mxu1 %v9526_v41  ;;  %v9574_v41 = vld [vmem:[#allocation7 + $0x60] sm:$0xff]  }
 0x465   : > { %8526 = vmatmul.mubr.msk.bf16.gmra.mrb[20].mxu1 %vm1452_vm1, %v9523_v42  ;;  %v9578_v42 = vld [vmem:[#allocation5 + $0x804] ss:$8 sps:$4 sm:$0xff]  }
 0x466   : > { %2880 = vmatprep.mubr.bf16.mxu1 %v12330_v0 }
 0x46d   : > { %8561 = vmatmul.mubr.msk.bf16.vlgmr.msra.gmra.mrb[16].mxu1 %vm1452_vm1, %v9527_v43  ;;  %v9575_v43 = vld [vmem:[#allocation7 + $0x68] sm:$0xff]  }
 0x46e   : > { %3103 = vmatpush1.bf16.msra.mxu1 %v9524_v44  ;;  %2890 = vmatprep.mubr.bf16.mxu1 %v12330_v0  ;;  %v9593_v44 = vld [vmem:[#allocation5 + $0x850] ss:$8 sps:$4 sm:$0xff]  }
 0x46f   : > { %3104 = vmatprep.subr.bf16.mxu1 %v9530_v45  ;;  %v9598_v45 = vld [vmem:[#allocation5 + $0x864] ss:$8 sps:$4 sm:$0xff]  }
 0x472   : > { %3105 = vmatpush1.bf16.msra.mxu1 %v9528_v46  ;;  %v9596_v46 = vld [vmem:[#allocation5 + $0x860] ss:$8 sps:$4 sm:$0xff]  }
 0x473   : > { %3106 = vmatprep.subr.bf16.mxu1 %v9533_v47  ;;  %v9601_v47 = vld [vmem:[#allocation5 + $0x874] ss:$8 sps:$4 sm:$0xff]  }
 0x475   : > { %8562 = vmatmul.mubr.msk.bf16.gmra.mrb[20].mxu1 %vm1452_vm1, %v9534_v48  ;;  %v9599_v48 = vld [vmem:[#allocation5 + $0x870] ss:$8 sps:$4 sm:$0xff]  }
 0x476   : > { %3107 = vmatpush1.bf16.msra.mxu1 %v9531_v49  ;;  %3134 = vmatprep.mubr.bf16.mxu1 %v11183_v18  ;;  %v9604_v49 = vld [vmem:[#allocation5 + $0x884] ss:$8 sps:$4 sm:$0xff]  }
 0x477   : > { %3108 = vmatprep.subr.bf16.mxu1 %v9537_v50  ;;  %v9607_v50 = vld [vmem:[#allocation5 + $0x894] ss:$8 sps:$4 sm:$0xff]  }
 0x47a   : > { %3109 = vmatpush1.bf16.msra.mxu1 %v9535_v51  ;;  %v9605_v51 = vld [vmem:[#allocation5 + $0x890] ss:$8 sps:$4 sm:$0xff]  }
 0x47b   : > { %3110 = vmatprep.subr.bf16.mxu1 %v9540_v52  ;;  %v9610_v52 = vld [vmem:[#allocation5 + $0x8a4] ss:$8 sps:$4 sm:$0xff]  }
 0x47e   : > { %3111 = vmatpush1.bf16.msra.mxu1 %v9538_v53  ;;  %v9608_v53 = vld [vmem:[#allocation5 + $0x8a0] ss:$8 sps:$4 sm:$0xff]  }
 0x47f   : > { %3112 = vmatprep.subr.bf16.mxu1 %v9543_v54  ;;  %v9613_v54 = vld [vmem:[#allocation5 + $0x8b4] ss:$8 sps:$4 sm:$0xff]  }
 0x482   : > { %3113 = vmatpush1.bf16.msra.mxu1 %v9541_v55  ;;  %v9611_v55 = vld [vmem:[#allocation5 + $0x8b0] ss:$8 sps:$4 sm:$0xff]  }
 0x483   : > { %3114 = vmatprep.subr.bf16.mxu1 %v9546_v56  ;;  %v9616_v56 = vld [vmem:[#allocation5 + $0x8c4] ss:$8 sps:$4 sm:$0xff]  }
 0x486   : > { %3115 = vmatpush1.bf16.msra.mxu1 %v9544_v57  ;;  %v9614_v57 = vld [vmem:[#allocation5 + $0x8c0] ss:$8 sps:$4 sm:$0xff]  }
 0x487   : > { %3116 = vmatprep.subr.bf16.mxu1 %v9549_v58  ;;  %v9619_v58 = vld [vmem:[#allocation5 + $0x8d4] ss:$8 sps:$4 sm:$0xff]  }
 0x48a   : > { %3117 = vmatpush1.bf16.msra.mxu1 %v9547_v59  ;;  %v9617_v59 = vld [vmem:[#allocation5 + $0x8d0] ss:$8 sps:$4 sm:$0xff]  }
 0x48b   : > { %3118 = vmatprep.subr.bf16.mxu1 %v9552_v60  ;;  %v9622_v60 = vld [vmem:[#allocation5 + $0x8e4] ss:$8 sps:$4 sm:$0xff]  }
 0x48e   : > { %3119 = vmatpush1.bf16.msra.mxu1 %v9550_v61  ;;  %v9620_v61 = vld [vmem:[#allocation5 + $0x8e0] ss:$8 sps:$4 sm:$0xff]  }
 0x48f   : > { %3120 = vmatprep.subr.bf16.mxu1 %v9555_v62  ;;  %v9625_v62 = vld [vmem:[#allocation5 + $0x8f4] ss:$8 sps:$4 sm:$0xff]  }
 0x492   : > { %3121 = vmatpush1.bf16.msra.mxu1 %v9553_v63  ;;  %v9623_v63 = vld [vmem:[#allocation5 + $0x8f0] ss:$8 sps:$4 sm:$0xff]  }
 0x493   : > { %3122 = vmatprep.subr.bf16.mxu1 %v9558_v1  ;;  %v3905_v1 = vld [vmem:[%s12394_s14] sm:$0xff] }
 0x494   : > { %3911 = vperm.xlu0 %9162, %v3905_v1  }
 0x496   : > { %3123 = vmatpush1.bf16.msra.mxu1 %v9556_v2  ;;  %v3907_v2 = vld [vmem:[%s12394_s14 + $0x10] sm:$0xff] }
 0x497   : > { %3124 = vmatprep.subr.bf16.mxu1 %v9561_v3  ;;  %3921 = vperm.xlu1 %9163, %v3907_v2   ;;  %v4232_v3 = vld [vmem:[%s12297_s8 + $0x8] sm:$0xff] }
 0x49a   : > { %3125 = vmatpush1.bf16.msra.mxu1 %v9559_v4  ;;  %v4233_v4 = vld [vmem:[%s12297_s8 + $0x10] sm:$0xff] }
 0x49b   : > { %3126 = vmatprep.subr.bf16.mxu1 %v9564_v5  ;;  %v4234_v5 = vld [vmem:[%s12297_s8 + $0x18] sm:$0xff] }
 0x49e   : > { %3127 = vmatpush1.bf16.msra.mxu1 %v9562_v6  ;;  %v4235_v6 = vld [vmem:[%s12297_s8 + $0x20] sm:$0xff] }
 0x49f   : > { %3128 = vmatprep.subr.bf16.mxu1 %v9567_v7  ;;  %v4236_v7 = vld [vmem:[%s12297_s8 + $0x28] sm:$0xff] }
 0x4a2   : > { %3129 = vmatpush1.bf16.msra.mxu1 %v9565_v8  ;;  %v4237_v8 = vld [vmem:[%s12297_s8 + $0x30] sm:$0xff] }
 0x4a3   : > { %3130 = vmatprep.subr.bf16.mxu1 %v9570_v9  ;;  %v4238_v9 = vld [vmem:[%s12297_s8 + $0x38] sm:$0xff] }
 0x4a6   : > { %3131 = vmatpush1.bf16.msra.mxu1 %v9568_v24 }
 0x4a7   : > { %3132 = vmatprep.subr.bf16.mxu1 %v9573_v25 }
 0x4aa   : > { %3133 = vmatpush1.bf16.msra.mxu1 %v9571_v27 }
 0x4ad   : > { %3135 = vmatmul.mubr.bf16.vlgmr.msra.gmra.mrb[32].mxu1 %v11181_v16 }
 0x4ae   : > { %3144 = vmatprep.mubr.bf16.mxu1 %v11191_v28 }
 0x4b5   : > { %3145 = vmatmul.mubr.bf16.gmra.mrb[36].mxu1 %v11189_v26 }
 0x4b6   : > { %3212 = vmatprep.mubr.bf16.mxu1 %v12330_v0 }
 0x580   : > { %v3136_v29 = vpop.f32.mrb[32].mxu1 }
 0x581   : > { %v3138_v30 = vpop.f32.mrb[33].mxu1 }
 0x582   : > { %v3140_v31 = vpop.f32.mrb[34].mxu1 }
 0x583   : > { %v3160_v32 = vpack.c.bf16 %v3140_v31, %v3136_v29  ;;  %v3142_v33 = vpop.f32.mrb[35].mxu1 }
 0x584   : > { %v3161_v34 = vpack.c.bf16 %v3142_v33, %v3138_v30 }
 0x586   : > { %3180 = vmatprep.subr.bf16.mxu1 %v3161_v34 }
 0x587   : > { %3181 = vmatpush1.bf16.msra.mxu1 %v3160_v32 }
 0x588   : > { %v3146_v35 = vpop.f32.mrb[36].mxu1 }
 0x589   : > { %v3148_v36 = vpop.f32.mrb[37].mxu1 }
 0x58a   : > { %v3150_v37 = vpop.f32.mrb[38].mxu1 }
 0x58b   : > { %v3162_v38 = vpack.c.bf16 %v3150_v37, %v3146_v35  ;;  %v3152_v39 = vpop.f32.mrb[39].mxu1 }
 0x58c   : > { %v3163_v40 = vpack.c.bf16 %v3152_v39, %v3148_v36  ;;  %v9627_v39 = vld [vmem:[#allocation7 + $0x88] sm:$0xff]  }
 0x58e   : > { %3182 = vmatprep.subr.bf16.mxu1 %v3163_v40  ;;  %v9630_v40 = vld [vmem:[%s801_s21 + $0x4] ss:$8 sps:$4 sm:$0xff]  }
 0x58f   : > { %3183 = vmatpush1.bf16.msra.mxu1 %v3162_v38  ;;  %v9626_v38 = vld [vmem:[#allocation7 + $0x80] sm:$0xff]  }
 0x590   : > { %3512 = vmatprep.subr.bf16.mxu1 %v3493_v15  ;;  %v9586_v15 = vld [vmem:[#allocation7 + $0x78] sm:$0xff]  }
 0x592   : > { %8597 = vmatmul.mubr.msk.bf16.vlgmr.msra.gmra.mrb[16].mxu1 %vm1452_vm1, %v9574_v41  ;;  %v9628_v41 = vld [vmem:[%s801_s21] ss:$8 sps:$4 sm:$0xff]  }
 0x593   : > { %3513 = vmatpush1.bf16.msra.mxu1 %v3492_v13  ;;  %3222 = vmatprep.mubr.bf16.mxu1 %v12330_v0  ;;  %v9580_v13 = vld [vmem:[#allocation5 + $0x810] ss:$8 sps:$4 sm:$0xff]  }
 0x594   : > { %3514 = vmatprep.subr.bf16.mxu1 %v3495_v23  ;;  %v9595_v23 = vld [vmem:[#allocation5 + $0x854] ss:$8 sps:$4 sm:$0xff]  }
 0x597   : > { %3515 = vmatpush1.bf16.msra.mxu1 %v3494_v21  ;;  %v9592_v21 = vld [vmem:[#allocation5 + $0x844] ss:$8 sps:$4 sm:$0xff]  }
 0x598   : > { %3766 = vmatprep.subr.bf16.mxu1 %v9578_v42  ;;  %v9633_v42 = vld [vmem:[%s801_s21 + $0x14] ss:$8 sps:$4 sm:$0xff]  }
 0x59a   : > { %8598 = vmatmul.mubr.msk.bf16.gmra.mrb[20].mxu1 %vm1452_vm1, %v9575_v43  ;;  %v9631_v43 = vld [vmem:[%s801_s21 + $0x10] ss:$8 sps:$4 sm:$0xff]  }
 0x59b   : > { %3544 = vmatprep.mubr.bf16.mxu1 %v12330_v0 }
 0x5a2   : > { %8633 = vmatmul.mubr.msk.bf16.vlgmr.msra.gmra.mrb[16].mxu1 %vm1452_vm1, %v9579_v11  ;;  %v9634_v11 = vld [vmem:[%s12296_s7] sm:$0xff]  }
 0x5a3   : > { %3767 = vmatpush1.bf16.msra.mxu1 %v9576_v10  ;;  %3554 = vmatprep.mubr.bf16.mxu1 %v12330_v0  ;;  %v9636_v10 = vld [vmem:[%s12296_s7 + $0x8] sm:$0xff]  }
 0x5a4   : > { %3768 = vmatprep.subr.bf16.mxu1 %v9582_v12  ;;  %v9638_v12 = vld [vmem:[%s12296_s7 + $0x10] sm:$0xff]  }
 0x5a7   : > { %3769 = vmatpush1.bf16.msra.mxu1 %v9580_v13  ;;  %v9640_v13 = vld [vmem:[%s12296_s7 + $0x18] sm:$0xff]  }
 0x5a8   : > { %3770 = vmatprep.subr.bf16.mxu1 %v9585_v14  ;;  %v3912_v14 = vpop.permute.xlu0 %3911 }
 0x5aa   : > { %8634 = vmatmul.mubr.msk.bf16.gmra.mrb[20].mxu1 %vm1452_vm1, %v9586_v15 }
 0x5ab   : > { %3771 = vmatpush1.bf16.msra.mxu1 %v9583_v17  ;;  %3798 = vmatprep.mubr.bf16.mxu1 %v11183_v18  ;;  %v9602_v18 = vld [vmem:[#allocation5 + $0x880] ss:$8 sps:$4 sm:$0xff]  }
 0x5ac   : > { %3772 = vmatprep.subr.bf16.mxu1 %v9589_v19 }
 0x5af   : > { %3773 = vmatpush1.bf16.msra.mxu1 %v9587_v20 }
 0x5b0   : > { %3774 = vmatprep.subr.bf16.mxu1 %v9592_v21 }
 0x5b3   : > { %3775 = vmatpush1.bf16.msra.mxu1 %v9590_v22 }
 0x5b4   : > { %3776 = vmatprep.subr.bf16.mxu1 %v9595_v23 }
 0x5b7   : > { %3777 = vmatpush1.bf16.msra.mxu1 %v9593_v44 }
 0x5b8   : > { %3778 = vmatprep.subr.bf16.mxu1 %v9598_v45 }
 0x5bb   : > { %3779 = vmatpush1.bf16.msra.mxu1 %v9596_v46  ;;  %v3922_v46 = vpop.permute.xlu1 %3921 }
 0x5bc   : > { %3780 = vmatprep.subr.bf16.mxu1 %v9601_v47 }
 0x5bf   : > { %3781 = vmatpush1.bf16.msra.mxu1 %v9599_v48 }
 0x5c0   : > { %3782 = vmatprep.subr.bf16.mxu1 %v9604_v49 }
 0x5c3   : > { %3783 = vmatpush1.bf16.msra.mxu1 %v9602_v18 }
 0x5c4   : > { %3784 = vmatprep.subr.bf16.mxu1 %v9607_v50 }
 0x5c7   : > { %3785 = vmatpush1.bf16.msra.mxu1 %v9605_v51 }
 0x5c8   : > { %3786 = vmatprep.subr.bf16.mxu1 %v9610_v52 }
 0x5cb   : > { %3787 = vmatpush1.bf16.msra.mxu1 %v9608_v53 }
 0x5cc   : > { %3788 = vmatprep.subr.bf16.mxu1 %v9613_v54 }
 0x5cf   : > { %3789 = vmatpush1.bf16.msra.mxu1 %v9611_v55 }
 0x5d0   : > { %3790 = vmatprep.subr.bf16.mxu1 %v9616_v56 }
 0x5d3   : > { %3791 = vmatpush1.bf16.msra.mxu1 %v9614_v57 }
 0x5d4   : > { %3792 = vmatprep.subr.bf16.mxu1 %v9619_v58 }
 0x5d7   : > { %3793 = vmatpush1.bf16.msra.mxu1 %v9617_v59 }
 0x5d8   : > { %3794 = vmatprep.subr.bf16.mxu1 %v9622_v60 }
 0x5db   : > { %3795 = vmatpush1.bf16.msra.mxu1 %v9620_v61 }
 0x5dc   : > { %3796 = vmatprep.subr.bf16.mxu1 %v9625_v62 }
 0x5df   : > { %3797 = vmatpush1.bf16.msra.mxu1 %v9623_v63 }
 0x5e2   : > { %3799 = vmatmul.mubr.bf16.vlgmr.msra.gmra.mrb[40].mxu1 %v11181_v16  ;;  %v3906_v16 = vld [vmem:[%s12394_s14 + $0x8] sm:$0xff] }
 0x5e3   : > { %3808 = vmatprep.mubr.bf16.mxu1 %v11191_v28  ;;  %3916 = vperm.xlu0 %9162, %v3906_v16   ;;  %v4231_v28 = vld [vmem:[%s12297_s8] sm:$0xff] }
 0x5e7   : > { %4241 = vperm.xlu0 %9162, %v4231_v28  }
 0x5ea   : > { %3809 = vmatmul.mubr.bf16.gmra.mrb[44].mxu1 %v11189_v26  ;;  %v3908_v26 = vld [vmem:[%s12394_s14 + $0x18] sm:$0xff] }
 0x5eb   : > { %3876 = vmatprep.mubr.bf16.mxu1 %v12330_v0  ;;  %3926 = vperm.xlu1 %9163, %v3908_v26  }
 0x5ec   : > { %4251 = vperm.xlu0 %9162, %v4233_v4  }
 0x5ef   : > { %4246 = vperm.xlu1 %9163, %v4232_v3  }
 0x5f0   : > { %4261 = vperm.xlu0 %9162, %v4235_v6  }
 0x5f3   : > { %4256 = vperm.xlu1 %9163, %v4234_v5  }
 0x5f4   : > { %4271 = vperm.xlu0 %9162, %v4237_v8  }
 0x5f7   : > { %4266 = vperm.xlu1 %9163, %v4236_v7  }
 0x5fb   : > { %4276 = vperm.xlu1 %9163, %v4238_v9  }
 0x662   : > { %v3917_v20 = vpop.permute.xlu0 %3916 }
 0x66a   : > { %v3927_v53 = vpop.permute.xlu1 %3926 }
 0x6b5   : > { %v3800_v24 = vpop.f32.mrb[40].mxu1 }
 0x6b6   : > { %v3802_v25 = vpop.f32.mrb[41].mxu1 }
 0x6b7   : > { %v3804_v27 = vpop.f32.mrb[42].mxu1 }
 0x6b8   : > { %v3824_v29 = vpack.c.bf16 %v3804_v27, %v3800_v24  ;;  %v3806_v30 = vpop.f32.mrb[43].mxu1 }
 0x6b9   : > { %v3825_v31 = vpack.c.bf16 %v3806_v30, %v3802_v25 }
 0x6bb   : > { %3844 = vmatprep.subr.bf16.mxu1 %v3825_v31 }
 0x6bc   : > { %3845 = vmatpush1.bf16.msra.mxu1 %v3824_v29 }
 0x6bd   : > { %v3810_v32 = vpop.f32.mrb[44].mxu1 }
 0x6be   : > { %v3812_v33 = vpop.f32.mrb[45].mxu1 }
 0x6bf   : > { %v3814_v34 = vpop.f32.mrb[46].mxu1 }
 0x6c0   : > { %v3826_v35 = vpack.c.bf16 %v3814_v34, %v3810_v32  ;;  %v3816_v36 = vpop.f32.mrb[47].mxu1 }
 0x6c1   : > { %v3827_v37 = vpack.c.bf16 %v3816_v36, %v3812_v33 }
 0x6c3   : > { %3846 = vmatprep.subr.bf16.mxu1 %v3827_v37 }
 0x6c4   : > { %3847 = vmatpush1.bf16.msra.mxu1 %v3826_v35 }
 0x6c5   : > { %4053 = vmatprep.subr.bf16.mxu1 %v9630_v40 }
 0x6c7   : > { %8669 = vmatmul.mubr.msk.bf16.vlgmr.msra.gmra.mrb[16].mxu1 %vm1452_vm1, %v9626_v38 }
 0x6c8   : > { %3886 = vmatprep.mubr.bf16.mxu1 %v12330_v0  ;;  %4054 = vmatpush1.bf16.msra.mxu1 %v9628_v41 }
 0x6c9   : > { %4055 = vmatprep.subr.bf16.mxu1 %v9633_v42 }
 0x6cc   : > { %4056 = vmatpush1.bf16.msra.mxu1 %v9631_v43 }
 0x6cf   : > { %8670 = vmatmul.mubr.msk.bf16.gmra.mrb[20].mxu1 %vm1452_vm1, %v9627_v39 }
 0x6d0   : > { %4085 = vmatprep.mubr.bf16.mxu1 %v12330_v0 }
 0x6d7   : > { %8679 = vmatmul.mubr.msk.bf16.vlgmr.msra.gmra.mrb[48].mxu1 %vm1452_vm1, %v9634_v11 }
 0x6d8   : > { %4095 = vmatprep.mubr.bf16.mxu1 %v12330_v0 }
 0x6df   : > { %8680 = vmatmul.mubr.msk.bf16.gmra.mrb[52].mxu1 %vm1452_vm1, %v9636_v10 }
 0x6e0   : > { %4105 = vmatprep.mubr.bf16.mxu1 %v12330_v0 }
 0x6e7   : > { %8681 = vmatmul.mubr.msk.bf16.gmra.mrb[56].mxu1 %vm1452_vm1, %v9638_v12 }
 0x6e8   : > { %4115 = vmatprep.mubr.bf16.mxu1 %v12330_v0 }
 0x6ef   : > { %8682 = vmatmul.mubr.msk.bf16.gmra.mrb[60].mxu1 %vm1452_vm1, %v9640_v13 }
 0x79a   : > { %v3878_v15 = vpop.f32.mrb[16].mxu1 }
 0x79b   : > { %v3929_v17 = vadd.f32 %v3912_v14, %v3878_v15  ;;  %v3880_v19 = vpop.f32.mrb[17].mxu1  ;;  %v9635_v15 = vld [vmem:[%s12295_s6] sm:$0xff]  }
 0x79c   : > { %v3930_v21 = vadd.f32 %v3912_v14, %v3880_v19  ;;  %v3882_v22 = vpop.f32.mrb[18].mxu1  ;;  %v9639_v19 = vld [vmem:[%s12295_s6 + $0x10] sm:$0xff]  }
 0x79d   : > { %v3945_v23 = vmul.f32 0.70710677, %v3929_v17  ;;  %v3931_v44 = vadd.f32 %v3917_v20, %v3882_v22  ;;  %v3884_v45 = vpop.f32.mrb[19].mxu1  ;;  %v3937_v3 = vmul.f32 0.5, %v3929_v17  ;;  %v9637_v17 = vld [vmem:[%s12295_s6 + $0x8] sm:$0xff]  }
 0x79e   : > { %v3946_v47 = vmul.f32 0.70710677, %v3930_v21  ;;  %v3932_v48 = vadd.f32 %v3917_v20, %v3884_v45  ;;  %v3938_v6 = vmul.f32 0.5, %v3930_v21  ;;  %v9641_v20 = vld [vmem:[%s12295_s6 + $0x18] sm:$0xff]  }
 0x79f   : > { %9778 = verf.f32 %v3945_v23  ;;  %v3947_v49 = vmul.f32 0.70710677, %v3931_v44  ;;  %v3939_v4 = vmul.f32 0.5, %v3931_v44  ;;  %v9644_v45 = vld [vmem:[#allocation11 + $0x4] ss:$8 sps:$4 sm:$0xff]  }
 0x7a0   : > { %9780 = verf.f32 %v3946_v47  ;;  %v3948_v18 = vmul.f32 0.70710677, %v3932_v48  ;;  %v3940_v7 = vmul.f32 0.5, %v3932_v48  ;;  %v9642_v47 = vld [vmem:[#allocation11] ss:$8 sps:$4 sm:$0xff]  }
 0x7a1   : > { %9782 = verf.f32 %v3947_v49  ;;  %v9645_v48 = vld [vmem:[#allocation10] ss:$8 sps:$4 sm:$0xff]  }
 0x7a2   : > { %9784 = verf.f32 %v3948_v18  ;;  %v3888_v50 = vpop.f32.mrb[20].mxu1 }
 0x7a3   : > { %v3933_v51 = vadd.f32 %v3922_v46, %v3888_v50  ;;  %v3890_v52 = vpop.f32.mrb[21].mxu1  ;;  %v9650_v50 = vld [vmem:[#allocation11 + $0x14] ss:$8 sps:$4 sm:$0xff]  }
 0x7a4   : > { %v3934_v54 = vadd.f32 %v3922_v46, %v3890_v52  ;;  %v3892_v55 = vpop.f32.mrb[22].mxu1  ;;  %v9647_v46 = vld [vmem:[#allocation10 + $0x4] ss:$8 sps:$4 sm:$0xff]  }
 0x7a5   : > { %v3949_v56 = vmul.f32 0.70710677, %v3933_v51  ;;  %v3935_v57 = vadd.f32 %v3927_v53, %v3892_v55  ;;  %v3894_v58 = vpop.f32.mrb[23].mxu1  ;;  %v3941_v37 = vmul.f32 0.5, %v3933_v51  ;;  %5045 = vmatprep.subr.bf16.mxu1 %v9647_v46  ;;  %v9653_v51 = vld [vmem:[#allocation10 + $0x14] ss:$8 sps:$4 sm:$0xff]  }
 0x7a6   : > { %v3950_v59 = vmul.f32 0.70710677, %v3934_v54  ;;  %v3936_v60 = vadd.f32 %v3927_v53, %v3894_v58  ;;  %v3942_v40 = vmul.f32 0.5, %v3934_v54  ;;  %5046 = vmatpush1.bf16.msra.mxu1 %v9645_v48  ;;  %v9648_v53 = vld [vmem:[#allocation11 + $0x10] ss:$8 sps:$4 sm:$0xff]  }
 0x7a7   : > { %9786 = verf.f32 %v3949_v56  ;;  %v3951_v61 = vmul.f32 0.70710677, %v3935_v57  ;;  %v3943_v38 = vmul.f32 0.5, %v3935_v57  ;;  %v9651_v54 = vld [vmem:[#allocation10 + $0x10] ss:$8 sps:$4 sm:$0xff]   ;;  %5047 = vmatprep.subr.bf16.mxu1 %v9653_v51 }
 0x7a8   : > { %9788 = verf.f32 %v3950_v59  ;;  %v3952_v62 = vmul.f32 0.70710677, %v3936_v60  ;;  %v3944_v41 = vmul.f32 0.5, %v3936_v60  ;;  %v9656_v56 = vld [vmem:[#allocation11 + $0x24] ss:$8 sps:$4 sm:$0xff]  }
 0x7a9   : > { %v9779_v63 = vpop.eup %9778  ;;  %9790 = verf.f32 %v3951_v61  ;;  %v9659_v57 = vld [vmem:[#allocation10 + $0x24] ss:$8 sps:$4 sm:$0xff]   ;;  %v9654_v58 = vld [vmem:[#allocation11 + $0x20] ss:$8 sps:$4 sm:$0xff]   ;;  %v9722_v51 = vld [vmem:[#allocation11 + $0xd4] ss:$8 sps:$4 sm:$0xff]  }
 0x7aa   : > { %v9781_v1 = vpop.eup %9780  ;;  %v3961_v2 = vadd.f32 1.0, %v9779_v63  ;;  %9792 = verf.f32 %v3952_v62  ;;  %v11395_v21 = vpop.f32.mrb[48].mxu1  ;;  %5048 = vmatpush1.bf16.msra.mxu1 %v9651_v54  ;;  %v9657_v59 = vld [vmem:[#allocation10 + $0x20] ss:$8 sps:$4 sm:$0xff]   ;;  %v9662_v62 = vld [vmem:[#allocation11 + $0x34] ss:$8 sps:$4 sm:$0xff]  }
 0x7ab   : > { %v9783_v16 = vpop.eup %9782  ;;  %v3962_v26 = vadd.f32 1.0, %v9781_v1  ;;  %v11397_v22 = vpop.f32.mrb[49].mxu1  ;;  %5049 = vmatprep.subr.bf16.mxu1 %v9659_v57  ;;  %v9665_v63 = vld [vmem:[#allocation10 + $0x34] ss:$8 sps:$4 sm:$0xff]   ;;  %v9716_v46 = vld [vmem:[#allocation11 + $0xc4] ss:$8 sps:$4 sm:$0xff]  }
 0x7ac   : > { %v9785_v28 = vpop.eup %9784  ;;  %v3963_v5 = vadd.f32 1.0, %v9783_v16  ;;  %v3969_v9 = vmul.f32 %v3961_v2, %v3937_v3  ;;  %v11399_v23 = vpop.f32.mrb[50].mxu1  ;;  %v9660_v2 = vld [vmem:[#allocation11 + $0x30] ss:$8 sps:$4 sm:$0xff]   ;;  %v9671_v3 = vld [vmem:[#allocation10 + $0x44] ss:$8 sps:$4 sm:$0xff]  }
 0x7ad   : > { %v3964_v8 = vadd.f32 1.0, %v9785_v28  ;;  %v3970_v25 = vmul.f32 %v3962_v26, %v3938_v6  ;;  %v11401_v44 = vpop.f32.mrb[51].mxu1  ;;  %v9663_v16 = vld [vmem:[#allocation10 + $0x30] ss:$8 sps:$4 sm:$0xff]   ;;  %v9668_v28 = vld [vmem:[#allocation11 + $0x44] ss:$8 sps:$4 sm:$0xff]  }
 0x7ae   : > { %v3971_v24 = vmul.f32 %v3963_v5, %v3939_v4  ;;  %5050 = vmatpush1.bf16.msra.mxu1 %v9657_v59  ;;  %v9666_v4 = vld [vmem:[#allocation11 + $0x40] ss:$8 sps:$4 sm:$0xff]   ;;  %v9723_v54 = vld [vmem:[#allocation10 + $0xd0] ss:$8 sps:$4 sm:$0xff]   ;;  %v9728_v57 = vld [vmem:[#allocation11 + $0xe4] ss:$8 sps:$4 sm:$0xff]  }
 0x7af   : > { %v3972_v27 = vmul.f32 %v3964_v8, %v3940_v7  ;;  %5051 = vmatprep.subr.bf16.mxu1 %v9665_v63  ;;  %v9669_v5 = vld [vmem:[#allocation10 + $0x40] ss:$8 sps:$4 sm:$0xff]   ;;  %v9674_v8 = vld [vmem:[#allocation11 + $0x54] ss:$8 sps:$4 sm:$0xff]  }
 0x7b0   : > { %v3985_v29 = vpack.c.bf16 %v3971_v24, %v3969_v9  ;;  %v9677_v9 = vld [vmem:[#allocation10 + $0x54] ss:$8 sps:$4 sm:$0xff]   ;;  %v9714_v48 = vld [vmem:[#allocation11 + $0xc0] ss:$8 sps:$4 sm:$0xff]  }
 0x7b1   : > { %v9787_v30 = vpop.eup %9786  ;;  %v3986_v31 = vpack.c.bf16 %v3972_v27, %v3970_v25  ;;  %v9672_v25 = vld [vmem:[#allocation11 + $0x50] ss:$8 sps:$4 sm:$0xff]   ;;  %v9726_v59 = vld [vmem:[#allocation11 + $0xe0] ss:$8 sps:$4 sm:$0xff]   ;;  %v9734_v63 = vld [vmem:[#allocation11 + $0xf4] ss:$8 sps:$4 sm:$0xff]  }
 0x7b2   : > { %v9789_v32 = vpop.eup %9788  ;;  %v3965_v33 = vadd.f32 1.0, %v9787_v30  ;;  %v11403_v49 = vpop.f32.mrb[52].mxu1  ;;  %5052 = vmatpush1.bf16.msra.mxu1 %v9663_v16  ;;  %v9675_v27 = vld [vmem:[#allocation10 + $0x50] ss:$8 sps:$4 sm:$0xff]   ;;  %v9680_v30 = vld [vmem:[#allocation11 + $0x64] ss:$8 sps:$4 sm:$0xff]  }
 0x7b3   : > { %v9791_v34 = vpop.eup %9790  ;;  %v3966_v35 = vadd.f32 1.0, %v9789_v32  ;;  %4158 = vmatprep.subr.bf16.mxu0 %v3986_v31  ;;  %v11405_v18 = vpop.f32.mrb[53].mxu1  ;;  %5053 = vmatprep.subr.bf16.mxu1 %v9671_v3  ;;  %v9683_v31 = vld [vmem:[#allocation10 + $0x64] ss:$8 sps:$4 sm:$0xff]   ;;  %v9678_v32 = vld [vmem:[#allocation11 + $0x60] ss:$8 sps:$4 sm:$0xff]  }
 0x7b4   : > { %v9793_v36 = vpop.eup %9792  ;;  %v3967_v39 = vadd.f32 1.0, %v9791_v34  ;;  %4159 = vmatpush1.bf16.msra.mxu0 %v3985_v29  ;;  %v3973_v43 = vmul.f32 %v3965_v33, %v3941_v37  ;;  %v11407_v52 = vpop.f32.mrb[54].mxu1  ;;  %v9681_v33 = vld [vmem:[#allocation10 + $0x60] ss:$8 sps:$4 sm:$0xff]   ;;  %v9686_v34 = vld [vmem:[#allocation11 + $0x74] ss:$8 sps:$4 sm:$0xff]  }
 0x7b5   : > { %v3968_v42 = vadd.f32 1.0, %v9793_v36  ;;  %v3974_v10 = vmul.f32 %v3966_v35, %v3942_v40  ;;  %v11409_v55 = vpop.f32.mrb[55].mxu1  ;;  %v9689_v35 = vld [vmem:[#allocation10 + $0x74] ss:$8 sps:$4 sm:$0xff]   ;;  %v9684_v36 = vld [vmem:[#allocation11 + $0x70] ss:$8 sps:$4 sm:$0xff]  }
 0x7b6   : > { %v3975_v11 = vmul.f32 %v3967_v39, %v3943_v38  ;;  %5054 = vmatpush1.bf16.msra.mxu1 %v9669_v5  ;;  %v9687_v37 = vld [vmem:[#allocation10 + $0x70] ss:$8 sps:$4 sm:$0xff]   ;;  %v9692_v38 = vld [vmem:[#allocation11 + $0x84] ss:$8 sps:$4 sm:$0xff]   ;;  %v9690_v40 = vld [vmem:[#allocation11 + $0x80] ss:$8 sps:$4 sm:$0xff]  }
 0x7b7   : > { %v3976_v12 = vmul.f32 %v3968_v42, %v3944_v41  ;;  %5055 = vmatprep.subr.bf16.mxu1 %v9677_v9  ;;  %v9695_v39 = vld [vmem:[#allocation10 + $0x84] ss:$8 sps:$4 sm:$0xff]   ;;  %v9693_v41 = vld [vmem:[#allocation10 + $0x80] ss:$8 sps:$4 sm:$0xff]   ;;  %v9698_v42 = vld [vmem:[#allocation11 + $0x94] ss:$8 sps:$4 sm:$0xff]   ;;  %v4242_v9 = vpop.permute.xlu0 %4241 }
 0x7b8   : > { %v3987_v13 = vpack.c.bf16 %v3975_v11, %v3973_v43  ;;  %v9701_v43 = vld [vmem:[#allocation10 + $0x94] ss:$8 sps:$4 sm:$0xff]   ;;  %v9696_v11 = vld [vmem:[#allocation11 + $0x90] ss:$8 sps:$4 sm:$0xff]  }
 0x7b9   : > { %v3988_v14 = vpack.c.bf16 %v3976_v12, %v3974_v10  ;;  %v9699_v10 = vld [vmem:[#allocation10 + $0x90] ss:$8 sps:$4 sm:$0xff]   ;;  %v9704_v12 = vld [vmem:[#allocation11 + $0xa4] ss:$8 sps:$4 sm:$0xff]  }
 0x7ba   : > { %v11411_v60 = vpop.f32.mrb[56].mxu1  ;;  %5056 = vmatpush1.bf16.msra.mxu1 %v9675_v27  ;;  %v9732_v16 = vld [vmem:[#allocation11 + $0xf0] ss:$8 sps:$4 sm:$0xff]  }
 0x7bb   : > { %4160 = vmatprep.subr.bf16.mxu0 %v3988_v14  ;;  %v11413_v61 = vpop.f32.mrb[57].mxu1  ;;  %5057 = vmatprep.subr.bf16.mxu1 %v9683_v31  ;;  %v9702_v14 = vld [vmem:[#allocation11 + $0xa0] ss:$8 sps:$4 sm:$0xff]   ;;  %v9900_v3 = vld [vmem:[#allocation5 + $0x104] ss:$8 sps:$4 sm:$0xff]  }
 0x7bc   : > { %4161 = vmatpush1.bf16.msra.mxu0 %v3987_v13  ;;  %v11415_v1 = vpop.f32.mrb[58].mxu1  ;;  %v9707_v13 = vld [vmem:[#allocation10 + $0xa4] ss:$8 sps:$4 sm:$0xff]  }
 0x7bd   : > { %4844 = vmatprep.subr.bf16.mxu0 %v9644_v45  ;;  %v11417_v26 = vpop.f32.mrb[59].mxu1  ;;  %v9711_v45 = vld [vmem:[#allocation10 + $0xb0] ss:$8 sps:$4 sm:$0xff]  }
 0x7be   : > { %5058 = vmatpush1.bf16.msra.mxu1 %v9681_v33  ;;  %v4247_v33 = vpop.permute.xlu1 %4246 }
 0x7bf   : > { %8687 = vmatmul.mubr.msk.bf16.vlgmr.msra.gmra.mrb[40].mxu0 %vm1452_vm1, %v9635_v15  ;;  %5059 = vmatprep.subr.bf16.mxu1 %v9689_v35  ;;  %v9705_v15 = vld [vmem:[#allocation10 + $0xa0] ss:$8 sps:$4 sm:$0xff]  }
 0x7c0   : > { %4200 = vmatprep.mubr.bf16.mxu0 %v12330_v0  ;;  %4845 = vmatpush1.bf16.msra.mxu0 %v9642_v47  ;;  %v9719_v47 = vld [vmem:[#allocation10 + $0xc4] ss:$8 sps:$4 sm:$0xff]  }
 0x7c1   : > { %4846 = vmatprep.subr.bf16.mxu0 %v9650_v50  ;;  %v9717_v50 = vld [vmem:[#allocation10 + $0xc0] ss:$8 sps:$4 sm:$0xff]  }
 0x7c2   : > { %v11419_v6 = vpop.f32.mrb[60].mxu1  ;;  %5060 = vmatpush1.bf16.msra.mxu1 %v9687_v37 }
 0x7c3   : > { %v11421_v7 = vpop.f32.mrb[61].mxu1  ;;  %5061 = vmatprep.subr.bf16.mxu1 %v9695_v39 }
 0x7c4   : > { %4847 = vmatpush1.bf16.msra.mxu0 %v9648_v53  ;;  %v11423_v24 = vpop.f32.mrb[62].mxu1  ;;  %v9720_v53 = vld [vmem:[#allocation11 + $0xd0] ss:$8 sps:$4 sm:$0xff]  }
 0x7c5   : > { %4848 = vmatprep.subr.bf16.mxu0 %v9656_v56  ;;  %v11425_v29 = vpop.f32.mrb[63].mxu1  ;;  %v9725_v56 = vld [vmem:[#allocation10 + $0xd4] ss:$8 sps:$4 sm:$0xff]  }
 0x7c6   : > { %5062 = vmatpush1.bf16.msra.mxu1 %v9693_v41 }
 0x7c7   : > { %8688 = vmatmul.mubr.msk.bf16.gmra.mrb[44].mxu0 %vm1452_vm1, %v9637_v17  ;;  %5063 = vmatprep.subr.bf16.mxu1 %v9701_v43  ;;  %v9710_v17 = vld [vmem:[#allocation11 + $0xb4] ss:$8 sps:$4 sm:$0xff]   ;;  %v4252_v43 = vpop.permute.xlu0 %4251 }
 0x7c8   : > { %4210 = vmatprep.mubr.bf16.mxu0 %v12330_v0  ;;  %4849 = vmatpush1.bf16.msra.mxu0 %v9654_v58  ;;  %v9731_v58 = vld [vmem:[#allocation10 + $0xe4] ss:$8 sps:$4 sm:$0xff]  }
 0x7c9   : > { %4850 = vmatprep.subr.bf16.mxu0 %v9662_v62  ;;  %v9729_v62 = vld [vmem:[#allocation10 + $0xe0] ss:$8 sps:$4 sm:$0xff]  }
 0x7ca   : > { %5064 = vmatpush1.bf16.msra.mxu1 %v9699_v10 }
 0x7cb   : > { %5065 = vmatprep.subr.bf16.mxu1 %v9707_v13  ;;  %v4257_v13 = vpop.permute.xlu1 %4256 }
 0x7cc   : > { %4851 = vmatpush1.bf16.msra.mxu0 %v9660_v2  ;;  %v9737_v2 = vld [vmem:[#allocation10 + $0xf4] ss:$8 sps:$4 sm:$0xff]  }
 0x7cd   : > { %4852 = vmatprep.subr.bf16.mxu0 %v9668_v28  ;;  %v9735_v28 = vld [vmem:[#allocation10 + $0xf0] ss:$8 sps:$4 sm:$0xff]  }
 0x7ce   : > { %5066 = vmatpush1.bf16.msra.mxu1 %v9705_v15 }
 0x7cf   : > { %8689 = vmatmul.mubr.msk.bf16.gmra.mrb[48].mxu0 %vm1452_vm1, %v9639_v19  ;;  %v9713_v19 = vld [vmem:[#allocation10 + $0xb4] ss:$8 sps:$4 sm:$0xff]  }
 0x7d0   : > { %4220 = vmatprep.mubr.bf16.mxu0 %v12330_v0  ;;  %4853 = vmatpush1.bf16.msra.mxu0 %v9666_v4 }
 0x7d1   : > { %4854 = vmatprep.subr.bf16.mxu0 %v9674_v8  ;;  %5067 = vmatprep.subr.bf16.mxu1 %v9713_v19 }
 0x7d2   : > { %5068 = vmatpush1.bf16.msra.mxu1 %v9711_v45 }
 0x7d3   : > { %5069 = vmatprep.subr.bf16.mxu1 %v9719_v47 }
 0x7d4   : > { %4855 = vmatpush1.bf16.msra.mxu0 %v9672_v25 }
 0x7d5   : > { %4856 = vmatprep.subr.bf16.mxu0 %v9680_v30 }
 0x7d6   : > { %5070 = vmatpush1.bf16.msra.mxu1 %v9717_v50 }
 0x7d7   : > { %8690 = vmatmul.mubr.msk.bf16.gmra.mrb[52].mxu0 %vm1452_vm1, %v9641_v20  ;;  %v9708_v20 = vld [vmem:[#allocation11 + $0xb0] ss:$8 sps:$4 sm:$0xff]   ;;  %5071 = vmatprep.subr.bf16.mxu1 %v9725_v56 }
 0x7d8   : > { %4857 = vmatpush1.bf16.msra.mxu0 %v9678_v32 }
 0x7d9   : > { %4858 = vmatprep.subr.bf16.mxu0 %v9686_v34 }
 0x7da   : > { %5072 = vmatpush1.bf16.msra.mxu1 %v9723_v54 }
 0x7db   : > { %5073 = vmatprep.subr.bf16.mxu1 %v9731_v58 }
 0x7dc   : > { %4859 = vmatpush1.bf16.msra.mxu0 %v9684_v36 }
 0x7dd   : > { %4860 = vmatprep.subr.bf16.mxu0 %v9692_v38 }
 0x7de   : > { %5074 = vmatpush1.bf16.msra.mxu1 %v9729_v62 }
 0x7df   : > { %5075 = vmatprep.subr.bf16.mxu1 %v9737_v2 }
 0x7e0   : > { %4861 = vmatpush1.bf16.msra.mxu0 %v9690_v40 }
 0x7e1   : > { %4862 = vmatprep.subr.bf16.mxu0 %v9698_v42 }
 0x7e2   : > { %5076 = vmatpush1.bf16.msra.mxu1 %v9735_v28 }
 0x7e3   : > { %5396 = vmatprep.subr.bf16.mxu1 %v9900_v3 }
 0x7e4   : > { %4863 = vmatpush1.bf16.msra.mxu0 %v9696_v11 }
 0x7e5   : > { %4864 = vmatprep.subr.bf16.mxu0 %v9704_v12 }
 0x7e8   : > { %4865 = vmatpush1.bf16.msra.mxu0 %v9702_v14 }
 0x7e9   : > { %4866 = vmatprep.subr.bf16.mxu0 %v9710_v17 }
 0x7ec   : > { %4867 = vmatpush1.bf16.msra.mxu0 %v9708_v20 }
 0x7ed   : > { %4868 = vmatprep.subr.bf16.mxu0 %v9716_v46 }
 0x7f0   : > { %4869 = vmatpush1.bf16.msra.mxu0 %v9714_v48 }
 0x7f1   : > { %4870 = vmatprep.subr.bf16.mxu0 %v9722_v51  ;;  %v4262_v51 = vpop.permute.xlu0 %4261 }
 0x7f4   : > { %4871 = vmatpush1.bf16.msra.mxu0 %v9720_v53 }
 0x7f5   : > { %4872 = vmatprep.subr.bf16.mxu0 %v9728_v57 }
 0x7f8   : > { %4873 = vmatpush1.bf16.msra.mxu0 %v9726_v59 }
 0x7f9   : > { %4874 = vmatprep.subr.bf16.mxu0 %v9734_v63 }
 0x7fc   : > { %4875 = vmatpush1.bf16.msra.mxu0 %v9732_v16 }
 0x892   : > { %v4192_v4 = vpop.f32.mrb[40].mxu0 }
 0x893   : > { %v4193_v5 = vadd.f32 %v4192_v4, %v11395_v21  ;;  %v4194_v8 = vpop.f32.mrb[41].mxu0 }
 0x894   : > { %v4195_v25 = vadd.f32 %v4194_v8, %v11397_v22  ;;  %v4196_v27 = vpop.f32.mrb[42].mxu0  ;;  %v4267_v8 = vpop.permute.xlu1 %4266 }
 0x895   : > { %v4279_v30 = vadd.f32 %v4242_v9, %v4193_v5  ;;  %v4197_v31 = vadd.f32 %v4196_v27, %v11399_v23  ;;  %v4198_v32 = vpop.f32.mrb[43].mxu0 }
 0x896   : > { %v4280_v34 = vadd.f32 %v4242_v9, %v4195_v25  ;;  %v4199_v35 = vadd.f32 %v4198_v32, %v11401_v44 }
 0x897   : > { %v4311_v36 = vmul.f32 0.70710677, %v4279_v30  ;;  %v4281_v37 = vadd.f32 %v4247_v33, %v4197_v31 }
 0x898   : > { %v4312_v38 = vmul.f32 0.70710677, %v4280_v34  ;;  %v4282_v39 = vadd.f32 %v4247_v33, %v4199_v35  ;;  %v4296_v54 = vmul.f32 0.5, %v4280_v34 }
 0x899   : > { %9794 = verf.f32 %v4311_v36  ;;  %v4313_v40 = vmul.f32 0.70710677, %v4281_v37  ;;  %v4297_v62 = vmul.f32 0.5, %v4281_v37 }
 0x89a   : > { %9796 = verf.f32 %v4312_v38  ;;  %v4314_v21 = vmul.f32 0.70710677, %v4282_v39  ;;  %v4202_v41 = vpop.f32.mrb[44].mxu0 }
 0x89b   : > { %9798 = verf.f32 %v4313_v40  ;;  %v4203_v22 = vadd.f32 %v4202_v41, %v11403_v49  ;;  %v4204_v42 = vpop.f32.mrb[45].mxu0 }
 0x89c   : > { %9800 = verf.f32 %v4314_v21  ;;  %v4205_v23 = vadd.f32 %v4204_v42, %v11405_v18  ;;  %v4206_v11 = vpop.f32.mrb[46].mxu0 }
 0x89d   : > { %v4283_v10 = vadd.f32 %v4252_v43, %v4203_v22  ;;  %v4207_v44 = vadd.f32 %v4206_v11, %v11407_v52  ;;  %v4208_v12 = vpop.f32.mrb[47].mxu0  ;;  %v4295_v52 = vmul.f32 0.5, %v4279_v30  ;;  %v4272_v22 = vpop.permute.xlu0 %4271 }
 0x89e   : > { %v4284_v14 = vadd.f32 %v4252_v43, %v4205_v23  ;;  %v4209_v15 = vadd.f32 %v4208_v12, %v11409_v55 }
 0x89f   : > { %v4315_v17 = vmul.f32 0.70710677, %v4283_v10  ;;  %v11435_v19 = vadd.f32 %v4257_v13, %v4207_v44  ;;  %v4299_v37 = vmul.f32 0.5, %v4283_v10 }
 0x8a0   : > { %v4316_v20 = vmul.f32 0.70710677, %v4284_v14  ;;  %v11437_v45 = vadd.f32 %v4257_v13, %v4209_v15  ;;  %v4300_v38 = vmul.f32 0.5, %v4284_v14 }
 0x8a1   : > { %9802 = verf.f32 %v4315_v17  ;;  %v4317_v49 = vmul.f32 0.70710677, %v11435_v19 }
 0x8a2   : > { %9804 = verf.f32 %v4316_v20  ;;  %v4318_v18 = vmul.f32 0.70710677, %v11437_v45  ;;  %v4212_v46 = vpop.f32.mrb[48].mxu0 }
 0x8a3   : > { %v9795_v47 = vpop.eup %9794  ;;  %9806 = verf.f32 %v4317_v49  ;;  %v4213_v48 = vadd.f32 %v4212_v46, %v11411_v60  ;;  %v4214_v50 = vpop.f32.mrb[49].mxu0 }
 0x8a4   : > { %v9797_v55 = vpop.eup %9796  ;;  %v4343_v53 = vadd.f32 1.0, %v9795_v47  ;;  %9808 = verf.f32 %v4318_v18  ;;  %v4215_v56 = vadd.f32 %v4214_v50, %v11413_v61  ;;  %v4216_v57 = vpop.f32.mrb[50].mxu0  ;;  %v4298_v61 = vmul.f32 0.5, %v4282_v39 }
 0x8a5   : > { %v9799_v58 = vpop.eup %9798  ;;  %v4344_v59 = vadd.f32 1.0, %v9797_v55  ;;  %v4287_v63 = vadd.f32 %v4262_v51, %v4213_v48  ;;  %v4217_v2 = vadd.f32 %v4216_v57, %v11415_v1  ;;  %v4218_v16 = vpop.f32.mrb[51].mxu0  ;;  %v4302_v48 = vmul.f32 0.5, %v11437_v45 }
 0x8a6   : > { %v9801_v28 = vpop.eup %9800  ;;  %v11444_v3 = vmul.f32 %v4343_v53, %v4295_v52  ;;  %v4345_v60 = vadd.f32 1.0, %v9799_v58  ;;  %v11446_v4 = vadd.f32 %v4262_v51, %v4215_v56  ;;  %v4219_v5 = vadd.f32 %v4218_v16, %v11417_v26  ;;  %v4277_v47 = vpop.permute.xlu1 %4276 }
 0x8a7   : > { %v11449_v9 = vmul.f32 %v4344_v59, %v4296_v54  ;;  %v4346_v25 = vadd.f32 1.0, %v9801_v28  ;;  %v4319_v27 = vmul.f32 0.70710677, %v4287_v63  ;;  %v11454_v1 = vadd.f32 %v4267_v8, %v4217_v2 }
 0x8a8   : > { %v11451_v30 = vmul.f32 %v4345_v60, %v4297_v62  ;;  %v4320_v31 = vmul.f32 0.70710677, %v11446_v4  ;;  %v11458_v33 = vadd.f32 %v4267_v8, %v4219_v5  ;;  %v4301_v52 = vmul.f32 0.5, %v11435_v19 }
 0x8a9   : > { %v11456_v32 = vmul.f32 %v4346_v25, %v4298_v61  ;;  %9810 = verf.f32 %v4319_v27  ;;  %v4375_v26 = vadd.f32 %v11449_v9, %v11444_v3  ;;  %v4321_v34 = vmul.f32 0.70710677, %v11454_v1 }
 0x8aa   : > { %9812 = verf.f32 %v4320_v31  ;;  %v4222_v35 = vpop.f32.mrb[52].mxu0  ;;  %v4322_v39 = vmul.f32 0.70710677, %v11458_v33  ;;  %v4303_v50 = vmul.f32 0.5, %v4287_v63  ;;  %v4304_v63 = vmul.f32 0.5, %v11446_v4 }
 0x8ab   : > { %v9803_v36 = vpop.eup %9802  ;;  %v4223_v40 = vadd.f32 %v4222_v35, %v11419_v6  ;;  %v4224_v21 = vpop.f32.mrb[53].mxu0  ;;  %4376 = vadd.xlane.f32.xlu0 %v4375_v26  ;;  %9814 = verf.f32 %v4321_v34  ;;  %v4378_v11 = vadd.f32 %v11456_v32, %v11451_v30  ;;  %v4574_v19 = vadd.f32 %v11456_v32, %v11449_v9 }
 0x8ac   : > { %v9805_v41 = vpop.eup %9804  ;;  %v4347_v42 = vadd.f32 1.0, %v9803_v36  ;;  %v4225_v43 = vadd.f32 %v4224_v21, %v11421_v7  ;;  %v4226_v23 = vpop.f32.mrb[54].mxu0  ;;  %9816 = verf.f32 %v4322_v39  ;;  %v4305_v8 = vmul.f32 0.5, %v11454_v1 }
 0x8ad   : > { %v9807_v44 = vpop.eup %9806  ;;  %v4348_v12 = vadd.f32 1.0, %v9805_v41  ;;  %v4291_v10 = vadd.f32 %v4272_v22, %v4223_v40  ;;  %v4227_v13 = vadd.f32 %v4226_v23, %v11423_v24  ;;  %v4228_v14 = vpop.f32.mrb[55].mxu0  ;;  %4379 = vadd.xlane.f32.xlu1 %v4378_v11  ;;  %v4561_v24 = vadd.f32 %v11451_v30, %v11444_v3 }
 0x8ae   : > { %v9809_v6 = vpop.eup %9808  ;;  %v11469_v15 = vmul.f32 %v4347_v42, %v4299_v37  ;;  %v4292_v17 = vadd.f32 %v4272_v22, %v4225_v43  ;;  %v4229_v20 = vadd.f32 %v4228_v14, %v11425_v29  ;;  %v4349_v7 = vadd.f32 1.0, %v9807_v44 }
 0x8af   : > { %v11472_v49 = vmul.f32 %v4348_v12, %v4300_v38  ;;  %v4350_v18 = vadd.f32 1.0, %v9809_v6  ;;  %v4323_v46 = vmul.f32 0.70710677, %v4291_v10  ;;  %v4293_v51 = vadd.f32 %v4277_v47, %v4227_v13 }
 0x8b0   : > { %v4324_v55 = vmul.f32 0.70710677, %v4292_v17  ;;  %v11478_v29 = vmul.f32 %v4349_v7, %v4301_v52  ;;  %v4294_v56 = vadd.f32 %v4277_v47, %v4229_v20  ;;  %v4562_v62 = vadd.f32 %v4561_v24, %v11469_v15 }
 0x8b1   : > { %9818 = verf.f32 %v4323_v46  ;;  %v11480_v54 = vmul.f32 %v4350_v18, %v4302_v48  ;;  %v4381_v57 = vadd.f32 %v11472_v49, %v11469_v15  ;;  %v4325_v59 = vmul.f32 0.70710677, %v4293_v51 }
 0x8b2   : > { %9820 = verf.f32 %v4324_v55  ;;  %v4326_v16 = vmul.f32 0.70710677, %v4294_v56  ;;  %v4575_v60 = vadd.f32 %v4574_v19, %v11472_v49  ;;  %v4306_v4 = vmul.f32 0.5, %v11458_v33 }
 0x8b3   : > { %v9811_v53 = vpop.eup %9810  ;;  %4382 = vadd.xlane.f32.xlu0 %v4381_v57  ;;  %9822 = verf.f32 %v4325_v59  ;;  %v4384_v31 = vadd.f32 %v11480_v54, %v11478_v29  ;;  %v4563_v34 = vadd.f32 %v4562_v62, %v11478_v29  ;;  %v4307_v40 = vmul.f32 0.5, %v4291_v10 }
 0x8b4   : > { %v9813_v58 = vpop.eup %9812  ;;  %v4351_v45 = vadd.f32 1.0, %v9811_v53  ;;  %9824 = verf.f32 %v4326_v16  ;;  %v4576_v38 = vadd.f32 %v4575_v60, %v11480_v54  ;;  %v4308_v23 = vmul.f32 0.5, %v4292_v17 }
 0x8b5   : > { %v4352_v2 = vadd.f32 1.0, %v9813_v58  ;;  %v9815_v28 = vpop.eup %9814  ;;  %v4590_v12 = vmax.f32 %v11444_v3, %v11469_v15  ;;  %v4603_v10 = vmax.f32 %v11449_v9, %v11472_v49  ;;  %v4591_v13 = vmax.f32 %v11451_v30, %v11478_v29 }
 0x8b6   : > { %v11489_v5 = vmul.f32 %v4351_v45, %v4303_v50  ;;  %v9817_v61 = vpop.eup %9816  ;;  %v4353_v27 = vadd.f32 1.0, %v9815_v28  ;;  %v4309_v14 = vmul.f32 0.5, %v4293_v51  ;;  %v4604_v46 = vmax.f32 %v11456_v32, %v11480_v54 }
 0x8b7   : > { %v11492_v25 = vmul.f32 %v4352_v2, %v4304_v63  ;;  %v4354_v26 = vadd.f32 1.0, %v9817_v61  ;;  %4385 = vadd.xlane.f32.xlu0 %v4384_v31  ;;  %v4310_v52 = vmul.f32 0.5, %v4294_v56 }
 0x8b8   : > { %v11498_v35 = vmul.f32 %v4353_v27, %v4305_v8  ;;  %v4564_v39 = vadd.f32 %v4563_v34, %v11489_v5  ;;  %v4592_v47 = vmax.f32 %v4590_v12, %v11489_v5 }
 0x8b9   : > { %v4387_v1 = vadd.f32 %v11492_v25, %v11489_v5  ;;  %v11502_v36 = vmul.f32 %v4354_v26, %v4306_v4  ;;  %v4577_v41 = vadd.f32 %v4576_v38, %v11492_v25  ;;  %v4605_v57 = vmax.f32 %v4603_v10, %v11492_v25 }
 0x8ba   : > { %v4565_v43 = vadd.f32 %v4564_v39, %v11498_v35  ;;  %v4593_v24 = vmax.f32 %v4591_v13, %v11498_v35 }
 0x8bb   : > { %v9819_v37 = vpop.eup %9818  ;;  %4388 = vadd.xlane.f32.xlu1 %v4387_v1  ;;  %v4390_v33 = vadd.f32 %v11502_v36, %v11498_v35  ;;  %v4578_v20 = vadd.f32 %v4577_v41, %v11502_v36  ;;  %v4606_v58 = vmax.f32 %v4604_v46, %v11502_v36 }
 0x8bc   : > { %v4355_v21 = vadd.f32 1.0, %v9819_v37  ;;  %v9821_v22 = vpop.eup %9820 }
 0x8bd   : > { %4391 = vadd.xlane.f32.xlu0 %v4390_v33  ;;  %v4356_v11 = vadd.f32 1.0, %v9821_v22  ;;  %v9823_v44 = vpop.eup %9822 }
 0x8be   : > { %v11509_v42 = vmul.f32 %v4355_v21, %v4307_v40  ;;  %v9825_v6 = vpop.eup %9824  ;;  %v4357_v17 = vadd.f32 1.0, %v9823_v44 }
 0x8bf   : > { %v11520_v18 = vmul.f32 %v4356_v11, %v4308_v23  ;;  %v4358_v48 = vadd.f32 1.0, %v9825_v6 }
 0x8c0   : > { %v4566_v7 = vadd.f32 %v4565_v43, %v11509_v42  ;;  %v11526_v50 = vmul.f32 %v4357_v17, %v4309_v14  ;;  %v4594_v19 = vmax.f32 %v4592_v47, %v11509_v42  ;;  %v9901_v47 = vld [vmem:[#allocation5 + $0x100] ss:$8 sps:$4 sm:$0xff]  }
 0x8c1   : > { %v4393_v55 = vadd.f32 %v11520_v18, %v11509_v42  ;;  %v4579_v51 = vadd.f32 %v4578_v20, %v11520_v18  ;;  %v11531_v53 = vmul.f32 %v4358_v48, %v4310_v52  ;;  %v4607_v62 = vmax.f32 %v4605_v57, %v11520_v18  ;;  %v9902_v52 = vld [vmem:[#allocation5 + $0x114] ss:$8 sps:$4 sm:$0xff]   ;;  %v9903_v48 = vld [vmem:[#allocation5 + $0x110] ss:$8 sps:$4 sm:$0xff]  }
 0x8c2   : > { %v4567_v56 = vadd.f32 %v4566_v7, %v11526_v50  ;;  %v4595_v45 = vmax.f32 %v4593_v24, %v11526_v50  ;;  %v9904_v24 = vld [vmem:[#allocation5 + $0x124] ss:$8 sps:$4 sm:$0xff]   ;;  %v9907_v57 = vld [vmem:[#allocation5 + $0x130] ss:$8 sps:$4 sm:$0xff]  }
 0x8c3   : > { %4394 = vadd.xlane.f32.xlu1 %v4393_v55  ;;  %v4396_v59 = vadd.f32 %v11531_v53, %v11526_v50  ;;  %v4608_v63 = vmax.f32 %v4606_v58, %v11531_v53  ;;  %v4580_v2 = vadd.f32 %v4579_v51, %v11531_v53  ;;  %v9905_v55 = vld [vmem:[#allocation5 + $0x120] ss:$8 sps:$4 sm:$0xff]   ;;  %v9906_v51 = vld [vmem:[#allocation5 + $0x134] ss:$8 sps:$4 sm:$0xff]   ;;  %v9908_v58 = vld [vmem:[#allocation5 + $0x144] ss:$8 sps:$4 sm:$0xff]  }
 0x8c4   : > { %v4568_v16 = vrot.slane %v4567_v56, 4  ;;  %v4596_v28 = vmax.f32 %v4594_v19, %v4595_v45  ;;  %v9909_v19 = vld [vmem:[#allocation5 + $0x140] ss:$8 sps:$4 sm:$0xff]   ;;  %v9911_v45 = vld [vmem:[#allocation5 + $0x150] ss:$8 sps:$4 sm:$0xff]  }
 0x8c5   : > { %4397 = vadd.xlane.f32.xlu0 %v4396_v59  ;;  %v4609_v60 = vmax.f32 %v4607_v62, %v4608_v63  ;;  %v4581_v8 = vrot.slane %v4580_v2, 4  ;;  %v9912_v59 = vld [vmem:[#allocation5 + $0x164] ss:$8 sps:$4 sm:$0xff]   ;;  %v9913_v62 = vld [vmem:[#allocation5 + $0x160] ss:$8 sps:$4 sm:$0xff]  }
 0x8c6   : > { %v4569_v61 = vadd.f32 %v4568_v16, %v4567_v56  ;;  %v4597_v27 = vrot.slane %v4596_v28, 4  ;;  %v9910_v56 = vld [vmem:[#allocation5 + $0x154] ss:$8 sps:$4 sm:$0xff]   ;;  %v9916_v16 = vld [vmem:[#allocation5 + $0x184] ss:$8 sps:$4 sm:$0xff]  }
 0x8c7   : > { %v4610_v31 = vrot.slane %v4609_v60, 4  ;;  %v4582_v4 = vadd.f32 %v4581_v8, %v4580_v2  ;;  %v9914_v63 = vld [vmem:[#allocation5 + $0x174] ss:$8 sps:$4 sm:$0xff]   ;;  %v9915_v2 = vld [vmem:[#allocation5 + $0x170] ss:$8 sps:$4 sm:$0xff]  }
 0x8c8   : > { %v4598_v26 = vmax.f32 %v4596_v28, %v4597_v27  ;;  %v4570_v34 = vrot.slane %v4569_v61, 2  ;;  %v9917_v28 = vld [vmem:[#allocation5 + $0x180] ss:$8 sps:$4 sm:$0xff]   ;;  %v9919_v8 = vld [vmem:[#allocation5 + $0x190] ss:$8 sps:$4 sm:$0xff]  }
 0x8c9   : > { %v4611_v1 = vmax.f32 %v4609_v60, %v4610_v31  ;;  %v4583_v37 = vrot.slane %v4582_v4, 2  ;;  %v9918_v60 = vld [vmem:[#allocation5 + $0x194] ss:$8 sps:$4 sm:$0xff]   ;;  %v9921_v27 = vld [vmem:[#allocation5 + $0x1a0] ss:$8 sps:$4 sm:$0xff]  }
 0x8ca   : > { %v4599_v38 = vrot.slane %v4598_v26, 2  ;;  %v4571_v39 = vadd.f32 %v4570_v34, %v4569_v61  ;;  %v9920_v61 = vld [vmem:[#allocation5 + $0x1a4] ss:$8 sps:$4 sm:$0xff]   ;;  %v9922_v31 = vld [vmem:[#allocation5 + $0x1b4] ss:$8 sps:$4 sm:$0xff]  }
 0x8cb   : > { %v4612_v40 = vrot.slane %v4611_v1, 2  ;;  %v4584_v21 = vadd.f32 %v4583_v37, %v4582_v4  ;;  %v9923_v4 = vld [vmem:[#allocation5 + $0x1b0] ss:$8 sps:$4 sm:$0xff]   ;;  %v9925_v34 = vld [vmem:[#allocation5 + $0x1c0] ss:$8 sps:$4 sm:$0xff]  }
 0x8cc   : > { %v4600_v33 = vmax.f32 %v4598_v26, %v4599_v38  ;;  %v4572_v41 = vrot.slane %v4571_v39, 1  ;;  %v9924_v26 = vld [vmem:[#allocation5 + $0x1c4] ss:$8 sps:$4 sm:$0xff]   ;;  %v9927_v37 = vld [vmem:[#allocation5 + $0x1d0] ss:$8 sps:$4 sm:$0xff]  }
 0x8cd   : > { %v4613_v22 = vmax.f32 %v4611_v1, %v4612_v40  ;;  %v4585_v43 = vrot.slane %v4584_v21, 1  ;;  %v9926_v1 = vld [vmem:[#allocation5 + $0x1d4] ss:$8 sps:$4 sm:$0xff]   ;;  %v9928_v38 = vld [vmem:[#allocation5 + $0x1e4] ss:$8 sps:$4 sm:$0xff]  }
 0x8ce   : > { %v4601_v23 = vrot.slane %v4600_v33, 1  ;;  %v4573_v11 = vadd.f32 %v4572_v41, %v4571_v39  ;;  %v9929_v39 = vld [vmem:[#allocation5 + $0x1e0] ss:$8 sps:$4 sm:$0xff]   ;;  %v9930_v40 = vld [vmem:[#allocation5 + $0x1f4] ss:$8 sps:$4 sm:$0xff]  }
 0x8cf   : > { %v4614_v44 = vrot.slane %v4613_v22, 1  ;;  %v4586_v12 = vadd.f32 %v4585_v43, %v4584_v21  ;;  %v9931_v21 = vld [vmem:[#allocation5 + $0x1f0] ss:$8 sps:$4 sm:$0xff]  }
 0x8d0   : > { %v4602_v10 = vmax.f32 %v4600_v33, %v4601_v23  ;;  %v4588_v13 = vmul.f32 0.015625, %v4573_v11  ;;  %v9932_v33 = vld [vmem:[#allocation5 + $0x204] ss:$8 sps:$4 sm:$0xff]  }
 0x8d1   : > { %v4615_v14 = vmax.f32 %v4613_v22, %v4614_v44  ;;  %v4589_v6 = vmul.f32 0.015625, %v4586_v12  ;;  %v4409_v23 = vld [vmem:[%s12298_s9 + $0x8] sm:$0xff] }
 0x8d2   : > { %v4650_v17 = vpack.c.bf16 %v4602_v10, %v4602_v10  ;;  %v4616_v46 = vpack.c.bf16 %v4588_v13, %v4588_v13  ;;  %v4408_v10 = vld [vmem:[%s12298_s9] sm:$0xff]  ;;  %v4410_v13 = vld [vmem:[%s12298_s9 + $0x10] sm:$0xff] }
 0x8d3   : > { %v4651_v20 = vpack.c.bf16 %v4615_v14, %v4615_v14  ;;  %v4617_v7 = vpack.c.bf16 %v4589_v6, %v4589_v6  ;;  %v4411_v6 = vld [vmem:[%s12298_s9 + $0x18] sm:$0xff] }
 0x8d5   : > { %4876 = vmatprep.mubr.bf16.mxu0 %v4651_v20  ;;  %5077 = vmatprep.mubr.bf16.mxu1 %v4617_v7 }
 0x8d6   : > { %4877 = vmatmul.mubr.bf16.vlgmr.msra.gmra.mrb[56].mxu0 %v4650_v17  ;;  %5078 = vmatmul.mubr.bf16.vlgmr.msra.gmra.mrb[64].mxu1 %v4616_v46 }
 0x8d7   : > { %5262 = vmatprep.mubr.bf16.mxu0 %v12330_v0  ;;  %5397 = vmatpush1.bf16.msra.mxu1 %v9901_v47  ;;  %v4412_v47 = vld [vmem:[%s12298_s9 + $0x20] sm:$0xff] }
 0x8d8   : > { %5398 = vmatprep.subr.bf16.mxu1 %v9902_v52 }
 0x8db   : > { %5399 = vmatpush1.bf16.msra.mxu1 %v9903_v48 }
 0x8dc   : > { %5400 = vmatprep.subr.bf16.mxu1 %v9904_v24 }
 0x8df   : > { %5401 = vmatpush1.bf16.msra.mxu1 %v9905_v55 }
 0x8e0   : > { %5402 = vmatprep.subr.bf16.mxu1 %v9906_v51 }
 0x8e3   : > { %5403 = vmatpush1.bf16.msra.mxu1 %v9907_v57 }
 0x8e4   : > { %5404 = vmatprep.subr.bf16.mxu1 %v9908_v58 }
 0x8e7   : > { %5405 = vmatpush1.bf16.msra.mxu1 %v9909_v19 }
 0x8e8   : > { %5406 = vmatprep.subr.bf16.mxu1 %v9910_v56 }
 0x8eb   : > { %5407 = vmatpush1.bf16.msra.mxu1 %v9911_v45  ;;  %v4413_v45 = vld [vmem:[%s12298_s9 + $0x28] sm:$0xff] }
 0x8ec   : > { %5408 = vmatprep.subr.bf16.mxu1 %v9912_v59 }
 0x8ef   : > { %5409 = vmatpush1.bf16.msra.mxu1 %v9913_v62 }
 0x8f0   : > { %5410 = vmatprep.subr.bf16.mxu1 %v9914_v63 }
 0x8f3   : > { %5411 = vmatpush1.bf16.msra.mxu1 %v9915_v2 }
 0x8f4   : > { %5412 = vmatprep.subr.bf16.mxu1 %v9916_v16 }
 0x8f7   : > { %5413 = vmatpush1.bf16.msra.mxu1 %v9917_v28 }
 0x8f8   : > { %5414 = vmatprep.subr.bf16.mxu1 %v9918_v60 }
 0x8fb   : > { %5415 = vmatpush1.bf16.msra.mxu1 %v9919_v8  ;;  %v4414_v8 = vld [vmem:[%s12298_s9 + $0x30] sm:$0xff] }
 0x8fc   : > { %5416 = vmatprep.subr.bf16.mxu1 %v9920_v61 }
 0x8ff   : > { %5417 = vmatpush1.bf16.msra.mxu1 %v9921_v27 }
 0x900   : > { %5418 = vmatprep.subr.bf16.mxu1 %v9922_v31 }
 0x903   : > { %5419 = vmatpush1.bf16.msra.mxu1 %v9923_v4 }
 0x904   : > { %5420 = vmatprep.subr.bf16.mxu1 %v9924_v26  ;;  %v4415_v26 = vld [vmem:[%s12298_s9 + $0x38] sm:$0xff] }
 0x907   : > { %5421 = vmatpush1.bf16.msra.mxu1 %v9925_v34 }
 0x908   : > { %5422 = vmatprep.subr.bf16.mxu1 %v9926_v1 }
 0x90b   : > { %5423 = vmatpush1.bf16.msra.mxu1 %v9927_v37 }
 0x90c   : > { %5424 = vmatprep.subr.bf16.mxu1 %v9928_v38 }
 0x90f   : > { %5425 = vmatpush1.bf16.msra.mxu1 %v9929_v39 }
 0x910   : > { %5426 = vmatprep.subr.bf16.mxu1 %v9930_v40 }
 0x913   : > { %5427 = vmatpush1.bf16.msra.mxu1 %v9931_v21 }
 0x914   : > { %5620 = vmatprep.subr.bf16.mxu1 %v9932_v33 }
 0x938   : > { %v4377_v41 = vpop.xlane.xlu0 %4376 }
 0x939   : > { %v4400_v44 = vmul.f32 0.00390625, %v4377_v41 }
 0x93a   : > { %v4380_v22 = vpop.xlane.xlu1 %4379 }
 0x93b   : > { %v4401_v43 = vmul.f32 0.00390625, %v4380_v22  ;;  %v4416_v7 = vmul.f32 %v4408_v10, %v4400_v44  ;;  %v4446_v44 = vld [vmem:[#allocation8] sm:$0x1] }
 0x93d   : > { %v4417_v14 = vmul.f32 %v4409_v23, %v4401_v43  ;;  %v4425_v51 = vsel %vm4424_vm2, %v4416_v7, 0.0 }
 0x93f   : > { %v4426_v48 = vsel %vm4424_vm2, %v4417_v14, 0.0  ;;  %v4461_v14 = vlaneseq }
 0x940   : > { %v4383_v11 = vpop.xlane.xlu0 %4382  ;;  %v4427_v56 = vadd.f32 %v4426_v48, %v4425_v51  ;;  %v4453_v48 = vld [vmem:[%s12300_s11] sm:$0xff]  ;;  %v4455_v51 = vld [vmem:[%s12300_s11 + $0x10] sm:$0xff] }
 0x941   : > { %v4402_v12 = vmul.f32 0.00390625, %v4383_v11 }
 0x943   : > { %v4418_v17 = vmul.f32 %v4410_v13, %v4402_v12 }
 0x944   : > { %v4386_v20 = vpop.xlane.xlu0 %4385 }
 0x945   : > { %v4403_v46 = vmul.f32 0.00390625, %v4386_v20  ;;  %v4428_v57 = vsel %vm4424_vm2, %v4418_v17, 0.0 }
 0x946   : > { %v4429_v63 = vadd.f32 %v4428_v57, %v4427_v56 }
 0x947   : > { %v4419_v24 = vmul.f32 %v4411_v6, %v4403_v46  ;;  %v4462_v6 = vshrl.u32 %v4461_v14, 7 }
 0x948   : > { %v4389_v52 = vpop.xlane.xlu1 %4388 }
 0x949   : > { %v4404_v55 = vmul.f32 0.00390625, %v4389_v52  ;;  %v4430_v62 = vsel %vm4424_vm2, %v4419_v24, 0.0  ;;  %v11576_v7 = vsub.s32 0, %v4462_v6  ;;  %v4454_v52 = vld [vmem:[%s12300_s11 + $0x8] sm:$0xff]  ;;  %v4500_v6 = vld [vmem:[%s12301_s12 + $0x18] sm:$0xff] }
 0x94a   : > { %v4392_v19 = vpop.xlane.xlu0 %4391  ;;  %v4431_v28 = vadd.f32 %v4430_v62, %v4429_v63  ;;  %v4458_v62 = vld [vmem:[%s12300_s11 + $0x28] sm:$0xff]  ;;  %v4457_v63 = vld [vmem:[%s12300_s11 + $0x20] sm:$0xff] }
 0x94b   : > { %v4420_v58 = vmul.f32 %v4412_v47, %v4404_v55  ;;  %v4405_v59 = vmul.f32 0.00390625, %v4392_v19  ;;  %v4456_v55 = vld [vmem:[%s12300_s11 + $0x18] sm:$0xff] }
 0x94d   : > { %v4432_v2 = vsel %vm4424_vm2, %v4420_v58, 0.0  ;;  %v4421_v16 = vmul.f32 %v4413_v45, %v4405_v59 }
 0x94e   : > { %v4433_v60 = vadd.f32 %v4432_v2, %v4431_v28 }
 0x94f   : > { %v4434_v27 = vsel %vm4424_vm2, %v4421_v16, 0.0 }
 0x950   : > { %v4395_v61 = vpop.xlane.xlu1 %4394  ;;  %v4435_v1 = vadd.f32 %v4434_v27, %v4433_v60 }
 0x951   : > { %v4406_v31 = vmul.f32 0.00390625, %v4395_v61  ;;  %v4459_v61 = vld [vmem:[%s12300_s11 + $0x30] sm:$0xff] }
 0x952   : > { %v4398_v34 = vpop.xlane.xlu0 %4397 }
 0x953   : > { %v4422_v4 = vmul.f32 %v4414_v8, %v4406_v31  ;;  %v4407_v37 = vmul.f32 0.00390625, %v4398_v34  ;;  %v4460_v8 = vld [vmem:[%s12300_s11 + $0x38] sm:$0xff] }
 0x955   : > { %v4436_v38 = vsel %vm4424_vm2, %v4422_v4, 0.0  ;;  %v4423_v40 = vmul.f32 %v4415_v26, %v4407_v37 }
 0x956   : > { %v4437_v39 = vadd.f32 %v4436_v38, %v4435_v1 }
 0x957   : > { %v4438_v21 = vsel %vm4424_vm2, %v4423_v40, 0.0 }
 0x958   : > { %v4439_v33 = vadd.f32 %v4438_v21, %v4437_v39 }
 0x95a   : > { %v4440_v41 = vrot.slane %v4439_v33, 4 }
 0x95c   : > { %v4441_v22 = vadd.f32 %v4440_v41, %v4439_v33 }
 0x95e   : > { %v4442_v43 = vrot.slane %v4441_v22, 2 }
 0x960   : > { %v4443_v23 = vadd.f32 %v4442_v43, %v4441_v22 }
 0x962   : > { %v4444_v11 = vrot.slane %v4443_v23, 1 }
 0x964   : > { %v4445_v12 = vadd.f32 %v4444_v11, %v4443_v23  ;;  %v4498_v11 = vld [vmem:[%s12301_s12 + $0x8] sm:$0xff] }
 0x966   : > { %v4447_v10 = vadd.f32 %v4446_v44, %v4445_v12  ;;  %v4497_v44 = vld [vmem:[%s12301_s12] sm:$0xff] }
 0x968   : > { %v4449_v13 = vmul.f32 0.70710677, %v4447_v10  ;;  %v4448_v17 = vmul.f32 0.5, %v4447_v10 }
 0x96a   : > { %9826 = verf.f32 %v4449_v13 }
 0x974   : > { %v9827_v20 = vpop.eup %9826 }
 0x975   : > { %v4451_v46 = vadd.f32 1.0, %v9827_v20  ;;  %v4499_v20 = vld [vmem:[%s12301_s12 + $0x10] sm:$0xff] }
 0x977   : > { %v4452_v47 = vmul.f32 %v4451_v46, %v4448_v17 }
 0x979   : > { %v4464_v24 = vrot.slane %v4452_v47, %v11576_v7 }
 0x97b   : > { %v4466_v57 = vmul.f32 %v4464_v24, %v4454_v52  ;;  %v4465_v58 = vmul.f32 %v4464_v24, %v4453_v48  ;;  %v4468_v45 = vmul.f32 %v4464_v24, %v4456_v55  ;;  %v4467_v59 = vmul.f32 %v4464_v24, %v4455_v51  ;;  %v4502_v55 = vld [vmem:[%s12301_s12 + $0x28] sm:$0xff]  ;;  %v4501_v51 = vld [vmem:[%s12301_s12 + $0x20] sm:$0xff] }
 0x97c   : > { %v4470_v28 = vmul.f32 %v4464_v24, %v4458_v62  ;;  %v4469_v60 = vmul.f32 %v4464_v24, %v4457_v63  ;;  %v4472_v4 = vmul.f32 %v4464_v24, %v4460_v8  ;;  %v4471_v26 = vmul.f32 %v4464_v24, %v4459_v61  ;;  %v4504_v62 = vld [vmem:[%s12301_s12 + $0x38] sm:$0xff]  ;;  %v4503_v63 = vld [vmem:[%s12301_s12 + $0x30] sm:$0xff] }
 0x97d   : > { %v4476_v19 = vsel %vm4424_vm2, %v4466_v57, 0.0  ;;  %v4473_v56 = vsel %vm4424_vm2, %v4465_v58, 0.0  ;;  %v4482_v2 = vsel %vm4424_vm2, %v4468_v45, 0.0  ;;  %v4479_v16 = vsel %vm4424_vm2, %v4467_v59, 0.0 }
 0x97e   : > { %4477 = vadd.xlane.f32.xlu0 %v4476_v19  ;;  %4474 = vadd.xlane.f32.xlu1 %v4473_v56  ;;  %v4488_v27 = vsel %vm4424_vm2, %v4470_v28, 0.0  ;;  %v4485_v31 = vsel %vm4424_vm2, %v4469_v60, 0.0  ;;  %v4494_v34 = vsel %vm4424_vm2, %v4472_v4, 0.0  ;;  %v4491_v1 = vsel %vm4424_vm2, %v4471_v26, 0.0 }
 0x982   : > { %4483 = vadd.xlane.f32.xlu0 %v4482_v2  ;;  %4480 = vadd.xlane.f32.xlu1 %v4479_v16 }
 0x986   : > { %4489 = vadd.xlane.f32.xlu0 %v4488_v27  ;;  %4486 = vadd.xlane.f32.xlu1 %v4485_v31 }
 0x98a   : > { %4495 = vadd.xlane.f32.xlu0 %v4494_v34  ;;  %4492 = vadd.xlane.f32.xlu1 %v4491_v1 }
 0x9a9   : > { %v4878_v37 = vpop.f32.mrb[56].mxu0  ;;  %v5079_v38 = vpop.f32.mrb[64].mxu1 }
 0x9aa   : > { %v11611_v39 = vadd.f32 %v5079_v38, %v4878_v37  ;;  %v4880_v40 = vpop.f32.mrb[57].mxu0  ;;  %v5081_v21 = vpop.f32.mrb[65].mxu1 }
 0x9ab   : > { %v11613_v33 = vadd.f32 %v5081_v21, %v4880_v40  ;;  %v4882_v41 = vpop.f32.mrb[58].mxu0  ;;  %v5083_v22 = vpop.f32.mrb[66].mxu1 }
 0x9ac   : > { %v4883_v43 = vpop.f32.mrb[59].mxu0  ;;  %v5084_v23 = vpop.f32.mrb[67].mxu1 }
 0xa0b   : > { %v4478_v12 = vpop.xlane.xlu0 %4477  ;;  %v4475_v10 = vpop.xlane.xlu1 %4474 }
 0xa0c   : > { %v4506_v13 = vadd.f32 %v4498_v11, %v4478_v12  ;;  %v4505_v14 = vadd.f32 %v4497_v44, %v4475_v10 }
 0xa0e   : > { %v8692_v17 = vmul.f32 -1.442695, %v4506_v13  ;;  %v8691_v46 = vmul.f32 -1.442695, %v4505_v14 }
 0xa0f   : > { %v4484_v47 = vpop.xlane.xlu0 %4483  ;;  %v4481_v52 = vpop.xlane.xlu1 %4480 }
 0xa10   : > { %9828 = vpow2.f32 %v8692_v17  ;;  %v4508_v48 = vadd.f32 %v4500_v6, %v4484_v47  ;;  %v4507_v24 = vadd.f32 %v4499_v20, %v4481_v52 }
 0xa11   : > { %9830 = vpow2.f32 %v8691_v46 }
 0xa12   : > { %v8694_v57 = vmul.f32 -1.442695, %v4508_v48  ;;  %v8693_v58 = vmul.f32 -1.442695, %v4507_v24  ;;  %v6761_v48 = vld [vmem:[%s12396_s18] sm:$0xff]  ;;  %v6762_v24 = vld [vmem:[%s12396_s18 + $0x8] sm:$0xff] }
 0xa13   : > { %v4490_v19 = vpop.xlane.xlu0 %4489  ;;  %v4487_v56 = vpop.xlane.xlu1 %4486 }
 0xa14   : > { %9832 = vpow2.f32 %v8694_v57  ;;  %v4510_v45 = vadd.f32 %v4502_v55, %v4490_v19  ;;  %v4509_v59 = vadd.f32 %v4501_v51, %v4487_v56  ;;  %v6763_v55 = vld [vmem:[%s12396_s18 + $0x10] sm:$0xff]  ;;  %v6764_v51 = vld [vmem:[%s12396_s18 + $0x18] sm:$0xff]  ;;  %v8071_v57 = vld [vmem:[%s12397_s4] sm:$0xff] }
 0xa15   : > { %9834 = vpow2.f32 %v8693_v58  ;;  %v8072_v58 = vld [vmem:[%s12397_s4 + $0x8] sm:$0xff]  ;;  %v8073_v19 = vld [vmem:[%s12397_s4 + $0x10] sm:$0xff]  ;;  %v8074_v56 = vld [vmem:[%s12397_s4 + $0x18] sm:$0xff] }
 0xa16   : > { %v8696_v2 = vmul.f32 -1.442695, %v4510_v45  ;;  %v8695_v16 = vmul.f32 -1.442695, %v4509_v59  ;;  %v5087_v45 = vstv %s5086_s22 }
 0xa17   : > { %v4496_v28 = vpop.xlane.xlu0 %4495  ;;  %v4493_v60 = vpop.xlane.xlu1 %4492  ;;  %v5088_v59 = vadd.f32 %v5087_v45, %v11611_v39 }
 0xa18   : > { %9836 = vpow2.f32 %v8696_v2  ;;  %v4512_v8 = vadd.f32 %v4504_v62, %v4496_v28  ;;  %v4511_v61 = vadd.f32 %v4503_v63, %v4493_v60  ;;  %v5089_v62 = vadd.f32 %v5087_v45, %v11613_v33 }
 0xa19   : > { %9838 = vpow2.f32 %v8695_v16  ;;  %v8763_v63 = vmul.f32 -1.442695, %v5088_v59 }
 0xa1a   : > { %v9829_v27 = vpop.eup %9828  ;;  %v8698_v31 = vmul.f32 -1.442695, %v4512_v8  ;;  %v8697_v34 = vmul.f32 -1.442695, %v4511_v61  ;;  %v8764_v2 = vmul.f32 -1.442695, %v5089_v62 }
 0xa1b   : > { %v9831_v4 = vpop.eup %9830  ;;  %v4538_v26 = vadd.f32 1.0, %v9829_v27 }
 0xa1c   : > { %v4537_v1 = vadd.f32 1.0, %v9831_v4  ;;  %9840 = vpow2.f32 %v8698_v31 }
 0xa1d   : > { %9842 = vrcp.f32 %v4538_v26 }
 0xa1e   : > { %v9833_v37 = vpop.eup %9832  ;;  %9844 = vrcp.f32 %v4537_v1 }
 0xa1f   : > { %v9835_v38 = vpop.eup %9834  ;;  %9846 = vpow2.f32 %v8697_v34  ;;  %v4540_v21 = vadd.f32 1.0, %v9833_v37 }
 0xa20   : > { %v4539_v40 = vadd.f32 1.0, %v9835_v38 }
 0xa22   : > { %v9837_v41 = vpop.eup %9836  ;;  %9848 = vrcp.f32 %v4539_v40 }
 0xa23   : > { %v9839_v22 = vpop.eup %9838  ;;  %9850 = vrcp.f32 %v4540_v21  ;;  %v4542_v11 = vadd.f32 1.0, %v9837_v41 }
 0xa24   : > { %v4541_v43 = vadd.f32 1.0, %v9839_v22 }
 0xa26   : > { %v9841_v23 = vpop.eup %9840  ;;  %9852 = vrcp.f32 %v4541_v43 }
 0xa27   : > { %v9843_v44 = vpop.eup %9842  ;;  %9854 = vrcp.f32 %v4542_v11  ;;  %v4544_v13 = vadd.f32 1.0, %v9841_v23 }
 0xa28   : > { %v9845_v12 = vpop.eup %9844  ;;  %5109 = vperm.xlu0 %9162, %v9843_v44  }
 0xa29   : > { %v9847_v10 = vpop.eup %9846  ;;  %5104 = vperm.xlu1 %9163, %v9845_v12  }
 0xa2a   : > { %v4543_v14 = vadd.f32 1.0, %v9847_v10 }
 0xa2c   : > { %v9849_v6 = vpop.eup %9848  ;;  %9856 = vrcp.f32 %v4543_v14 }
 0xa2d   : > { %5114 = vperm.xlu1 %9163, %v9849_v6   ;;  %9858 = vrcp.f32 %v4544_v13  ;;  %v9851_v20 = vpop.eup %9850 }
 0xa2e   : > { %9860 = vpow2.f32 %v8763_v63  ;;  %v9933_v63 = vld [vmem:[#allocation5 + $0x4] ss:$8 sps:$4 sm:$0xff]  }
 0xa2f   : > { %9862 = vpow2.f32 %v8764_v2  ;;  %v9936_v2 = vld [vmem:[#allocation5 + $0x10] ss:$8 sps:$4 sm:$0xff]  }
 0xa30   : > { %v9853_v17 = vpop.eup %9852 }
 0xa31   : > { %5119 = vperm.xlu1 %9163, %v9851_v20   ;;  %5124 = vperm.xlu0 %9162, %v9853_v17   ;;  %v9855_v46 = vpop.eup %9854 }
 0xa35   : > { %5129 = vperm.xlu1 %9163, %v9855_v46  }
 0xa36   : > { %v9857_v47 = vpop.eup %9856 }
 0xa37   : > { %5134 = vperm.xlu0 %9162, %v9857_v47   ;;  %v9859_v52 = vpop.eup %9858 }
 0xa38   : > { %v9861_v16 = vpop.eup %9860 }
 0xa39   : > { %5139 = vperm.xlu1 %9163, %v9859_v52   ;;  %v9863_v28 = vpop.eup %9862  ;;  %v5096_v60 = vadd.f32 1.0, %v9861_v16  ;;  %v9938_v16 = vld [vmem:[#allocation5 + $0x20] ss:$8 sps:$4 sm:$0xff]  }
 0xa3a   : > { %v5097_v8 = vadd.f32 1.0, %v9863_v28  ;;  %v9939_v28 = vld [vmem:[#allocation5 + $0x34] ss:$8 sps:$4 sm:$0xff]  }
 0xa3b   : > { %6767 = vperm.xlu0 %9162, %v6761_v48   ;;  %9864 = vrcp.f32 %v5096_v60  ;;  %v9740_v60 = vld [vmem:[#allocation13 + $0x10] sm:$0xff]  }
 0xa3c   : > { %9866 = vrcp.f32 %v5097_v8  ;;  %v9940_v8 = vld [vmem:[#allocation5 + $0x30] ss:$8 sps:$4 sm:$0xff]  }
 0xa3d   : > { %6772 = vperm.xlu1 %9163, %v6762_v24  }
 0xa3f   : > { %6777 = vperm.xlu0 %9162, %v6763_v55  }
 0xa41   : > { %6782 = vperm.xlu1 %9163, %v6764_v51  }
 0xa43   : > { %8077 = vperm.xlu0 %9162, %v8071_v57  }
 0xa45   : > { %8082 = vperm.xlu1 %9163, %v8072_v58   ;;  %v9865_v61 = vpop.eup %9864 }
 0xa46   : > { %v9867_v27 = vpop.eup %9866  ;;  %v5145_v31 = vrot.slane %v9865_v61, %v11576_v7  ;;  %v9941_v61 = vld [vmem:[#allocation5 + $0x44] ss:$8 sps:$4 sm:$0xff]  }
 0xa47   : > { %8087 = vperm.xlu0 %9162, %v8073_v19   ;;  %v5149_v4 = vrot.slane %v9867_v27, %v11576_v7  ;;  %v9942_v27 = vld [vmem:[#allocation5 + $0x40] ss:$8 sps:$4 sm:$0xff]  }
 0xa49   : > { %8092 = vperm.xlu1 %9163, %v8074_v56  }
 0xaa7   : > { %v5110_v26 = vpop.permute.xlu0 %5109 }
 0xaa8   : > { %v5152_v39 = vadd.f32 %v5145_v31, %v5110_v26  ;;  %v5153_v34 = vadd.f32 %v5149_v4, %v5110_v26  ;;  %v5105_v33 = vpop.permute.xlu1 %5104  ;;  %v9944_v26 = vld [vmem:[#allocation5 + $0x50] ss:$8 sps:$4 sm:$0xff]  }
 0xaa9   : > { %v5150_v1 = vadd.f32 %v5145_v31, %v5105_v33  ;;  %v5151_v37 = vadd.f32 %v5149_v4, %v5105_v33  ;;  %v9947_v33 = vld [vmem:[#allocation5 + $0x74] ss:$8 sps:$4 sm:$0xff]  }
 0xaaa   : > { %v5168_v38 = vmul.f32 %v5152_v39, %v11451_v30  ;;  %v5169_v40 = vmul.f32 %v5153_v34, %v11456_v32  ;;  %v9945_v39 = vld [vmem:[#allocation5 + $0x64] ss:$8 sps:$4 sm:$0xff]   ;;  %v9946_v34 = vld [vmem:[#allocation5 + $0x60] ss:$8 sps:$4 sm:$0xff]  }
 0xaab   : > { %v5166_v21 = vmul.f32 %v5150_v1, %v11444_v3  ;;  %v5167_v41 = vmul.f32 %v5151_v37, %v11449_v9  ;;  %v9948_v1 = vld [vmem:[#allocation5 + $0x70] ss:$8 sps:$4 sm:$0xff]   ;;  %v9949_v37 = vld [vmem:[#allocation5 + $0x84] ss:$8 sps:$4 sm:$0xff]  }
 0xaac   : > { %v5115_v22 = vpop.permute.xlu1 %5114 }
 0xaad   : > { %v5190_v43 = vpack.c.bf16 %v5168_v38, %v5166_v21  ;;  %v5191_v23 = vpack.c.bf16 %v5169_v40, %v5167_v41  ;;  %v5154_v11 = vadd.f32 %v5145_v31, %v5115_v22  ;;  %v5155_v44 = vadd.f32 %v5149_v4, %v5115_v22  ;;  %v9950_v38 = vld [vmem:[#allocation5 + $0x80] ss:$8 sps:$4 sm:$0xff]   ;;  %v9951_v40 = vld [vmem:[#allocation5 + $0x94] ss:$8 sps:$4 sm:$0xff]   ;;  %v9952_v21 = vld [vmem:[#allocation5 + $0x90] ss:$8 sps:$4 sm:$0xff]  }
 0xaae   : > { %v9953_v41 = vld [vmem:[#allocation5 + $0xa4] ss:$8 sps:$4 sm:$0xff]   ;;  %v9954_v22 = vld [vmem:[#allocation5 + $0xa0] ss:$8 sps:$4 sm:$0xff]  }
 0xaaf   : > { %5230 = vmatprep.subr.bf16.mxu0 %v5191_v23  ;;  %v5170_v14 = vmul.f32 %v5154_v11, %v11469_v15  ;;  %v5171_v30 = vmul.f32 %v5155_v44, %v11472_v49  ;;  %v9956_v23 = vld [vmem:[#allocation5 + $0xb0] ss:$8 sps:$4 sm:$0xff]   ;;  %v9957_v11 = vld [vmem:[#allocation5 + $0xc4] ss:$8 sps:$4 sm:$0xff]   ;;  %v9958_v44 = vld [vmem:[#allocation5 + $0xc0] ss:$8 sps:$4 sm:$0xff]  }
 0xab0   : > { %v5125_v7 = vpop.permute.xlu0 %5124  ;;  %5231 = vmatpush1.bf16.msra.mxu0 %v5190_v43  ;;  %v5120_v12 = vpop.permute.xlu1 %5119  ;;  %v9955_v43 = vld [vmem:[#allocation5 + $0xb4] ss:$8 sps:$4 sm:$0xff]  }
 0xab1   : > { %v5156_v10 = vadd.f32 %v5145_v31, %v5120_v12  ;;  %v5157_v13 = vadd.f32 %v5149_v4, %v5120_v12  ;;  %v5158_v32 = vadd.f32 %v5145_v31, %v5125_v7  ;;  %v5159_v6 = vadd.f32 %v5149_v4, %v5125_v7  ;;  %v9959_v7 = vld [vmem:[#allocation5 + $0xd4] ss:$8 sps:$4 sm:$0xff]   ;;  %v9960_v12 = vld [vmem:[#allocation5 + $0xd0] ss:$8 sps:$4 sm:$0xff]  }
 0xab3   : > { %v5172_v3 = vmul.f32 %v5156_v10, %v11478_v29  ;;  %v5173_v9 = vmul.f32 %v5157_v13, %v11480_v54  ;;  %v5174_v24 = vmul.f32 %v5158_v32, %v11489_v5  ;;  %v5175_v49 = vmul.f32 %v5159_v6, %v11492_v25  ;;  %v9738_v25 = vld [vmem:[#allocation13] sm:$0xff]   ;;  %v9961_v10 = vld [vmem:[#allocation5 + $0xe4] ss:$8 sps:$4 sm:$0xff]   ;;  %v9962_v13 = vld [vmem:[#allocation5 + $0xe0] ss:$8 sps:$4 sm:$0xff]  }
 0xab4   : > { %v5130_v20 = vpop.permute.xlu1 %5129 }
 0xab5   : > { %v5192_v17 = vpack.c.bf16 %v5172_v3, %v5170_v14  ;;  %v5160_v46 = vadd.f32 %v5145_v31, %v5130_v20  ;;  %v5161_v47 = vadd.f32 %v5149_v4, %v5130_v20  ;;  %v5193_v52 = vpack.c.bf16 %v5173_v9, %v5171_v30  ;;  %v9963_v14 = vld [vmem:[#allocation5 + $0xf4] ss:$8 sps:$4 sm:$0xff]   ;;  %v9964_v30 = vld [vmem:[#allocation5 + $0xf0] ss:$8 sps:$4 sm:$0xff]  }
 0xab6   : > { %v5135_v48 = vpop.permute.xlu0 %5134 }
 0xab7   : > { %v5162_v55 = vadd.f32 %v5145_v31, %v5135_v48  ;;  %v5176_v51 = vmul.f32 %v5160_v46, %v11498_v35  ;;  %v5177_v15 = vmul.f32 %v5161_v47, %v11502_v36  ;;  %5232 = vmatprep.subr.bf16.mxu0 %v5193_v52  ;;  %v5163_v29 = vadd.f32 %v5149_v4, %v5135_v48  ;;  %v9965_v46 = vld [vmem:[#allocation5 + $0x200] ss:$8 sps:$4 sm:$0xff]   ;;  %v9966_v48 = vld [vmem:[#allocation5 + $0x214] ss:$8 sps:$4 sm:$0xff]  }
 0xab8   : > { %5233 = vmatpush1.bf16.msra.mxu0 %v5192_v17  ;;  %v5140_v54 = vpop.permute.xlu1 %5139 }
 0xab9   : > { %v5194_v57 = vpack.c.bf16 %v5176_v51, %v5174_v24  ;;  %v5164_v58 = vadd.f32 %v5145_v31, %v5140_v54  ;;  %v5165_v19 = vadd.f32 %v5149_v4, %v5140_v54  ;;  %v5195_v56 = vpack.c.bf16 %v5177_v15, %v5175_v49  ;;  %v9943_v31 = vld [vmem:[#allocation5 + $0x54] ss:$8 sps:$4 sm:$0xff]   ;;  %v9741_v4 = vld [vmem:[#allocation13 + $0x18] sm:$0xff]  }
 0xaba   : > { %v5178_v45 = vmul.f32 %v5162_v55, %v11509_v42  ;;  %v5179_v5 = vmul.f32 %v5163_v29, %v11520_v18  ;;  %v9934_v42 = vld [vmem:[#allocation5] ss:$8 sps:$4 sm:$0xff]   ;;  %v9967_v49 = vld [vmem:[#allocation5 + $0x210] ss:$8 sps:$4 sm:$0xff]   ;;  %v9968_v29 = vld [vmem:[#allocation5 + $0x224] ss:$8 sps:$4 sm:$0xff]  }
 0xabb   : > { %v5180_v59 = vmul.f32 %v5164_v58, %v11526_v50  ;;  %v5181_v35 = vmul.f32 %v5165_v19, %v11531_v53  ;;  %5234 = vmatprep.subr.bf16.mxu0 %v5195_v56  ;;  %v9935_v50 = vld [vmem:[#allocation5 + $0x14] ss:$8 sps:$4 sm:$0xff]   ;;  %v9937_v53 = vld [vmem:[#allocation5 + $0x24] ss:$8 sps:$4 sm:$0xff]   ;;  %v9969_v54 = vld [vmem:[#allocation5 + $0x220] ss:$8 sps:$4 sm:$0xff]  }
 0xabc   : > { %5235 = vmatpush1.bf16.msra.mxu0 %v5194_v57  ;;  %v9739_v18 = vld [vmem:[#allocation13 + $0x8] sm:$0xff]  }
 0xabd   : > { %v5196_v36 = vpack.c.bf16 %v5180_v59, %v5178_v45  ;;  %v5197_v62 = vpack.c.bf16 %v5181_v35, %v5179_v5  ;;  %v9970_v19 = vld [vmem:[#allocation5 + $0x234] ss:$8 sps:$4 sm:$0xff]   ;;  %v9971_v35 = vld [vmem:[#allocation5 + $0x230] ss:$8 sps:$4 sm:$0xff]  }
 0xabf   : > { %5236 = vmatprep.subr.bf16.mxu0 %v5197_v62  ;;  %v9973_v62 = vld [vmem:[#allocation5 + $0x240] ss:$8 sps:$4 sm:$0xff]  }
 0xac0   : > { %5237 = vmatpush1.bf16.msra.mxu0 %v5196_v36  ;;  %v9972_v36 = vld [vmem:[#allocation5 + $0x244] ss:$8 sps:$4 sm:$0xff]  }
 0xac1   : > { %5311 = vmatprep.subr.bf16.mxu0 %v9933_v63 }
 0xac3   : > { %8769 = vmatmul.mubr.msk.bf16.vlgmr.msra.gmra.mrb[60].mxu0 %vm870_vm0, %v9738_v25 }
 0xac4   : > { %5272 = vmatprep.mubr.bf16.mxu0 %v12330_v0  ;;  %5312 = vmatpush1.bf16.msra.mxu0 %v9934_v42  ;;  %v9974_v42 = vld [vmem:[#allocation5 + $0x254] ss:$8 sps:$4 sm:$0xff]  }
 0xac5   : > { %5313 = vmatprep.subr.bf16.mxu0 %v9935_v50 }
 0xac8   : > { %5314 = vmatpush1.bf16.msra.mxu0 %v9936_v2 }
 0xac9   : > { %5315 = vmatprep.subr.bf16.mxu0 %v9937_v53 }
 0xacb   : > { %8770 = vmatmul.mubr.msk.bf16.gmra.mrb[64].mxu0 %vm870_vm0, %v9739_v18 }
 0xacc   : > { %5282 = vmatprep.mubr.bf16.mxu0 %v12330_v0  ;;  %5316 = vmatpush1.bf16.msra.mxu0 %v9938_v16  ;;  %v9975_v16 = vld [vmem:[#allocation5 + $0x250] ss:$8 sps:$4 sm:$0xff]  }
 0xacd   : > { %5317 = vmatprep.subr.bf16.mxu0 %v9939_v28  ;;  %v9976_v28 = vld [vmem:[#allocation5 + $0x264] ss:$8 sps:$4 sm:$0xff]  }
 0xad0   : > { %5318 = vmatpush1.bf16.msra.mxu0 %v9940_v8  ;;  %v9978_v8 = vld [vmem:[#allocation5 + $0x274] ss:$8 sps:$4 sm:$0xff]  }
 0xad1   : > { %5319 = vmatprep.subr.bf16.mxu0 %v9941_v61  ;;  %v9979_v61 = vld [vmem:[#allocation5 + $0x270] ss:$8 sps:$4 sm:$0xff]  }
 0xad3   : > { %8771 = vmatmul.mubr.msk.bf16.gmra.mrb[68].mxu0 %vm870_vm0, %v9740_v60  ;;  %v9977_v60 = vld [vmem:[#allocation5 + $0x260] ss:$8 sps:$4 sm:$0xff]  }
 0xad4   : > { %5292 = vmatprep.mubr.bf16.mxu0 %v12330_v0  ;;  %5320 = vmatpush1.bf16.msra.mxu0 %v9942_v27  ;;  %v9980_v27 = vld [vmem:[#allocation5 + $0x284] ss:$8 sps:$4 sm:$0xff]  }
 0xad5   : > { %5321 = vmatprep.subr.bf16.mxu0 %v9943_v31  ;;  %v9981_v31 = vld [vmem:[#allocation5 + $0x280] ss:$8 sps:$4 sm:$0xff]  }
 0xad8   : > { %5322 = vmatpush1.bf16.msra.mxu0 %v9944_v26  ;;  %v9983_v26 = vld [vmem:[#allocation5 + $0x290] ss:$8 sps:$4 sm:$0xff]  }
 0xad9   : > { %5323 = vmatprep.subr.bf16.mxu0 %v9945_v39  ;;  %v9984_v39 = vld [vmem:[#allocation5 + $0x2a4] ss:$8 sps:$4 sm:$0xff]  }
 0xadb   : > { %8772 = vmatmul.mubr.msk.bf16.gmra.mrb[72].mxu0 %vm870_vm0, %v9741_v4  ;;  %v9982_v4 = vld [vmem:[#allocation5 + $0x294] ss:$8 sps:$4 sm:$0xff]  }
 0xadc   : > { %5324 = vmatpush1.bf16.msra.mxu0 %v9946_v34  ;;  %v9985_v34 = vld [vmem:[#allocation5 + $0x2a0] ss:$8 sps:$4 sm:$0xff]  }
 0xadd   : > { %5325 = vmatprep.subr.bf16.mxu0 %v9947_v33  ;;  %v9986_v33 = vld [vmem:[#allocation5 + $0x2b4] ss:$8 sps:$4 sm:$0xff]  }
 0xae0   : > { %5326 = vmatpush1.bf16.msra.mxu0 %v9948_v1  ;;  %v9987_v1 = vld [vmem:[#allocation5 + $0x2b0] ss:$8 sps:$4 sm:$0xff]  }
 0xae1   : > { %5327 = vmatprep.subr.bf16.mxu0 %v9949_v37  ;;  %v9988_v37 = vld [vmem:[#allocation5 + $0x2c4] ss:$8 sps:$4 sm:$0xff]  }
 0xae4   : > { %5328 = vmatpush1.bf16.msra.mxu0 %v9950_v38  ;;  %v9989_v38 = vld [vmem:[#allocation5 + $0x2c0] ss:$8 sps:$4 sm:$0xff]  }
 0xae5   : > { %5329 = vmatprep.subr.bf16.mxu0 %v9951_v40  ;;  %v9990_v40 = vld [vmem:[#allocation5 + $0x2d4] ss:$8 sps:$4 sm:$0xff]  }
 0xae8   : > { %5330 = vmatpush1.bf16.msra.mxu0 %v9952_v21  ;;  %v9991_v21 = vld [vmem:[#allocation5 + $0x2d0] ss:$8 sps:$4 sm:$0xff]  }
 0xae9   : > { %5331 = vmatprep.subr.bf16.mxu0 %v9953_v41  ;;  %v9992_v41 = vld [vmem:[#allocation5 + $0x2e4] ss:$8 sps:$4 sm:$0xff]  }
 0xaec   : > { %5332 = vmatpush1.bf16.msra.mxu0 %v9954_v22  ;;  %v9993_v22 = vld [vmem:[#allocation5 + $0x2e0] ss:$8 sps:$4 sm:$0xff]  }
 0xaed   : > { %5333 = vmatprep.subr.bf16.mxu0 %v9955_v43  ;;  %v9994_v43 = vld [vmem:[#allocation5 + $0x2f4] ss:$8 sps:$4 sm:$0xff]  }
 0xaf0   : > { %5334 = vmatpush1.bf16.msra.mxu0 %v9956_v23  ;;  %v9995_v23 = vld [vmem:[#allocation5 + $0x2f0] ss:$8 sps:$4 sm:$0xff]  }
 0xaf1   : > { %5335 = vmatprep.subr.bf16.mxu0 %v9957_v11  ;;  %v9996_v11 = vld [vmem:[#allocation5 + $0x404] ss:$8 sps:$4 sm:$0xff]  }
 0xaf4   : > { %5336 = vmatpush1.bf16.msra.mxu0 %v9958_v44  ;;  %v9997_v44 = vld [vmem:[#allocation5 + $0x400] ss:$8 sps:$4 sm:$0xff]  }
 0xaf5   : > { %5337 = vmatprep.subr.bf16.mxu0 %v9959_v7  ;;  %v9998_v7 = vld [vmem:[#allocation5 + $0x414] ss:$8 sps:$4 sm:$0xff]  }
 0xaf8   : > { %5338 = vmatpush1.bf16.msra.mxu0 %v9960_v12  ;;  %v9999_v12 = vld [vmem:[#allocation5 + $0x410] ss:$8 sps:$4 sm:$0xff]  }
 0xaf9   : > { %5339 = vmatprep.subr.bf16.mxu0 %v9961_v10  ;;  %v10000_v10 = vld [vmem:[#allocation5 + $0x424] ss:$8 sps:$4 sm:$0xff]  }
 0xafc   : > { %5340 = vmatpush1.bf16.msra.mxu0 %v9962_v13  ;;  %v10001_v13 = vld [vmem:[#allocation5 + $0x420] ss:$8 sps:$4 sm:$0xff]  }
 0xafd   : > { %5341 = vmatprep.subr.bf16.mxu0 %v9963_v14  ;;  %v10002_v14 = vld [vmem:[#allocation5 + $0x434] ss:$8 sps:$4 sm:$0xff]  }
 0xb00   : > { %5342 = vmatpush1.bf16.msra.mxu0 %v9964_v30  ;;  %v10003_v30 = vld [vmem:[#allocation5 + $0x430] ss:$8 sps:$4 sm:$0xff]  }
 0xb96   : > { %v5264_v32 = vpop.f32.mrb[60].mxu0 }
 0xb97   : > { %v5266_v3 = vpop.f32.mrb[61].mxu0 }
 0xb98   : > { %v5268_v9 = vpop.f32.mrb[62].mxu0 }
 0xb99   : > { %v11690_v6 = vpack.c.bf16 %v5268_v9, %v5264_v32  ;;  %v5270_v20 = vpop.f32.mrb[63].mxu0  ;;  %v10004_v32 = vld [vmem:[#allocation5 + $0x444] ss:$8 sps:$4 sm:$0xff]   ;;  %v10006_v9 = vld [vmem:[#allocation5 + $0x454] ss:$8 sps:$4 sm:$0xff]  }
 0xb9a   : > { %v11692_v17 = vpack.c.bf16 %v5270_v20, %v5266_v3  ;;  %v10005_v3 = vld [vmem:[#allocation5 + $0x440] ss:$8 sps:$4 sm:$0xff]   ;;  %v10007_v20 = vld [vmem:[#allocation5 + $0x450] ss:$8 sps:$4 sm:$0xff]  }
 0xb9c   : > { %5343 = vmatprep.mubr.bf16.mxu0 %v11692_v17  ;;  %5428 = vmatprep.mubr.bf16.mxu1 %v11692_v17 }
 0xb9d   : > { %5344 = vmatmul.mubr.bf16.vlgmr.msra.gmra.mrb[76].mxu0 %v11690_v6  ;;  %5429 = vmatmul.mubr.bf16.vlgmr.msra.gmra.mrb[68].mxu1 %v11690_v6 }
 0xb9e   : > { %5621 = vmatpush1.bf16.msra.mxu1 %v9965_v46  ;;  %v5274_v47 = vpop.f32.mrb[64].mxu0  ;;  %v10008_v46 = vld [vmem:[#allocation5 + $0x464] ss:$8 sps:$4 sm:$0xff]  }
 0xb9f   : > { %v5276_v52 = vpop.f32.mrb[65].mxu0  ;;  %5622 = vmatprep.subr.bf16.mxu1 %v9966_v48  ;;  %v10011_v48 = vld [vmem:[#allocation5 + $0x470] ss:$8 sps:$4 sm:$0xff]  }
 0xba0   : > { %v5278_v24 = vpop.f32.mrb[66].mxu0 }
 0xba1   : > { %v11698_v55 = vpack.c.bf16 %v5278_v24, %v5274_v47  ;;  %v5280_v51 = vpop.f32.mrb[67].mxu0  ;;  %v10009_v47 = vld [vmem:[#allocation5 + $0x460] ss:$8 sps:$4 sm:$0xff]   ;;  %v10012_v24 = vld [vmem:[#allocation5 + $0x484] ss:$8 sps:$4 sm:$0xff]  }
 0xba2   : > { %v11700_v15 = vpack.c.bf16 %v5280_v51, %v5276_v52  ;;  %5623 = vmatpush1.bf16.msra.mxu1 %v9967_v49  ;;  %v10010_v52 = vld [vmem:[#allocation5 + $0x474] ss:$8 sps:$4 sm:$0xff]   ;;  %v10013_v51 = vld [vmem:[#allocation5 + $0x480] ss:$8 sps:$4 sm:$0xff]  }
 0xba3   : > { %5624 = vmatprep.subr.bf16.mxu1 %v9968_v29  ;;  %v10014_v49 = vld [vmem:[#allocation5 + $0x494] ss:$8 sps:$4 sm:$0xff]   ;;  %v10015_v29 = vld [vmem:[#allocation5 + $0x490] ss:$8 sps:$4 sm:$0xff]  }
 0xba4   : > { %5438 = vmatprep.mubr.bf16.mxu1 %v11700_v15  ;;  %5353 = vmatprep.mubr.bf16.mxu0 %v11700_v15 }
 0xba5   : > { %5439 = vmatmul.mubr.bf16.gmra.mrb[72].mxu1 %v11698_v55  ;;  %5354 = vmatmul.mubr.bf16.gmra.mrb[80].mxu0 %v11698_v55 }
 0xba6   : > { %5625 = vmatpush1.bf16.msra.mxu1 %v9969_v54  ;;  %v5284_v57 = vpop.f32.mrb[68].mxu0  ;;  %v10016_v54 = vld [vmem:[#allocation5 + $0x4a4] ss:$8 sps:$4 sm:$0xff]  }
 0xba7   : > { %v5286_v58 = vpop.f32.mrb[69].mxu0  ;;  %5626 = vmatprep.subr.bf16.mxu1 %v9970_v19  ;;  %v10019_v19 = vld [vmem:[#allocation5 + $0x4b0] ss:$8 sps:$4 sm:$0xff]  }
 0xba8   : > { %v5288_v56 = vpop.f32.mrb[70].mxu0 }
 0xba9   : > { %v11706_v45 = vpack.c.bf16 %v5288_v56, %v5284_v57  ;;  %v5290_v59 = vpop.f32.mrb[71].mxu0  ;;  %v10017_v57 = vld [vmem:[#allocation5 + $0x4a0] ss:$8 sps:$4 sm:$0xff]   ;;  %v10020_v56 = vld [vmem:[#allocation5 + $0x4c4] ss:$8 sps:$4 sm:$0xff]  }
 0xbaa   : > { %v11708_v5 = vpack.c.bf16 %v5290_v59, %v5286_v58  ;;  %5627 = vmatpush1.bf16.msra.mxu1 %v9971_v35  ;;  %v10018_v58 = vld [vmem:[#allocation5 + $0x4b4] ss:$8 sps:$4 sm:$0xff]   ;;  %v10021_v59 = vld [vmem:[#allocation5 + $0x4c0] ss:$8 sps:$4 sm:$0xff]  }
 0xbab   : > { %5628 = vmatprep.subr.bf16.mxu1 %v9972_v36  ;;  %v10022_v35 = vld [vmem:[#allocation5 + $0x4d4] ss:$8 sps:$4 sm:$0xff]   ;;  %v10023_v36 = vld [vmem:[#allocation5 + $0x4d0] ss:$8 sps:$4 sm:$0xff]  }
 0xbac   : > { %5448 = vmatprep.mubr.bf16.mxu1 %v11708_v5  ;;  %5363 = vmatprep.mubr.bf16.mxu0 %v11708_v5 }
 0xbad   : > { %5449 = vmatmul.mubr.bf16.gmra.mrb[76].mxu1 %v11706_v45  ;;  %5364 = vmatmul.mubr.bf16.gmra.mrb[84].mxu0 %v11706_v45 }
 0xbae   : > { %5629 = vmatpush1.bf16.msra.mxu1 %v9973_v62  ;;  %v5294_v25 = vpop.f32.mrb[72].mxu0  ;;  %v10024_v62 = vld [vmem:[#allocation5 + $0x4e4] ss:$8 sps:$4 sm:$0xff]  }
 0xbaf   : > { %v5296_v63 = vpop.f32.mrb[73].mxu0  ;;  %5630 = vmatprep.subr.bf16.mxu1 %v9974_v42  ;;  %v10027_v42 = vld [vmem:[#allocation5 + $0x4f0] ss:$8 sps:$4 sm:$0xff]  }
 0xbb0   : > { %v5298_v50 = vpop.f32.mrb[74].mxu0 }
 0xbb1   : > { %v11714_v18 = vpack.c.bf16 %v5298_v50, %v5294_v25  ;;  %v5300_v2 = vpop.f32.mrb[75].mxu0  ;;  %v10025_v25 = vld [vmem:[#allocation5 + $0x4e0] ss:$8 sps:$4 sm:$0xff]   ;;  %v10028_v50 = vld [vmem:[#allocation5 + $0x504] ss:$8 sps:$4 sm:$0xff]  }
 0xbb2   : > { %v11716_v53 = vpack.c.bf16 %v5300_v2, %v5296_v63  ;;  %5631 = vmatpush1.bf16.msra.mxu1 %v9975_v16  ;;  %v10026_v63 = vld [vmem:[#allocation5 + $0x4f4] ss:$8 sps:$4 sm:$0xff]   ;;  %v10029_v2 = vld [vmem:[#allocation5 + $0x500] ss:$8 sps:$4 sm:$0xff]  }
 0xbb3   : > { %5632 = vmatprep.subr.bf16.mxu1 %v9976_v28  ;;  %v10030_v16 = vld [vmem:[#allocation5 + $0x514] ss:$8 sps:$4 sm:$0xff]   ;;  %v10031_v28 = vld [vmem:[#allocation5 + $0x510] ss:$8 sps:$4 sm:$0xff]  }
 0xbb4   : > { %5458 = vmatprep.mubr.bf16.mxu1 %v11716_v53  ;;  %5373 = vmatprep.mubr.bf16.mxu0 %v11716_v53 }
 0xbb5   : > { %5459 = vmatmul.mubr.bf16.gmra.mrb[80].mxu1 %v11714_v18  ;;  %5374 = vmatmul.mubr.bf16.gmra.mrb[88].mxu0 %v11714_v18 }
 0xbb6   : > { %5633 = vmatpush1.bf16.msra.mxu1 %v9977_v60  ;;  %5652 = vmatprep.mubr.bf16.mxu1 %v11692_v17  ;;  %v10032_v60 = vld [vmem:[#allocation5 + $0x524] ss:$8 sps:$4 sm:$0xff]  }
 0xbb7   : > { %5634 = vmatprep.subr.bf16.mxu1 %v9978_v8  ;;  %5530 = vmatprep.mubr.bf16.mxu0 %v12330_v0  ;;  %v10033_v8 = vld [vmem:[#allocation5 + $0x520] ss:$8 sps:$4 sm:$0xff]  }
 0xbba   : > { %5635 = vmatpush1.bf16.msra.mxu1 %v9979_v61  ;;  %v10034_v61 = vld [vmem:[#allocation5 + $0x534] ss:$8 sps:$4 sm:$0xff]  }
 0xbbb   : > { %5636 = vmatprep.subr.bf16.mxu1 %v9980_v27  ;;  %v10035_v27 = vld [vmem:[#allocation5 + $0x530] ss:$8 sps:$4 sm:$0xff]  }
 0xbbe   : > { %5637 = vmatpush1.bf16.msra.mxu1 %v9981_v31  ;;  %v10036_v31 = vld [vmem:[#allocation5 + $0x544] ss:$8 sps:$4 sm:$0xff]  }
 0xbbf   : > { %5638 = vmatprep.subr.bf16.mxu1 %v9982_v4  ;;  %v10037_v4 = vld [vmem:[#allocation5 + $0x540] ss:$8 sps:$4 sm:$0xff]  }
 0xbc2   : > { %5639 = vmatpush1.bf16.msra.mxu1 %v9983_v26  ;;  %v10038_v26 = vld [vmem:[#allocation5 + $0x554] ss:$8 sps:$4 sm:$0xff]  }
 0xbc3   : > { %5640 = vmatprep.subr.bf16.mxu1 %v9984_v39  ;;  %v10039_v39 = vld [vmem:[#allocation5 + $0x550] ss:$8 sps:$4 sm:$0xff]  }
 0xbc6   : > { %5641 = vmatpush1.bf16.msra.mxu1 %v9985_v34  ;;  %v10040_v34 = vld [vmem:[#allocation5 + $0x564] ss:$8 sps:$4 sm:$0xff]  }
 0xbc7   : > { %5642 = vmatprep.subr.bf16.mxu1 %v9986_v33  ;;  %v10041_v33 = vld [vmem:[#allocation5 + $0x560] ss:$8 sps:$4 sm:$0xff]  }
 0xbca   : > { %5643 = vmatpush1.bf16.msra.mxu1 %v9987_v1  ;;  %v10042_v1 = vld [vmem:[#allocation5 + $0x574] ss:$8 sps:$4 sm:$0xff]  }
 0xbcb   : > { %5644 = vmatprep.subr.bf16.mxu1 %v9988_v37  ;;  %v10043_v37 = vld [vmem:[#allocation5 + $0x570] ss:$8 sps:$4 sm:$0xff]  }
 0xbce   : > { %5645 = vmatpush1.bf16.msra.mxu1 %v9989_v38  ;;  %v10044_v38 = vld [vmem:[#allocation5 + $0x584] ss:$8 sps:$4 sm:$0xff]  }
 0xbcf   : > { %5646 = vmatprep.subr.bf16.mxu1 %v9990_v40  ;;  %v10045_v40 = vld [vmem:[#allocation5 + $0x580] ss:$8 sps:$4 sm:$0xff]  }
 0xbd2   : > { %5647 = vmatpush1.bf16.msra.mxu1 %v9991_v21  ;;  %v10046_v21 = vld [vmem:[#allocation5 + $0x594] ss:$8 sps:$4 sm:$0xff]  }
 0xbd3   : > { %5648 = vmatprep.subr.bf16.mxu1 %v9992_v41  ;;  %v10047_v41 = vld [vmem:[#allocation5 + $0x590] ss:$8 sps:$4 sm:$0xff]  }
 0xbd6   : > { %5649 = vmatpush1.bf16.msra.mxu1 %v9993_v22  ;;  %v10048_v22 = vld [vmem:[#allocation5 + $0x5a4] ss:$8 sps:$4 sm:$0xff]  }
 0xbd7   : > { %5650 = vmatprep.subr.bf16.mxu1 %v9994_v43  ;;  %v10049_v43 = vld [vmem:[#allocation5 + $0x5a0] ss:$8 sps:$4 sm:$0xff]  }
 0xbda   : > { %5651 = vmatpush1.bf16.msra.mxu1 %v9995_v23  ;;  %v10050_v23 = vld [vmem:[#allocation5 + $0x5b4] ss:$8 sps:$4 sm:$0xff]  }
 0xbdb   : > { %5946 = vmatprep.subr.bf16.mxu1 %v9996_v11  ;;  %v10051_v11 = vld [vmem:[#allocation5 + $0x5b0] ss:$8 sps:$4 sm:$0xff]  }
 0xbdd   : > { %5653 = vmatmul.mubr.bf16.vlgmr.msra.gmra.mrb[84].mxu1 %v11690_v6 }
 0xbde   : > { %5662 = vmatprep.mubr.bf16.mxu1 %v11700_v15  ;;  %5947 = vmatpush1.bf16.msra.mxu1 %v9997_v44  ;;  %v10052_v44 = vld [vmem:[#allocation5 + $0x5c4] ss:$8 sps:$4 sm:$0xff]  }
 0xbdf   : > { %5948 = vmatprep.subr.bf16.mxu1 %v9998_v7  ;;  %v10053_v7 = vld [vmem:[#allocation5 + $0x5c0] ss:$8 sps:$4 sm:$0xff]  }
 0xbe2   : > { %5949 = vmatpush1.bf16.msra.mxu1 %v9999_v12  ;;  %v10054_v12 = vld [vmem:[#allocation5 + $0x5d4] ss:$8 sps:$4 sm:$0xff]  }
 0xbe3   : > { %5950 = vmatprep.subr.bf16.mxu1 %v10000_v10  ;;  %v10055_v10 = vld [vmem:[#allocation5 + $0x5d0] ss:$8 sps:$4 sm:$0xff]  }
 0xbe5   : > { %5663 = vmatmul.mubr.bf16.gmra.mrb[88].mxu1 %v11698_v55 }
 0xbe6   : > { %5672 = vmatprep.mubr.bf16.mxu1 %v11708_v5  ;;  %5951 = vmatpush1.bf16.msra.mxu1 %v10001_v13  ;;  %v10056_v13 = vld [vmem:[#allocation5 + $0x5e4] ss:$8 sps:$4 sm:$0xff]  }
 0xbe7   : > { %5952 = vmatprep.subr.bf16.mxu1 %v10002_v14  ;;  %v10057_v14 = vld [vmem:[#allocation5 + $0x5e0] ss:$8 sps:$4 sm:$0xff]  }
 0xbea   : > { %5953 = vmatpush1.bf16.msra.mxu1 %v10003_v30  ;;  %v10058_v30 = vld [vmem:[#allocation5 + $0x5f4] ss:$8 sps:$4 sm:$0xff]  }
 0xbeb   : > { %5954 = vmatprep.subr.bf16.mxu1 %v10004_v32  ;;  %v10059_v32 = vld [vmem:[#allocation5 + $0x5f0] ss:$8 sps:$4 sm:$0xff]  }
 0xbed   : > { %5673 = vmatmul.mubr.bf16.gmra.mrb[92].mxu1 %v11706_v45 }
 0xbee   : > { %5682 = vmatprep.mubr.bf16.mxu1 %v11716_v53  ;;  %5955 = vmatpush1.bf16.msra.mxu1 %v10005_v3  ;;  %v10060_v3 = vld [vmem:[#allocation5 + $0x704] ss:$8 sps:$4 sm:$0xff]  }
 0xbef   : > { %5956 = vmatprep.subr.bf16.mxu1 %v10006_v9  ;;  %v10061_v9 = vld [vmem:[#allocation5 + $0x700] ss:$8 sps:$4 sm:$0xff]  }
 0xbf2   : > { %5957 = vmatpush1.bf16.msra.mxu1 %v10007_v20  ;;  %v10062_v20 = vld [vmem:[#allocation5 + $0x714] ss:$8 sps:$4 sm:$0xff]  }
 0xbf3   : > { %5958 = vmatprep.subr.bf16.mxu1 %v10008_v46  ;;  %v10063_v46 = vld [vmem:[#allocation5 + $0x710] ss:$8 sps:$4 sm:$0xff]  }
 0xbf5   : > { %5683 = vmatmul.mubr.bf16.gmra.mrb[96].mxu1 %v11714_v18 }
 0xbf6   : > { %5959 = vmatpush1.bf16.msra.mxu1 %v10009_v47  ;;  %5978 = vmatprep.mubr.bf16.mxu1 %v11692_v17  ;;  %v10064_v47 = vld [vmem:[#allocation5 + $0x724] ss:$8 sps:$4 sm:$0xff]  }
 0xbf7   : > { %5960 = vmatprep.subr.bf16.mxu1 %v10010_v52  ;;  %v10065_v52 = vld [vmem:[#allocation5 + $0x720] ss:$8 sps:$4 sm:$0xff]  }
 0xbfa   : > { %5961 = vmatpush1.bf16.msra.mxu1 %v10011_v48  ;;  %v10066_v48 = vld [vmem:[#allocation5 + $0x734] ss:$8 sps:$4 sm:$0xff]  }
 0xbfb   : > { %5962 = vmatprep.subr.bf16.mxu1 %v10012_v24  ;;  %v10067_v24 = vld [vmem:[#allocation5 + $0x730] ss:$8 sps:$4 sm:$0xff]  }
 0xbfe   : > { %5963 = vmatpush1.bf16.msra.mxu1 %v10013_v51  ;;  %v10068_v51 = vld [vmem:[#allocation5 + $0x744] ss:$8 sps:$4 sm:$0xff]  }
 0xbff   : > { %5964 = vmatprep.subr.bf16.mxu1 %v10014_v49  ;;  %v10069_v49 = vld [vmem:[#allocation5 + $0x740] ss:$8 sps:$4 sm:$0xff]  }
 0xc02   : > { %5965 = vmatpush1.bf16.msra.mxu1 %v10015_v29  ;;  %v10070_v29 = vld [vmem:[#allocation5 + $0x754] ss:$8 sps:$4 sm:$0xff]  }
 0xc03   : > { %5966 = vmatprep.subr.bf16.mxu1 %v10016_v54 }
 0xc06   : > { %5967 = vmatpush1.bf16.msra.mxu1 %v10017_v57 }
 0xc07   : > { %5968 = vmatprep.subr.bf16.mxu1 %v10018_v58 }
 0xc0a   : > { %5969 = vmatpush1.bf16.msra.mxu1 %v10019_v19 }
 0xc0b   : > { %5970 = vmatprep.subr.bf16.mxu1 %v10020_v56  ;;  %v10071_v56 = vld [vmem:[#allocation5 + $0x750] ss:$8 sps:$4 sm:$0xff]  }
 0xc0e   : > { %5971 = vmatpush1.bf16.msra.mxu1 %v10021_v59 }
 0xc0f   : > { %5972 = vmatprep.subr.bf16.mxu1 %v10022_v35 }
 0xc12   : > { %5973 = vmatpush1.bf16.msra.mxu1 %v10023_v36 }
 0xc13   : > { %5974 = vmatprep.subr.bf16.mxu1 %v10024_v62 }
 0xc16   : > { %5975 = vmatpush1.bf16.msra.mxu1 %v10025_v25 }
 0xc17   : > { %5976 = vmatprep.subr.bf16.mxu1 %v10026_v63 }
 0xc1a   : > { %5977 = vmatpush1.bf16.msra.mxu1 %v10027_v42  ;;  %v10072_v42 = vld [vmem:[#allocation5 + $0x764] ss:$8 sps:$4 sm:$0xff]  }
 0xc1b   : > { %6109 = vmatprep.subr.bf16.mxu1 %v10028_v50 }
 0xc1d   : > { %5979 = vmatmul.mubr.bf16.vlgmr.msra.gmra.mrb[100].mxu1 %v11690_v6 }
 0xc1e   : > { %5988 = vmatprep.mubr.bf16.mxu1 %v11700_v15  ;;  %6110 = vmatpush1.bf16.msra.mxu1 %v10029_v2 }
 0xc1f   : > { %6111 = vmatprep.subr.bf16.mxu1 %v10030_v16  ;;  %v10073_v16 = vld [vmem:[#allocation5 + $0x760] ss:$8 sps:$4 sm:$0xff]  }
 0xc22   : > { %6112 = vmatpush1.bf16.msra.mxu1 %v10031_v28  ;;  %v10074_v28 = vld [vmem:[#allocation5 + $0x774] ss:$8 sps:$4 sm:$0xff]  }
 0xc23   : > { %6113 = vmatprep.subr.bf16.mxu1 %v10032_v60 }
 0xc25   : > { %5989 = vmatmul.mubr.bf16.gmra.mrb[104].mxu1 %v11698_v55 }
 0xc26   : > { %5998 = vmatprep.mubr.bf16.mxu1 %v11708_v5  ;;  %6114 = vmatpush1.bf16.msra.mxu1 %v10033_v8 }
 0xc27   : > { %6115 = vmatprep.subr.bf16.mxu1 %v10034_v61 }
 0xc2a   : > { %6116 = vmatpush1.bf16.msra.mxu1 %v10035_v27 }
 0xc2b   : > { %6117 = vmatprep.subr.bf16.mxu1 %v10036_v31  ;;  %v10075_v31 = vld [vmem:[#allocation5 + $0x770] ss:$8 sps:$4 sm:$0xff]  }
 0xc2d   : > { %5999 = vmatmul.mubr.bf16.gmra.mrb[108].mxu1 %v11706_v45 }
 0xc2e   : > { %6008 = vmatprep.mubr.bf16.mxu1 %v11716_v53  ;;  %6118 = vmatpush1.bf16.msra.mxu1 %v10037_v4 }
 0xc2f   : > { %6119 = vmatprep.subr.bf16.mxu1 %v10038_v26 }
 0xc32   : > { %6120 = vmatpush1.bf16.msra.mxu1 %v10039_v39  ;;  %v10076_v39 = vld [vmem:[#allocation5 + $0x784] ss:$8 sps:$4 sm:$0xff]  }
 0xc33   : > { %6121 = vmatprep.subr.bf16.mxu1 %v10040_v34 }
 0xc35   : > { %6009 = vmatmul.mubr.bf16.gmra.mrb[112].mxu1 %v11714_v18 }
 0xc36   : > { %6122 = vmatpush1.bf16.msra.mxu1 %v10041_v33  ;;  %6141 = vmatprep.mubr.bf16.mxu1 %v11692_v17 }
 0xc37   : > { %6123 = vmatprep.subr.bf16.mxu1 %v10042_v1 }
 0xc3a   : > { %6124 = vmatpush1.bf16.msra.mxu1 %v10043_v37 }
 0xc3b   : > { %6125 = vmatprep.subr.bf16.mxu1 %v10044_v38 }
 0xc3e   : > { %6126 = vmatpush1.bf16.msra.mxu1 %v10045_v40 }
 0xc3f   : > { %6127 = vmatprep.subr.bf16.mxu1 %v10046_v21  ;;  %v10077_v21 = vld [vmem:[#allocation5 + $0x780] ss:$8 sps:$4 sm:$0xff]  }
 0xc42   : > { %6128 = vmatpush1.bf16.msra.mxu1 %v10047_v41  ;;  %v10078_v41 = vld [vmem:[#allocation5 + $0x794] ss:$8 sps:$4 sm:$0xff]  }
 0xc43   : > { %6129 = vmatprep.subr.bf16.mxu1 %v10048_v22 }
 0xc46   : > { %6130 = vmatpush1.bf16.msra.mxu1 %v10049_v43 }
 0xc47   : > { %6131 = vmatprep.subr.bf16.mxu1 %v10050_v23 }
 0xc4a   : > { %6132 = vmatpush1.bf16.msra.mxu1 %v10051_v11 }
 0xc4b   : > { %6133 = vmatprep.subr.bf16.mxu1 %v10052_v44  ;;  %v10079_v44 = vld [vmem:[#allocation5 + $0x790] ss:$8 sps:$4 sm:$0xff]  }
 0xc4e   : > { %6134 = vmatpush1.bf16.msra.mxu1 %v10053_v7 }
 0xc4f   : > { %6135 = vmatprep.subr.bf16.mxu1 %v10054_v12 }
 0xc52   : > { %6136 = vmatpush1.bf16.msra.mxu1 %v10055_v10  ;;  %v10080_v10 = vld [vmem:[#allocation5 + $0x7a4] ss:$8 sps:$4 sm:$0xff]  }
 0xc53   : > { %6137 = vmatprep.subr.bf16.mxu1 %v10056_v13 }
 0xc56   : > { %6138 = vmatpush1.bf16.msra.mxu1 %v10057_v14 }
 0xc57   : > { %6139 = vmatprep.subr.bf16.mxu1 %v10058_v30 }
 0xc5a   : > { %6140 = vmatpush1.bf16.msra.mxu1 %v10059_v32 }
 0xc5b   : > { %6435 = vmatprep.subr.bf16.mxu1 %v10060_v3 }
 0xc5d   : > { %6142 = vmatmul.mubr.bf16.vlgmr.msra.gmra.mrb[116].mxu1 %v11690_v6 }
 0xc5e   : > { %6151 = vmatprep.mubr.bf16.mxu1 %v11700_v15  ;;  %6436 = vmatpush1.bf16.msra.mxu1 %v10061_v9 }
 0xc5f   : > { %6437 = vmatprep.subr.bf16.mxu1 %v10062_v20  ;;  %v10081_v20 = vld [vmem:[#allocation5 + $0x7a0] ss:$8 sps:$4 sm:$0xff]  }
 0xc62   : > { %6438 = vmatpush1.bf16.msra.mxu1 %v10063_v46  ;;  %v10082_v46 = vld [vmem:[#allocation5 + $0x7b4] ss:$8 sps:$4 sm:$0xff]  }
 0xc63   : > { %6439 = vmatprep.subr.bf16.mxu1 %v10064_v47 }
 0xc65   : > { %6152 = vmatmul.mubr.bf16.gmra.mrb[120].mxu1 %v11698_v55 }
 0xc66   : > { %6161 = vmatprep.mubr.bf16.mxu1 %v11708_v5  ;;  %6440 = vmatpush1.bf16.msra.mxu1 %v10065_v52 }
 0xc67   : > { %6441 = vmatprep.subr.bf16.mxu1 %v10066_v48 }
 0xc6a   : > { %6442 = vmatpush1.bf16.msra.mxu1 %v10067_v24 }
 0xc6b   : > { %6443 = vmatprep.subr.bf16.mxu1 %v10068_v51  ;;  %v10083_v51 = vld [vmem:[#allocation5 + $0x7b0] ss:$8 sps:$4 sm:$0xff]  }
 0xc6d   : > { %6162 = vmatmul.mubr.bf16.gmra.mrb[124].mxu1 %v11706_v45 }
 0xc6e   : > { %6171 = vmatprep.mubr.bf16.mxu1 %v11716_v53  ;;  %6444 = vmatpush1.bf16.msra.mxu1 %v10069_v49 }
 0xc6f   : > { %6445 = vmatprep.subr.bf16.mxu1 %v10070_v29 }
 0xc70   : > { %v11746_v54 = vpop.f32.mrb[76].mxu0  ;;  %v5430_v57 = vpop.f32.mrb[68].mxu1 }
 0xc71   : > { %v11748_v58 = vpop.f32.mrb[77].mxu0  ;;  %v5432_v19 = vpop.f32.mrb[69].mxu1 }
 0xc72   : > { %6446 = vmatpush1.bf16.msra.mxu1 %v10071_v56  ;;  %v11750_v59 = vpop.f32.mrb[78].mxu0  ;;  %v5434_v35 = vpop.f32.mrb[70].mxu1  ;;  %v10084_v56 = vld [vmem:[#allocation5 + $0x7c4] ss:$8 sps:$4 sm:$0xff]  }
 0xc73   : > { %v5388_v36 = vpack.c.bf16 %v11750_v59, %v11746_v54  ;;  %v5474_v62 = vpack.c.bf16 %v5434_v35, %v5430_v57  ;;  %v11754_v25 = vpop.f32.mrb[79].mxu0  ;;  %v5436_v63 = vpop.f32.mrb[71].mxu1  ;;  %6447 = vmatprep.subr.bf16.mxu1 %v10072_v42  ;;  %v10092_v54 = vld [vmem:[#allocation5 + $0x804] ss:$8 sps:$4 sm:$0xff]   ;;  %v10093_v59 = vld [vmem:[#allocation5 + $0x800] ss:$8 sps:$4 sm:$0xff]  }
 0xc74   : > { %v5389_v50 = vpack.c.bf16 %v11754_v25, %v11748_v58  ;;  %v5475_v2 = vpack.c.bf16 %v5436_v63, %v5432_v19  ;;  %v10090_v58 = vld [vmem:[#allocation5 + $0x7f4] ss:$8 sps:$4 sm:$0xff]   ;;  %v10091_v25 = vld [vmem:[#allocation5 + $0x7f0] ss:$8 sps:$4 sm:$0xff]  }
 0xc75   : > { %6172 = vmatmul.mubr.bf16.gmra.mrb[128].mxu1 %v11714_v18 }
 0xc76   : > { %6448 = vmatpush1.bf16.msra.mxu1 %v10073_v16  ;;  %6467 = vmatprep.mubr.bf16.mxu1 %v11692_v17  ;;  %v9742_v16 = vld [vmem:[#allocation14 + $0x10] sm:$0xff]  }
 0xc77   : > { %5498 = vmatprep.subr.bf16.mxu0 %v5475_v2  ;;  %6449 = vmatprep.subr.bf16.mxu1 %v10074_v28  ;;  %v10085_v2 = vld [vmem:[#allocation5 + $0x7c0] ss:$8 sps:$4 sm:$0xff]   ;;  %v10086_v28 = vld [vmem:[#allocation5 + $0x7d4] ss:$8 sps:$4 sm:$0xff]  }
 0xc78   : > { %5499 = vmatpush1.bf16.msra.mxu0 %v5474_v62  ;;  %v5440_v60 = vpop.f32.mrb[72].mxu1  ;;  %v11760_v8 = vpop.f32.mrb[80].mxu0 }
 0xc79   : > { %v5442_v61 = vpop.f32.mrb[73].mxu1  ;;  %v11762_v27 = vpop.f32.mrb[81].mxu0 }
 0xc7a   : > { %6450 = vmatpush1.bf16.msra.mxu1 %v10075_v31  ;;  %v5444_v4 = vpop.f32.mrb[74].mxu1  ;;  %v11764_v26 = vpop.f32.mrb[82].mxu0  ;;  %v9743_v31 = vld [vmem:[#allocation14 + $0x18] sm:$0xff]  }
 0xc7b   : > { %6451 = vmatprep.subr.bf16.mxu1 %v10076_v39  ;;  %v5476_v34 = vpack.c.bf16 %v5444_v4, %v5440_v60  ;;  %v5446_v33 = vpop.f32.mrb[75].mxu1  ;;  %v5390_v1 = vpack.c.bf16 %v11764_v26, %v11760_v8  ;;  %v5361_v37 = vpop.f32.mrb[83].mxu0  ;;  %v10087_v60 = vld [vmem:[#allocation5 + $0x7d0] ss:$8 sps:$4 sm:$0xff]   ;;  %v10096_v4 = vld [vmem:[#allocation5 + $0x824] ss:$8 sps:$4 sm:$0xff]  }
 0xc7c   : > { %v5477_v38 = vpack.c.bf16 %v5446_v33, %v5442_v61  ;;  %v5391_v40 = vpack.c.bf16 %v5361_v37, %v11762_v27  ;;  %v10088_v61 = vld [vmem:[#allocation5 + $0x7e4] ss:$8 sps:$4 sm:$0xff]   ;;  %v10089_v27 = vld [vmem:[#allocation5 + $0x7e0] ss:$8 sps:$4 sm:$0xff]   ;;  %v10095_v8 = vld [vmem:[#allocation5 + $0x810] ss:$8 sps:$4 sm:$0xff]  }
 0xc7d   : > { %v10097_v26 = vld [vmem:[#allocation5 + $0x820] ss:$8 sps:$4 sm:$0xff]   ;;  %v10099_v33 = vld [vmem:[#allocation5 + $0x830] ss:$8 sps:$4 sm:$0xff]  }
 0xc7e   : > { %6452 = vmatpush1.bf16.msra.mxu1 %v10077_v21  ;;  %5500 = vmatprep.subr.bf16.mxu0 %v5477_v38  ;;  %v9745_v39 = vld [vmem:[#allocation14 + $0x8] sm:$0xff]  }
 0xc7f   : > { %6453 = vmatprep.subr.bf16.mxu1 %v10078_v41  ;;  %5501 = vmatpush1.bf16.msra.mxu0 %v5476_v34  ;;  %v10098_v34 = vld [vmem:[#allocation5 + $0x834] ss:$8 sps:$4 sm:$0xff]   ;;  %v10101_v37 = vld [vmem:[#allocation5 + $0x840] ss:$8 sps:$4 sm:$0xff]  }
 0xc80   : > { %v5450_v22 = vpop.f32.mrb[76].mxu1  ;;  %v11769_v43 = vpop.f32.mrb[84].mxu0  ;;  %v10102_v38 = vld [vmem:[#allocation5 + $0x854] ss:$8 sps:$4 sm:$0xff]  }
 0xc81   : > { %v5452_v23 = vpop.f32.mrb[77].mxu1  ;;  %v5367_v11 = vpop.f32.mrb[85].mxu0 }
 0xc82   : > { %6454 = vmatpush1.bf16.msra.mxu1 %v10079_v44  ;;  %v5454_v7 = vpop.f32.mrb[78].mxu1  ;;  %v5369_v12 = vpop.f32.mrb[86].mxu0 }
 0xc83   : > { %6455 = vmatprep.subr.bf16.mxu1 %v10080_v10  ;;  %v5478_v13 = vpack.c.bf16 %v5454_v7, %v5450_v22  ;;  %v5456_v14 = vpop.f32.mrb[79].mxu1  ;;  %v5392_v30 = vpack.c.bf16 %v5369_v12, %v11769_v43  ;;  %v5371_v32 = vpop.f32.mrb[87].mxu0  ;;  %v10103_v22 = vld [vmem:[#allocation5 + $0x850] ss:$8 sps:$4 sm:$0xff]   ;;  %v10105_v7 = vld [vmem:[#allocation5 + $0x860] ss:$8 sps:$4 sm:$0xff]  }
 0xc84   : > { %v5479_v3 = vpack.c.bf16 %v5456_v14, %v5452_v23  ;;  %v5393_v9 = vpack.c.bf16 %v5371_v32, %v5367_v11  ;;  %v10104_v11 = vld [vmem:[#allocation5 + $0x864] ss:$8 sps:$4 sm:$0xff]   ;;  %v10106_v10 = vld [vmem:[#allocation5 + $0x874] ss:$8 sps:$4 sm:$0xff]  }
 0xc86   : > { %6456 = vmatpush1.bf16.msra.mxu1 %v10081_v20  ;;  %5502 = vmatprep.subr.bf16.mxu0 %v5479_v3 }
 0xc87   : > { %6457 = vmatprep.subr.bf16.mxu1 %v10082_v46  ;;  %5503 = vmatpush1.bf16.msra.mxu0 %v5478_v13  ;;  %v10109_v46 = vld [vmem:[#allocation5 + $0x880] ss:$8 sps:$4 sm:$0xff]  }
 0xc88   : > { %v5460_v47 = vpop.f32.mrb[80].mxu1  ;;  %v5375_v52 = vpop.f32.mrb[88].mxu0 }
 0xc89   : > { %v5462_v48 = vpop.f32.mrb[81].mxu1  ;;  %v5377_v24 = vpop.f32.mrb[89].mxu0 }
 0xc8a   : > { %6458 = vmatpush1.bf16.msra.mxu1 %v10083_v51  ;;  %v5464_v49 = vpop.f32.mrb[82].mxu1  ;;  %v5379_v29 = vpop.f32.mrb[90].mxu0  ;;  %v10111_v51 = vld [vmem:[#allocation5 + $0x890] ss:$8 sps:$4 sm:$0xff]  }
 0xc8b   : > { %v5480_v57 = vpack.c.bf16 %v5464_v49, %v5460_v47  ;;  %v5466_v19 = vpop.f32.mrb[83].mxu1  ;;  %6459 = vmatprep.subr.bf16.mxu1 %v10084_v56  ;;  %v5394_v35 = vpack.c.bf16 %v5379_v29, %v5375_v52  ;;  %v5381_v62 = vpop.f32.mrb[91].mxu0  ;;  %v10110_v47 = vld [vmem:[#allocation5 + $0x894] ss:$8 sps:$4 sm:$0xff]   ;;  %v10113_v56 = vld [vmem:[#allocation5 + $0x8a0] ss:$8 sps:$4 sm:$0xff]  }
 0xc8c   : > { %v5481_v63 = vpack.c.bf16 %v5466_v19, %v5462_v48  ;;  %v5395_v42 = vpack.c.bf16 %v5381_v62, %v5377_v24 }
 0xc8e   : > { %6460 = vmatpush1.bf16.msra.mxu1 %v10085_v2  ;;  %5504 = vmatprep.subr.bf16.mxu0 %v5481_v63  ;;  %v10115_v2 = vld [vmem:[#allocation5 + $0x8b0] ss:$8 sps:$4 sm:$0xff]  }
 0xc8f   : > { %5505 = vmatpush1.bf16.msra.mxu0 %v5480_v57  ;;  %6461 = vmatprep.subr.bf16.mxu1 %v10086_v28  ;;  %v10112_v57 = vld [vmem:[#allocation5 + $0x8a4] ss:$8 sps:$4 sm:$0xff]  }
 0xc90   : > { %5567 = vmatprep.subr.bf16.mxu0 %v5389_v50  ;;  %v10094_v50 = vld [vmem:[#allocation5 + $0x814] ss:$8 sps:$4 sm:$0xff]  }
 0xc92   : > { %6462 = vmatpush1.bf16.msra.mxu1 %v10087_v60  ;;  %8775 = vmatmul.mubr.msk.bf16.vlgmr.msra.gmra.mrb[92].mxu0 %vm870_vm0, %v9742_v16  ;;  %v10116_v60 = vld [vmem:[#allocation5 + $0x8c4] ss:$8 sps:$4 sm:$0xff]  }
 0xc93   : > { %5568 = vmatpush1.bf16.msra.mxu0 %v5388_v36  ;;  %6463 = vmatprep.subr.bf16.mxu1 %v10088_v61  ;;  %v9744_v36 = vld [vmem:[#allocation14] sm:$0xff]  }
 0xc94   : > { %5569 = vmatprep.subr.bf16.mxu0 %v5391_v40  ;;  %5540 = vmatprep.mubr.bf16.mxu0 %v12330_v0 }
 0xc96   : > { %6464 = vmatpush1.bf16.msra.mxu1 %v10089_v27  ;;  %v10117_v27 = vld [vmem:[#allocation5 + $0x8c0] ss:$8 sps:$4 sm:$0xff]  }
 0xc97   : > { %5570 = vmatpush1.bf16.msra.mxu0 %v5390_v1  ;;  %6465 = vmatprep.subr.bf16.mxu1 %v10090_v58  ;;  %v10100_v1 = vld [vmem:[#allocation5 + $0x844] ss:$8 sps:$4 sm:$0xff]   ;;  %v10118_v58 = vld [vmem:[#allocation5 + $0x8d4] ss:$8 sps:$4 sm:$0xff]  }
 0xc98   : > { %5571 = vmatprep.subr.bf16.mxu0 %v5393_v9  ;;  %v10108_v9 = vld [vmem:[#allocation5 + $0x884] ss:$8 sps:$4 sm:$0xff]  }
 0xc9a   : > { %6466 = vmatpush1.bf16.msra.mxu1 %v10091_v25  ;;  %8776 = vmatmul.mubr.msk.bf16.gmra.mrb[96].mxu0 %vm870_vm0, %v9743_v31  ;;  %v9746_v31 = vld [vmem:[#allocation14 + $0x20] sm:$0xff]   ;;  %v10119_v25 = vld [vmem:[#allocation5 + $0x304] ss:$8 sps:$4 sm:$0xff]  }
 0xc9b   : > { %6598 = vmatprep.subr.bf16.mxu1 %v10092_v54  ;;  %5572 = vmatpush1.bf16.msra.mxu0 %v5392_v30  ;;  %v10107_v30 = vld [vmem:[#allocation5 + $0x870] ss:$8 sps:$4 sm:$0xff]  }
 0xc9c   : > { %5573 = vmatprep.subr.bf16.mxu0 %v5395_v42  ;;  %5599 = vmatprep.mubr.bf16.mxu0 %v12330_v0  ;;  %v10120_v54 = vld [vmem:[#allocation5 + $0x8d0] ss:$8 sps:$4 sm:$0xff]  }
 0xc9d   : > { %6468 = vmatmul.mubr.bf16.vlgmr.msra.gmra.mrb[132].mxu1 %v11690_v6 }
 0xc9e   : > { %6477 = vmatprep.mubr.bf16.mxu1 %v11700_v15  ;;  %6599 = vmatpush1.bf16.msra.mxu1 %v10093_v59  ;;  %v10121_v59 = vld [vmem:[#allocation5 + $0x300] ss:$8 sps:$4 sm:$0xff]  }
 0xc9f   : > { %6600 = vmatprep.subr.bf16.mxu1 %v10094_v50  ;;  %5574 = vmatpush1.bf16.msra.mxu0 %v5394_v35  ;;  %v10114_v35 = vld [vmem:[#allocation5 + $0x8b4] ss:$8 sps:$4 sm:$0xff]  }
 0xca0   : > { %v10123_v50 = vld [vmem:[#allocation5 + $0x314] ss:$8 sps:$4 sm:$0xff]  }
 0xca2   : > { %6601 = vmatpush1.bf16.msra.mxu1 %v10095_v8  ;;  %8779 = vmatmul.mubr.msk.bf16.vlgmr.msra.gmra.mrb[92].mxu0 %vm870_vm0, %v9744_v36  ;;  %v10122_v36 = vld [vmem:[#allocation5 + $0x8e4] ss:$8 sps:$4 sm:$0xff]   ;;  %v10124_v8 = vld [vmem:[#allocation5 + $0x8e0] ss:$8 sps:$4 sm:$0xff]  }
 0xca3   : > { %6602 = vmatprep.subr.bf16.mxu1 %v10096_v4  ;;  %5609 = vmatprep.mubr.bf16.mxu0 %v12330_v0  ;;  %v9747_v4 = vld [vmem:[#allocation14 + $0x28] sm:$0xff]  }
 0xca5   : > { %6478 = vmatmul.mubr.bf16.gmra.mrb[136].mxu1 %v11698_v55 }
 0xca6   : > { %6487 = vmatprep.mubr.bf16.mxu1 %v11708_v5  ;;  %6603 = vmatpush1.bf16.msra.mxu1 %v10097_v26  ;;  %v10125_v26 = vld [vmem:[#allocation5 + $0x310] ss:$8 sps:$4 sm:$0xff]  }
 0xca7   : > { %6604 = vmatprep.subr.bf16.mxu1 %v10098_v34  ;;  %v10127_v34 = vld [vmem:[#allocation5 + $0x324] ss:$8 sps:$4 sm:$0xff]  }
 0xcaa   : > { %6605 = vmatpush1.bf16.msra.mxu1 %v10099_v33  ;;  %8780 = vmatmul.mubr.msk.bf16.gmra.mrb[96].mxu0 %vm870_vm0, %v9745_v39  ;;  %v10126_v39 = vld [vmem:[#allocation5 + $0x8f4] ss:$8 sps:$4 sm:$0xff]   ;;  %v10128_v33 = vld [vmem:[#allocation5 + $0x8f0] ss:$8 sps:$4 sm:$0xff]  }
 0xcab   : > { %6606 = vmatprep.subr.bf16.mxu1 %v10100_v1  ;;  %5754 = vmatprep.mubr.bf16.mxu0 %v12330_v0  ;;  %v10129_v1 = vld [vmem:[#allocation5 + $0x320] ss:$8 sps:$4 sm:$0xff]  }
 0xcad   : > { %6488 = vmatmul.mubr.bf16.gmra.mrb[140].mxu1 %v11706_v45 }
 0xcae   : > { %6497 = vmatprep.mubr.bf16.mxu1 %v11716_v53  ;;  %6607 = vmatpush1.bf16.msra.mxu1 %v10101_v37  ;;  %v10130_v37 = vld [vmem:[#allocation5 + $0x334] ss:$8 sps:$4 sm:$0xff]  }
 0xcaf   : > { %6608 = vmatprep.subr.bf16.mxu1 %v10102_v38  ;;  %v10131_v38 = vld [vmem:[#allocation5 + $0x104] ss:$8 sps:$4 sm:$0xff]  }
 0xcb0   : > { %v5654_v40 = vpop.f32.mrb[84].mxu1 }
 0xcb1   : > { %v5656_v21 = vpop.f32.mrb[85].mxu1 }
 0xcb2   : > { %v5658_v41 = vpop.f32.mrb[86].mxu1  ;;  %6609 = vmatpush1.bf16.msra.mxu1 %v10103_v22  ;;  %v10135_v22 = vld [vmem:[#allocation5 + $0x344] ss:$8 sps:$4 sm:$0xff]  }
 0xcb3   : > { %v5698_v43 = vpack.c.bf16 %v5658_v41, %v5654_v40  ;;  %v5660_v23 = vpop.f32.mrb[87].mxu1  ;;  %6610 = vmatprep.subr.bf16.mxu1 %v10104_v11  ;;  %v10132_v40 = vld [vmem:[#allocation5 + $0x100] ss:$8 sps:$4 sm:$0xff]   ;;  %v10134_v41 = vld [vmem:[#allocation5 + $0x114] ss:$8 sps:$4 sm:$0xff]  }
 0xcb4   : > { %v5699_v44 = vpack.c.bf16 %v5660_v23, %v5656_v21  ;;  %v10133_v21 = vld [vmem:[#allocation5 + $0x330] ss:$8 sps:$4 sm:$0xff]   ;;  %v10137_v23 = vld [vmem:[#allocation5 + $0x340] ss:$8 sps:$4 sm:$0xff]   ;;  %v10138_v11 = vld [vmem:[#allocation5 + $0x124] ss:$8 sps:$4 sm:$0xff]  }
 0xcb5   : > { %6498 = vmatmul.mubr.bf16.gmra.mrb[144].mxu1 %v11714_v18 }
 0xcb6   : > { %5722 = vmatprep.subr.bf16.mxu0 %v5699_v44  ;;  %6611 = vmatpush1.bf16.msra.mxu1 %v10105_v7  ;;  %v10139_v44 = vld [vmem:[#allocation5 + $0x354] ss:$8 sps:$4 sm:$0xff]   ;;  %v10140_v7 = vld [vmem:[#allocation5 + $0x120] ss:$8 sps:$4 sm:$0xff]  }
 0xcb7   : > { %6630 = vmatprep.mubr.bf16.mxu1 %v11692_v17  ;;  %5723 = vmatpush1.bf16.msra.mxu0 %v5698_v43  ;;  %v10136_v43 = vld [vmem:[#allocation5 + $0x110] ss:$8 sps:$4 sm:$0xff]  }
 0xcb8   : > { %v5664_v12 = vpop.f32.mrb[88].mxu1  ;;  %6612 = vmatprep.subr.bf16.mxu1 %v10106_v10  ;;  %v10142_v10 = vld [vmem:[#allocation5 + $0x134] ss:$8 sps:$4 sm:$0xff]  }
 0xcb9   : > { %v5666_v13 = vpop.f32.mrb[89].mxu1 }
 0xcba   : > { %v5668_v14 = vpop.f32.mrb[90].mxu1  ;;  %6613 = vmatpush1.bf16.msra.mxu1 %v10107_v30  ;;  %v10145_v30 = vld [vmem:[#allocation5 + $0x360] ss:$8 sps:$4 sm:$0xff]  }
 0xcbb   : > { %v5700_v32 = vpack.c.bf16 %v5668_v14, %v5664_v12  ;;  %v5670_v3 = vpop.f32.mrb[91].mxu1  ;;  %6614 = vmatprep.subr.bf16.mxu1 %v10108_v9  ;;  %v10141_v12 = vld [vmem:[#allocation5 + $0x350] ss:$8 sps:$4 sm:$0xff]   ;;  %v10148_v9 = vld [vmem:[#allocation5 + $0x140] ss:$8 sps:$4 sm:$0xff]  }
 0xcbc   : > { %v5701_v20 = vpack.c.bf16 %v5670_v3, %v5666_v13  ;;  %v10143_v13 = vld [vmem:[#allocation5 + $0x364] ss:$8 sps:$4 sm:$0xff]   ;;  %v10144_v14 = vld [vmem:[#allocation5 + $0x130] ss:$8 sps:$4 sm:$0xff]   ;;  %v10147_v3 = vld [vmem:[#allocation5 + $0x374] ss:$8 sps:$4 sm:$0xff]  }
 0xcbe   : > { %5724 = vmatprep.subr.bf16.mxu0 %v5701_v20  ;;  %6615 = vmatpush1.bf16.msra.mxu1 %v10109_v46  ;;  %v10149_v20 = vld [vmem:[#allocation5 + $0x370] ss:$8 sps:$4 sm:$0xff]   ;;  %v10150_v46 = vld [vmem:[#allocation5 + $0x154] ss:$8 sps:$4 sm:$0xff]  }
 0xcbf   : > { %5725 = vmatpush1.bf16.msra.mxu0 %v5700_v32  ;;  %6616 = vmatprep.subr.bf16.mxu1 %v10110_v47  ;;  %v10146_v32 = vld [vmem:[#allocation5 + $0x144] ss:$8 sps:$4 sm:$0xff]  }
 0xcc0   : > { %v5674_v52 = vpop.f32.mrb[92].mxu1 }
 0xcc1   : > { %v5676_v48 = vpop.f32.mrb[93].mxu1 }
 0xcc2   : > { %v5678_v24 = vpop.f32.mrb[94].mxu1  ;;  %6617 = vmatpush1.bf16.msra.mxu1 %v10111_v51  ;;  %v10152_v51 = vld [vmem:[#allocation5 + $0x150] ss:$8 sps:$4 sm:$0xff]  }
 0xcc3   : > { %v5702_v49 = vpack.c.bf16 %v5678_v24, %v5674_v52  ;;  %v5680_v29 = vpop.f32.mrb[95].mxu1  ;;  %6618 = vmatprep.subr.bf16.mxu1 %v10112_v57  ;;  %v10151_v52 = vld [vmem:[#allocation5 + $0x384] ss:$8 sps:$4 sm:$0xff]  }
 0xcc4   : > { %v5703_v19 = vpack.c.bf16 %v5680_v29, %v5676_v48  ;;  %v10153_v29 = vld [vmem:[#allocation5 + $0x380] ss:$8 sps:$4 sm:$0xff]  }
 0xcc6   : > { %5726 = vmatprep.subr.bf16.mxu0 %v5703_v19  ;;  %6619 = vmatpush1.bf16.msra.mxu1 %v10113_v56  ;;  %v10154_v19 = vld [vmem:[#allocation5 + $0x164] ss:$8 sps:$4 sm:$0xff]  }
 0xcc7   : > { %5727 = vmatpush1.bf16.msra.mxu0 %v5702_v49  ;;  %6620 = vmatprep.subr.bf16.mxu1 %v10114_v35  ;;  %v10155_v35 = vld [vmem:[#allocation5 + $0x394] ss:$8 sps:$4 sm:$0xff]  }
 0xcc8   : > { %v5684_v62 = vpop.f32.mrb[96].mxu1 }
 0xcc9   : > { %v5686_v63 = vpop.f32.mrb[97].mxu1 }
 0xcca   : > { %v5688_v42 = vpop.f32.mrb[98].mxu1  ;;  %6621 = vmatpush1.bf16.msra.mxu1 %v10115_v2 }
 0xccb   : > { %v5704_v16 = vpack.c.bf16 %v5688_v42, %v5684_v62  ;;  %v5690_v28 = vpop.f32.mrb[99].mxu1  ;;  %6622 = vmatprep.subr.bf16.mxu1 %v10116_v60  ;;  %v10156_v62 = vld [vmem:[#allocation5 + $0x160] ss:$8 sps:$4 sm:$0xff]   ;;  %v10158_v42 = vld [vmem:[#allocation5 + $0x174] ss:$8 sps:$4 sm:$0xff]  }
 0xccc   : > { %v5705_v61 = vpack.c.bf16 %v5690_v28, %v5686_v63  ;;  %v10157_v63 = vld [vmem:[#allocation5 + $0x390] ss:$8 sps:$4 sm:$0xff]  }
 0xcce   : > { %5728 = vmatprep.subr.bf16.mxu0 %v5705_v61  ;;  %6623 = vmatpush1.bf16.msra.mxu1 %v10117_v27  ;;  %v10160_v61 = vld [vmem:[#allocation5 + $0x170] ss:$8 sps:$4 sm:$0xff]  }
 0xccf   : > { %5729 = vmatpush1.bf16.msra.mxu0 %v5704_v16  ;;  %6624 = vmatprep.subr.bf16.mxu1 %v10118_v58  ;;  %v10159_v16 = vld [vmem:[#allocation5 + $0x3a4] ss:$8 sps:$4 sm:$0xff]  }
 0xcd0   : > { %5783 = vmatprep.subr.bf16.mxu0 %v10119_v25  ;;  %v10162_v25 = vld [vmem:[#allocation5 + $0x184] ss:$8 sps:$4 sm:$0xff]  }
 0xcd2   : > { %8783 = vmatmul.mubr.msk.bf16.vlgmr.msra.gmra.mrb[92].mxu0 %vm870_vm0, %v9746_v31  ;;  %6625 = vmatpush1.bf16.msra.mxu1 %v10120_v54  ;;  %v10161_v31 = vld [vmem:[#allocation5 + $0x3a0] ss:$8 sps:$4 sm:$0xff]  }
 0xcd3   : > { %5784 = vmatpush1.bf16.msra.mxu0 %v10121_v59  ;;  %6626 = vmatprep.subr.bf16.mxu1 %v10122_v36  ;;  %v10163_v59 = vld [vmem:[#allocation5 + $0x3b4] ss:$8 sps:$4 sm:$0xff]   ;;  %v10164_v36 = vld [vmem:[#allocation5 + $0x180] ss:$8 sps:$4 sm:$0xff]  }
 0xcd4   : > { %5785 = vmatprep.subr.bf16.mxu0 %v10123_v50  ;;  %5764 = vmatprep.mubr.bf16.mxu0 %v12330_v0  ;;  %v10165_v50 = vld [vmem:[#allocation5 + $0x3b0] ss:$8 sps:$4 sm:$0xff]  }
 0xcd6   : > { %6627 = vmatpush1.bf16.msra.mxu1 %v10124_v8  ;;  %v10166_v8 = vld [vmem:[#allocation5 + $0x194] ss:$8 sps:$4 sm:$0xff]  }
 0xcd7   : > { %5786 = vmatpush1.bf16.msra.mxu0 %v10125_v26  ;;  %6628 = vmatprep.subr.bf16.mxu1 %v10126_v39  ;;  %v10167_v26 = vld [vmem:[#allocation5 + $0x3c4] ss:$8 sps:$4 sm:$0xff]  }
 0xcd8   : > { %5787 = vmatprep.subr.bf16.mxu0 %v10127_v34 }
 0xcda   : > { %8784 = vmatmul.mubr.msk.bf16.gmra.mrb[96].mxu0 %vm870_vm0, %v9747_v4  ;;  %6629 = vmatpush1.bf16.msra.mxu1 %v10128_v33  ;;  %v10168_v33 = vld [vmem:[#allocation5 + $0x190] ss:$8 sps:$4 sm:$0xff]  }
 0xcdb   : > { %5788 = vmatpush1.bf16.msra.mxu0 %v10129_v1  ;;  %5815 = vmatprep.mubr.bf16.mxu0 %v11692_v17 }
 0xcdc   : > { %5789 = vmatprep.subr.bf16.mxu0 %v10130_v37  ;;  %6898 = vmatprep.subr.bf16.mxu1 %v10131_v38  ;;  %v10169_v37 = vld [vmem:[#allocation5 + $0x3c0] ss:$8 sps:$4 sm:$0xff]  }
 0xcdd   : > { %6631 = vmatmul.mubr.bf16.vlgmr.msra.gmra.mrb[148].mxu1 %v11690_v6 }
 0xcde   : > { %6640 = vmatprep.mubr.bf16.mxu1 %v11700_v15  ;;  %6899 = vmatpush1.bf16.msra.mxu1 %v10132_v40  ;;  %v10170_v40 = vld [vmem:[#allocation5 + $0x1a4] ss:$8 sps:$4 sm:$0xff]  }
 0xcdf   : > { %5790 = vmatpush1.bf16.msra.mxu0 %v10133_v21  ;;  %6900 = vmatprep.subr.bf16.mxu1 %v10134_v41  ;;  %v10171_v41 = vld [vmem:[#allocation5 + $0x3d4] ss:$8 sps:$4 sm:$0xff]  }
 0xce0   : > { %5791 = vmatprep.subr.bf16.mxu0 %v10135_v22  ;;  %v10172_v22 = vld [vmem:[#allocation5 + $0x1a0] ss:$8 sps:$4 sm:$0xff]  }
 0xce2   : > { %6901 = vmatpush1.bf16.msra.mxu1 %v10136_v43  ;;  %v10173_v43 = vld [vmem:[#allocation5 + $0x3d0] ss:$8 sps:$4 sm:$0xff]  }
 0xce3   : > { %5792 = vmatpush1.bf16.msra.mxu0 %v10137_v23  ;;  %6902 = vmatprep.subr.bf16.mxu1 %v10138_v11  ;;  %v10174_v23 = vld [vmem:[#allocation5 + $0x1b4] ss:$8 sps:$4 sm:$0xff]  }
 0xce4   : > { %5793 = vmatprep.subr.bf16.mxu0 %v10139_v44  ;;  %v10175_v44 = vld [vmem:[#allocation5 + $0x3e4] ss:$8 sps:$4 sm:$0xff]  }
 0xce5   : > { %6641 = vmatmul.mubr.bf16.gmra.mrb[152].mxu1 %v11698_v55 }
 0xce6   : > { %6650 = vmatprep.mubr.bf16.mxu1 %v11708_v5  ;;  %6903 = vmatpush1.bf16.msra.mxu1 %v10140_v7 }
 0xce7   : > { %5794 = vmatpush1.bf16.msra.mxu0 %v10141_v12  ;;  %6904 = vmatprep.subr.bf16.mxu1 %v10142_v10  ;;  %v10176_v10 = vld [vmem:[#allocation5 + $0x1b0] ss:$8 sps:$4 sm:$0xff]  }
 0xce8   : > { %5795 = vmatprep.subr.bf16.mxu0 %v10143_v13 }
 0xcea   : > { %6905 = vmatpush1.bf16.msra.mxu1 %v10144_v14  ;;  %v10177_v14 = vld [vmem:[#allocation5 + $0x3e0] ss:$8 sps:$4 sm:$0xff]  }
 0xceb   : > { %5796 = vmatpush1.bf16.msra.mxu0 %v10145_v30  ;;  %6906 = vmatprep.subr.bf16.mxu1 %v10146_v32  ;;  %v10178_v32 = vld [vmem:[#allocation5 + $0x1c4] ss:$8 sps:$4 sm:$0xff]  }
 0xcec   : > { %5797 = vmatprep.subr.bf16.mxu0 %v10147_v3 }
 0xced   : > { %6651 = vmatmul.mubr.bf16.gmra.mrb[156].mxu1 %v11706_v45 }
 0xcee   : > { %6660 = vmatprep.mubr.bf16.mxu1 %v11716_v53  ;;  %6907 = vmatpush1.bf16.msra.mxu1 %v10148_v9  ;;  %v10179_v9 = vld [vmem:[#allocation5 + $0x3f4] ss:$8 sps:$4 sm:$0xff]  }
 0xcef   : > { %5798 = vmatpush1.bf16.msra.mxu0 %v10149_v20  ;;  %6908 = vmatprep.subr.bf16.mxu1 %v10150_v46  ;;  %v10180_v20 = vld [vmem:[#allocation5 + $0x1c0] ss:$8 sps:$4 sm:$0xff]   ;;  %v10181_v46 = vld [vmem:[#allocation5 + $0x3f0] ss:$8 sps:$4 sm:$0xff]  }
 0xcf0   : > { %v11807_v47 = vpop.f32.mrb[100].mxu1  ;;  %5799 = vmatprep.subr.bf16.mxu0 %v10151_v52  ;;  %v10182_v52 = vld [vmem:[#allocation5 + $0x1d4] ss:$8 sps:$4 sm:$0xff]  }
 0xcf1   : > { %v11809_v48 = vpop.f32.mrb[101].mxu1 }
 0xcf2   : > { %v11811_v24 = vpop.f32.mrb[102].mxu1  ;;  %6909 = vmatpush1.bf16.msra.mxu1 %v10152_v51  ;;  %v10183_v51 = vld [vmem:[#allocation5 + $0x1d0] ss:$8 sps:$4 sm:$0xff]  }
 0xcf3   : > { %5800 = vmatpush1.bf16.msra.mxu0 %v10153_v29  ;;  %v11815_v57 = vpop.f32.mrb[103].mxu1  ;;  %6910 = vmatprep.subr.bf16.mxu1 %v10154_v19  ;;  %v10184_v29 = vld [vmem:[#allocation5 + $0x1e4] ss:$8 sps:$4 sm:$0xff]   ;;  %v10185_v19 = vld [vmem:[#allocation5 + $0x1e0] ss:$8 sps:$4 sm:$0xff]  }
 0xcf4   : > { %5801 = vmatprep.subr.bf16.mxu0 %v10155_v35  ;;  %v10186_v35 = vld [vmem:[#allocation5 + $0x1f4] ss:$8 sps:$4 sm:$0xff]  }
 0xcf5   : > { %6661 = vmatmul.mubr.bf16.gmra.mrb[160].mxu1 %v11714_v18 }
 0xcf6   : > { %6911 = vmatpush1.bf16.msra.mxu1 %v10156_v62  ;;  %v10187_v62 = vld [vmem:[#allocation5 + $0x1f0] ss:$8 sps:$4 sm:$0xff]  }
 0xcf7   : > { %5802 = vmatpush1.bf16.msra.mxu0 %v10157_v63  ;;  %6912 = vmatprep.subr.bf16.mxu1 %v10158_v42  ;;  %v10188_v63 = vld [vmem:[#allocation5 + $0x204] ss:$8 sps:$4 sm:$0xff]  }
 0xcf8   : > { %v11820_v2 = vpop.f32.mrb[104].mxu1  ;;  %5803 = vmatprep.subr.bf16.mxu0 %v10159_v16 }
 0xcf9   : > { %v11822_v28 = vpop.f32.mrb[105].mxu1 }
 0xcfa   : > { %v11824_v60 = vpop.f32.mrb[106].mxu1  ;;  %6913 = vmatpush1.bf16.msra.mxu1 %v10160_v61 }
 0xcfb   : > { %5804 = vmatpush1.bf16.msra.mxu0 %v10161_v31  ;;  %v11828_v58 = vpop.f32.mrb[107].mxu1  ;;  %6914 = vmatprep.subr.bf16.mxu1 %v10162_v25 }
 0xcfc   : > { %5805 = vmatprep.subr.bf16.mxu0 %v10163_v59 }
 0xcfe   : > { %6915 = vmatpush1.bf16.msra.mxu1 %v10164_v36 }
 0xcff   : > { %5806 = vmatpush1.bf16.msra.mxu0 %v10165_v50  ;;  %6916 = vmatprep.subr.bf16.mxu1 %v10166_v8 }
 0xd00   : > { %v11832_v4 = vpop.f32.mrb[108].mxu1  ;;  %5807 = vmatprep.subr.bf16.mxu0 %v10167_v26 }
 0xd01   : > { %v11834_v39 = vpop.f32.mrb[109].mxu1 }
 0xd02   : > { %v11836_v34 = vpop.f32.mrb[110].mxu1  ;;  %6917 = vmatpush1.bf16.msra.mxu1 %v10168_v33 }
 0xd03   : > { %5808 = vmatpush1.bf16.msra.mxu0 %v10169_v37  ;;  %v11840_v38 = vpop.f32.mrb[111].mxu1  ;;  %6918 = vmatprep.subr.bf16.mxu1 %v10170_v40 }
 0xd04   : > { %5809 = vmatprep.subr.bf16.mxu0 %v10171_v41 }
 0xd06   : > { %6919 = vmatpush1.bf16.msra.mxu1 %v10172_v22 }
 0xd07   : > { %5810 = vmatpush1.bf16.msra.mxu0 %v10173_v43  ;;  %6920 = vmatprep.subr.bf16.mxu1 %v10174_v23 }
 0xd08   : > { %v11844_v11 = vpop.f32.mrb[112].mxu1  ;;  %5811 = vmatprep.subr.bf16.mxu0 %v10175_v44 }
 0xd09   : > { %v11846_v7 = vpop.f32.mrb[113].mxu1 }
 0xd0a   : > { %v11848_v12 = vpop.f32.mrb[114].mxu1  ;;  %6921 = vmatpush1.bf16.msra.mxu1 %v10176_v10 }
 0xd0b   : > { %5812 = vmatpush1.bf16.msra.mxu0 %v10177_v14  ;;  %v11852_v30 = vpop.f32.mrb[115].mxu1  ;;  %6922 = vmatprep.subr.bf16.mxu1 %v10178_v32 }
 0xd0c   : > { %5813 = vmatprep.subr.bf16.mxu0 %v10179_v9 }
 0xd0e   : > { %6923 = vmatpush1.bf16.msra.mxu1 %v10180_v20 }
 0xd0f   : > { %5814 = vmatpush1.bf16.msra.mxu0 %v10181_v46  ;;  %6924 = vmatprep.subr.bf16.mxu1 %v10182_v52 }
 0xd12   : > { %5816 = vmatmul.mubr.bf16.vlgmr.msra.gmra.mrb[100].mxu0 %v11690_v6  ;;  %6925 = vmatpush1.bf16.msra.mxu1 %v10183_v51 }
 0xd13   : > { %5825 = vmatprep.mubr.bf16.mxu0 %v11700_v15  ;;  %6926 = vmatprep.subr.bf16.mxu1 %v10184_v29 }
 0xd16   : > { %6927 = vmatpush1.bf16.msra.mxu1 %v10185_v19 }
 0xd17   : > { %6928 = vmatprep.subr.bf16.mxu1 %v10186_v35 }
 0xd1a   : > { %5826 = vmatmul.mubr.bf16.gmra.mrb[104].mxu0 %v11698_v55  ;;  %6929 = vmatpush1.bf16.msra.mxu1 %v10187_v62 }
 0xd1b   : > { %5835 = vmatprep.mubr.bf16.mxu0 %v11708_v5  ;;  %7098 = vmatprep.subr.bf16.mxu1 %v10188_v63 }
 0xd22   : > { %5836 = vmatmul.mubr.bf16.gmra.mrb[108].mxu0 %v11706_v45 }
 0xd23   : > { %5845 = vmatprep.mubr.bf16.mxu0 %v11716_v53 }
 0xd2a   : > { %5846 = vmatmul.mubr.bf16.gmra.mrb[112].mxu0 %v11714_v18 }
 0xd2b   : > { %5917 = vmatprep.mubr.bf16.mxu0 %v12330_v0 }
 0xd30   : > { %v11864_v42 = vpop.f32.mrb[116].mxu1 }
 0xd31   : > { %v11866_v16 = vpop.f32.mrb[117].mxu1 }
 0xd32   : > { %v11868_v61 = vpop.f32.mrb[118].mxu1 }
 0xd33   : > { %v11872_v25 = vpop.f32.mrb[119].mxu1 }
 0xd38   : > { %v11876_v36 = vpop.f32.mrb[120].mxu1 }
 0xd39   : > { %v11878_v50 = vpop.f32.mrb[121].mxu1 }
 0xd3a   : > { %v11880_v8 = vpop.f32.mrb[122].mxu1 }
 0xd3b   : > { %v11884_v33 = vpop.f32.mrb[123].mxu1 }
 0xd40   : > { %v11888_v40 = vpop.f32.mrb[124].mxu1 }
 0xd41   : > { %v11890_v41 = vpop.f32.mrb[125].mxu1 }
 0xd42   : > { %v11892_v22 = vpop.f32.mrb[126].mxu1 }
 0xd43   : > { %v11896_v23 = vpop.f32.mrb[127].mxu1 }
 0xd48   : > { %v11900_v10 = vpop.f32.mrb[128].mxu1 }
 0xd49   : > { %v11902_v14 = vpop.f32.mrb[129].mxu1 }
 0xd4a   : > { %v11904_v32 = vpop.f32.mrb[130].mxu1 }
 0xd4b   : > { %v11908_v20 = vpop.f32.mrb[131].mxu1 }
 0xd70   : > { %v11912_v52 = vpop.f32.mrb[132].mxu1 }
 0xd71   : > { %v11914_v51 = vpop.f32.mrb[133].mxu1 }
 0xd72   : > { %v11916_v29 = vpop.f32.mrb[134].mxu1 }
 0xd73   : > { %v11920_v35 = vpop.f32.mrb[135].mxu1 }
 0xd78   : > { %v11924_v63 = vpop.f32.mrb[136].mxu1 }
 0xd79   : > { %12398 = vst [vmem:[#allocation23_spill] sm:$0xff] %v11924_v63  ;;  %v11926_v9 = vpop.f32.mrb[137].mxu1 }
 0xd7a   : > { %v11928_v43 = vpop.f32.mrb[138].mxu1 }
 0xd7b   : > { %12399 = vst [vmem:[#allocation24_spill] sm:$0xff] %v11928_v43  ;;  %v11932_v44 = vpop.f32.mrb[139].mxu1 }
 0xd80   : > { %v11936_v19 = vpop.f32.mrb[140].mxu1 }
 0xd81   : > { %12400 = vst [vmem:[#allocation25_spill] sm:$0xff] %v11936_v19  ;;  %v11938_v37 = vpop.f32.mrb[141].mxu1 }
 0xd82   : > { %12401 = vst [vmem:[#allocation26_spill] sm:$0xff] %v11938_v37  ;;  %v11940_v31 = vpop.f32.mrb[142].mxu1 }
 0xd83   : > { %12402 = vst [vmem:[#allocation27_spill] sm:$0xff] %v11940_v31  ;;  %v11944_v59 = vpop.f32.mrb[143].mxu1 }
 0xd84   : > { %12403 = vst [vmem:[#allocation28_spill] sm:$0xff] %v11944_v59 }
 0xd88   : > { %v11948_v46 = vpop.f32.mrb[144].mxu1 }
 0xd89   : > { %12404 = vst [vmem:[#allocation29_spill] sm:$0xff] %v11948_v46  ;;  %v11950_v3 = vpop.f32.mrb[145].mxu1 }
 0xd8a   : > { %12405 = vst [vmem:[#allocation30_spill] sm:$0xff] %v11950_v3  ;;  %v11952_v1 = vpop.f32.mrb[146].mxu1 }
 0xd8b   : > { %12406 = vst [vmem:[#allocation31_spill] sm:$0xff] %v11952_v1  ;;  %v11956_v21 = vpop.f32.mrb[147].mxu1 }
 0xd8c   : > { %12407 = vst [vmem:[#allocation32_spill] sm:$0xff] %v11956_v21 }
 0xdb0   : > { %v11960_v62 = vpop.f32.mrb[148].mxu1 }
 0xdb1   : > { %12408 = vst [vmem:[#allocation33_spill] sm:$0xff] %v11960_v62  ;;  %v11962_v54 = vpop.f32.mrb[149].mxu1 }
 0xdb2   : > { %12409 = vst [vmem:[#allocation34_spill] sm:$0xff] %v11962_v54  ;;  %v11964_v0 = vpop.f32.mrb[150].mxu1 }
 0xdb3   : > { %12410 = vst [vmem:[#allocation35_spill] sm:$0xff] %v11964_v0  ;;  %v11968_v49 = vpop.f32.mrb[151].mxu1 }
 0xdb4   : > { %12411 = vst [vmem:[#allocation36_spill] sm:$0xff] %v11968_v49 }
 0xdb8   : > { %v11972_v26 = vpop.f32.mrb[152].mxu1 }
 0xdb9   : > { %12412 = vst [vmem:[#allocation37_spill] sm:$0xff] %v11972_v26  ;;  %v11974_v46 = vpop.f32.mrb[153].mxu1 }
 0xdba   : > { %12413 = vst [vmem:[#allocation38_spill] sm:$0xff] %v11974_v46  ;;  %v11976_v1 = vpop.f32.mrb[154].mxu1 }
 0xdbb   : > { %12414 = vst [vmem:[#allocation39_spill] sm:$0xff] %v11976_v1  ;;  %v11980_v3 = vpop.f32.mrb[155].mxu1 }
 0xdbc   : > { %12415 = vst [vmem:[#allocation40_spill] sm:$0xff] %v11980_v3 }
 0xdc0   : > { %v11984_v13 = vpop.f32.mrb[156].mxu1 }
 0xdc1   : > { %12416 = vst [vmem:[#allocation41_spill] sm:$0xff] %v11984_v13  ;;  %v11986_v62 = vpop.f32.mrb[157].mxu1 }
 0xdc2   : > { %12417 = vst [vmem:[#allocation42_spill] sm:$0xff] %v11986_v62  ;;  %v11988_v0 = vpop.f32.mrb[158].mxu1 }
 0xdc3   : > { %12418 = vst [vmem:[#allocation43_spill] sm:$0xff] %v11988_v0  ;;  %v11992_v54 = vpop.f32.mrb[159].mxu1 }
 0xdc4   : > { %12419 = vst [vmem:[#allocation44_spill] sm:$0xff] %v11992_v54 }
 0xdc8   : > { %v11996_v27 = vpop.f32.mrb[160].mxu1 }
 0xdc9   : > { %12420 = vst [vmem:[#allocation45_spill] sm:$0xff] %v11996_v27  ;;  %v11998_v26 = vpop.f32.mrb[161].mxu1 }
 0xdca   : > { %12421 = vst [vmem:[#allocation46_spill] sm:$0xff] %v11998_v26  ;;  %v12000_v1 = vpop.f32.mrb[162].mxu1 }
 0xdcb   : > { %12422 = vst [vmem:[#allocation47_spill] sm:$0xff] %v12000_v1  ;;  %v12004_v46 = vpop.f32.mrb[163].mxu1 }
 0xdcc   : > { %12423 = vst [vmem:[#allocation48_spill] sm:$0xff] %v12004_v46 }
 0xde5   : > { %v5817_v56 = vpop.f32.mrb[100].mxu0 }
 0xde6   : > { %v5819_v13 = vpop.f32.mrb[101].mxu0 }
 0xde7   : > { %v5821_v0 = vpop.f32.mrb[102].mxu0 }
 0xde8   : > { %v5861_v19 = vpack.c.bf16 %v5821_v0, %v5817_v56  ;;  %v5823_v31 = vpop.f32.mrb[103].mxu0 }
 0xde9   : > { %v5862_v49 = vpack.c.bf16 %v5823_v31, %v5819_v13 }
 0xdeb   : > { %5885 = vmatprep.subr.bf16.mxu0 %v5862_v49 }
 0xdec   : > { %5886 = vmatpush1.bf16.msra.mxu0 %v5861_v19 }
 0xded   : > { %v5827_v62 = vpop.f32.mrb[104].mxu0 }
 0xdee   : > { %v5829_v54 = vpop.f32.mrb[105].mxu0 }
 0xdef   : > { %v5831_v37 = vpop.f32.mrb[106].mxu0 }
 0xdf0   : > { %v5863_v59 = vpack.c.bf16 %v5831_v37, %v5827_v62  ;;  %v5833_v63 = vpop.f32.mrb[107].mxu0  ;;  %v9748_v37 = vld [vmem:[#allocation14 + $0x30] sm:$0xff]  }
 0xdf1   : > { %v5864_v43 = vpack.c.bf16 %v5833_v63, %v5829_v54  ;;  %v12424_v54 = vpack.c.bf16 %v11815_v57, %v11809_v48  ;;  %v12429_v48 = vpack.c.bf16 %v11840_v38, %v11834_v39  ;;  %v9750_v57 = vld [vmem:[#allocation14 + $0x40] sm:$0xff]   ;;  %v12436_v39 = vpack.c.bf16 %v11880_v8, %v11876_v36  ;;  %v10193_v36 = vld [vmem:[#allocation5 + $0x624] ss:$8 sps:$4 sm:$0xff]   ;;  %v10210_v63 = vld [vmem:[#allocation5 + $0x6a0] ss:$8 sps:$4 sm:$0xff]  }
 0xdf2   : > { %v12438_v38 = vpack.c.bf16 %v11892_v22, %v11888_v40  ;;  %v10195_v8 = vld [vmem:[#allocation5 + $0x634] ss:$8 sps:$4 sm:$0xff]   ;;  %v10198_v40 = vld [vmem:[#allocation5 + $0x640] ss:$8 sps:$4 sm:$0xff]   ;;  %v10200_v22 = vld [vmem:[#allocation5 + $0x650] ss:$8 sps:$4 sm:$0xff]  }
 0xdf3   : > { %5887 = vmatprep.subr.bf16.mxu0 %v5864_v43  ;;  %v10201_v43 = vld [vmem:[#allocation5 + $0x664] ss:$8 sps:$4 sm:$0xff]  }
 0xdf4   : > { %5888 = vmatpush1.bf16.msra.mxu0 %v5863_v59  ;;  %v12428_v59 = vpack.c.bf16 %v11824_v60, %v11820_v2  ;;  %v12432_v2 = vpack.c.bf16 %v11848_v12, %v11844_v11  ;;  %v12434_v60 = vpack.c.bf16 %v11868_v61, %v11864_v42  ;;  %v12439_v11 = vpack.c.bf16 %v11908_v20, %v11902_v14  ;;  %v10190_v42 = vld [vmem:[#allocation5 + $0x600] ss:$8 sps:$4 sm:$0xff]   ;;  %v10204_v14 = vld [vmem:[#allocation5 + $0x670] ss:$8 sps:$4 sm:$0xff]   ;;  %v10207_v20 = vld [vmem:[#allocation5 + $0x694] ss:$8 sps:$4 sm:$0xff]  }
 0xdf5   : > { %v5837_v21 = vpop.f32.mrb[108].mxu0  ;;  %v12440_v12 = vpack.c.bf16 %v11904_v32, %v11900_v10  ;;  %v9753_v61 = vld [vmem:[#allocation14 + $0x58] sm:$0xff]   ;;  %v10203_v10 = vld [vmem:[#allocation5 + $0x674] ss:$8 sps:$4 sm:$0xff]  }
 0xdf6   : > { %v5839_v27 = vpop.f32.mrb[109].mxu0  ;;  %v10206_v32 = vld [vmem:[#allocation5 + $0x680] ss:$8 sps:$4 sm:$0xff]   ;;  %v10209_v62 = vld [vmem:[#allocation5 + $0x6a4] ss:$8 sps:$4 sm:$0xff]  }
 0xdf7   : > { %v5841_v1 = vpop.f32.mrb[110].mxu0 }
 0xdf8   : > { %v5865_v3 = vpack.c.bf16 %v5841_v1, %v5837_v21  ;;  %v5843_v26 = vpop.f32.mrb[111].mxu0  ;;  %v12426_v1 = vmov 0   ;;  %v12427_v21 = vpack.c.bf16 %v11828_v58, %v11822_v28  ;;  %v12433_v28 = vpack.c.bf16 %v11872_v25, %v11866_v16  ;;  %v10191_v16 = vld [vmem:[#allocation5 + $0x614] ss:$8 sps:$4 sm:$0xff]   ;;  %v10192_v25 = vld [vmem:[#allocation5 + $0x610] ss:$8 sps:$4 sm:$0xff]  }
 0xdf9   : > { %v5866_v46 = vpack.c.bf16 %v5843_v26, %v5839_v27  ;;  %v12425_v27 = vpack.c.bf16 %v11811_v24, %v11807_v47  ;;  %v12430_v47 = vpack.c.bf16 %v11836_v34, %v11832_v4  ;;  %v12431_v24 = vpack.c.bf16 %v11852_v30, %v11846_v7  ;;  %v9751_v4 = vld [vmem:[#allocation14 + $0x48] sm:$0xff]   ;;  %v9752_v7 = vld [vmem:[#allocation14 + $0x50] sm:$0xff]  }
 0xdfa   : > { %v12435_v58 = vpack.c.bf16 %v11884_v33, %v11878_v50  ;;  %v12437_v34 = vpack.c.bf16 %v11896_v23, %v11890_v41  ;;  %v10189_v30 = vld [vmem:[#allocation5 + $0x604] ss:$8 sps:$4 sm:$0xff]   ;;  %v10194_v50 = vld [vmem:[#allocation5 + $0x620] ss:$8 sps:$4 sm:$0xff]   ;;  %v10196_v26 = vld [vmem:[#allocation5 + $0x630] ss:$8 sps:$4 sm:$0xff]  }
 0xdfb   : > { %5889 = vmatprep.subr.bf16.mxu0 %v5866_v46  ;;  %v10197_v33 = vld [vmem:[#allocation5 + $0x644] ss:$8 sps:$4 sm:$0xff]   ;;  %v10199_v41 = vld [vmem:[#allocation5 + $0x654] ss:$8 sps:$4 sm:$0xff]   ;;  %v10202_v23 = vld [vmem:[#allocation5 + $0x660] ss:$8 sps:$4 sm:$0xff]  }
 0xdfc   : > { %5890 = vmatpush1.bf16.msra.mxu0 %v5865_v3  ;;  %v9749_v3 = vld [vmem:[#allocation14 + $0x38] sm:$0xff]  }
 0xdfd   : > { %v5847_v0 = vpop.f32.mrb[112].mxu0  ;;  %v10208_v46 = vld [vmem:[#allocation5 + $0x690] ss:$8 sps:$4 sm:$0xff]  }
 0xdfe   : > { %v5849_v56 = vpop.f32.mrb[113].mxu0 }
 0xdff   : > { %v5851_v49 = vpop.f32.mrb[114].mxu0 }
 0xe00   : > { %v5867_v13 = vpack.c.bf16 %v5851_v49, %v5847_v0  ;;  %v5853_v31 = vpop.f32.mrb[115].mxu0  ;;  %v10211_v0 = vld [vmem:[#allocation5 + $0x6b4] ss:$8 sps:$4 sm:$0xff]   ;;  %v10213_v49 = vld [vmem:[#allocation5 + $0x6c4] ss:$8 sps:$4 sm:$0xff]  }
 0xe01   : > { %v5868_v19 = vpack.c.bf16 %v5853_v31, %v5849_v56  ;;  %v10212_v56 = vld [vmem:[#allocation5 + $0x6b0] ss:$8 sps:$4 sm:$0xff]   ;;  %v10215_v31 = vld [vmem:[#allocation5 + $0x6d4] ss:$8 sps:$4 sm:$0xff]  }
 0xe03   : > { %5891 = vmatprep.subr.bf16.mxu0 %v5868_v19  ;;  %v10216_v19 = vld [vmem:[#allocation5 + $0x6d0] ss:$8 sps:$4 sm:$0xff]  }
 0xe04   : > { %5892 = vmatpush1.bf16.msra.mxu0 %v5867_v13  ;;  %v10214_v13 = vld [vmem:[#allocation5 + $0x6c0] ss:$8 sps:$4 sm:$0xff]  }
 0xe05   : > { %6048 = vmatprep.subr.bf16.mxu0 %v12424_v54  ;;  %v10218_v54 = vld [vmem:[#allocation5 + $0x6e0] ss:$8 sps:$4 sm:$0xff]  }
 0xe07   : > { %8787 = vmatmul.mubr.msk.bf16.vlgmr.msra.gmra.mrb[92].mxu0 %vm870_vm0, %v9748_v37  ;;  %v10217_v37 = vld [vmem:[#allocation5 + $0x6e4] ss:$8 sps:$4 sm:$0xff]  }
 0xe08   : > { %6049 = vmatpush1.bf16.msra.mxu0 %v12425_v27  ;;  %5927 = vmatprep.mubr.bf16.mxu0 %v12426_v1  ;;  %v10219_v27 = vld [vmem:[#allocation5 + $0x6f4] ss:$8 sps:$4 sm:$0xff]  }
 0xe09   : > { %6050 = vmatprep.subr.bf16.mxu0 %v12427_v21  ;;  %v10220_v21 = vld [vmem:[#allocation5 + $0x6f0] ss:$8 sps:$4 sm:$0xff]  }
 0xe0c   : > { %6051 = vmatpush1.bf16.msra.mxu0 %v12428_v59 }
 0xe0d   : > { %6052 = vmatprep.subr.bf16.mxu0 %v12429_v48 }
 0xe0f   : > { %8788 = vmatmul.mubr.msk.bf16.gmra.mrb[96].mxu0 %vm870_vm0, %v9749_v3 }
 0xe10   : > { %6053 = vmatpush1.bf16.msra.mxu0 %v12430_v47  ;;  %6080 = vmatprep.mubr.bf16.mxu0 %v12426_v1 }
 0xe11   : > { %6054 = vmatprep.subr.bf16.mxu0 %v12431_v24 }
 0xe14   : > { %6055 = vmatpush1.bf16.msra.mxu0 %v12432_v2 }
 0xe15   : > { %6211 = vmatprep.subr.bf16.mxu0 %v12433_v28 }
 0xe17   : > { %8791 = vmatmul.mubr.msk.bf16.vlgmr.msra.gmra.mrb[92].mxu0 %vm870_vm0, %v9750_v57 }
 0xe18   : > { %6212 = vmatpush1.bf16.msra.mxu0 %v12434_v60  ;;  %6090 = vmatprep.mubr.bf16.mxu0 %v12426_v1 }
 0xe19   : > { %6213 = vmatprep.subr.bf16.mxu0 %v12435_v58 }
 0xe1c   : > { %6214 = vmatpush1.bf16.msra.mxu0 %v12436_v39 }
 0xe1d   : > { %6215 = vmatprep.subr.bf16.mxu0 %v12437_v34 }
 0xe1f   : > { %8792 = vmatmul.mubr.msk.bf16.gmra.mrb[96].mxu0 %vm870_vm0, %v9751_v4 }
 0xe20   : > { %6216 = vmatpush1.bf16.msra.mxu0 %v12438_v38  ;;  %6243 = vmatprep.mubr.bf16.mxu0 %v12426_v1 }
 0xe21   : > { %6217 = vmatprep.subr.bf16.mxu0 %v12439_v11 }
 0xe24   : > { %6218 = vmatpush1.bf16.msra.mxu0 %v12440_v12 }
 0xe25   : > { %6272 = vmatprep.subr.bf16.mxu0 %v10189_v30  ;;  %v9754_v30 = vld [vmem:[#allocation14 + $0x60] sm:$0xff]  }
 0xe27   : > { %8795 = vmatmul.mubr.msk.bf16.vlgmr.msra.gmra.mrb[92].mxu0 %vm870_vm0, %v9752_v7 }
 0xe28   : > { %6273 = vmatpush1.bf16.msra.mxu0 %v10190_v42  ;;  %6253 = vmatprep.mubr.bf16.mxu0 %v12426_v1  ;;  %v12441_v42 = vpack.c.bf16 %v11920_v35, %v11914_v51  ;;  %v12448_v51 = vld [vmem:[#allocation26_spill] sm:$0xff] }
 0xe29   : > { %6274 = vmatprep.subr.bf16.mxu0 %v10191_v16  ;;  %v12442_v16 = vpack.c.bf16 %v11916_v29, %v11912_v52  ;;  %v12451_v52 = vld [vmem:[#allocation25_spill] sm:$0xff] }
 0xe2c   : > { %6275 = vmatpush1.bf16.msra.mxu0 %v10192_v25  ;;  %v9755_v25 = vld [vmem:[#allocation14 + $0x68] sm:$0xff]  }
 0xe2d   : > { %6276 = vmatprep.subr.bf16.mxu0 %v10193_v36  ;;  %v12444_v36 = vld [vmem:[#allocation24_spill] sm:$0xff] }
 0xe2f   : > { %8796 = vmatmul.mubr.msk.bf16.gmra.mrb[96].mxu0 %vm870_vm0, %v9753_v61  ;;  %v12443_v61 = vpack.c.bf16 %v11932_v44, %v11926_v9  ;;  %v12454_v44 = vld [vmem:[#allocation30_spill] sm:$0xff] }
 0xe30   : > { %6277 = vmatpush1.bf16.msra.mxu0 %v10194_v50  ;;  %6304 = vmatprep.mubr.bf16.mxu0 %v11692_v17  ;;  %v10205_v17 = vld [vmem:[#allocation5 + $0x684] ss:$8 sps:$4 sm:$0xff]   ;;  %v12445_v50 = vld [vmem:[#allocation23_spill] sm:$0xff] }
 0xe31   : > { %6278 = vmatprep.subr.bf16.mxu0 %v10195_v8  ;;  %v12446_v8 = vpack.c.bf16 %v12444_v36, %v12445_v50  ;;  %v10241_v36 = vld [vmem:[#allocation5 + $0xa4] ss:$8 sps:$4 sm:$0xff]   ;;  %v10242_v50 = vld [vmem:[#allocation5 + $0xa0] ss:$8 sps:$4 sm:$0xff]  }
 0xe34   : > { %6279 = vmatpush1.bf16.msra.mxu0 %v10196_v26  ;;  %v12447_v26 = vld [vmem:[#allocation28_spill] sm:$0xff] }
 0xe35   : > { %6280 = vmatprep.subr.bf16.mxu0 %v10197_v33  ;;  %v12449_v35 = vpack.c.bf16 %v12447_v26, %v12448_v51  ;;  %v12450_v33 = vld [vmem:[#allocation27_spill] sm:$0xff]  ;;  %v10245_v51 = vld [vmem:[#allocation5 + $0xc4] ss:$8 sps:$4 sm:$0xff]  }
 0xe36   : > { %v12452_v29 = vpack.c.bf16 %v12450_v33, %v12451_v52  ;;  %v10244_v26 = vld [vmem:[#allocation5 + $0xb0] ss:$8 sps:$4 sm:$0xff]   ;;  %v10247_v33 = vld [vmem:[#allocation5 + $0xd4] ss:$8 sps:$4 sm:$0xff]  }
 0xe37   : > { %v10248_v52 = vld [vmem:[#allocation5 + $0xd0] ss:$8 sps:$4 sm:$0xff]  }
 0xe38   : > { %6281 = vmatpush1.bf16.msra.mxu0 %v10198_v40  ;;  %v12453_v40 = vld [vmem:[#allocation32_spill] sm:$0xff] }
 0xe39   : > { %6282 = vmatprep.subr.bf16.mxu0 %v10199_v41  ;;  %v12455_v9 = vpack.c.bf16 %v12453_v40, %v12454_v44  ;;  %v9756_v41 = vld [vmem:[#allocation14 + $0x70] sm:$0xff]   ;;  %v10251_v44 = vld [vmem:[#allocation5 + $0xf4] ss:$8 sps:$4 sm:$0xff]  }
 0xe3a   : > { %v10250_v40 = vld [vmem:[#allocation5 + $0xe0] ss:$8 sps:$4 sm:$0xff]  }
 0xe3c   : > { %6283 = vmatpush1.bf16.msra.mxu0 %v10200_v22  ;;  %v12456_v22 = vld [vmem:[#allocation31_spill] sm:$0xff] }
 0xe3d   : > { %6284 = vmatprep.subr.bf16.mxu0 %v10201_v43  ;;  %v12457_v43 = vld [vmem:[#allocation29_spill] sm:$0xff] }
 0xe40   : > { %6285 = vmatpush1.bf16.msra.mxu0 %v10202_v23  ;;  %v12458_v23 = vpack.c.bf16 %v12456_v22, %v12457_v43 }
 0xe41   : > { %6286 = vmatprep.subr.bf16.mxu0 %v10203_v10  ;;  %v12459_v10 = vld [vmem:[#allocation36_spill] sm:$0xff] }
 0xe44   : > { %6287 = vmatpush1.bf16.msra.mxu0 %v10204_v14  ;;  %v12460_v14 = vld [vmem:[#allocation34_spill] sm:$0xff] }
 0xe45   : > { %6288 = vmatprep.subr.bf16.mxu0 %v10205_v17  ;;  %v12461_v17 = vpack.c.bf16 %v12459_v10, %v12460_v14  ;;  %v6773_v10 = vpop.permute.xlu1 %6772 }
 0xe48   : > { %6289 = vmatpush1.bf16.msra.mxu0 %v10206_v32  ;;  %v12462_v32 = vld [vmem:[#allocation35_spill] sm:$0xff] }
 0xe49   : > { %6290 = vmatprep.subr.bf16.mxu0 %v10207_v20  ;;  %v12463_v20 = vld [vmem:[#allocation33_spill] sm:$0xff] }
 0xe4c   : > { %6291 = vmatpush1.bf16.msra.mxu0 %v10208_v46  ;;  %v12464_v46 = vpack.c.bf16 %v12462_v32, %v12463_v20 }
 0xe4d   : > { %6292 = vmatprep.subr.bf16.mxu0 %v10209_v62  ;;  %v12465_v62 = vld [vmem:[#allocation40_spill] sm:$0xff] }
 0xe50   : > { %6293 = vmatpush1.bf16.msra.mxu0 %v10210_v63  ;;  %v12466_v63 = vld [vmem:[#allocation38_spill] sm:$0xff] }
 0xe51   : > { %6294 = vmatprep.subr.bf16.mxu0 %v10211_v0  ;;  %v12467_v0 = vpack.c.bf16 %v12465_v62, %v12466_v63 }
 0xe54   : > { %6295 = vmatpush1.bf16.msra.mxu0 %v10212_v56  ;;  %v9757_v56 = vld [vmem:[#allocation14 + $0x78] sm:$0xff]  }
 0xe55   : > { %6296 = vmatprep.subr.bf16.mxu0 %v10213_v49  ;;  %v12468_v49 = vld [vmem:[#allocation39_spill] sm:$0xff] }
 0xe58   : > { %6297 = vmatpush1.bf16.msra.mxu0 %v10214_v13  ;;  %v12469_v13 = vld [vmem:[#allocation37_spill] sm:$0xff] }
 0xe59   : > { %6298 = vmatprep.subr.bf16.mxu0 %v10215_v31  ;;  %v12470_v31 = vpack.c.bf16 %v12468_v49, %v12469_v13 }
 0xe5c   : > { %6299 = vmatpush1.bf16.msra.mxu0 %v10216_v19  ;;  %v12471_v19 = vld [vmem:[#allocation44_spill] sm:$0xff] }
 0xe5d   : > { %6300 = vmatprep.subr.bf16.mxu0 %v10217_v37  ;;  %v12472_v37 = vld [vmem:[#allocation42_spill] sm:$0xff] }
 0xe60   : > { %6301 = vmatpush1.bf16.msra.mxu0 %v10218_v54  ;;  %v12473_v54 = vpack.c.bf16 %v12471_v19, %v12472_v37  ;;  %v6783_v37 = vpop.permute.xlu1 %6782 }
 0xe61   : > { %6302 = vmatprep.subr.bf16.mxu0 %v10219_v27  ;;  %v12474_v27 = vld [vmem:[#allocation43_spill] sm:$0xff] }
 0xe64   : > { %6303 = vmatpush1.bf16.msra.mxu0 %v10220_v21  ;;  %v12475_v21 = vld [vmem:[#allocation41_spill] sm:$0xff] }
 0xe67   : > { %6305 = vmatmul.mubr.bf16.vlgmr.msra.gmra.mrb[116].mxu0 %v11690_v6 }
 0xe68   : > { %6314 = vmatprep.mubr.bf16.mxu0 %v11700_v15 }
 0xe6f   : > { %6315 = vmatmul.mubr.bf16.gmra.mrb[120].mxu0 %v11698_v55 }
 0xe70   : > { %6324 = vmatprep.mubr.bf16.mxu0 %v11708_v5 }
 0xe77   : > { %6325 = vmatmul.mubr.bf16.gmra.mrb[124].mxu0 %v11706_v45 }
 0xe78   : > { %6334 = vmatprep.mubr.bf16.mxu0 %v11716_v53 }
 0xe7f   : > { %6335 = vmatmul.mubr.bf16.gmra.mrb[128].mxu0 %v11714_v18 }
 0xe80   : > { %6406 = vmatprep.mubr.bf16.mxu0 %v12426_v1 }
 0xf3a   : > { %v6306_v3 = vpop.f32.mrb[116].mxu0 }
 0xf3b   : > { %v6308_v59 = vpop.f32.mrb[117].mxu0 }
 0xf3c   : > { %v6310_v48 = vpop.f32.mrb[118].mxu0 }
 0xf3d   : > { %v6350_v47 = vpack.c.bf16 %v6310_v48, %v6306_v3  ;;  %v6312_v24 = vpop.f32.mrb[119].mxu0  ;;  %v12476_v3 = vpack.c.bf16 %v12474_v27, %v12475_v21  ;;  %v12478_v48 = vld [vmem:[#allocation46_spill] sm:$0xff] }
 0xf3e   : > { %v6351_v6 = vpack.c.bf16 %v6312_v24, %v6308_v59  ;;  %v12477_v59 = vld [vmem:[#allocation48_spill] sm:$0xff]  ;;  %v9758_v24 = vld [vmem:[#allocation14 + $0x80] sm:$0xff]  }
 0xf40   : > { %6374 = vmatprep.subr.bf16.mxu0 %v6351_v6  ;;  %v12480_v6 = vld [vmem:[#allocation47_spill] sm:$0xff] }
 0xf41   : > { %6375 = vmatpush1.bf16.msra.mxu0 %v6350_v47  ;;  %v12479_v47 = vpack.c.bf16 %v12477_v59, %v12478_v48 }
 0xf42   : > { %v6316_v15 = vpop.f32.mrb[120].mxu0 }
 0xf43   : > { %v6318_v55 = vpop.f32.mrb[121].mxu0 }
 0xf44   : > { %v6320_v57 = vpop.f32.mrb[122].mxu0 }
 0xf45   : > { %v6352_v5 = vpack.c.bf16 %v6320_v57, %v6316_v15  ;;  %v6322_v2 = vpop.f32.mrb[123].mxu0  ;;  %v12481_v15 = vld [vmem:[#allocation45_spill] sm:$0xff] }
 0xf46   : > { %v6353_v45 = vpack.c.bf16 %v6322_v2, %v6318_v55  ;;  %v12482_v55 = vpack.c.bf16 %v12480_v6, %v12481_v15  ;;  %v10221_v57 = vld [vmem:[#allocation5 + $0x4] ss:$8 sps:$4 sm:$0xff]   ;;  %v10223_v2 = vld [vmem:[#allocation5 + $0x14] ss:$8 sps:$4 sm:$0xff]  }
 0xf48   : > { %6376 = vmatprep.subr.bf16.mxu0 %v6353_v45  ;;  %v9759_v45 = vld [vmem:[#allocation14 + $0x88] sm:$0xff]  }
 0xf49   : > { %6377 = vmatpush1.bf16.msra.mxu0 %v6352_v5  ;;  %v10222_v5 = vld [vmem:[#allocation5] ss:$8 sps:$4 sm:$0xff]  }
 0xf4a   : > { %v6326_v53 = vpop.f32.mrb[124].mxu0 }
 0xf4b   : > { %v6328_v18 = vpop.f32.mrb[125].mxu0 }
 0xf4c   : > { %v6330_v28 = vpop.f32.mrb[126].mxu0 }
 0xf4d   : > { %v6354_v60 = vpack.c.bf16 %v6330_v28, %v6326_v53  ;;  %v6332_v58 = vpop.f32.mrb[127].mxu0  ;;  %v10224_v53 = vld [vmem:[#allocation5 + $0x10] ss:$8 sps:$4 sm:$0xff]   ;;  %v10226_v28 = vld [vmem:[#allocation5 + $0x20] ss:$8 sps:$4 sm:$0xff]  }
 0xf4e   : > { %v6355_v4 = vpack.c.bf16 %v6332_v58, %v6328_v18  ;;  %v10225_v18 = vld [vmem:[#allocation5 + $0x24] ss:$8 sps:$4 sm:$0xff]   ;;  %v10228_v58 = vld [vmem:[#allocation5 + $0x30] ss:$8 sps:$4 sm:$0xff]  }
 0xf50   : > { %6378 = vmatprep.subr.bf16.mxu0 %v6355_v4  ;;  %v10229_v4 = vld [vmem:[#allocation5 + $0x44] ss:$8 sps:$4 sm:$0xff]  }
 0xf51   : > { %6379 = vmatpush1.bf16.msra.mxu0 %v6354_v60  ;;  %v10227_v60 = vld [vmem:[#allocation5 + $0x34] ss:$8 sps:$4 sm:$0xff]  }
 0xf52   : > { %v6336_v39 = vpop.f32.mrb[128].mxu0 }
 0xf53   : > { %v6338_v34 = vpop.f32.mrb[129].mxu0 }
 0xf54   : > { %v6340_v38 = vpop.f32.mrb[130].mxu0 }
 0xf55   : > { %v6356_v11 = vpack.c.bf16 %v6340_v38, %v6336_v39  ;;  %v6342_v7 = vpop.f32.mrb[131].mxu0  ;;  %v10230_v39 = vld [vmem:[#allocation5 + $0x40] ss:$8 sps:$4 sm:$0xff]   ;;  %v10232_v38 = vld [vmem:[#allocation5 + $0x50] ss:$8 sps:$4 sm:$0xff]  }
 0xf56   : > { %v6357_v12 = vpack.c.bf16 %v6342_v7, %v6338_v34  ;;  %v10231_v34 = vld [vmem:[#allocation5 + $0x54] ss:$8 sps:$4 sm:$0xff]   ;;  %v10234_v7 = vld [vmem:[#allocation5 + $0x60] ss:$8 sps:$4 sm:$0xff]  }
 0xf58   : > { %6380 = vmatprep.subr.bf16.mxu0 %v6357_v12  ;;  %v10235_v12 = vld [vmem:[#allocation5 + $0x74] ss:$8 sps:$4 sm:$0xff]  }
 0xf59   : > { %6381 = vmatpush1.bf16.msra.mxu0 %v6356_v11  ;;  %v10233_v11 = vld [vmem:[#allocation5 + $0x64] ss:$8 sps:$4 sm:$0xff]  }
 0xf5a   : > { %6537 = vmatprep.subr.bf16.mxu0 %v12441_v42  ;;  %v10237_v42 = vld [vmem:[#allocation5 + $0x84] ss:$8 sps:$4 sm:$0xff]  }
 0xf5c   : > { %8799 = vmatmul.mubr.msk.bf16.vlgmr.msra.gmra.mrb[92].mxu0 %vm870_vm0, %v9754_v30  ;;  %v10236_v30 = vld [vmem:[#allocation5 + $0x70] ss:$8 sps:$4 sm:$0xff]  }
 0xf5d   : > { %6538 = vmatpush1.bf16.msra.mxu0 %v12442_v16  ;;  %6416 = vmatprep.mubr.bf16.mxu0 %v12426_v1  ;;  %v10238_v16 = vld [vmem:[#allocation5 + $0x80] ss:$8 sps:$4 sm:$0xff]  }
 0xf5e   : > { %6539 = vmatprep.subr.bf16.mxu0 %v12443_v61  ;;  %v10239_v61 = vld [vmem:[#allocation5 + $0x94] ss:$8 sps:$4 sm:$0xff]  }
 0xf61   : > { %6540 = vmatpush1.bf16.msra.mxu0 %v12446_v8  ;;  %v10243_v8 = vld [vmem:[#allocation5 + $0xb4] ss:$8 sps:$4 sm:$0xff]  }
 0xf62   : > { %6541 = vmatprep.subr.bf16.mxu0 %v12449_v35  ;;  %v10246_v35 = vld [vmem:[#allocation5 + $0xc0] ss:$8 sps:$4 sm:$0xff]  }
 0xf64   : > { %8800 = vmatmul.mubr.msk.bf16.gmra.mrb[96].mxu0 %vm870_vm0, %v9755_v25  ;;  %v10240_v25 = vld [vmem:[#allocation5 + $0x90] ss:$8 sps:$4 sm:$0xff]  }
 0xf65   : > { %6542 = vmatpush1.bf16.msra.mxu0 %v12452_v29  ;;  %6569 = vmatprep.mubr.bf16.mxu0 %v12426_v1  ;;  %v10249_v29 = vld [vmem:[#allocation5 + $0xe4] ss:$8 sps:$4 sm:$0xff]  }
 0xf66   : > { %6543 = vmatprep.subr.bf16.mxu0 %v12455_v9  ;;  %v10252_v9 = vld [vmem:[#allocation5 + $0xf0] ss:$8 sps:$4 sm:$0xff]  }
 0xf69   : > { %6544 = vmatpush1.bf16.msra.mxu0 %v12458_v23 }
 0xf6a   : > { %6700 = vmatprep.subr.bf16.mxu0 %v12461_v17 }
 0xf6c   : > { %8803 = vmatmul.mubr.msk.bf16.vlgmr.msra.gmra.mrb[92].mxu0 %vm870_vm0, %v9756_v41  ;;  %v6768_v41 = vpop.permute.xlu0 %6767 }
 0xf6d   : > { %6701 = vmatpush1.bf16.msra.mxu0 %v12464_v46  ;;  %6579 = vmatprep.mubr.bf16.mxu0 %v12426_v1 }
 0xf6e   : > { %6702 = vmatprep.subr.bf16.mxu0 %v12467_v0 }
 0xf70   : > { %v6778_v49 = vpop.permute.xlu0 %6777 }
 0xf71   : > { %6703 = vmatpush1.bf16.msra.mxu0 %v12470_v31 }
 0xf72   : > { %6704 = vmatprep.subr.bf16.mxu0 %v12473_v54 }
 0xf74   : > { %8804 = vmatmul.mubr.msk.bf16.gmra.mrb[96].mxu0 %vm870_vm0, %v9757_v56 }
 0xf75   : > { %6705 = vmatpush1.bf16.msra.mxu0 %v12476_v3  ;;  %6732 = vmatprep.mubr.bf16.mxu0 %v12426_v1 }
 0xf76   : > { %6706 = vmatprep.subr.bf16.mxu0 %v12479_v47 }
 0xf79   : > { %6707 = vmatpush1.bf16.msra.mxu0 %v12482_v55 }
 0xf7a   : > { %6837 = vmatprep.subr.bf16.mxu0 %v10221_v57 }
 0xf7c   : > { %8807 = vmatmul.mubr.msk.bf16.vlgmr.msra.gmra.mrb[92].mxu0 %vm870_vm0, %v9758_v24 }
 0xf7d   : > { %6742 = vmatprep.mubr.bf16.mxu0 %v12426_v1  ;;  %6838 = vmatpush1.bf16.msra.mxu0 %v10222_v5 }
 0xf7e   : > { %6839 = vmatprep.subr.bf16.mxu0 %v10223_v2 }
 0xf81   : > { %6840 = vmatpush1.bf16.msra.mxu0 %v10224_v53 }
 0xf82   : > { %6841 = vmatprep.subr.bf16.mxu0 %v10225_v18 }
 0xf84   : > { %8808 = vmatmul.mubr.msk.bf16.gmra.mrb[96].mxu0 %vm870_vm0, %v9759_v45 }
 0xf85   : > { %6842 = vmatpush1.bf16.msra.mxu0 %v10226_v28 }
 0xf86   : > { %6843 = vmatprep.subr.bf16.mxu0 %v10227_v60 }
 0xf89   : > { %6844 = vmatpush1.bf16.msra.mxu0 %v10228_v58 }
 0xf8a   : > { %6845 = vmatprep.subr.bf16.mxu0 %v10229_v4 }
 0xf8d   : > { %6846 = vmatpush1.bf16.msra.mxu0 %v10230_v39 }
 0xf8e   : > { %6847 = vmatprep.subr.bf16.mxu0 %v10231_v34 }
 0xf91   : > { %6848 = vmatpush1.bf16.msra.mxu0 %v10232_v38 }
 0xf92   : > { %6849 = vmatprep.subr.bf16.mxu0 %v10233_v11 }
 0xf95   : > { %6850 = vmatpush1.bf16.msra.mxu0 %v10234_v7 }
 0xf96   : > { %6851 = vmatprep.subr.bf16.mxu0 %v10235_v12 }
 0xf99   : > { %6852 = vmatpush1.bf16.msra.mxu0 %v10236_v30 }
 0xf9a   : > { %6853 = vmatprep.subr.bf16.mxu0 %v10237_v42 }
 0xf9d   : > { %6854 = vmatpush1.bf16.msra.mxu0 %v10238_v16 }
 0xf9e   : > { %6855 = vmatprep.subr.bf16.mxu0 %v10239_v61 }
 0xfa1   : > { %6856 = vmatpush1.bf16.msra.mxu0 %v10240_v25 }
 0xfa2   : > { %6857 = vmatprep.subr.bf16.mxu0 %v10241_v36 }
 0xfa5   : > { %6858 = vmatpush1.bf16.msra.mxu0 %v10242_v50 }
 0xfa6   : > { %6859 = vmatprep.subr.bf16.mxu0 %v10243_v8 }
 0xfa9   : > { %6860 = vmatpush1.bf16.msra.mxu0 %v10244_v26 }
 0xfaa   : > { %6861 = vmatprep.subr.bf16.mxu0 %v10245_v51 }
 0xfad   : > { %6862 = vmatpush1.bf16.msra.mxu0 %v10246_v35 }
 0xfae   : > { %6863 = vmatprep.subr.bf16.mxu0 %v10247_v33 }
 0xfb1   : > { %6864 = vmatpush1.bf16.msra.mxu0 %v10248_v52  ;;  %v10253_v52 = vld [vmem:[#allocation5 + $0x200] ss:$8 sps:$4 sm:$0xff]  }
 0xfb2   : > { %6865 = vmatprep.subr.bf16.mxu0 %v10249_v29 }
 0xfb5   : > { %6866 = vmatpush1.bf16.msra.mxu0 %v10250_v40 }
 0xfb6   : > { %6867 = vmatprep.subr.bf16.mxu0 %v10251_v44  ;;  %v10254_v44 = vld [vmem:[#allocation5 + $0x214] ss:$8 sps:$4 sm:$0xff]  }
 0xfb9   : > { %6868 = vmatpush1.bf16.msra.mxu0 %v10252_v9 }
0x104f   : > { %v6734_v22 = vpop.f32.mrb[92].mxu0 }
0x1050   : > { %v6785_v43 = vadd.f32 %v6768_v41, %v6734_v22  ;;  %v6736_v23 = vpop.f32.mrb[93].mxu0 }
0x1051   : > { %v6786_v14 = vadd.f32 %v6768_v41, %v6736_v23  ;;  %v6738_v17 = vpop.f32.mrb[94].mxu0  ;;  %v10255_v23 = vld [vmem:[#allocation5 + $0x210] ss:$8 sps:$4 sm:$0xff]  }
0x1052   : > { %v6801_v32 = vmul.f32 0.70710677, %v6785_v43  ;;  %v6787_v20 = vadd.f32 %v6773_v10, %v6738_v17  ;;  %v6740_v46 = vpop.f32.mrb[95].mxu0  ;;  %v6793_v53 = vmul.f32 0.5, %v6785_v43  ;;  %v10258_v17 = vld [vmem:[#allocation5 + $0x234] ss:$8 sps:$4 sm:$0xff]  }
0x1053   : > { %v6802_v62 = vmul.f32 0.70710677, %v6786_v14  ;;  %v6788_v63 = vadd.f32 %v6773_v10, %v6740_v46  ;;  %v6794_v60 = vmul.f32 0.5, %v6786_v14  ;;  %v10256_v10 = vld [vmem:[#allocation5 + $0x224] ss:$8 sps:$4 sm:$0xff]  }
0x1054   : > { %9868 = verf.f32 %v6801_v32  ;;  %v6803_v0 = vmul.f32 0.70710677, %v6787_v20  ;;  %v6795_v18 = vmul.f32 0.5, %v6787_v20  ;;  %v10257_v14 = vld [vmem:[#allocation5 + $0x220] ss:$8 sps:$4 sm:$0xff]  }
0x1055   : > { %9870 = verf.f32 %v6802_v62  ;;  %v6804_v56 = vmul.f32 0.70710677, %v6788_v63  ;;  %v6796_v58 = vmul.f32 0.5, %v6788_v63  ;;  %v10259_v32 = vld [vmem:[#allocation5 + $0x230] ss:$8 sps:$4 sm:$0xff]  }
0x1056   : > { %9872 = verf.f32 %v6803_v0  ;;  %v10260_v20 = vld [vmem:[#allocation5 + $0x244] ss:$8 sps:$4 sm:$0xff]   ;;  %v10261_v46 = vld [vmem:[#allocation5 + $0x240] ss:$8 sps:$4 sm:$0xff]   ;;  %v10262_v62 = vld [vmem:[#allocation5 + $0x254] ss:$8 sps:$4 sm:$0xff]  }
0x1057   : > { %9874 = verf.f32 %v6804_v56  ;;  %v6744_v13 = vpop.f32.mrb[96].mxu0  ;;  %v10263_v63 = vld [vmem:[#allocation5 + $0x250] ss:$8 sps:$4 sm:$0xff]   ;;  %v10264_v0 = vld [vmem:[#allocation5 + $0x264] ss:$8 sps:$4 sm:$0xff]  }
0x1058   : > { %v6789_v31 = vadd.f32 %v6778_v49, %v6744_v13  ;;  %v6746_v19 = vpop.f32.mrb[97].mxu0  ;;  %v10265_v56 = vld [vmem:[#allocation5 + $0x260] ss:$8 sps:$4 sm:$0xff]   ;;  %v10267_v13 = vld [vmem:[#allocation5 + $0x270] ss:$8 sps:$4 sm:$0xff]  }
0x1059   : > { %v6790_v54 = vadd.f32 %v6778_v49, %v6746_v19  ;;  %v6748_v27 = vpop.f32.mrb[98].mxu0  ;;  %v10266_v49 = vld [vmem:[#allocation5 + $0x274] ss:$8 sps:$4 sm:$0xff]   ;;  %v10269_v19 = vld [vmem:[#allocation5 + $0x280] ss:$8 sps:$4 sm:$0xff]  }
0x105a   : > { %v6805_v21 = vmul.f32 0.70710677, %v6789_v31  ;;  %v6791_v3 = vadd.f32 %v6783_v37, %v6748_v27  ;;  %v6750_v59 = vpop.f32.mrb[99].mxu0  ;;  %v6797_v50 = vmul.f32 0.5, %v6789_v31  ;;  %v10268_v31 = vld [vmem:[#allocation5 + $0x284] ss:$8 sps:$4 sm:$0xff]  }
0x105b   : > { %v6806_v48 = vmul.f32 0.70710677, %v6790_v54  ;;  %v6792_v47 = vadd.f32 %v6783_v37, %v6750_v59  ;;  %v6798_v51 = vmul.f32 0.5, %v6790_v54  ;;  %v10270_v37 = vld [vmem:[#allocation5 + $0x294] ss:$8 sps:$4 sm:$0xff]  }
0x105c   : > { %9876 = verf.f32 %v6805_v21  ;;  %v6807_v24 = vmul.f32 0.70710677, %v6791_v3  ;;  %v6799_v8 = vmul.f32 0.5, %v6791_v3  ;;  %v10271_v54 = vld [vmem:[#allocation5 + $0x290] ss:$8 sps:$4 sm:$0xff]  }
0x105d   : > { %9878 = verf.f32 %v6806_v48  ;;  %v6808_v6 = vmul.f32 0.70710677, %v6792_v47  ;;  %v6800_v35 = vmul.f32 0.5, %v6792_v47  ;;  %v10272_v27 = vld [vmem:[#allocation5 + $0x2a4] ss:$8 sps:$4 sm:$0xff]  }
0x105e   : > { %v9869_v15 = vpop.eup %9868  ;;  %9880 = verf.f32 %v6807_v24  ;;  %v10273_v21 = vld [vmem:[#allocation5 + $0x2a0] ss:$8 sps:$4 sm:$0xff]   ;;  %v10274_v3 = vld [vmem:[#allocation5 + $0x2b4] ss:$8 sps:$4 sm:$0xff]   ;;  %v10275_v59 = vld [vmem:[#allocation5 + $0x2b0] ss:$8 sps:$4 sm:$0xff]  }
0x105f   : > { %v9871_v55 = vpop.eup %9870  ;;  %v6817_v57 = vadd.f32 1.0, %v9869_v15  ;;  %9882 = verf.f32 %v6808_v6  ;;  %v10276_v48 = vld [vmem:[#allocation5 + $0x2c4] ss:$8 sps:$4 sm:$0xff]   ;;  %v10277_v47 = vld [vmem:[#allocation5 + $0x2c0] ss:$8 sps:$4 sm:$0xff]  }
0x1060   : > { %v9873_v5 = vpop.eup %9872  ;;  %v6818_v2 = vadd.f32 1.0, %v9871_v55  ;;  %v10278_v24 = vld [vmem:[#allocation5 + $0x2d4] ss:$8 sps:$4 sm:$0xff]   ;;  %v10279_v6 = vld [vmem:[#allocation5 + $0x2d0] ss:$8 sps:$4 sm:$0xff]  }
0x1061   : > { %v9875_v45 = vpop.eup %9874  ;;  %v6819_v28 = vadd.f32 1.0, %v9873_v5  ;;  %v6825_v39 = vmul.f32 %v6817_v57, %v6793_v53  ;;  %v10280_v15 = vld [vmem:[#allocation5 + $0x2e4] ss:$8 sps:$4 sm:$0xff]   ;;  %v10281_v55 = vld [vmem:[#allocation5 + $0x2e0] ss:$8 sps:$4 sm:$0xff]  }
0x1062   : > { %v6820_v4 = vadd.f32 1.0, %v9875_v45  ;;  %v6826_v38 = vmul.f32 %v6818_v2, %v6794_v60  ;;  %v10282_v57 = vld [vmem:[#allocation5 + $0x2f4] ss:$8 sps:$4 sm:$0xff]   ;;  %v10283_v5 = vld [vmem:[#allocation5 + $0x2f0] ss:$8 sps:$4 sm:$0xff]  }
0x1063   : > { %v6827_v34 = vmul.f32 %v6819_v28, %v6795_v18  ;;  %v10284_v2 = vld [vmem:[#allocation5 + $0x404] ss:$8 sps:$4 sm:$0xff]   ;;  %v10285_v45 = vld [vmem:[#allocation5 + $0x400] ss:$8 sps:$4 sm:$0xff]   ;;  %v10286_v53 = vld [vmem:[#allocation5 + $0x414] ss:$8 sps:$4 sm:$0xff]  }
0x1064   : > { %v6828_v11 = vmul.f32 %v6820_v4, %v6796_v58  ;;  %v10287_v18 = vld [vmem:[#allocation5 + $0x410] ss:$8 sps:$4 sm:$0xff]   ;;  %v10288_v28 = vld [vmem:[#allocation5 + $0x424] ss:$8 sps:$4 sm:$0xff]   ;;  %v10289_v60 = vld [vmem:[#allocation5 + $0x420] ss:$8 sps:$4 sm:$0xff]  }
0x1065   : > { %v12135_v7 = vpack.c.bf16 %v6827_v34, %v6825_v39  ;;  %v10290_v58 = vld [vmem:[#allocation5 + $0x434] ss:$8 sps:$4 sm:$0xff]   ;;  %v10291_v4 = vld [vmem:[#allocation5 + $0x430] ss:$8 sps:$4 sm:$0xff]   ;;  %v10292_v39 = vld [vmem:[#allocation5 + $0x444] ss:$8 sps:$4 sm:$0xff]  }
0x1066   : > { %v9877_v12 = vpop.eup %9876  ;;  %v12137_v30 = vpack.c.bf16 %v6828_v11, %v6826_v38  ;;  %v10293_v34 = vld [vmem:[#allocation5 + $0x440] ss:$8 sps:$4 sm:$0xff]   ;;  %v10294_v38 = vld [vmem:[#allocation5 + $0x454] ss:$8 sps:$4 sm:$0xff]   ;;  %v10295_v11 = vld [vmem:[#allocation5 + $0x450] ss:$8 sps:$4 sm:$0xff]  }
0x1067   : > { %v9879_v42 = vpop.eup %9878  ;;  %v6821_v16 = vadd.f32 1.0, %v9877_v12  ;;  %v10296_v12 = vld [vmem:[#allocation5 + $0x464] ss:$8 sps:$4 sm:$0xff]  }
0x1068   : > { %v9881_v61 = vpop.eup %9880  ;;  %v6822_v25 = vadd.f32 1.0, %v9879_v42  ;;  %6869 = vmatprep.mubr.bf16.mxu0 %v12137_v30  ;;  %6930 = vmatprep.mubr.bf16.mxu1 %v12137_v30  ;;  %v10297_v42 = vld [vmem:[#allocation5 + $0x460] ss:$8 sps:$4 sm:$0xff]  }
0x1069   : > { %v9883_v36 = vpop.eup %9882  ;;  %v6823_v26 = vadd.f32 1.0, %v9881_v61  ;;  %6870 = vmatmul.mubr.bf16.vlgmr.msra.gmra.mrb[132].mxu0 %v12135_v7  ;;  %6931 = vmatmul.mubr.bf16.vlgmr.msra.gmra.mrb[164].mxu1 %v12135_v7  ;;  %v6829_v29 = vmul.f32 %v6821_v16, %v6797_v50  ;;  %v10298_v16 = vld [vmem:[#allocation5 + $0x474] ss:$8 sps:$4 sm:$0xff]   ;;  %v10299_v61 = vld [vmem:[#allocation5 + $0x470] ss:$8 sps:$4 sm:$0xff]  }
0x106a   : > { %v6824_v33 = vadd.f32 1.0, %v9883_v36  ;;  %7099 = vmatpush1.bf16.msra.mxu1 %v10253_v52  ;;  %v6830_v9 = vmul.f32 %v6822_v25, %v6798_v51  ;;  %v10300_v25 = vld [vmem:[#allocation5 + $0x484] ss:$8 sps:$4 sm:$0xff]   ;;  %v10301_v36 = vld [vmem:[#allocation5 + $0x480] ss:$8 sps:$4 sm:$0xff]  }
0x106b   : > { %v6831_v40 = vmul.f32 %v6823_v26, %v6799_v8  ;;  %7100 = vmatprep.subr.bf16.mxu1 %v10254_v44  ;;  %v10302_v50 = vld [vmem:[#allocation5 + $0x494] ss:$8 sps:$4 sm:$0xff]   ;;  %v10303_v8 = vld [vmem:[#allocation5 + $0x490] ss:$8 sps:$4 sm:$0xff]   ;;  %v10304_v26 = vld [vmem:[#allocation5 + $0x4a4] ss:$8 sps:$4 sm:$0xff]  }
0x106c   : > { %v6832_v41 = vmul.f32 %v6824_v33, %v6800_v35  ;;  %v10305_v51 = vld [vmem:[#allocation5 + $0x4a0] ss:$8 sps:$4 sm:$0xff]   ;;  %v10306_v35 = vld [vmem:[#allocation5 + $0x4b4] ss:$8 sps:$4 sm:$0xff]   ;;  %v10307_v33 = vld [vmem:[#allocation5 + $0x4b0] ss:$8 sps:$4 sm:$0xff]  }
0x106d   : > { %v12143_v22 = vpack.c.bf16 %v6831_v40, %v6829_v29  ;;  %v10308_v52 = vld [vmem:[#allocation5 + $0x4c4] ss:$8 sps:$4 sm:$0xff]   ;;  %v10309_v29 = vld [vmem:[#allocation5 + $0x4c0] ss:$8 sps:$4 sm:$0xff]   ;;  %v10310_v40 = vld [vmem:[#allocation5 + $0x4d4] ss:$8 sps:$4 sm:$0xff]  }
0x106e   : > { %v12145_v43 = vpack.c.bf16 %v6832_v41, %v6830_v9  ;;  %7101 = vmatpush1.bf16.msra.mxu1 %v10255_v23  ;;  %v10311_v44 = vld [vmem:[#allocation5 + $0x4d0] ss:$8 sps:$4 sm:$0xff]   ;;  %v10312_v9 = vld [vmem:[#allocation5 + $0x4e4] ss:$8 sps:$4 sm:$0xff]   ;;  %v10313_v41 = vld [vmem:[#allocation5 + $0x4e0] ss:$8 sps:$4 sm:$0xff]  }
0x106f   : > { %7102 = vmatprep.subr.bf16.mxu1 %v10256_v10  ;;  %v10314_v23 = vld [vmem:[#allocation5 + $0x4f4] ss:$8 sps:$4 sm:$0xff]   ;;  %v10315_v10 = vld [vmem:[#allocation5 + $0x4f0] ss:$8 sps:$4 sm:$0xff]  }
0x1070   : > { %6879 = vmatprep.mubr.bf16.mxu0 %v12145_v43  ;;  %6940 = vmatprep.mubr.bf16.mxu1 %v12145_v43 }
0x1071   : > { %6880 = vmatmul.mubr.bf16.gmra.mrb[136].mxu0 %v12143_v22  ;;  %6941 = vmatmul.mubr.bf16.gmra.mrb[168].mxu1 %v12143_v22 }
0x1072   : > { %7103 = vmatpush1.bf16.msra.mxu1 %v10257_v14  ;;  %7130 = vmatprep.mubr.bf16.mxu1 %v12137_v30  ;;  %v10316_v14 = vld [vmem:[#allocation5 + $0x504] ss:$8 sps:$4 sm:$0xff]  }
0x1073   : > { %7104 = vmatprep.subr.bf16.mxu1 %v10258_v17  ;;  %7008 = vmatprep.mubr.bf16.mxu0 %v12426_v1  ;;  %v10317_v17 = vld [vmem:[#allocation5 + $0x500] ss:$8 sps:$4 sm:$0xff]  }
0x1076   : > { %7105 = vmatpush1.bf16.msra.mxu1 %v10259_v32  ;;  %v10318_v32 = vld [vmem:[#allocation5 + $0x514] ss:$8 sps:$4 sm:$0xff]  }
0x1077   : > { %7106 = vmatprep.subr.bf16.mxu1 %v10260_v20  ;;  %v10319_v20 = vld [vmem:[#allocation5 + $0x510] ss:$8 sps:$4 sm:$0xff]  }
0x107a   : > { %7107 = vmatpush1.bf16.msra.mxu1 %v10261_v46  ;;  %v10320_v46 = vld [vmem:[#allocation5 + $0x524] ss:$8 sps:$4 sm:$0xff]  }
0x107b   : > { %7108 = vmatprep.subr.bf16.mxu1 %v10262_v62  ;;  %v10321_v62 = vld [vmem:[#allocation5 + $0x520] ss:$8 sps:$4 sm:$0xff]  }
0x107e   : > { %7109 = vmatpush1.bf16.msra.mxu1 %v10263_v63  ;;  %v10322_v63 = vld [vmem:[#allocation5 + $0x534] ss:$8 sps:$4 sm:$0xff]  }
0x107f   : > { %7110 = vmatprep.subr.bf16.mxu1 %v10264_v0  ;;  %v10323_v0 = vld [vmem:[#allocation5 + $0x530] ss:$8 sps:$4 sm:$0xff]  }
0x1082   : > { %7111 = vmatpush1.bf16.msra.mxu1 %v10265_v56  ;;  %v10324_v56 = vld [vmem:[#allocation5 + $0x544] ss:$8 sps:$4 sm:$0xff]  }
0x1083   : > { %7112 = vmatprep.subr.bf16.mxu1 %v10266_v49  ;;  %v10325_v49 = vld [vmem:[#allocation5 + $0x540] ss:$8 sps:$4 sm:$0xff]  }
0x1086   : > { %7113 = vmatpush1.bf16.msra.mxu1 %v10267_v13  ;;  %v10326_v13 = vld [vmem:[#allocation5 + $0x554] ss:$8 sps:$4 sm:$0xff]  }
0x1087   : > { %7114 = vmatprep.subr.bf16.mxu1 %v10268_v31  ;;  %v10327_v31 = vld [vmem:[#allocation5 + $0x550] ss:$8 sps:$4 sm:$0xff]  }
0x108a   : > { %7115 = vmatpush1.bf16.msra.mxu1 %v10269_v19  ;;  %v10328_v19 = vld [vmem:[#allocation5 + $0x564] ss:$8 sps:$4 sm:$0xff]  }
0x108b   : > { %7116 = vmatprep.subr.bf16.mxu1 %v10270_v37  ;;  %v10329_v37 = vld [vmem:[#allocation5 + $0x560] ss:$8 sps:$4 sm:$0xff]  }
0x108e   : > { %7117 = vmatpush1.bf16.msra.mxu1 %v10271_v54  ;;  %v10330_v54 = vld [vmem:[#allocation5 + $0x574] ss:$8 sps:$4 sm:$0xff]  }
0x108f   : > { %7118 = vmatprep.subr.bf16.mxu1 %v10272_v27  ;;  %v10331_v27 = vld [vmem:[#allocation5 + $0x570] ss:$8 sps:$4 sm:$0xff]  }
0x1092   : > { %7119 = vmatpush1.bf16.msra.mxu1 %v10273_v21  ;;  %v10332_v21 = vld [vmem:[#allocation5 + $0x584] ss:$8 sps:$4 sm:$0xff]  }
0x1093   : > { %7120 = vmatprep.subr.bf16.mxu1 %v10274_v3  ;;  %v10333_v3 = vld [vmem:[#allocation5 + $0x580] ss:$8 sps:$4 sm:$0xff]  }
0x1096   : > { %7121 = vmatpush1.bf16.msra.mxu1 %v10275_v59  ;;  %v10334_v59 = vld [vmem:[#allocation5 + $0x594] ss:$8 sps:$4 sm:$0xff]  }
0x1097   : > { %7122 = vmatprep.subr.bf16.mxu1 %v10276_v48  ;;  %v10335_v48 = vld [vmem:[#allocation5 + $0x590] ss:$8 sps:$4 sm:$0xff]  }
0x109a   : > { %7123 = vmatpush1.bf16.msra.mxu1 %v10277_v47  ;;  %v10336_v47 = vld [vmem:[#allocation5 + $0x5a4] ss:$8 sps:$4 sm:$0xff]  }
0x109b   : > { %7124 = vmatprep.subr.bf16.mxu1 %v10278_v24  ;;  %v10337_v24 = vld [vmem:[#allocation5 + $0x5a0] ss:$8 sps:$4 sm:$0xff]  }
0x109e   : > { %7125 = vmatpush1.bf16.msra.mxu1 %v10279_v6  ;;  %v10338_v6 = vld [vmem:[#allocation5 + $0x5b4] ss:$8 sps:$4 sm:$0xff]  }
0x109f   : > { %7126 = vmatprep.subr.bf16.mxu1 %v10280_v15  ;;  %v10339_v15 = vld [vmem:[#allocation5 + $0x5b0] ss:$8 sps:$4 sm:$0xff]  }
0x10a2   : > { %7127 = vmatpush1.bf16.msra.mxu1 %v10281_v55  ;;  %v10340_v55 = vld [vmem:[#allocation5 + $0x5c4] ss:$8 sps:$4 sm:$0xff]  }
0x10a3   : > { %7128 = vmatprep.subr.bf16.mxu1 %v10282_v57  ;;  %v10341_v57 = vld [vmem:[#allocation5 + $0x5c0] ss:$8 sps:$4 sm:$0xff]  }
0x10a6   : > { %7129 = vmatpush1.bf16.msra.mxu1 %v10283_v5  ;;  %v10342_v5 = vld [vmem:[#allocation5 + $0x5d4] ss:$8 sps:$4 sm:$0xff]  }
0x10a7   : > { %7376 = vmatprep.subr.bf16.mxu1 %v10284_v2  ;;  %v10343_v2 = vld [vmem:[#allocation5 + $0x5d0] ss:$8 sps:$4 sm:$0xff]  }
0x10a9   : > { %7131 = vmatmul.mubr.bf16.vlgmr.msra.gmra.mrb[172].mxu1 %v12135_v7 }
0x10aa   : > { %7140 = vmatprep.mubr.bf16.mxu1 %v12145_v43  ;;  %7377 = vmatpush1.bf16.msra.mxu1 %v10285_v45  ;;  %v10344_v45 = vld [vmem:[#allocation5 + $0x5e4] ss:$8 sps:$4 sm:$0xff]  }
0x10ab   : > { %7378 = vmatprep.subr.bf16.mxu1 %v10286_v53  ;;  %v10345_v53 = vld [vmem:[#allocation5 + $0x5e0] ss:$8 sps:$4 sm:$0xff]  }
0x10ae   : > { %7379 = vmatpush1.bf16.msra.mxu1 %v10287_v18  ;;  %v10346_v18 = vld [vmem:[#allocation5 + $0x5f4] ss:$8 sps:$4 sm:$0xff]  }
0x10af   : > { %7380 = vmatprep.subr.bf16.mxu1 %v10288_v28  ;;  %v10347_v28 = vld [vmem:[#allocation5 + $0x5f0] ss:$8 sps:$4 sm:$0xff]  }
0x10b1   : > { %7141 = vmatmul.mubr.bf16.gmra.mrb[176].mxu1 %v12143_v22 }
0x10b2   : > { %7381 = vmatpush1.bf16.msra.mxu1 %v10289_v60  ;;  %7408 = vmatprep.mubr.bf16.mxu1 %v12137_v30  ;;  %v10348_v60 = vld [vmem:[#allocation5 + $0x704] ss:$8 sps:$4 sm:$0xff]  }
0x10b3   : > { %7382 = vmatprep.subr.bf16.mxu1 %v10290_v58  ;;  %v10349_v58 = vld [vmem:[#allocation5 + $0x700] ss:$8 sps:$4 sm:$0xff]  }
0x10b6   : > { %7383 = vmatpush1.bf16.msra.mxu1 %v10291_v4  ;;  %v10350_v4 = vld [vmem:[#allocation5 + $0x714] ss:$8 sps:$4 sm:$0xff]  }
0x10b7   : > { %7384 = vmatprep.subr.bf16.mxu1 %v10292_v39  ;;  %v10351_v39 = vld [vmem:[#allocation5 + $0x710] ss:$8 sps:$4 sm:$0xff]  }
0x10ba   : > { %7385 = vmatpush1.bf16.msra.mxu1 %v10293_v34  ;;  %v10352_v34 = vld [vmem:[#allocation5 + $0x724] ss:$8 sps:$4 sm:$0xff]  }
0x10bb   : > { %7386 = vmatprep.subr.bf16.mxu1 %v10294_v38  ;;  %v10353_v38 = vld [vmem:[#allocation5 + $0x720] ss:$8 sps:$4 sm:$0xff]  }
0x10be   : > { %7387 = vmatpush1.bf16.msra.mxu1 %v10295_v11  ;;  %v10354_v11 = vld [vmem:[#allocation5 + $0x734] ss:$8 sps:$4 sm:$0xff]  }
0x10bf   : > { %7388 = vmatprep.subr.bf16.mxu1 %v10296_v12  ;;  %v10355_v12 = vld [vmem:[#allocation5 + $0x730] ss:$8 sps:$4 sm:$0xff]  }
0x10c2   : > { %7389 = vmatpush1.bf16.msra.mxu1 %v10297_v42  ;;  %v10356_v42 = vld [vmem:[#allocation5 + $0x744] ss:$8 sps:$4 sm:$0xff]  }
0x10c3   : > { %7390 = vmatprep.subr.bf16.mxu1 %v10298_v16  ;;  %v10357_v16 = vld [vmem:[#allocation5 + $0x740] ss:$8 sps:$4 sm:$0xff]  }
0x10c6   : > { %7391 = vmatpush1.bf16.msra.mxu1 %v10299_v61  ;;  %v10358_v61 = vld [vmem:[#allocation5 + $0x754] ss:$8 sps:$4 sm:$0xff]  }
0x10c7   : > { %7392 = vmatprep.subr.bf16.mxu1 %v10300_v25 }
0x10ca   : > { %7393 = vmatpush1.bf16.msra.mxu1 %v10301_v36 }
0x10cb   : > { %7394 = vmatprep.subr.bf16.mxu1 %v10302_v50 }
0x10ce   : > { %7395 = vmatpush1.bf16.msra.mxu1 %v10303_v8 }
0x10cf   : > { %7396 = vmatprep.subr.bf16.mxu1 %v10304_v26  ;;  %v10359_v26 = vld [vmem:[#allocation5 + $0x750] ss:$8 sps:$4 sm:$0xff]  }
0x10d2   : > { %7397 = vmatpush1.bf16.msra.mxu1 %v10305_v51 }
0x10d3   : > { %7398 = vmatprep.subr.bf16.mxu1 %v10306_v35 }
0x10d6   : > { %7399 = vmatpush1.bf16.msra.mxu1 %v10307_v33 }
0x10d7   : > { %7400 = vmatprep.subr.bf16.mxu1 %v10308_v52 }
0x10da   : > { %7401 = vmatpush1.bf16.msra.mxu1 %v10309_v29 }
0x10db   : > { %7402 = vmatprep.subr.bf16.mxu1 %v10310_v40 }
0x10de   : > { %7403 = vmatpush1.bf16.msra.mxu1 %v10311_v44  ;;  %v10360_v44 = vld [vmem:[#allocation5 + $0x764] ss:$8 sps:$4 sm:$0xff]  }
0x10df   : > { %7404 = vmatprep.subr.bf16.mxu1 %v10312_v9 }
0x10e2   : > { %7405 = vmatpush1.bf16.msra.mxu1 %v10313_v41 }
0x10e3   : > { %7406 = vmatprep.subr.bf16.mxu1 %v10314_v23  ;;  %v10361_v23 = vld [vmem:[#allocation5 + $0x760] ss:$8 sps:$4 sm:$0xff]  }
0x10e6   : > { %7407 = vmatpush1.bf16.msra.mxu1 %v10315_v10  ;;  %v10362_v10 = vld [vmem:[#allocation5 + $0x774] ss:$8 sps:$4 sm:$0xff]  }
0x10e7   : > { %7515 = vmatprep.subr.bf16.mxu1 %v10316_v14 }
0x10e9   : > { %7409 = vmatmul.mubr.bf16.vlgmr.msra.gmra.mrb[180].mxu1 %v12135_v7 }
0x10ea   : > { %7418 = vmatprep.mubr.bf16.mxu1 %v12145_v43  ;;  %7516 = vmatpush1.bf16.msra.mxu1 %v10317_v17 }
0x10eb   : > { %7517 = vmatprep.subr.bf16.mxu1 %v10318_v32 }
0x10ee   : > { %7518 = vmatpush1.bf16.msra.mxu1 %v10319_v20 }
0x10ef   : > { %7519 = vmatprep.subr.bf16.mxu1 %v10320_v46  ;;  %v10363_v46 = vld [vmem:[#allocation5 + $0x770] ss:$8 sps:$4 sm:$0xff]  }
0x10f1   : > { %7419 = vmatmul.mubr.bf16.gmra.mrb[184].mxu1 %v12143_v22 }
0x10f2   : > { %7520 = vmatpush1.bf16.msra.mxu1 %v10321_v62  ;;  %7547 = vmatprep.mubr.bf16.mxu1 %v12137_v30 }
0x10f3   : > { %7521 = vmatprep.subr.bf16.mxu1 %v10322_v63 }
0x10f6   : > { %7522 = vmatpush1.bf16.msra.mxu1 %v10323_v0 }
0x10f7   : > { %7523 = vmatprep.subr.bf16.mxu1 %v10324_v56 }
0x10fa   : > { %7524 = vmatpush1.bf16.msra.mxu1 %v10325_v49 }
0x10fb   : > { %7525 = vmatprep.subr.bf16.mxu1 %v10326_v13 }
0x10fe   : > { %7526 = vmatpush1.bf16.msra.mxu1 %v10327_v31  ;;  %v10364_v31 = vld [vmem:[#allocation5 + $0x784] ss:$8 sps:$4 sm:$0xff]  }
0x10ff   : > { %7527 = vmatprep.subr.bf16.mxu1 %v10328_v19 }
0x1102   : > { %7528 = vmatpush1.bf16.msra.mxu1 %v10329_v37 }
0x1103   : > { %7529 = vmatprep.subr.bf16.mxu1 %v10330_v54  ;;  %v10365_v54 = vld [vmem:[#allocation5 + $0x780] ss:$8 sps:$4 sm:$0xff]  }
0x1106   : > { %7530 = vmatpush1.bf16.msra.mxu1 %v10331_v27  ;;  %v9760_v27 = vld [vmem:[#allocation16 + $0x10] sm:$0xff]  }
0x1107   : > { %7531 = vmatprep.subr.bf16.mxu1 %v10332_v21  ;;  %v10366_v21 = vld [vmem:[#allocation5 + $0x794] ss:$8 sps:$4 sm:$0xff]  }
0x110a   : > { %7532 = vmatpush1.bf16.msra.mxu1 %v10333_v3  ;;  %v10367_v3 = vld [vmem:[#allocation5 + $0x790] ss:$8 sps:$4 sm:$0xff]  }
0x110b   : > { %7533 = vmatprep.subr.bf16.mxu1 %v10334_v59  ;;  %v10368_v59 = vld [vmem:[#allocation5 + $0x7a4] ss:$8 sps:$4 sm:$0xff]  }
0x110e   : > { %7534 = vmatpush1.bf16.msra.mxu1 %v10335_v48  ;;  %v10369_v48 = vld [vmem:[#allocation5 + $0x7a0] ss:$8 sps:$4 sm:$0xff]  }
0x110f   : > { %7535 = vmatprep.subr.bf16.mxu1 %v10336_v47  ;;  %v9761_v47 = vld [vmem:[#allocation16 + $0x18] sm:$0xff]  }
0x1112   : > { %7536 = vmatpush1.bf16.msra.mxu1 %v10337_v24  ;;  %v10370_v24 = vld [vmem:[#allocation5 + $0x7b4] ss:$8 sps:$4 sm:$0xff]  }
0x1113   : > { %7537 = vmatprep.subr.bf16.mxu1 %v10338_v6  ;;  %v10371_v6 = vld [vmem:[#allocation5 + $0x7b0] ss:$8 sps:$4 sm:$0xff]  }
0x1116   : > { %7538 = vmatpush1.bf16.msra.mxu1 %v10339_v15  ;;  %v10372_v15 = vld [vmem:[#allocation5 + $0x7c4] ss:$8 sps:$4 sm:$0xff]  }
0x1117   : > { %7539 = vmatprep.subr.bf16.mxu1 %v10340_v55  ;;  %v10373_v55 = vld [vmem:[#allocation5 + $0x7c0] ss:$8 sps:$4 sm:$0xff]  }
0x111a   : > { %7540 = vmatpush1.bf16.msra.mxu1 %v10341_v57  ;;  %v9762_v57 = vld [vmem:[#allocation16] sm:$0xff]  }
0x111b   : > { %7541 = vmatprep.subr.bf16.mxu1 %v10342_v5  ;;  %v10374_v5 = vld [vmem:[#allocation5 + $0x7d4] ss:$8 sps:$4 sm:$0xff]  }
0x111e   : > { %7542 = vmatpush1.bf16.msra.mxu1 %v10343_v2  ;;  %v10375_v2 = vld [vmem:[#allocation5 + $0x7d0] ss:$8 sps:$4 sm:$0xff]  }
0x111f   : > { %7543 = vmatprep.subr.bf16.mxu1 %v10344_v45  ;;  %v10376_v45 = vld [vmem:[#allocation5 + $0x7e4] ss:$8 sps:$4 sm:$0xff]  }
0x1122   : > { %7544 = vmatpush1.bf16.msra.mxu1 %v10345_v53  ;;  %v10377_v53 = vld [vmem:[#allocation5 + $0x7e0] ss:$8 sps:$4 sm:$0xff]  }
0x1123   : > { %7545 = vmatprep.subr.bf16.mxu1 %v10346_v18  ;;  %v9763_v18 = vld [vmem:[#allocation16 + $0x8] sm:$0xff]  }
0x1126   : > { %7546 = vmatpush1.bf16.msra.mxu1 %v10347_v28  ;;  %v10378_v28 = vld [vmem:[#allocation5 + $0x7f4] ss:$8 sps:$4 sm:$0xff]  }
0x1127   : > { %7793 = vmatprep.subr.bf16.mxu1 %v10348_v60  ;;  %v10379_v60 = vld [vmem:[#allocation5 + $0x7f0] ss:$8 sps:$4 sm:$0xff]  }
0x1129   : > { %7548 = vmatmul.mubr.bf16.vlgmr.msra.gmra.mrb[188].mxu1 %v12135_v7 }
0x112a   : > { %7557 = vmatprep.mubr.bf16.mxu1 %v12145_v43  ;;  %7794 = vmatpush1.bf16.msra.mxu1 %v10349_v58 }
0x112b   : > { %7795 = vmatprep.subr.bf16.mxu1 %v10350_v4 }
0x112e   : > { %7796 = vmatpush1.bf16.msra.mxu1 %v10351_v39 }
0x112f   : > { %7797 = vmatprep.subr.bf16.mxu1 %v10352_v34 }
0x1131   : > { %7558 = vmatmul.mubr.bf16.gmra.mrb[192].mxu1 %v12143_v22 }
0x1132   : > { %7798 = vmatpush1.bf16.msra.mxu1 %v10353_v38  ;;  %7825 = vmatprep.mubr.bf16.mxu1 %v12137_v30 }
0x1133   : > { %7799 = vmatprep.subr.bf16.mxu1 %v10354_v11 }
0x1136   : > { %7800 = vmatpush1.bf16.msra.mxu1 %v10355_v12 }
0x1137   : > { %7801 = vmatprep.subr.bf16.mxu1 %v10356_v42 }
0x113a   : > { %7802 = vmatpush1.bf16.msra.mxu1 %v10357_v16 }
0x113b   : > { %7803 = vmatprep.subr.bf16.mxu1 %v10358_v61 }
0x113c   : > { %v6871_v25 = vpop.f32.mrb[132].mxu0  ;;  %v6932_v36 = vpop.f32.mrb[164].mxu1 }
0x113d   : > { %v6873_v50 = vpop.f32.mrb[133].mxu0  ;;  %v6934_v8 = vpop.f32.mrb[165].mxu1 }
0x113e   : > { %7804 = vmatpush1.bf16.msra.mxu1 %v10359_v26  ;;  %v6875_v51 = vpop.f32.mrb[134].mxu0  ;;  %v6936_v35 = vpop.f32.mrb[166].mxu1  ;;  %v10381_v26 = vld [vmem:[#allocation5 + $0x300] ss:$8 sps:$4 sm:$0xff]  }
0x113f   : > { %v6894_v33 = vpack.c.bf16 %v6875_v51, %v6871_v25  ;;  %v6956_v52 = vpack.c.bf16 %v6936_v35, %v6932_v36  ;;  %v6877_v29 = vpop.f32.mrb[135].mxu0  ;;  %v6938_v40 = vpop.f32.mrb[167].mxu1  ;;  %7805 = vmatprep.subr.bf16.mxu1 %v10360_v44  ;;  %v10382_v51 = vld [vmem:[#allocation5 + $0x314] ss:$8 sps:$4 sm:$0xff]   ;;  %v9765_v35 = vld [vmem:[#allocation16 + $0x28] sm:$0xff]  }
0x1140   : > { %v6895_v9 = vpack.c.bf16 %v6877_v29, %v6873_v50  ;;  %v6957_v41 = vpack.c.bf16 %v6938_v40, %v6934_v8  ;;  %v9764_v50 = vld [vmem:[#allocation16 + $0x20] sm:$0xff]   ;;  %v10386_v40 = vld [vmem:[#allocation5 + $0x334] ss:$8 sps:$4 sm:$0xff]   ;;  %v10387_v44 = vld [vmem:[#allocation5 + $0x330] ss:$8 sps:$4 sm:$0xff]  }
0x1141   : > { %v10380_v8 = vld [vmem:[#allocation5 + $0x304] ss:$8 sps:$4 sm:$0xff]   ;;  %v10385_v29 = vld [vmem:[#allocation5 + $0x320] ss:$8 sps:$4 sm:$0xff]  }
0x1142   : > { %7806 = vmatpush1.bf16.msra.mxu1 %v10361_v23  ;;  %6976 = vmatprep.subr.bf16.mxu0 %v6957_v41  ;;  %v10389_v41 = vld [vmem:[#allocation5 + $0x340] ss:$8 sps:$4 sm:$0xff]   ;;  %v10390_v23 = vld [vmem:[#allocation5 + $0x354] ss:$8 sps:$4 sm:$0xff]  }
0x1143   : > { %6977 = vmatpush1.bf16.msra.mxu0 %v6956_v52  ;;  %7807 = vmatprep.subr.bf16.mxu1 %v10362_v10  ;;  %v10384_v52 = vld [vmem:[#allocation5 + $0x324] ss:$8 sps:$4 sm:$0xff]   ;;  %v10391_v10 = vld [vmem:[#allocation5 + $0x350] ss:$8 sps:$4 sm:$0xff]  }
0x1144   : > { %v6881_v14 = vpop.f32.mrb[136].mxu0  ;;  %v6942_v17 = vpop.f32.mrb[168].mxu1 }
0x1145   : > { %v6883_v32 = vpop.f32.mrb[137].mxu0  ;;  %v6944_v20 = vpop.f32.mrb[169].mxu1 }
0x1146   : > { %7808 = vmatpush1.bf16.msra.mxu1 %v10363_v46  ;;  %v6885_v62 = vpop.f32.mrb[138].mxu0  ;;  %v6946_v63 = vpop.f32.mrb[170].mxu1  ;;  %v10396_v46 = vld [vmem:[#allocation5 + $0x384] ss:$8 sps:$4 sm:$0xff]  }
0x1147   : > { %v6896_v0 = vpack.c.bf16 %v6885_v62, %v6881_v14  ;;  %v6958_v56 = vpack.c.bf16 %v6946_v63, %v6942_v17  ;;  %v6887_v49 = vpop.f32.mrb[139].mxu0  ;;  %v6948_v13 = vpop.f32.mrb[171].mxu1  ;;  %7809 = vmatprep.subr.bf16.mxu1 %v10364_v31  ;;  %v10392_v14 = vld [vmem:[#allocation5 + $0x364] ss:$8 sps:$4 sm:$0xff]   ;;  %v10393_v17 = vld [vmem:[#allocation5 + $0x360] ss:$8 sps:$4 sm:$0xff]  }
0x1148   : > { %v6897_v19 = vpack.c.bf16 %v6887_v49, %v6883_v32  ;;  %v6959_v37 = vpack.c.bf16 %v6948_v13, %v6944_v20  ;;  %v10394_v32 = vld [vmem:[#allocation5 + $0x374] ss:$8 sps:$4 sm:$0xff]   ;;  %v10395_v20 = vld [vmem:[#allocation5 + $0x370] ss:$8 sps:$4 sm:$0xff]   ;;  %v10397_v62 = vld [vmem:[#allocation5 + $0x380] ss:$8 sps:$4 sm:$0xff]  }
0x1149   : > { %v10398_v63 = vld [vmem:[#allocation5 + $0x394] ss:$8 sps:$4 sm:$0xff]   ;;  %v10401_v49 = vld [vmem:[#allocation5 + $0x3a0] ss:$8 sps:$4 sm:$0xff]   ;;  %v10403_v31 = vld [vmem:[#allocation5 + $0x3b0] ss:$8 sps:$4 sm:$0xff]  }
0x114a   : > { %7810 = vmatpush1.bf16.msra.mxu1 %v10365_v54  ;;  %6978 = vmatprep.subr.bf16.mxu0 %v6959_v37  ;;  %v10402_v13 = vld [vmem:[#allocation5 + $0x3b4] ss:$8 sps:$4 sm:$0xff]   ;;  %v10404_v37 = vld [vmem:[#allocation5 + $0x3c4] ss:$8 sps:$4 sm:$0xff]  }
0x114b   : > { %6979 = vmatpush1.bf16.msra.mxu0 %v6958_v56  ;;  %7811 = vmatprep.subr.bf16.mxu1 %v10366_v21  ;;  %v10400_v56 = vld [vmem:[#allocation5 + $0x3a4] ss:$8 sps:$4 sm:$0xff]  }
0x114c   : > { %7045 = vmatprep.subr.bf16.mxu0 %v6895_v9  ;;  %v10388_v9 = vld [vmem:[#allocation5 + $0x344] ss:$8 sps:$4 sm:$0xff]  }
0x114e   : > { %7812 = vmatpush1.bf16.msra.mxu1 %v10367_v3  ;;  %8811 = vmatmul.mubr.msk.bf16.vlgmr.msra.gmra.mrb[140].mxu0 %vm1452_vm1, %v9760_v27  ;;  %v10405_v3 = vld [vmem:[#allocation5 + $0x3c0] ss:$8 sps:$4 sm:$0xff]  }
0x114f   : > { %7046 = vmatpush1.bf16.msra.mxu0 %v6894_v33  ;;  %7813 = vmatprep.subr.bf16.mxu1 %v10368_v59  ;;  %v10383_v33 = vld [vmem:[#allocation5 + $0x310] ss:$8 sps:$4 sm:$0xff]  }
0x1150   : > { %7047 = vmatprep.subr.bf16.mxu0 %v6897_v19  ;;  %7018 = vmatprep.mubr.bf16.mxu0 %v12426_v1 }
0x1152   : > { %7814 = vmatpush1.bf16.msra.mxu1 %v10369_v48 }
0x1153   : > { %7048 = vmatpush1.bf16.msra.mxu0 %v6896_v0  ;;  %7815 = vmatprep.subr.bf16.mxu1 %v10370_v24  ;;  %v10399_v0 = vld [vmem:[#allocation5 + $0x390] ss:$8 sps:$4 sm:$0xff]  }
0x1154   : > { %v10407_v24 = vld [vmem:[#allocation5 + $0x3d0] ss:$8 sps:$4 sm:$0xff]  }
0x1156   : > { %7816 = vmatpush1.bf16.msra.mxu1 %v10371_v6  ;;  %8812 = vmatmul.mubr.msk.bf16.gmra.mrb[144].mxu0 %vm1452_vm1, %v9761_v47  ;;  %v10406_v47 = vld [vmem:[#allocation5 + $0x3d4] ss:$8 sps:$4 sm:$0xff]  }
0x1157   : > { %7817 = vmatprep.subr.bf16.mxu1 %v10372_v15  ;;  %7077 = vmatprep.mubr.bf16.mxu0 %v12426_v1  ;;  %v10408_v15 = vld [vmem:[#allocation5 + $0x3e4] ss:$8 sps:$4 sm:$0xff]  }
0x115a   : > { %7818 = vmatpush1.bf16.msra.mxu1 %v10373_v55 }
0x115b   : > { %7819 = vmatprep.subr.bf16.mxu1 %v10374_v5 }
0x115e   : > { %7820 = vmatpush1.bf16.msra.mxu1 %v10375_v2  ;;  %8815 = vmatmul.mubr.msk.bf16.vlgmr.msra.gmra.mrb[140].mxu0 %vm1452_vm1, %v9762_v57  ;;  %v10409_v2 = vld [vmem:[#allocation5 + $0x3e0] ss:$8 sps:$4 sm:$0xff]  }
0x115f   : > { %7821 = vmatprep.subr.bf16.mxu1 %v10376_v45  ;;  %7087 = vmatprep.mubr.bf16.mxu0 %v12426_v1 }
0x1162   : > { %7822 = vmatpush1.bf16.msra.mxu1 %v10377_v53 }
0x1163   : > { %7823 = vmatprep.subr.bf16.mxu1 %v10378_v28  ;;  %v10411_v28 = vld [vmem:[#allocation5 + $0x3f0] ss:$8 sps:$4 sm:$0xff]  }
0x1166   : > { %7824 = vmatpush1.bf16.msra.mxu1 %v10379_v60  ;;  %8816 = vmatmul.mubr.msk.bf16.gmra.mrb[144].mxu0 %vm1452_vm1, %v9763_v18  ;;  %v10410_v18 = vld [vmem:[#allocation5 + $0x3f4] ss:$8 sps:$4 sm:$0xff]  }
0x1167   : > { %7208 = vmatprep.mubr.bf16.mxu0 %v12426_v1 }
0x1169   : > { %7826 = vmatmul.mubr.bf16.vlgmr.msra.gmra.mrb[196].mxu1 %v12135_v7 }
0x116a   : > { %7835 = vmatprep.mubr.bf16.mxu1 %v12145_v43 }
0x1171   : > { %7836 = vmatmul.mubr.bf16.gmra.mrb[200].mxu1 %v12143_v22 }
0x117c   : > { %v7132_v58 = vpop.f32.mrb[172].mxu1 }
0x117d   : > { %v7134_v4 = vpop.f32.mrb[173].mxu1 }
0x117e   : > { %v7136_v39 = vpop.f32.mrb[174].mxu1 }
0x117f   : > { %v7156_v34 = vpack.c.bf16 %v7136_v39, %v7132_v58  ;;  %v7138_v38 = vpop.f32.mrb[175].mxu1 }
0x1180   : > { %v7157_v11 = vpack.c.bf16 %v7138_v38, %v7134_v4 }
0x1182   : > { %7176 = vmatprep.subr.bf16.mxu0 %v7157_v11 }
0x1183   : > { %7177 = vmatpush1.bf16.msra.mxu0 %v7156_v34 }
0x1184   : > { %v7142_v12 = vpop.f32.mrb[176].mxu1 }
0x1185   : > { %v7144_v42 = vpop.f32.mrb[177].mxu1 }
0x1186   : > { %v7146_v16 = vpop.f32.mrb[178].mxu1 }
0x1187   : > { %v7158_v61 = vpack.c.bf16 %v7146_v16, %v7142_v12  ;;  %v7148_v25 = vpop.f32.mrb[179].mxu1 }
0x1188   : > { %v7159_v36 = vpack.c.bf16 %v7148_v25, %v7144_v42 }
0x118a   : > { %7178 = vmatprep.subr.bf16.mxu0 %v7159_v36 }
0x118b   : > { %7179 = vmatpush1.bf16.msra.mxu0 %v7158_v61 }
0x118c   : > { %7237 = vmatprep.subr.bf16.mxu0 %v10380_v8 }
0x118e   : > { %8819 = vmatmul.mubr.msk.bf16.vlgmr.msra.gmra.mrb[140].mxu0 %vm1452_vm1, %v9764_v50 }
0x118f   : > { %7238 = vmatpush1.bf16.msra.mxu0 %v10381_v26  ;;  %7218 = vmatprep.mubr.bf16.mxu0 %v12426_v1 }
0x1190   : > { %7239 = vmatprep.subr.bf16.mxu0 %v10382_v51 }
0x1193   : > { %7240 = vmatpush1.bf16.msra.mxu0 %v10383_v33 }
0x1194   : > { %7241 = vmatprep.subr.bf16.mxu0 %v10384_v52 }
0x1196   : > { %8820 = vmatmul.mubr.msk.bf16.gmra.mrb[144].mxu0 %vm1452_vm1, %v9765_v35 }
0x1197   : > { %7242 = vmatpush1.bf16.msra.mxu0 %v10385_v29  ;;  %7269 = vmatprep.mubr.bf16.mxu0 %v12137_v30 }
0x1198   : > { %7243 = vmatprep.subr.bf16.mxu0 %v10386_v40 }
0x119b   : > { %7244 = vmatpush1.bf16.msra.mxu0 %v10387_v44 }
0x119c   : > { %7245 = vmatprep.subr.bf16.mxu0 %v10388_v9 }
0x119f   : > { %7246 = vmatpush1.bf16.msra.mxu0 %v10389_v41 }
0x11a0   : > { %7247 = vmatprep.subr.bf16.mxu0 %v10390_v23 }
0x11a3   : > { %7248 = vmatpush1.bf16.msra.mxu0 %v10391_v10 }
0x11a4   : > { %7249 = vmatprep.subr.bf16.mxu0 %v10392_v14 }
0x11a7   : > { %7250 = vmatpush1.bf16.msra.mxu0 %v10393_v17 }
0x11a8   : > { %7251 = vmatprep.subr.bf16.mxu0 %v10394_v32 }
0x11ab   : > { %7252 = vmatpush1.bf16.msra.mxu0 %v10395_v20 }
0x11ac   : > { %7253 = vmatprep.subr.bf16.mxu0 %v10396_v46 }
0x11af   : > { %7254 = vmatpush1.bf16.msra.mxu0 %v10397_v62 }
0x11b0   : > { %7255 = vmatprep.subr.bf16.mxu0 %v10398_v63 }
0x11b3   : > { %7256 = vmatpush1.bf16.msra.mxu0 %v10399_v0 }
0x11b4   : > { %7257 = vmatprep.subr.bf16.mxu0 %v10400_v56 }
0x11b7   : > { %7258 = vmatpush1.bf16.msra.mxu0 %v10401_v49  ;;  %v9766_v49 = vld [vmem:[#allocation16 + $0x30] sm:$0xff]  }
0x11b8   : > { %7259 = vmatprep.subr.bf16.mxu0 %v10402_v13  ;;  %v9767_v13 = vld [vmem:[#allocation16 + $0x38] sm:$0xff]  }
0x11bb   : > { %7260 = vmatpush1.bf16.msra.mxu0 %v10403_v31  ;;  %v9768_v31 = vld [vmem:[#allocation16 + $0x40] sm:$0xff]  }
0x11bc   : > { %v12180_v19 = vpop.f32.mrb[180].mxu1  ;;  %7261 = vmatprep.subr.bf16.mxu0 %v10404_v37  ;;  %v9769_v37 = vld [vmem:[#allocation16 + $0x48] sm:$0xff]  }
0x11bd   : > { %v12182_v54 = vpop.f32.mrb[181].mxu1 }
0x11be   : > { %v12184_v27 = vpop.f32.mrb[182].mxu1 }
0x11bf   : > { %v7434_v21 = vpack.c.bf16 %v12184_v27, %v12180_v19  ;;  %7262 = vmatpush1.bf16.msra.mxu0 %v10405_v3  ;;  %v12188_v59 = vpop.f32.mrb[183].mxu1  ;;  %v10412_v19 = vld [vmem:[#allocation5 + $0x604] ss:$8 sps:$4 sm:$0xff]   ;;  %v10413_v27 = vld [vmem:[#allocation5 + $0x600] ss:$8 sps:$4 sm:$0xff]  }
0x11c0   : > { %v7435_v48 = vpack.c.bf16 %v12188_v59, %v12182_v54  ;;  %7263 = vmatprep.subr.bf16.mxu0 %v10406_v47  ;;  %v9770_v54 = vld [vmem:[#allocation16 + $0x50] sm:$0xff]   ;;  %v9771_v3 = vld [vmem:[#allocation16 + $0x58] sm:$0xff]  }
0x11c1   : > { %v10415_v59 = vld [vmem:[#allocation5 + $0x610] ss:$8 sps:$4 sm:$0xff]   ;;  %v10417_v47 = vld [vmem:[#allocation5 + $0x620] ss:$8 sps:$4 sm:$0xff]  }
0x11c3   : > { %7264 = vmatpush1.bf16.msra.mxu0 %v10407_v24  ;;  %v10418_v24 = vld [vmem:[#allocation5 + $0x634] ss:$8 sps:$4 sm:$0xff]  }
0x11c4   : > { %v12192_v6 = vpop.f32.mrb[184].mxu1  ;;  %7265 = vmatprep.subr.bf16.mxu0 %v10408_v15  ;;  %v10420_v15 = vld [vmem:[#allocation5 + $0x644] ss:$8 sps:$4 sm:$0xff]  }
0x11c5   : > { %v7422_v55 = vpop.f32.mrb[185].mxu1 }
0x11c6   : > { %v7424_v57 = vpop.f32.mrb[186].mxu1 }
0x11c7   : > { %v7436_v5 = vpack.c.bf16 %v7424_v57, %v12192_v6  ;;  %7266 = vmatpush1.bf16.msra.mxu0 %v10409_v2  ;;  %v7426_v45 = vpop.f32.mrb[187].mxu1  ;;  %v10419_v6 = vld [vmem:[#allocation5 + $0x630] ss:$8 sps:$4 sm:$0xff]   ;;  %v10422_v57 = vld [vmem:[#allocation5 + $0x654] ss:$8 sps:$4 sm:$0xff]  }
0x11c8   : > { %v7437_v53 = vpack.c.bf16 %v7426_v45, %v7422_v55  ;;  %7267 = vmatprep.subr.bf16.mxu0 %v10410_v18  ;;  %v10421_v55 = vld [vmem:[#allocation5 + $0x640] ss:$8 sps:$4 sm:$0xff]   ;;  %v10424_v2 = vld [vmem:[#allocation5 + $0x664] ss:$8 sps:$4 sm:$0xff]   ;;  %v10427_v18 = vld [vmem:[#allocation5 + $0x670] ss:$8 sps:$4 sm:$0xff]  }
0x11c9   : > { %v10425_v45 = vld [vmem:[#allocation5 + $0x660] ss:$8 sps:$4 sm:$0xff]  }
0x11cb   : > { %7268 = vmatpush1.bf16.msra.mxu0 %v10411_v28  ;;  %v10428_v28 = vld [vmem:[#allocation5 + $0x684] ss:$8 sps:$4 sm:$0xff]  }
0x11ce   : > { %7270 = vmatmul.mubr.bf16.vlgmr.msra.gmra.mrb[148].mxu0 %v12135_v7 }
0x11cf   : > { %7279 = vmatprep.mubr.bf16.mxu0 %v12145_v43 }
0x11d6   : > { %7280 = vmatmul.mubr.bf16.gmra.mrb[152].mxu0 %v12143_v22 }
0x11d7   : > { %7347 = vmatprep.mubr.bf16.mxu0 %v12426_v1 }
0x11fc   : > { %v7549_v60 = vpop.f32.mrb[188].mxu1 }
0x11fd   : > { %v7551_v58 = vpop.f32.mrb[189].mxu1 }
0x11fe   : > { %v7553_v4 = vpop.f32.mrb[190].mxu1 }
0x11ff   : > { %v7573_v39 = vpack.c.bf16 %v7553_v4, %v7549_v60  ;;  %v7555_v34 = vpop.f32.mrb[191].mxu1  ;;  %v10429_v60 = vld [vmem:[#allocation5 + $0x680] ss:$8 sps:$4 sm:$0xff]   ;;  %v10431_v4 = vld [vmem:[#allocation5 + $0x690] ss:$8 sps:$4 sm:$0xff]  }
0x1200   : > { %v7574_v38 = vpack.c.bf16 %v7555_v34, %v7551_v58  ;;  %v10430_v58 = vld [vmem:[#allocation5 + $0x694] ss:$8 sps:$4 sm:$0xff]   ;;  %v10433_v34 = vld [vmem:[#allocation5 + $0x6a0] ss:$8 sps:$4 sm:$0xff]  }
0x1204   : > { %v7559_v11 = vpop.f32.mrb[192].mxu1 }
0x1205   : > { %v7561_v12 = vpop.f32.mrb[193].mxu1 }
0x1206   : > { %v7563_v42 = vpop.f32.mrb[194].mxu1 }
0x1207   : > { %v7575_v16 = vpack.c.bf16 %v7563_v42, %v7559_v11  ;;  %v7565_v61 = vpop.f32.mrb[195].mxu1  ;;  %v10435_v11 = vld [vmem:[#allocation5 + $0x6b0] ss:$8 sps:$4 sm:$0xff]   ;;  %v10437_v42 = vld [vmem:[#allocation5 + $0x6c0] ss:$8 sps:$4 sm:$0xff]  }
0x1208   : > { %v7576_v25 = vpack.c.bf16 %v7565_v61, %v7561_v12  ;;  %v10436_v12 = vld [vmem:[#allocation5 + $0x6c4] ss:$8 sps:$4 sm:$0xff]   ;;  %v10439_v61 = vld [vmem:[#allocation5 + $0x6d0] ss:$8 sps:$4 sm:$0xff]  }
0x123c   : > { %v12199_v36 = vpop.f32.mrb[196].mxu1 }
0x123d   : > { %v12201_v50 = vpop.f32.mrb[197].mxu1 }
0x123e   : > { %v12203_v8 = vpop.f32.mrb[198].mxu1 }
0x123f   : > { %v7851_v26 = vpack.c.bf16 %v12203_v8, %v12199_v36  ;;  %v12207_v51 = vpop.f32.mrb[199].mxu1  ;;  %v10445_v36 = vld [vmem:[#allocation5 + $0x800] ss:$8 sps:$4 sm:$0xff]   ;;  %v10446_v8 = vld [vmem:[#allocation5 + $0x814] ss:$8 sps:$4 sm:$0xff]  }
0x1240   : > { %v7852_v35 = vpack.c.bf16 %v12207_v51, %v12201_v50  ;;  %v9774_v50 = vld [vmem:[#allocation16 + $0x70] sm:$0xff]  }
0x1241   : > { %v10447_v51 = vld [vmem:[#allocation5 + $0x810] ss:$8 sps:$4 sm:$0xff]  }
0x1244   : > { %v12211_v33 = vpop.f32.mrb[200].mxu1 }
0x1245   : > { %v12213_v52 = vpop.f32.mrb[201].mxu1 }
0x1246   : > { %v12215_v29 = vpop.f32.mrb[202].mxu1 }
0x1247   : > { %v7853_v40 = vpack.c.bf16 %v12215_v29, %v12211_v33  ;;  %v12219_v44 = vpop.f32.mrb[203].mxu1  ;;  %v10449_v33 = vld [vmem:[#allocation5 + $0x820] ss:$8 sps:$4 sm:$0xff]   ;;  %v10451_v29 = vld [vmem:[#allocation5 + $0x830] ss:$8 sps:$4 sm:$0xff]  }
0x1248   : > { %v7854_v9 = vpack.c.bf16 %v12219_v44, %v12213_v52  ;;  %v10450_v52 = vld [vmem:[#allocation5 + $0x834] ss:$8 sps:$4 sm:$0xff]   ;;  %v10453_v44 = vld [vmem:[#allocation5 + $0x840] ss:$8 sps:$4 sm:$0xff]  }
0x12a1   : > { %v7271_v41 = vpop.f32.mrb[148].mxu0 }
0x12a2   : > { %v7273_v23 = vpop.f32.mrb[149].mxu0 }
0x12a3   : > { %v7275_v10 = vpop.f32.mrb[150].mxu0 }
0x12a4   : > { %v7295_v14 = vpack.c.bf16 %v7275_v10, %v7271_v41  ;;  %v7277_v17 = vpop.f32.mrb[151].mxu0  ;;  %v10441_v41 = vld [vmem:[#allocation5 + $0x6e0] ss:$8 sps:$4 sm:$0xff]   ;;  %v10443_v10 = vld [vmem:[#allocation5 + $0x6f0] ss:$8 sps:$4 sm:$0xff]  }
0x12a5   : > { %v7296_v32 = vpack.c.bf16 %v7277_v17, %v7273_v23  ;;  %v10442_v23 = vld [vmem:[#allocation5 + $0x6f4] ss:$8 sps:$4 sm:$0xff]  }
0x12a7   : > { %7315 = vmatprep.subr.bf16.mxu0 %v7296_v32 }
0x12a8   : > { %7316 = vmatpush1.bf16.msra.mxu0 %v7295_v14 }
0x12a9   : > { %v7281_v20 = vpop.f32.mrb[152].mxu0 }
0x12aa   : > { %v7283_v46 = vpop.f32.mrb[153].mxu0 }
0x12ab   : > { %v7285_v62 = vpop.f32.mrb[154].mxu0 }
0x12ac   : > { %v7297_v63 = vpack.c.bf16 %v7285_v62, %v7281_v20  ;;  %v7287_v0 = vpop.f32.mrb[155].mxu0 }
0x12ad   : > { %v7298_v56 = vpack.c.bf16 %v7287_v0, %v7283_v46 }
0x12af   : > { %7317 = vmatprep.subr.bf16.mxu0 %v7298_v56 }
0x12b0   : > { %7318 = vmatpush1.bf16.msra.mxu0 %v7297_v63 }
0x12b1   : > { %7454 = vmatprep.subr.bf16.mxu0 %v7435_v48  ;;  %v10416_v48 = vld [vmem:[#allocation5 + $0x624] ss:$8 sps:$4 sm:$0xff]  }
0x12b3   : > { %8823 = vmatmul.mubr.msk.bf16.vlgmr.msra.gmra.mrb[140].mxu0 %vm1452_vm1, %v9766_v49 }
0x12b4   : > { %7455 = vmatpush1.bf16.msra.mxu0 %v7434_v21  ;;  %7357 = vmatprep.mubr.bf16.mxu0 %v12426_v1  ;;  %v10414_v21 = vld [vmem:[#allocation5 + $0x614] ss:$8 sps:$4 sm:$0xff]  }
0x12b5   : > { %7456 = vmatprep.subr.bf16.mxu0 %v7437_v53  ;;  %v10426_v53 = vld [vmem:[#allocation5 + $0x674] ss:$8 sps:$4 sm:$0xff]  }
0x12b8   : > { %7457 = vmatpush1.bf16.msra.mxu0 %v7436_v5  ;;  %v10423_v5 = vld [vmem:[#allocation5 + $0x650] ss:$8 sps:$4 sm:$0xff]  }
0x12b9   : > { %7593 = vmatprep.subr.bf16.mxu0 %v7574_v38  ;;  %v10434_v38 = vld [vmem:[#allocation5 + $0x6b4] ss:$8 sps:$4 sm:$0xff]  }
0x12bb   : > { %8824 = vmatmul.mubr.msk.bf16.gmra.mrb[144].mxu0 %vm1452_vm1, %v9767_v13 }
0x12bc   : > { %7486 = vmatprep.mubr.bf16.mxu0 %v12426_v1 }
0x12c3   : > { %8827 = vmatmul.mubr.msk.bf16.vlgmr.msra.gmra.mrb[140].mxu0 %vm1452_vm1, %v9768_v31 }
0x12c4   : > { %7594 = vmatpush1.bf16.msra.mxu0 %v7573_v39  ;;  %7496 = vmatprep.mubr.bf16.mxu0 %v12426_v1  ;;  %v10432_v39 = vld [vmem:[#allocation5 + $0x6a4] ss:$8 sps:$4 sm:$0xff]  }
0x12c5   : > { %7595 = vmatprep.subr.bf16.mxu0 %v7576_v25  ;;  %v10440_v25 = vld [vmem:[#allocation5 + $0x6e4] ss:$8 sps:$4 sm:$0xff]  }
0x12c8   : > { %7596 = vmatpush1.bf16.msra.mxu0 %v7575_v16  ;;  %v10438_v16 = vld [vmem:[#allocation5 + $0x6d4] ss:$8 sps:$4 sm:$0xff]  }
0x12c9   : > { %7654 = vmatprep.subr.bf16.mxu0 %v10412_v19  ;;  %v9773_v19 = vld [vmem:[#allocation16 + $0x68] sm:$0xff]  }
0x12cb   : > { %8828 = vmatmul.mubr.msk.bf16.gmra.mrb[144].mxu0 %vm1452_vm1, %v9769_v37  ;;  %v9772_v37 = vld [vmem:[#allocation16 + $0x60] sm:$0xff]  }
0x12cc   : > { %7625 = vmatprep.mubr.bf16.mxu0 %v12426_v1 }
0x12d3   : > { %8831 = vmatmul.mubr.msk.bf16.vlgmr.msra.gmra.mrb[140].mxu0 %vm1452_vm1, %v9770_v54  ;;  %v10444_v54 = vld [vmem:[#allocation5 + $0x804] ss:$8 sps:$4 sm:$0xff]  }
0x12d4   : > { %7655 = vmatpush1.bf16.msra.mxu0 %v10413_v27  ;;  %7635 = vmatprep.mubr.bf16.mxu0 %v12426_v1  ;;  %v10455_v27 = vld [vmem:[#allocation5 + $0x850] ss:$8 sps:$4 sm:$0xff]  }
0x12d5   : > { %7656 = vmatprep.subr.bf16.mxu0 %v10414_v21  ;;  %v10456_v21 = vld [vmem:[#allocation5 + $0x864] ss:$8 sps:$4 sm:$0xff]  }
0x12d8   : > { %7657 = vmatpush1.bf16.msra.mxu0 %v10415_v59  ;;  %v10458_v59 = vld [vmem:[#allocation5 + $0x874] ss:$8 sps:$4 sm:$0xff]  }
0x12d9   : > { %7658 = vmatprep.subr.bf16.mxu0 %v10416_v48  ;;  %v10459_v48 = vld [vmem:[#allocation5 + $0x870] ss:$8 sps:$4 sm:$0xff]  }
0x12db   : > { %8832 = vmatmul.mubr.msk.bf16.gmra.mrb[144].mxu0 %vm1452_vm1, %v9771_v3  ;;  %v10457_v3 = vld [vmem:[#allocation5 + $0x860] ss:$8 sps:$4 sm:$0xff]  }
0x12dc   : > { %7659 = vmatpush1.bf16.msra.mxu0 %v10417_v47  ;;  %7686 = vmatprep.mubr.bf16.mxu0 %v12137_v30  ;;  %v10461_v47 = vld [vmem:[#allocation5 + $0x880] ss:$8 sps:$4 sm:$0xff]  }
0x12dd   : > { %7660 = vmatprep.subr.bf16.mxu0 %v10418_v24  ;;  %v10462_v24 = vld [vmem:[#allocation5 + $0x894] ss:$8 sps:$4 sm:$0xff]  }
0x12e0   : > { %7661 = vmatpush1.bf16.msra.mxu0 %v10419_v6  ;;  %v10463_v6 = vld [vmem:[#allocation5 + $0x890] ss:$8 sps:$4 sm:$0xff]  }
0x12e1   : > { %7662 = vmatprep.subr.bf16.mxu0 %v10420_v15  ;;  %v10464_v15 = vld [vmem:[#allocation5 + $0x8a4] ss:$8 sps:$4 sm:$0xff]  }
0x12e4   : > { %7663 = vmatpush1.bf16.msra.mxu0 %v10421_v55  ;;  %v10465_v55 = vld [vmem:[#allocation5 + $0x8a0] ss:$8 sps:$4 sm:$0xff]  }
0x12e5   : > { %7664 = vmatprep.subr.bf16.mxu0 %v10422_v57  ;;  %v10466_v57 = vld [vmem:[#allocation5 + $0x8b4] ss:$8 sps:$4 sm:$0xff]  }
0x12e8   : > { %7665 = vmatpush1.bf16.msra.mxu0 %v10423_v5  ;;  %v10467_v5 = vld [vmem:[#allocation5 + $0x8b0] ss:$8 sps:$4 sm:$0xff]  }
0x12e9   : > { %7666 = vmatprep.subr.bf16.mxu0 %v10424_v2  ;;  %v10468_v2 = vld [vmem:[#allocation5 + $0x8c4] ss:$8 sps:$4 sm:$0xff]  }
0x12ec   : > { %7667 = vmatpush1.bf16.msra.mxu0 %v10425_v45  ;;  %v10469_v45 = vld [vmem:[#allocation5 + $0x8c0] ss:$8 sps:$4 sm:$0xff]  }
0x12ed   : > { %7668 = vmatprep.subr.bf16.mxu0 %v10426_v53  ;;  %v10470_v53 = vld [vmem:[#allocation5 + $0x8d4] ss:$8 sps:$4 sm:$0xff]  }
0x12f0   : > { %7669 = vmatpush1.bf16.msra.mxu0 %v10427_v18  ;;  %v10471_v18 = vld [vmem:[#allocation5 + $0x8d0] ss:$8 sps:$4 sm:$0xff]  }
0x12f1   : > { %7670 = vmatprep.subr.bf16.mxu0 %v10428_v28  ;;  %v10472_v28 = vld [vmem:[#allocation5 + $0x8e4] ss:$8 sps:$4 sm:$0xff]  }
0x12f4   : > { %7671 = vmatpush1.bf16.msra.mxu0 %v10429_v60  ;;  %v10473_v60 = vld [vmem:[#allocation5 + $0x8e0] ss:$8 sps:$4 sm:$0xff]  }
0x12f5   : > { %7672 = vmatprep.subr.bf16.mxu0 %v10430_v58  ;;  %v10474_v58 = vld [vmem:[#allocation5 + $0x8f4] ss:$8 sps:$4 sm:$0xff]  }
0x12f8   : > { %7673 = vmatpush1.bf16.msra.mxu0 %v10431_v4  ;;  %v10475_v4 = vld [vmem:[#allocation5 + $0x8f0] ss:$8 sps:$4 sm:$0xff]  }
0x12f9   : > { %7674 = vmatprep.subr.bf16.mxu0 %v10432_v39 }
0x12fc   : > { %7675 = vmatpush1.bf16.msra.mxu0 %v10433_v34 }
0x12fd   : > { %7676 = vmatprep.subr.bf16.mxu0 %v10434_v38 }
0x1300   : > { %7677 = vmatpush1.bf16.msra.mxu0 %v10435_v11 }
0x1301   : > { %7678 = vmatprep.subr.bf16.mxu0 %v10436_v12 }
0x1304   : > { %7679 = vmatpush1.bf16.msra.mxu0 %v10437_v42 }
0x1305   : > { %7680 = vmatprep.subr.bf16.mxu0 %v10438_v16 }
0x1308   : > { %7681 = vmatpush1.bf16.msra.mxu0 %v10439_v61 }
0x1309   : > { %7682 = vmatprep.subr.bf16.mxu0 %v10440_v25 }
0x130c   : > { %7683 = vmatpush1.bf16.msra.mxu0 %v10441_v41 }
0x130d   : > { %7684 = vmatprep.subr.bf16.mxu0 %v10442_v23 }
0x1310   : > { %7685 = vmatpush1.bf16.msra.mxu0 %v10443_v10  ;;  %v8078_v10 = vpop.permute.xlu0 %8077 }
0x1313   : > { %7687 = vmatmul.mubr.bf16.vlgmr.msra.gmra.mrb[156].mxu0 %v12135_v7 }
0x1314   : > { %7696 = vmatprep.mubr.bf16.mxu0 %v12145_v43 }
0x131b   : > { %7697 = vmatmul.mubr.bf16.gmra.mrb[160].mxu0 %v12143_v22 }
0x131c   : > { %7764 = vmatprep.mubr.bf16.mxu0 %v12426_v1 }
0x13e6   : > { %v7688_v14 = vpop.f32.mrb[156].mxu0 }
0x13e7   : > { %v7690_v17 = vpop.f32.mrb[157].mxu0 }
0x13e8   : > { %v7692_v32 = vpop.f32.mrb[158].mxu0 }
0x13e9   : > { %v7712_v20 = vpack.c.bf16 %v7692_v32, %v7688_v14  ;;  %v7694_v46 = vpop.f32.mrb[159].mxu0 }
0x13ea   : > { %v7713_v62 = vpack.c.bf16 %v7694_v46, %v7690_v17 }
0x13ec   : > { %7732 = vmatprep.subr.bf16.mxu0 %v7713_v62 }
0x13ed   : > { %7733 = vmatpush1.bf16.msra.mxu0 %v7712_v20  ;;  %v8083_v20 = vpop.permute.xlu1 %8082 }
0x13ee   : > { %v7698_v63 = vpop.f32.mrb[160].mxu0 }
0x13ef   : > { %v7700_v0 = vpop.f32.mrb[161].mxu0 }
0x13f0   : > { %v7702_v56 = vpop.f32.mrb[162].mxu0 }
0x13f1   : > { %v7714_v49 = vpack.c.bf16 %v7702_v56, %v7698_v63  ;;  %v7704_v13 = vpop.f32.mrb[163].mxu0 }
0x13f2   : > { %v7715_v31 = vpack.c.bf16 %v7704_v13, %v7700_v0 }
0x13f4   : > { %7734 = vmatprep.subr.bf16.mxu0 %v7715_v31 }
0x13f5   : > { %7735 = vmatpush1.bf16.msra.mxu0 %v7714_v49 }
0x13f6   : > { %7871 = vmatprep.subr.bf16.mxu0 %v7852_v35  ;;  %v10448_v35 = vld [vmem:[#allocation5 + $0x824] ss:$8 sps:$4 sm:$0xff]  }
0x13f8   : > { %8835 = vmatmul.mubr.msk.bf16.vlgmr.msra.gmra.mrb[140].mxu0 %vm1452_vm1, %v9772_v37 }
0x13f9   : > { %7872 = vmatpush1.bf16.msra.mxu0 %v7851_v26  ;;  %7774 = vmatprep.mubr.bf16.mxu0 %v12426_v1  ;;  %v9775_v26 = vld [vmem:[#allocation16 + $0x78] sm:$0xff]  }
0x13fa   : > { %7873 = vmatprep.subr.bf16.mxu0 %v7854_v9  ;;  %v10454_v9 = vld [vmem:[#allocation5 + $0x854] ss:$8 sps:$4 sm:$0xff]  }
0x13fd   : > { %7874 = vmatpush1.bf16.msra.mxu0 %v7853_v40  ;;  %v10452_v40 = vld [vmem:[#allocation5 + $0x844] ss:$8 sps:$4 sm:$0xff]  }
0x13fe   : > { %7932 = vmatprep.subr.bf16.mxu0 %v10444_v54 }
0x1400   : > { %8836 = vmatmul.mubr.msk.bf16.gmra.mrb[144].mxu0 %vm1452_vm1, %v9773_v19 }
0x1401   : > { %7903 = vmatprep.mubr.bf16.mxu0 %v12426_v1 }
0x1408   : > { %8839 = vmatmul.mubr.msk.bf16.vlgmr.msra.gmra.mrb[140].mxu0 %vm1452_vm1, %v9774_v50 }
0x1409   : > { %7933 = vmatpush1.bf16.msra.mxu0 %v10445_v36  ;;  %7913 = vmatprep.mubr.bf16.mxu0 %v12426_v1  ;;  %v8093_v36 = vpop.permute.xlu1 %8092 }
0x140a   : > { %7934 = vmatprep.subr.bf16.mxu0 %v10446_v8 }
0x140d   : > { %7935 = vmatpush1.bf16.msra.mxu0 %v10447_v51 }
0x140e   : > { %7936 = vmatprep.subr.bf16.mxu0 %v10448_v35 }
0x1410   : > { %8840 = vmatmul.mubr.msk.bf16.gmra.mrb[144].mxu0 %vm1452_vm1, %v9775_v26 }
0x1411   : > { %7937 = vmatpush1.bf16.msra.mxu0 %v10449_v33  ;;  %7964 = vmatprep.mubr.bf16.mxu0 %v12137_v30  ;;  %v10460_v30 = vld [vmem:[#allocation5 + $0x884] ss:$8 sps:$4 sm:$0xff]  }
0x1412   : > { %7938 = vmatprep.subr.bf16.mxu0 %v10450_v52 }
0x1415   : > { %7939 = vmatpush1.bf16.msra.mxu0 %v10451_v29 }
0x1416   : > { %7940 = vmatprep.subr.bf16.mxu0 %v10452_v40 }
0x1419   : > { %7941 = vmatpush1.bf16.msra.mxu0 %v10453_v44 }
0x141a   : > { %7942 = vmatprep.subr.bf16.mxu0 %v10454_v9 }
0x141d   : > { %7943 = vmatpush1.bf16.msra.mxu0 %v10455_v27 }
0x141e   : > { %7944 = vmatprep.subr.bf16.mxu0 %v10456_v21 }
0x1421   : > { %7945 = vmatpush1.bf16.msra.mxu0 %v10457_v3 }
0x1422   : > { %7946 = vmatprep.subr.bf16.mxu0 %v10458_v59 }
0x1425   : > { %7947 = vmatpush1.bf16.msra.mxu0 %v10459_v48 }
0x1426   : > { %7948 = vmatprep.subr.bf16.mxu0 %v10460_v30 }
0x1429   : > { %7949 = vmatpush1.bf16.msra.mxu0 %v10461_v47 }
0x142a   : > { %7950 = vmatprep.subr.bf16.mxu0 %v10462_v24 }
0x142d   : > { %7951 = vmatpush1.bf16.msra.mxu0 %v10463_v6 }
0x142e   : > { %7952 = vmatprep.subr.bf16.mxu0 %v10464_v15 }
0x1431   : > { %7953 = vmatpush1.bf16.msra.mxu0 %v10465_v55 }
0x1432   : > { %7954 = vmatprep.subr.bf16.mxu0 %v10466_v57 }
0x1435   : > { %7955 = vmatpush1.bf16.msra.mxu0 %v10467_v5 }
0x1436   : > { %7956 = vmatprep.subr.bf16.mxu0 %v10468_v2 }
0x1439   : > { %7957 = vmatpush1.bf16.msra.mxu0 %v10469_v45 }
0x143a   : > { %7958 = vmatprep.subr.bf16.mxu0 %v10470_v53 }
0x143d   : > { %7959 = vmatpush1.bf16.msra.mxu0 %v10471_v18 }
0x143e   : > { %7960 = vmatprep.subr.bf16.mxu0 %v10472_v28 }
0x1441   : > { %7961 = vmatpush1.bf16.msra.mxu0 %v10473_v60 }
0x1442   : > { %7962 = vmatprep.subr.bf16.mxu0 %v10474_v58 }
0x1445   : > { %7963 = vmatpush1.bf16.msra.mxu0 %v10475_v4 }
0x1448   : > { %7965 = vmatmul.mubr.bf16.vlgmr.msra.gmra.mrb[164].mxu0 %v12135_v7 }
0x1449   : > { %7974 = vmatprep.mubr.bf16.mxu0 %v12145_v43  ;;  %v9776_v43 = vld [vmem:[#allocation16 + $0x80] sm:$0xff]  }
0x1450   : > { %7975 = vmatmul.mubr.bf16.gmra.mrb[168].mxu0 %v12143_v22  ;;  %v9777_v22 = vld [vmem:[#allocation16 + $0x88] sm:$0xff]  }
0x1451   : > { %8042 = vmatprep.mubr.bf16.mxu0 %v12426_v1 }
0x151b   : > { %v7966_v39 = vpop.f32.mrb[164].mxu0 }
0x151c   : > { %v7968_v34 = vpop.f32.mrb[165].mxu0 }
0x151d   : > { %v7970_v38 = vpop.f32.mrb[166].mxu0 }
0x151e   : > { %v7990_v11 = vpack.c.bf16 %v7970_v38, %v7966_v39  ;;  %v7972_v12 = vpop.f32.mrb[167].mxu0 }
0x151f   : > { %v7991_v42 = vpack.c.bf16 %v7972_v12, %v7968_v34 }
0x1521   : > { %8010 = vmatprep.subr.bf16.mxu0 %v7991_v42 }
0x1522   : > { %8011 = vmatpush1.bf16.msra.mxu0 %v7990_v11 }
0x1523   : > { %v7976_v16 = vpop.f32.mrb[168].mxu0 }
0x1524   : > { %v7978_v61 = vpop.f32.mrb[169].mxu0 }
0x1525   : > { %v7980_v25 = vpop.f32.mrb[170].mxu0 }
0x1526   : > { %v7992_v41 = vpack.c.bf16 %v7980_v25, %v7976_v16  ;;  %v7982_v23 = vpop.f32.mrb[171].mxu0 }
0x1527   : > { %v7993_v7 = vpack.c.bf16 %v7982_v23, %v7978_v61 }
0x1529   : > { %8012 = vmatprep.subr.bf16.mxu0 %v7993_v7 }
0x152a   : > { %8013 = vmatpush1.bf16.msra.mxu0 %v7992_v41 }
0x152d   : > { %8843 = vmatmul.mubr.msk.bf16.vlgmr.msra.gmra.mrb[140].mxu0 %vm1452_vm1, %v9776_v43 }
0x152e   : > { %8052 = vmatprep.mubr.bf16.mxu0 %v12426_v1  ;;  %v8088_v1 = vpop.permute.xlu0 %8087 }
0x1535   : > { %8844 = vmatmul.mubr.msk.bf16.gmra.mrb[144].mxu0 %vm1452_vm1, %v9777_v22 }
0x1600   : > { %v8044_v14 = vpop.f32.mrb[140].mxu0 }
0x1601   : > { %v8095_v17 = vadd.f32 %v8078_v10, %v8044_v14  ;;  %v8046_v32 = vpop.f32.mrb[141].mxu0 }
0x1602   : > { %v8096_v46 = vadd.f32 %v8078_v10, %v8046_v32  ;;  %v8048_v62 = vpop.f32.mrb[142].mxu0 }
0x1603   : > { %v8111_v63 = vmul.f32 0.70710677, %v8095_v17  ;;  %v8097_v0 = vadd.f32 %v8083_v20, %v8048_v62  ;;  %v8050_v56 = vpop.f32.mrb[143].mxu0  ;;  %v8103_v21 = vmul.f32 0.5, %v8095_v17 }
0x1604   : > { %v8112_v49 = vmul.f32 0.70710677, %v8096_v46  ;;  %v8098_v13 = vadd.f32 %v8083_v20, %v8050_v56  ;;  %v8104_v48 = vmul.f32 0.5, %v8096_v46 }
0x1605   : > { %9884 = verf.f32 %v8111_v63  ;;  %v8113_v31 = vmul.f32 0.70710677, %v8097_v0  ;;  %v8105_v6 = vmul.f32 0.5, %v8097_v0 }
0x1606   : > { %9886 = verf.f32 %v8112_v49  ;;  %v8114_v37 = vmul.f32 0.70710677, %v8098_v13  ;;  %v8106_v57 = vmul.f32 0.5, %v8098_v13 }
0x1607   : > { %9888 = verf.f32 %v8113_v31 }
0x1608   : > { %9890 = verf.f32 %v8114_v37  ;;  %v8054_v19 = vpop.f32.mrb[144].mxu0 }
0x1609   : > { %v8099_v54 = vadd.f32 %v8088_v1, %v8054_v19  ;;  %v8056_v50 = vpop.f32.mrb[145].mxu0 }
0x160a   : > { %v8100_v8 = vadd.f32 %v8088_v1, %v8056_v50  ;;  %v8058_v26 = vpop.f32.mrb[146].mxu0 }
0x160b   : > { %v8115_v51 = vmul.f32 0.70710677, %v8099_v54  ;;  %v8101_v35 = vadd.f32 %v8093_v36, %v8058_v26  ;;  %v8060_v33 = vpop.f32.mrb[147].mxu0  ;;  %v8107_v28 = vmul.f32 0.5, %v8099_v54 }
0x160c   : > { %v8116_v52 = vmul.f32 0.70710677, %v8100_v8  ;;  %v8102_v29 = vadd.f32 %v8093_v36, %v8060_v33  ;;  %v8108_v4 = vmul.f32 0.5, %v8100_v8 }
0x160d   : > { %9892 = verf.f32 %v8115_v51  ;;  %v8117_v40 = vmul.f32 0.70710677, %v8101_v35  ;;  %v8109_v11 = vmul.f32 0.5, %v8101_v35 }
0x160e   : > { %9894 = verf.f32 %v8116_v52  ;;  %v8118_v44 = vmul.f32 0.70710677, %v8102_v29  ;;  %v8110_v16 = vmul.f32 0.5, %v8102_v29 }
0x160f   : > { %v9885_v9 = vpop.eup %9884  ;;  %9896 = verf.f32 %v8117_v40 }
0x1610   : > { %v9887_v27 = vpop.eup %9886  ;;  %v8127_v3 = vadd.f32 1.0, %v9885_v9  ;;  %9898 = verf.f32 %v8118_v44 }
0x1611   : > { %v9889_v59 = vpop.eup %9888  ;;  %v8128_v30 = vadd.f32 1.0, %v9887_v27 }
0x1612   : > { %v9891_v47 = vpop.eup %9890  ;;  %v8135_v24 = vmul.f32 %v8127_v3, %v8103_v21  ;;  %v8129_v15 = vadd.f32 1.0, %v9889_v59 }
0x1613   : > { %v8136_v55 = vmul.f32 %v8128_v30, %v8104_v48  ;;  %v8130_v5 = vadd.f32 1.0, %v9891_v47 }
0x1614   : > { %8143 = vst [vmem:[%s12276_s28] sm:$0xff] %v8135_v24  ;;  %v8137_v2 = vmul.f32 %v8129_v15, %v8105_v6 }
0x1615   : > { %8144 = vst [vmem:[%s12276_s28 + $0x8] sm:$0xff] %v8136_v55  ;;  %v8138_v45 = vmul.f32 %v8130_v5, %v8106_v57 }
0x1616   : > { %8145 = vst [vmem:[%s12276_s28 + $0x10] sm:$0xff] %v8137_v2 }
0x1617   : > { %v9893_v53 = vpop.eup %9892  ;;  %8146 = vst [vmem:[%s12276_s28 + $0x18] sm:$0xff] %v8138_v45 }
0x1618   : > { %v9895_v18 = vpop.eup %9894  ;;  %v8131_v60 = vadd.f32 1.0, %v9893_v53 }
0x1619   : > { %v9897_v58 = vpop.eup %9896  ;;  %v8132_v39 = vadd.f32 1.0, %v9895_v18 }
0x161a   : > { %v9899_v34 = vpop.eup %9898  ;;  %v8139_v38 = vmul.f32 %v8131_v60, %v8107_v28  ;;  %v8133_v12 = vadd.f32 1.0, %v9897_v58 }
0x161b   : > { %v8140_v42 = vmul.f32 %v8132_v39, %v8108_v4  ;;  %v8134_v61 = vadd.f32 1.0, %v9899_v34 }
0x161c   : > { %8147 = vst [vmem:[%s12276_s28 + $0x20] sm:$0xff] %v8139_v38  ;;  %v8141_v25 = vmul.f32 %v8133_v12, %v8109_v11 }
0x161d   : > { %8148 = vst [vmem:[%s12276_s28 + $0x28] sm:$0xff] %v8140_v42  ;;  %v8142_v41 = vmul.f32 %v8134_v61, %v8110_v16 }
0x161e   : > { %8149 = vst [vmem:[%s12276_s28 + $0x30] sm:$0xff] %v8141_v25 }
0x161f   : > { %8150 = vst [vmem:[%s12276_s28 + $0x38] sm:$0xff] %v8142_v41 }
0x1620 PF: > { %s12484_s27 = sld [smem:[#allocation22_spill]] }
0x1626   : > { %s37_s26 = sadd.s32 1, %s12484_s27  }
0x1627   : > { %p34_p11 = scmp.ge.s32.totalorder %s37_s26, 4  }
0x1629   :  { %36 = sbr.rel (!%p34_p11) target bundleno = 18 (0x12), region = 206 }
0x1630   :  { %8172 = vsyncpa [#allocation4], 1 }
0x1631   :  { %8174 = vsyncpa [#allocation4 + $0x1], 1 }
0x1632   :  { %8175 = vsyncpa [#allocation6], 1 }
0x1633   :  { %8176 = vsyncpa [#allocation9], 1 }
0x1634   :  { %8177 = vsyncpa [#allocation12], 1 }
0x1635   :  { %8178 = vsyncpa [#allocation15], 1 }

</bundles_post_ra>
